<compile_context>
chip_gen: v5e
topology: v5e:2x2
jax: 0.10.0
libtpu: 0.0.40
codegen_flags: <defaults>
</compile_context>

<pallas_src>
import numpy as np
import jax
import jax.numpy as jnp
from jax.experimental import pallas as pl
from jax.experimental.pallas import tpu as pltpu

BN_EPS = 1e-5


# ----------------------------------------------------------------------------
# Pallas kernel: one full ConvBlock (conv -> relu -> batchnorm -> maxpool)
# ----------------------------------------------------------------------------
def convblock_kernel(m_ref, w_ref, b_ref, g_ref, beta_ref, o_ref, y_ref):
    # m_ref    : (n4, K)        stride-2 shifted-plane patches, K = 16*Cin
    # w_ref    : (4, K, Cout)   zero-embedded conv weights, one slab per
    #                           pooling phase (dy, dx)
    # b_ref    : (1, Cout)      conv bias
    # g_ref    : (1, Cout)      BN gamma          beta_ref: (1, Cout) BN beta
    # o_ref    : (n4, Cout)     pooled output, rows ordered (b, i2, j2)
    # y_ref    : (4, n4, Cout)  VMEM scratch: the 4 pooling-phase activations
    n4, _ = m_ref.shape
    C = o_ref.shape[-1]

    m = m_ref[...]                                   # (n4, K), reused 4x
    bias = b_ref[...]                                # (1, C)

    # conv + bias + ReLU: one large-K MXU matmul per 2x2-pooling phase.
    # BN batch statistics (sum / sum-of-squares, f32) are folded into the
    # phase loop -- no second read pass over the scratch for stats.
    s = jnp.zeros((1, C), jnp.float32)
    ss = jnp.zeros((1, C), jnp.float32)
    for p in range(4):                               # phases (0,0)(0,1)(1,0)(1,1)
        y = jnp.dot(m, w_ref[p], preferred_element_type=jnp.float32)
        y = jnp.maximum(y + bias, 0.0)               # conv bias + ReLU
        y_ref[p] = y
        s = s + jnp.sum(y, axis=0, keepdims=True)
        ss = ss + jnp.sum(y * y, axis=0, keepdims=True)

    # BatchNorm2d, training mode: biased variance over all B*H*W positions
    # (= the 4*n4 rows spread over the 4 phase blocks).
    cnt = 4.0 * n4
    mean = s / cnt
    var = jnp.maximum(ss / cnt - mean * mean, 0.0)   # f32 accumulation; clamp

    # Fused BN epilogue: one per-channel scale/shift (hoisted, computed once).
    scale = g_ref[...] * jax.lax.rsqrt(var + BN_EPS)     # (1, C)
    shift = beta_ref[...] - mean * scale                 # (1, C)

    # MaxPool2d(2): the 2x2 window members are exactly the 4 phases at the
    # same (b, i2, j2) row.  Per-phase FMA then max is sign-safe for gamma<0.
    m01 = jnp.maximum(y_ref[0] * scale + shift, y_ref[1] * scale + shift)
    m23 = jnp.maximum(y_ref[2] * scale + shift, y_ref[3] * scale + shift)
    o_ref[...] = jnp.maximum(m01, m23)


def conv_block_pallas(x_nhwc, w_oihw, bias, gamma, beta):
    """One ConvBlock.  x_nhwc: (B, H, W, Cin) f32 -> (B, H//2, W//2, Cout) f32."""
    B, H, W, Cin = x_nhwc.shape
    Cout = w_oihw.shape[0]
    assert H % 2 == 0 and W % 2 == 0
    H2, W2 = H // 2, W // 2
    n4 = B * H2 * W2
    K = 16 * Cin

    # --- wrapper glue (cheap XLA ops on tiny tensors) -----------------------
    # Halo pad, then the stride-2 shifted-plane tensor:
    #   M[b, i2, j2, rho*4*Cin + sigma*Cin + ci] = x_pad[b, 2*i2+rho, 2*j2+sigma, ci]
    xp = jnp.pad(x_nhwc, ((0, 0), (1, 1), (1, 1), (0, 0)))
    shifts = [xp[:, r:r + 2 * H2:2, c:c + 2 * W2:2, :]
              for r in range(4) for c in range(4)]
    M = jnp.concatenate(shifts, axis=-1).reshape(n4, K)   # free row-major collapse

    # Zero-embedded per-phase weights: for phase (dy,dx) and tap (ky,kx) the
    # needed sample sits at (rho, sigma) = (dy+ky, dx+kx), so
    #   Wz[dy,dx, rho, sigma, ci, co] = w[co, ci, rho-dy, sigma-dx]  (0 elsewhere)
    wk = jnp.transpose(w_oihw, (2, 3, 1, 0))               # (3,3,Cin,Cout)
    Wz = jnp.zeros((2, 2, 4, 4, Cin, Cout), jnp.float32)
    for dy in (0, 1):
        for dx in (0, 1):
            Wz = Wz.at[dy, dx, dy:dy + 3, dx:dx + 3].set(wk)
    Wz = Wz.reshape(4, K, Cout)

    out2d = pl.pallas_call(
        convblock_kernel,
        out_shape=jax.ShapeDtypeStruct((n4, Cout), jnp.float32),
        grid=(1,),
        in_specs=[pl.BlockSpec((n4, K), lambda i: (0, 0)),
                  pl.BlockSpec((4, K, Cout), lambda i: (0, 0, 0)),
                  pl.BlockSpec((1, Cout), lambda i: (0, 0)),
                  pl.BlockSpec((1, Cout), lambda i: (0, 0)),
                  pl.BlockSpec((1, Cout), lambda i: (0, 0))],
        out_specs=pl.BlockSpec((n4, Cout), lambda i: (0, 0)),
        scratch_shapes=[pltpu.VMEM((4, n4, Cout), jnp.float32)],
        compiler_params=pltpu.CompilerParams(
            dimension_semantics=("arbitrary",),
            vmem_limit_bytes=32 * 1024 * 1024),
    )(M, Wz, bias.reshape(1, Cout), gamma.reshape(1, Cout),
      beta.reshape(1, Cout))

    return out2d.reshape(B, H2, W2, Cout)


@jax.jit
def dc_encoder_pallas(x_nchw, params):
    """DCEncoder.forward: chain of ConvBlocks, then 'B C H W -> B (C H W)'."""
    x = jnp.transpose(x_nchw, (0, 2, 3, 1))               # NCHW -> NHWC
    for (w, b, g, bb) in params:
        x = conv_block_pallas(x, w, b, g, bb)
    x = jnp.transpose(x, (0, 3, 1, 2))                    # NHWC -> NCHW
    return x.reshape(x.shape[0], -1)


# ----------------------------------------------------------------------------
# Pure-JAX reference (matches PyTorch forward semantics, training-mode BN)
# ----------------------------------------------------------------------------
def ref_conv_block(x_nchw, w, b, gamma, beta):
    y = jax.lax.conv_general_dilated(
        x_nchw, w, window_strides=(1, 1), padding=((1, 1), (1, 1)),
        dimension_numbers=("NCHW", "OIHW", "NCHW"),
        precision=jax.lax.Precision.HIGHEST)
    y = jnp.maximum(y + b[None, :, None, None], 0.0)
    mean = jnp.mean(y, axis=(0, 2, 3), keepdims=True)
    var = jnp.mean((y - mean) ** 2, axis=(0, 2, 3), keepdims=True)
    y = (y - mean) / jnp.sqrt(var + BN_EPS)
    y = y * gamma[None, :, None, None] + beta[None, :, None, None]
    y = jax.lax.reduce_window(y, -jnp.inf, jax.lax.max,
                              (1, 1, 2, 2), (1, 1, 2, 2), "VALID")
    return y


def ref_dc_encoder(x_nchw, params):
    x = x_nchw
    for (w, b, g, bb) in params:
        x = ref_conv_block(x, w, b, g, bb)
    return x.reshape(x.shape[0], -1)


# ----------------------------------------------------------------------------
if __name__ == "__main__":
    # Small shapes consistent with the module: filters=[4, 8, 16] (two ConvBlocks),
    # 32x32 input.
    B, H, W = 2, 32, 32
    filters = [4, 8, 16]

    key = jax.random.PRNGKey(0)
    key, kx = jax.random.split(key)
    x = jax.random.normal(kx, (B, filters[0], H, W), jnp.float32)

    # Deterministic parameter init (PyTorch shapes; BN affine defaults 1/0).
    params = []
    for fi, fo in zip(filters[:-1], filters[1:]):
        key, kw, kb = jax.random.split(key, 3)
        w = jax.random.normal(kw, (fo, fi, 3, 3), jnp.float32) / np.sqrt(9.0 * fi)
        b = 0.1 * jax.random.normal(kb, (fo,), jnp.float32)
        gamma = jnp.ones((fo,), jnp.float32)
        beta = jnp.zeros((fo,), jnp.float32)
        params.append((w, b, gamma, beta))

    out = jax.block_until_ready(dc_encoder_pallas(x, params))

    expected_dim = filters[-1] * (H // 2 ** (len(filters) - 1)) \
        * (W // 2 ** (len(filters) - 1))
    assert out.shape == (B, expected_dim), out.shape

    ref = jax.block_until_ready(ref_dc_encoder(x, params))
    np.testing.assert_allclose(np.asarray(out), np.asarray(ref),
                               atol=3e-2, rtol=3e-2)

    print("KERNEL_OK")
</pallas_src>

<mosaic_0001>
module attributes {stable_mosaic.version = 11 : i64} {
  func.func @convblock_kernel(%arg0: i32, %arg1: memref<512x64xf32, #tpu.memory_space<vmem>>, %arg2: memref<4x64x8xf32, #tpu.memory_space<vmem>>, %arg3: memref<1x8xf32, #tpu.memory_space<vmem>>, %arg4: memref<1x8xf32, #tpu.memory_space<vmem>>, %arg5: memref<1x8xf32, #tpu.memory_space<vmem>>, %arg6: memref<512x8xf32, #tpu.memory_space<vmem>>, %arg7: memref<4x512x8xf32, #tpu.memory_space<vmem>>) attributes {dimension_semantics = [#tpu.dimension_semantics<arbitrary>], iteration_bounds = array<i64: 1>, scalar_prefetch = 0 : i64, scratch_operands = 1 : i64, tpu.core_type = #tpu.core_type<tc>, window_params = [{pipeline_mode = #tpu.pipeline_mode<synchronous>, transform_indices = @transform_0, window_bounds = array<i64: 512, 64>}, {pipeline_mode = #tpu.pipeline_mode<synchronous>, transform_indices = @transform_1, window_bounds = array<i64: 4, 64, 8>}, {pipeline_mode = #tpu.pipeline_mode<synchronous>, transform_indices = @transform_2, window_bounds = array<i64: 1, 8>}, {pipeline_mode = #tpu.pipeline_mode<synchronous>, transform_indices = @transform_3, window_bounds = array<i64: 1, 8>}, {pipeline_mode = #tpu.pipeline_mode<synchronous>, transform_indices = @transform_4, window_bounds = array<i64: 1, 8>}, {pipeline_mode = #tpu.pipeline_mode<synchronous>, transform_indices = @transform_5, window_bounds = array<i64: 512, 8>}]} {
    %c0 = arith.constant 0 : index
    %c0_0 = arith.constant 0 : index
    %0 = vector.load %arg1[%c0, %c0_0] : memref<512x64xf32, #tpu.memory_space<vmem>>, vector<512x64xf32>
    %c0_1 = arith.constant 0 : index
    %c0_2 = arith.constant 0 : index
    %1 = vector.load %arg3[%c0_1, %c0_2] : memref<1x8xf32, #tpu.memory_space<vmem>>, vector<1x8xf32>
    %cst = arith.constant 0.000000e+00 : f32
    %2 = vector.broadcast %cst : f32 to vector<1x8xf32>
    %cst_3 = arith.constant 0.000000e+00 : f32
    %3 = vector.broadcast %cst_3 : f32 to vector<1x8xf32>
    %c0_4 = arith.constant 0 : index
    %c0_5 = arith.constant 0 : index
    %c0_6 = arith.constant 0 : index
    %4 = vector.load %arg2[%c0_4, %c0_5, %c0_6] : memref<4x64x8xf32, #tpu.memory_space<vmem>>, vector<1x64x8xf32>
    %5 = vector.shape_cast %4 : vector<1x64x8xf32> to vector<64x8xf32>
    %cst_7 = arith.constant dense<0.000000e+00> : vector<512x8xf32>
    %6 = tpu.matmul %0, %5, %cst_7 {dimension_numbers = #tpu.dot_dimension_numbers<[1], [0], [0], [1], [0, 0, 1, 1], [], []>} : vector<512x64xf32>, vector<64x8xf32>, vector<512x8xf32> -> vector<512x8xf32>
    %7 = vector.broadcast %1 : vector<1x8xf32> to vector<512x8xf32>
    %8 = arith.addf %6, %7 : vector<512x8xf32>
    %cst_8 = arith.constant 0.000000e+00 : f32
    %9 = vector.broadcast %cst_8 : f32 to vector<512x8xf32>
    %10 = arith.maximumf %8, %9 : vector<512x8xf32>
    %c0_9 = arith.constant 0 : index
    %c0_10 = arith.constant 0 : index
    %c0_11 = arith.constant 0 : index
    %11 = vector.load %arg7[%c0_9, %c0_10, %c0_11] : memref<4x512x8xf32, #tpu.memory_space<vmem>>, vector<1x512x8xf32>
    %12 = vector.shape_cast %11 : vector<1x512x8xf32> to vector<512x8xf32>
    %13 = vector.shape_cast %10 : vector<512x8xf32> to vector<1x512x8xf32>
    tpu.vector_store %arg7[%c0_9, %c0_10, %c0_11], %13 {strides = array<i32>} : memref<4x512x8xf32, #tpu.memory_space<vmem>>, vector<1x512x8xf32>,
    %cst_12 = arith.constant dense<0.000000e+00> : vector<8xf32>
    %14 = vector.multi_reduction <add>, %10, %cst_12 [0] : vector<512x8xf32> to vector<8xf32>
    %15 = vector.shape_cast %14 : vector<8xf32> to vector<1x8xf32>
    %16 = arith.addf %2, %15 : vector<1x8xf32>
    %17 = arith.mulf %10, %10 : vector<512x8xf32>
    %cst_13 = arith.constant dense<0.000000e+00> : vector<8xf32>
    %18 = vector.multi_reduction <add>, %17, %cst_13 [0] : vector<512x8xf32> to vector<8xf32>
    %19 = vector.shape_cast %18 : vector<8xf32> to vector<1x8xf32>
    %20 = arith.addf %3, %19 : vector<1x8xf32>
    %c1 = arith.constant 1 : index
    %c0_14 = arith.constant 0 : index
    %c0_15 = arith.constant 0 : index
    %21 = vector.load %arg2[%c1, %c0_14, %c0_15] : memref<4x64x8xf32, #tpu.memory_space<vmem>>, vector<1x64x8xf32>
    %22 = vector.shape_cast %21 : vector<1x64x8xf32> to vector<64x8xf32>
    %cst_16 = arith.constant dense<0.000000e+00> : vector<512x8xf32>
    %23 = tpu.matmul %0, %22, %cst_16 {dimension_numbers = #tpu.dot_dimension_numbers<[1], [0], [0], [1], [0, 0, 1, 1], [], []>} : vector<512x64xf32>, vector<64x8xf32>, vector<512x8xf32> -> vector<512x8xf32>
    %24 = vector.broadcast %1 : vector<1x8xf32> to vector<512x8xf32>
    %25 = arith.addf %23, %24 : vector<512x8xf32>
    %cst_17 = arith.constant 0.000000e+00 : f32
    %26 = vector.broadcast %cst_17 : f32 to vector<512x8xf32>
    %27 = arith.maximumf %25, %26 : vector<512x8xf32>
    %c1_18 = arith.constant 1 : index
    %c0_19 = arith.constant 0 : index
    %c0_20 = arith.constant 0 : index
    %28 = vector.load %arg7[%c1_18, %c0_19, %c0_20] : memref<4x512x8xf32, #tpu.memory_space<vmem>>, vector<1x512x8xf32>
    %29 = vector.shape_cast %28 : vector<1x512x8xf32> to vector<512x8xf32>
    %30 = vector.shape_cast %27 : vector<512x8xf32> to vector<1x512x8xf32>
    tpu.vector_store %arg7[%c1_18, %c0_19, %c0_20], %30 {strides = array<i32>} : memref<4x512x8xf32, #tpu.memory_space<vmem>>, vector<1x512x8xf32>,
    %cst_21 = arith.constant dense<0.000000e+00> : vector<8xf32>
    %31 = vector.multi_reduction <add>, %27, %cst_21 [0] : vector<512x8xf32> to vector<8xf32>
    %32 = vector.shape_cast %31 : vector<8xf32> to vector<1x8xf32>
    %33 = arith.addf %16, %32 : vector<1x8xf32>
    %34 = arith.mulf %27, %27 : vector<512x8xf32>
    %cst_22 = arith.constant dense<0.000000e+00> : vector<8xf32>
    %35 = vector.multi_reduction <add>, %34, %cst_22 [0] : vector<512x8xf32> to vector<8xf32>
    %36 = vector.shape_cast %35 : vector<8xf32> to vector<1x8xf32>
    %37 = arith.addf %20, %36 : vector<1x8xf32>
    %c2 = arith.constant 2 : index
    %c0_23 = arith.constant 0 : index
    %c0_24 = arith.constant 0 : index
    %38 = vector.load %arg2[%c2, %c0_23, %c0_24] : memref<4x64x8xf32, #tpu.memory_space<vmem>>, vector<1x64x8xf32>
    %39 = vector.shape_cast %38 : vector<1x64x8xf32> to vector<64x8xf32>
    %cst_25 = arith.constant dense<0.000000e+00> : vector<512x8xf32>
    %40 = tpu.matmul %0, %39, %cst_25 {dimension_numbers = #tpu.dot_dimension_numbers<[1], [0], [0], [1], [0, 0, 1, 1], [], []>} : vector<512x64xf32>, vector<64x8xf32>, vector<512x8xf32> -> vector<512x8xf32>
    %41 = vector.broadcast %1 : vector<1x8xf32> to vector<512x8xf32>
    %42 = arith.addf %40, %41 : vector<512x8xf32>
    %cst_26 = arith.constant 0.000000e+00 : f32
    %43 = vector.broadcast %cst_26 : f32 to vector<512x8xf32>
    %44 = arith.maximumf %42, %43 : vector<512x8xf32>
    %c2_27 = arith.constant 2 : index
    %c0_28 = arith.constant 0 : index
    %c0_29 = arith.constant 0 : index
    %45 = vector.load %arg7[%c2_27, %c0_28, %c0_29] : memref<4x512x8xf32, #tpu.memory_space<vmem>>, vector<1x512x8xf32>
    %46 = vector.shape_cast %45 : vector<1x512x8xf32> to vector<512x8xf32>
    %47 = vector.shape_cast %44 : vector<512x8xf32> to vector<1x512x8xf32>
    tpu.vector_store %arg7[%c2_27, %c0_28, %c0_29], %47 {strides = array<i32>} : memref<4x512x8xf32, #tpu.memory_space<vmem>>, vector<1x512x8xf32>,
    %cst_30 = arith.constant dense<0.000000e+00> : vector<8xf32>
    %48 = vector.multi_reduction <add>, %44, %cst_30 [0] : vector<512x8xf32> to vector<8xf32>
    %49 = vector.shape_cast %48 : vector<8xf32> to vector<1x8xf32>
    %50 = arith.addf %33, %49 : vector<1x8xf32>
    %51 = arith.mulf %44, %44 : vector<512x8xf32>
    %cst_31 = arith.constant dense<0.000000e+00> : vector<8xf32>
    %52 = vector.multi_reduction <add>, %51, %cst_31 [0] : vector<512x8xf32> to vector<8xf32>
    %53 = vector.shape_cast %52 : vector<8xf32> to vector<1x8xf32>
    %54 = arith.addf %37, %53 : vector<1x8xf32>
    %c3 = arith.constant 3 : index
    %c0_32 = arith.constant 0 : index
    %c0_33 = arith.constant 0 : index
    %55 = vector.load %arg2[%c3, %c0_32, %c0_33] : memref<4x64x8xf32, #tpu.memory_space<vmem>>, vector<1x64x8xf32>
    %56 = vector.shape_cast %55 : vector<1x64x8xf32> to vector<64x8xf32>
    %cst_34 = arith.constant dense<0.000000e+00> : vector<512x8xf32>
    %57 = tpu.matmul %0, %56, %cst_34 {dimension_numbers = #tpu.dot_dimension_numbers<[1], [0], [0], [1], [0, 0, 1, 1], [], []>} : vector<512x64xf32>, vector<64x8xf32>, vector<512x8xf32> -> vector<512x8xf32>
    %58 = vector.broadcast %1 : vector<1x8xf32> to vector<512x8xf32>
    %59 = arith.addf %57, %58 : vector<512x8xf32>
    %cst_35 = arith.constant 0.000000e+00 : f32
    %60 = vector.broadcast %cst_35 : f32 to vector<512x8xf32>
    %61 = arith.maximumf %59, %60 : vector<512x8xf32>
    %c3_36 = arith.constant 3 : index
    %c0_37 = arith.constant 0 : index
    %c0_38 = arith.constant 0 : index
    %62 = vector.load %arg7[%c3_36, %c0_37, %c0_38] : memref<4x512x8xf32, #tpu.memory_space<vmem>>, vector<1x512x8xf32>
    %63 = vector.shape_cast %62 : vector<1x512x8xf32> to vector<512x8xf32>
    %64 = vector.shape_cast %61 : vector<512x8xf32> to vector<1x512x8xf32>
    tpu.vector_store %arg7[%c3_36, %c0_37, %c0_38], %64 {strides = array<i32>} : memref<4x512x8xf32, #tpu.memory_space<vmem>>, vector<1x512x8xf32>,
    %cst_39 = arith.constant dense<0.000000e+00> : vector<8xf32>
    %65 = vector.multi_reduction <add>, %61, %cst_39 [0] : vector<512x8xf32> to vector<8xf32>
    %66 = vector.shape_cast %65 : vector<8xf32> to vector<1x8xf32>
    %67 = arith.addf %50, %66 : vector<1x8xf32>
    %68 = arith.mulf %61, %61 : vector<512x8xf32>
    %cst_40 = arith.constant dense<0.000000e+00> : vector<8xf32>
    %69 = vector.multi_reduction <add>, %68, %cst_40 [0] : vector<512x8xf32> to vector<8xf32>
    %70 = vector.shape_cast %69 : vector<8xf32> to vector<1x8xf32>
    %71 = arith.addf %54, %70 : vector<1x8xf32>
    %cst_41 = arith.constant 2.048000e+03 : f32
    %72 = vector.broadcast %cst_41 : f32 to vector<1x8xf32>
    %73 = arith.divf %67, %72 : vector<1x8xf32>
    %cst_42 = arith.constant 2.048000e+03 : f32
    %74 = vector.broadcast %cst_42 : f32 to vector<1x8xf32>
    %75 = arith.divf %71, %74 : vector<1x8xf32>
    %76 = arith.mulf %73, %73 : vector<1x8xf32>
    %77 = arith.subf %75, %76 : vector<1x8xf32>
    %cst_43 = arith.constant 0.000000e+00 : f32
    %78 = vector.broadcast %cst_43 : f32 to vector<1x8xf32>
    %79 = arith.maximumf %77, %78 : vector<1x8xf32>
    %c0_44 = arith.constant 0 : index
    %c0_45 = arith.constant 0 : index
    %80 = vector.load %arg4[%c0_44, %c0_45] : memref<1x8xf32, #tpu.memory_space<vmem>>, vector<1x8xf32>
    %cst_46 = arith.constant 9.99999974E-6 : f32
    %81 = vector.broadcast %cst_46 : f32 to vector<1x8xf32>
    %82 = arith.addf %79, %81 : vector<1x8xf32>
    %83 = math.rsqrt %82 : vector<1x8xf32>
    %84 = arith.mulf %80, %83 : vector<1x8xf32>
    %c0_47 = arith.constant 0 : index
    %c0_48 = arith.constant 0 : index
    %85 = vector.load %arg5[%c0_47, %c0_48] : memref<1x8xf32, #tpu.memory_space<vmem>>, vector<1x8xf32>
    %86 = arith.mulf %73, %84 : vector<1x8xf32>
    %87 = arith.subf %85, %86 : vector<1x8xf32>
    %c0_49 = arith.constant 0 : index
    %c0_50 = arith.constant 0 : index
    %c0_51 = arith.constant 0 : index
    %88 = vector.load %arg7[%c0_49, %c0_50, %c0_51] : memref<4x512x8xf32, #tpu.memory_space<vmem>>, vector<1x512x8xf32>
    %89 = vector.shape_cast %88 : vector<1x512x8xf32> to vector<512x8xf32>
    %90 = vector.broadcast %84 : vector<1x8xf32> to vector<512x8xf32>
    %91 = arith.mulf %89, %90 : vector<512x8xf32>
    %92 = vector.broadcast %87 : vector<1x8xf32> to vector<512x8xf32>
    %93 = arith.addf %91, %92 : vector<512x8xf32>
    %c1_52 = arith.constant 1 : index
    %c0_53 = arith.constant 0 : index
    %c0_54 = arith.constant 0 : index
    %94 = vector.load %arg7[%c1_52, %c0_53, %c0_54] : memref<4x512x8xf32, #tpu.memory_space<vmem>>, vector<1x512x8xf32>
    %95 = vector.shape_cast %94 : vector<1x512x8xf32> to vector<512x8xf32>
    %96 = vector.broadcast %84 : vector<1x8xf32> to vector<512x8xf32>
    %97 = arith.mulf %95, %96 : vector<512x8xf32>
    %98 = vector.broadcast %87 : vector<1x8xf32> to vector<512x8xf32>
    %99 = arith.addf %97, %98 : vector<512x8xf32>
    %100 = arith.maximumf %93, %99 : vector<512x8xf32>
    %c2_55 = arith.constant 2 : index
    %c0_56 = arith.constant 0 : index
    %c0_57 = arith.constant 0 : index
    %101 = vector.load %arg7[%c2_55, %c0_56, %c0_57] : memref<4x512x8xf32, #tpu.memory_space<vmem>>, vector<1x512x8xf32>
    %102 = vector.shape_cast %101 : vector<1x512x8xf32> to vector<512x8xf32>
    %103 = vector.broadcast %84 : vector<1x8xf32> to vector<512x8xf32>
    %104 = arith.mulf %102, %103 : vector<512x8xf32>
    %105 = vector.broadcast %87 : vector<1x8xf32> to vector<512x8xf32>
    %106 = arith.addf %104, %105 : vector<512x8xf32>
    %c3_58 = arith.constant 3 : index
    %c0_59 = arith.constant 0 : index
    %c0_60 = arith.constant 0 : index
    %107 = vector.load %arg7[%c3_58, %c0_59, %c0_60] : memref<4x512x8xf32, #tpu.memory_space<vmem>>, vector<1x512x8xf32>
    %108 = vector.shape_cast %107 : vector<1x512x8xf32> to vector<512x8xf32>
    %109 = vector.broadcast %84 : vector<1x8xf32> to vector<512x8xf32>
    %110 = arith.mulf %108, %109 : vector<512x8xf32>
    %111 = vector.broadcast %87 : vector<1x8xf32> to vector<512x8xf32>
    %112 = arith.addf %110, %111 : vector<512x8xf32>
    %113 = arith.maximumf %106, %112 : vector<512x8xf32>
    %114 = arith.maximumf %100, %113 : vector<512x8xf32>
    %c0_61 = arith.constant 0 : index
    %c0_62 = arith.constant 0 : index
    %115 = vector.load %arg6[%c0_61, %c0_62] : memref<512x8xf32, #tpu.memory_space<vmem>>, vector<512x8xf32>
    tpu.vector_store %arg6[%c0_61, %c0_62], %114 {strides = array<i32>} : memref<512x8xf32, #tpu.memory_space<vmem>>, vector<512x8xf32>,
    return
  }
  func.func @transform_0(%arg0: i32) -> (i32, i32) {
    %c0_i32 = arith.constant 0 : i32
    %c0_i32_0 = arith.constant 0 : i32
    %c0_i32_1 = arith.constant 0 : i32
    return %c0_i32, %c0_i32_0 : i32, i32
  }
  func.func @transform_1(%arg0: i32) -> (i32, i32, i32) {
    %c0_i32 = arith.constant 0 : i32
    %c0_i32_0 = arith.constant 0 : i32
    %c0_i32_1 = arith.constant 0 : i32
    %c0_i32_2 = arith.constant 0 : i32
    return %c0_i32, %c0_i32_0, %c0_i32_1 : i32, i32, i32
  }
  func.func @transform_2(%arg0: i32) -> (i32, i32) {
    %c0_i32 = arith.constant 0 : i32
    %c0_i32_0 = arith.constant 0 : i32
    %c0_i32_1 = arith.constant 0 : i32
    return %c0_i32, %c0_i32_0 : i32, i32
  }
  func.func @transform_3(%arg0: i32) -> (i32, i32) {
    %c0_i32 = arith.constant 0 : i32
    %c0_i32_0 = arith.constant 0 : i32
    %c0_i32_1 = arith.constant 0 : i32
    return %c0_i32, %c0_i32_0 : i32, i32
  }
  func.func @transform_4(%arg0: i32) -> (i32, i32) {
    %c0_i32 = arith.constant 0 : i32
    %c0_i32_0 = arith.constant 0 : i32
    %c0_i32_1 = arith.constant 0 : i32
    return %c0_i32, %c0_i32_0 : i32, i32
  }
  func.func @transform_5(%arg0: i32) -> (i32, i32) {
    %c0_i32 = arith.constant 0 : i32
    %c0_i32_0 = arith.constant 0 : i32
    %c0_i32_1 = arith.constant 0 : i32
    return %c0_i32, %c0_i32_0 : i32, i32
  }
}

module attributes {stable_mosaic.version = 11 : i64} {
  func.func @convblock_kernel(%arg0: i32, %arg1: memref<128x128xf32, #tpu.memory_space<vmem>>, %arg2: memref<4x128x16xf32, #tpu.memory_space<vmem>>, %arg3: memref<1x16xf32, #tpu.memory_space<vmem>>, %arg4: memref<1x16xf32, #tpu.memory_space<vmem>>, %arg5: memref<1x16xf32, #tpu.memory_space<vmem>>, %arg6: memref<128x16xf32, #tpu.memory_space<vmem>>, %arg7: memref<4x128x16xf32, #tpu.memory_space<vmem>>) attributes {dimension_semantics = [#tpu.dimension_semantics<arbitrary>], iteration_bounds = array<i64: 1>, scalar_prefetch = 0 : i64, scratch_operands = 1 : i64, tpu.core_type = #tpu.core_type<tc>, window_params = [{pipeline_mode = #tpu.pipeline_mode<synchronous>, transform_indices = @transform_0, window_bounds = array<i64: 128, 128>}, {pipeline_mode = #tpu.pipeline_mode<synchronous>, transform_indices = @transform_1, window_bounds = array<i64: 4, 128, 16>}, {pipeline_mode = #tpu.pipeline_mode<synchronous>, transform_indices = @transform_2, window_bounds = array<i64: 1, 16>}, {pipeline_mode = #tpu.pipeline_mode<synchronous>, transform_indices = @transform_3, window_bounds = array<i64: 1, 16>}, {pipeline_mode = #tpu.pipeline_mode<synchronous>, transform_indices = @transform_4, window_bounds = array<i64: 1, 16>}, {pipeline_mode = #tpu.pipeline_mode<synchronous>, transform_indices = @transform_5, window_bounds = array<i64: 128, 16>}]} {
    %c0 = arith.constant 0 : index
    %c0_0 = arith.constant 0 : index
    %0 = vector.load %arg1[%c0, %c0_0] : memref<128x128xf32, #tpu.memory_space<vmem>>, vector<128x128xf32>
    %c0_1 = arith.constant 0 : index
    %c0_2 = arith.constant 0 : index
    %1 = vector.load %arg3[%c0_1, %c0_2] : memref<1x16xf32, #tpu.memory_space<vmem>>, vector<1x16xf32>
    %cst = arith.constant 0.000000e+00 : f32
    %2 = vector.broadcast %cst : f32 to vector<1x16xf32>
    %cst_3 = arith.constant 0.000000e+00 : f32
    %3 = vector.broadcast %cst_3 : f32 to vector<1x16xf32>
    %c0_4 = arith.constant 0 : index
    %c0_5 = arith.constant 0 : index
    %c0_6 = arith.constant 0 : index
    %4 = vector.load %arg2[%c0_4, %c0_5, %c0_6] : memref<4x128x16xf32, #tpu.memory_space<vmem>>, vector<1x128x16xf32>
    %5 = vector.shape_cast %4 : vector<1x128x16xf32> to vector<128x16xf32>
    %cst_7 = arith.constant dense<0.000000e+00> : vector<128x16xf32>
    %6 = tpu.matmul %0, %5, %cst_7 {dimension_numbers = #tpu.dot_dimension_numbers<[1], [0], [0], [1], [0, 0, 1, 1], [], []>} : vector<128x128xf32>, vector<128x16xf32>, vector<128x16xf32> -> vector<128x16xf32>
    %7 = vector.broadcast %1 : vector<1x16xf32> to vector<128x16xf32>
    %8 = arith.addf %6, %7 : vector<128x16xf32>
    %cst_8 = arith.constant 0.000000e+00 : f32
    %9 = vector.broadcast %cst_8 : f32 to vector<128x16xf32>
    %10 = arith.maximumf %8, %9 : vector<128x16xf32>
    %c0_9 = arith.constant 0 : index
    %c0_10 = arith.constant 0 : index
    %c0_11 = arith.constant 0 : index
    %11 = vector.load %arg7[%c0_9, %c0_10, %c0_11] : memref<4x128x16xf32, #tpu.memory_space<vmem>>, vector<1x128x16xf32>
    %12 = vector.shape_cast %11 : vector<1x128x16xf32> to vector<128x16xf32>
    %13 = vector.shape_cast %10 : vector<128x16xf32> to vector<1x128x16xf32>
    tpu.vector_store %arg7[%c0_9, %c0_10, %c0_11], %13 {strides = array<i32>} : memref<4x128x16xf32, #tpu.memory_space<vmem>>, vector<1x128x16xf32>,
    %cst_12 = arith.constant dense<0.000000e+00> : vector<16xf32>
    %14 = vector.multi_reduction <add>, %10, %cst_12 [0] : vector<128x16xf32> to vector<16xf32>
    %15 = vector.shape_cast %14 : vector<16xf32> to vector<1x16xf32>
    %16 = arith.addf %2, %15 : vector<1x16xf32>
    %17 = arith.mulf %10, %10 : vector<128x16xf32>
    %cst_13 = arith.constant dense<0.000000e+00> : vector<16xf32>
    %18 = vector.multi_reduction <add>, %17, %cst_13 [0] : vector<128x16xf32> to vector<16xf32>
    %19 = vector.shape_cast %18 : vector<16xf32> to vector<1x16xf32>
    %20 = arith.addf %3, %19 : vector<1x16xf32>
    %c1 = arith.constant 1 : index
    %c0_14 = arith.constant 0 : index
    %c0_15 = arith.constant 0 : index
    %21 = vector.load %arg2[%c1, %c0_14, %c0_15] : memref<4x128x16xf32, #tpu.memory_space<vmem>>, vector<1x128x16xf32>
    %22 = vector.shape_cast %21 : vector<1x128x16xf32> to vector<128x16xf32>
    %cst_16 = arith.constant dense<0.000000e+00> : vector<128x16xf32>
    %23 = tpu.matmul %0, %22, %cst_16 {dimension_numbers = #tpu.dot_dimension_numbers<[1], [0], [0], [1], [0, 0, 1, 1], [], []>} : vector<128x128xf32>, vector<128x16xf32>, vector<128x16xf32> -> vector<128x16xf32>
    %24 = vector.broadcast %1 : vector<1x16xf32> to vector<128x16xf32>
    %25 = arith.addf %23, %24 : vector<128x16xf32>
    %cst_17 = arith.constant 0.000000e+00 : f32
    %26 = vector.broadcast %cst_17 : f32 to vector<128x16xf32>
    %27 = arith.maximumf %25, %26 : vector<128x16xf32>
    %c1_18 = arith.constant 1 : index
    %c0_19 = arith.constant 0 : index
    %c0_20 = arith.constant 0 : index
    %28 = vector.load %arg7[%c1_18, %c0_19, %c0_20] : memref<4x128x16xf32, #tpu.memory_space<vmem>>, vector<1x128x16xf32>
    %29 = vector.shape_cast %28 : vector<1x128x16xf32> to vector<128x16xf32>
    %30 = vector.shape_cast %27 : vector<128x16xf32> to vector<1x128x16xf32>
    tpu.vector_store %arg7[%c1_18, %c0_19, %c0_20], %30 {strides = array<i32>} : memref<4x128x16xf32, #tpu.memory_space<vmem>>, vector<1x128x16xf32>,
    %cst_21 = arith.constant dense<0.000000e+00> : vector<16xf32>
    %31 = vector.multi_reduction <add>, %27, %cst_21 [0] : vector<128x16xf32> to vector<16xf32>
    %32 = vector.shape_cast %31 : vector<16xf32> to vector<1x16xf32>
    %33 = arith.addf %16, %32 : vector<1x16xf32>
    %34 = arith.mulf %27, %27 : vector<128x16xf32>
    %cst_22 = arith.constant dense<0.000000e+00> : vector<16xf32>
    %35 = vector.multi_reduction <add>, %34, %cst_22 [0] : vector<128x16xf32> to vector<16xf32>
    %36 = vector.shape_cast %35 : vector<16xf32> to vector<1x16xf32>
    %37 = arith.addf %20, %36 : vector<1x16xf32>
    %c2 = arith.constant 2 : index
    %c0_23 = arith.constant 0 : index
    %c0_24 = arith.constant 0 : index
    %38 = vector.load %arg2[%c2, %c0_23, %c0_24] : memref<4x128x16xf32, #tpu.memory_space<vmem>>, vector<1x128x16xf32>
    %39 = vector.shape_cast %38 : vector<1x128x16xf32> to vector<128x16xf32>
    %cst_25 = arith.constant dense<0.000000e+00> : vector<128x16xf32>
    %40 = tpu.matmul %0, %39, %cst_25 {dimension_numbers = #tpu.dot_dimension_numbers<[1], [0], [0], [1], [0, 0, 1, 1], [], []>} : vector<128x128xf32>, vector<128x16xf32>, vector<128x16xf32> -> vector<128x16xf32>
    %41 = vector.broadcast %1 : vector<1x16xf32> to vector<128x16xf32>
    %42 = arith.addf %40, %41 : vector<128x16xf32>
    %cst_26 = arith.constant 0.000000e+00 : f32
    %43 = vector.broadcast %cst_26 : f32 to vector<128x16xf32>
    %44 = arith.maximumf %42, %43 : vector<128x16xf32>
    %c2_27 = arith.constant 2 : index
    %c0_28 = arith.constant 0 : index
    %c0_29 = arith.constant 0 : index
    %45 = vector.load %arg7[%c2_27, %c0_28, %c0_29] : memref<4x128x16xf32, #tpu.memory_space<vmem>>, vector<1x128x16xf32>
    %46 = vector.shape_cast %45 : vector<1x128x16xf32> to vector<128x16xf32>
    %47 = vector.shape_cast %44 : vector<128x16xf32> to vector<1x128x16xf32>
    tpu.vector_store %arg7[%c2_27, %c0_28, %c0_29], %47 {strides = array<i32>} : memref<4x128x16xf32, #tpu.memory_space<vmem>>, vector<1x128x16xf32>,
    %cst_30 = arith.constant dense<0.000000e+00> : vector<16xf32>
    %48 = vector.multi_reduction <add>, %44, %cst_30 [0] : vector<128x16xf32> to vector<16xf32>
    %49 = vector.shape_cast %48 : vector<16xf32> to vector<1x16xf32>
    %50 = arith.addf %33, %49 : vector<1x16xf32>
    %51 = arith.mulf %44, %44 : vector<128x16xf32>
    %cst_31 = arith.constant dense<0.000000e+00> : vector<16xf32>
    %52 = vector.multi_reduction <add>, %51, %cst_31 [0] : vector<128x16xf32> to vector<16xf32>
    %53 = vector.shape_cast %52 : vector<16xf32> to vector<1x16xf32>
    %54 = arith.addf %37, %53 : vector<1x16xf32>
    %c3 = arith.constant 3 : index
    %c0_32 = arith.constant 0 : index
    %c0_33 = arith.constant 0 : index
    %55 = vector.load %arg2[%c3, %c0_32, %c0_33] : memref<4x128x16xf32, #tpu.memory_space<vmem>>, vector<1x128x16xf32>
    %56 = vector.shape_cast %55 : vector<1x128x16xf32> to vector<128x16xf32>
    %cst_34 = arith.constant dense<0.000000e+00> : vector<128x16xf32>
    %57 = tpu.matmul %0, %56, %cst_34 {dimension_numbers = #tpu.dot_dimension_numbers<[1], [0], [0], [1], [0, 0, 1, 1], [], []>} : vector<128x128xf32>, vector<128x16xf32>, vector<128x16xf32> -> vector<128x16xf32>
    %58 = vector.broadcast %1 : vector<1x16xf32> to vector<128x16xf32>
    %59 = arith.addf %57, %58 : vector<128x16xf32>
    %cst_35 = arith.constant 0.000000e+00 : f32
    %60 = vector.broadcast %cst_35 : f32 to vector<128x16xf32>
    %61 = arith.maximumf %59, %60 : vector<128x16xf32>
    %c3_36 = arith.constant 3 : index
    %c0_37 = arith.constant 0 : index
    %c0_38 = arith.constant 0 : index
    %62 = vector.load %arg7[%c3_36, %c0_37, %c0_38] : memref<4x128x16xf32, #tpu.memory_space<vmem>>, vector<1x128x16xf32>
    %63 = vector.shape_cast %62 : vector<1x128x16xf32> to vector<128x16xf32>
    %64 = vector.shape_cast %61 : vector<128x16xf32> to vector<1x128x16xf32>
    tpu.vector_store %arg7[%c3_36, %c0_37, %c0_38], %64 {strides = array<i32>} : memref<4x128x16xf32, #tpu.memory_space<vmem>>, vector<1x128x16xf32>,
    %cst_39 = arith.constant dense<0.000000e+00> : vector<16xf32>
    %65 = vector.multi_reduction <add>, %61, %cst_39 [0] : vector<128x16xf32> to vector<16xf32>
    %66 = vector.shape_cast %65 : vector<16xf32> to vector<1x16xf32>
    %67 = arith.addf %50, %66 : vector<1x16xf32>
    %68 = arith.mulf %61, %61 : vector<128x16xf32>
    %cst_40 = arith.constant dense<0.000000e+00> : vector<16xf32>
    %69 = vector.multi_reduction <add>, %68, %cst_40 [0] : vector<128x16xf32> to vector<16xf32>
    %70 = vector.shape_cast %69 : vector<16xf32> to vector<1x16xf32>
    %71 = arith.addf %54, %70 : vector<1x16xf32>
    %cst_41 = arith.constant 5.120000e+02 : f32
    %72 = vector.broadcast %cst_41 : f32 to vector<1x16xf32>
    %73 = arith.divf %67, %72 : vector<1x16xf32>
    %cst_42 = arith.constant 5.120000e+02 : f32
    %74 = vector.broadcast %cst_42 : f32 to vector<1x16xf32>
    %75 = arith.divf %71, %74 : vector<1x16xf32>
    %76 = arith.mulf %73, %73 : vector<1x16xf32>
    %77 = arith.subf %75, %76 : vector<1x16xf32>
    %cst_43 = arith.constant 0.000000e+00 : f32
    %78 = vector.broadcast %cst_43 : f32 to vector<1x16xf32>
    %79 = arith.maximumf %77, %78 : vector<1x16xf32>
    %c0_44 = arith.constant 0 : index
    %c0_45 = arith.constant 0 : index
    %80 = vector.load %arg4[%c0_44, %c0_45] : memref<1x16xf32, #tpu.memory_space<vmem>>, vector<1x16xf32>
    %cst_46 = arith.constant 9.99999974E-6 : f32
    %81 = vector.broadcast %cst_46 : f32 to vector<1x16xf32>
    %82 = arith.addf %79, %81 : vector<1x16xf32>
    %83 = math.rsqrt %82 : vector<1x16xf32>
    %84 = arith.mulf %80, %83 : vector<1x16xf32>
    %c0_47 = arith.constant 0 : index
    %c0_48 = arith.constant 0 : index
    %85 = vector.load %arg5[%c0_47, %c0_48] : memref<1x16xf32, #tpu.memory_space<vmem>>, vector<1x16xf32>
    %86 = arith.mulf %73, %84 : vector<1x16xf32>
    %87 = arith.subf %85, %86 : vector<1x16xf32>
    %c0_49 = arith.constant 0 : index
    %c0_50 = arith.constant 0 : index
    %c0_51 = arith.constant 0 : index
    %88 = vector.load %arg7[%c0_49, %c0_50, %c0_51] : memref<4x128x16xf32, #tpu.memory_space<vmem>>, vector<1x128x16xf32>
    %89 = vector.shape_cast %88 : vector<1x128x16xf32> to vector<128x16xf32>
    %90 = vector.broadcast %84 : vector<1x16xf32> to vector<128x16xf32>
    %91 = arith.mulf %89, %90 : vector<128x16xf32>
    %92 = vector.broadcast %87 : vector<1x16xf32> to vector<128x16xf32>
    %93 = arith.addf %91, %92 : vector<128x16xf32>
    %c1_52 = arith.constant 1 : index
    %c0_53 = arith.constant 0 : index
    %c0_54 = arith.constant 0 : index
    %94 = vector.load %arg7[%c1_52, %c0_53, %c0_54] : memref<4x128x16xf32, #tpu.memory_space<vmem>>, vector<1x128x16xf32>
    %95 = vector.shape_cast %94 : vector<1x128x16xf32> to vector<128x16xf32>
    %96 = vector.broadcast %84 : vector<1x16xf32> to vector<128x16xf32>
    %97 = arith.mulf %95, %96 : vector<128x16xf32>
    %98 = vector.broadcast %87 : vector<1x16xf32> to vector<128x16xf32>
    %99 = arith.addf %97, %98 : vector<128x16xf32>
    %100 = arith.maximumf %93, %99 : vector<128x16xf32>
    %c2_55 = arith.constant 2 : index
    %c0_56 = arith.constant 0 : index
    %c0_57 = arith.constant 0 : index
    %101 = vector.load %arg7[%c2_55, %c0_56, %c0_57] : memref<4x128x16xf32, #tpu.memory_space<vmem>>, vector<1x128x16xf32>
    %102 = vector.shape_cast %101 : vector<1x128x16xf32> to vector<128x16xf32>
    %103 = vector.broadcast %84 : vector<1x16xf32> to vector<128x16xf32>
    %104 = arith.mulf %102, %103 : vector<128x16xf32>
    %105 = vector.broadcast %87 : vector<1x16xf32> to vector<128x16xf32>
    %106 = arith.addf %104, %105 : vector<128x16xf32>
    %c3_58 = arith.constant 3 : index
    %c0_59 = arith.constant 0 : index
    %c0_60 = arith.constant 0 : index
    %107 = vector.load %arg7[%c3_58, %c0_59, %c0_60] : memref<4x128x16xf32, #tpu.memory_space<vmem>>, vector<1x128x16xf32>
    %108 = vector.shape_cast %107 : vector<1x128x16xf32> to vector<128x16xf32>
    %109 = vector.broadcast %84 : vector<1x16xf32> to vector<128x16xf32>
    %110 = arith.mulf %108, %109 : vector<128x16xf32>
    %111 = vector.broadcast %87 : vector<1x16xf32> to vector<128x16xf32>
    %112 = arith.addf %110, %111 : vector<128x16xf32>
    %113 = arith.maximumf %106, %112 : vector<128x16xf32>
    %114 = arith.maximumf %100, %113 : vector<128x16xf32>
    %c0_61 = arith.constant 0 : index
    %c0_62 = arith.constant 0 : index
    %115 = vector.load %arg6[%c0_61, %c0_62] : memref<128x16xf32, #tpu.memory_space<vmem>>, vector<128x16xf32>
    tpu.vector_store %arg6[%c0_61, %c0_62], %114 {strides = array<i32>} : memref<128x16xf32, #tpu.memory_space<vmem>>, vector<128x16xf32>,
    return
  }
  func.func @transform_0(%arg0: i32) -> (i32, i32) {
    %c0_i32 = arith.constant 0 : i32
    %c0_i32_0 = arith.constant 0 : i32
    %c0_i32_1 = arith.constant 0 : i32
    return %c0_i32, %c0_i32_0 : i32, i32
  }
  func.func @transform_1(%arg0: i32) -> (i32, i32, i32) {
    %c0_i32 = arith.constant 0 : i32
    %c0_i32_0 = arith.constant 0 : i32
    %c0_i32_1 = arith.constant 0 : i32
    %c0_i32_2 = arith.constant 0 : i32
    return %c0_i32, %c0_i32_0, %c0_i32_1 : i32, i32, i32
  }
  func.func @transform_2(%arg0: i32) -> (i32, i32) {
    %c0_i32 = arith.constant 0 : i32
    %c0_i32_0 = arith.constant 0 : i32
    %c0_i32_1 = arith.constant 0 : i32
    return %c0_i32, %c0_i32_0 : i32, i32
  }
  func.func @transform_3(%arg0: i32) -> (i32, i32) {
    %c0_i32 = arith.constant 0 : i32
    %c0_i32_0 = arith.constant 0 : i32
    %c0_i32_1 = arith.constant 0 : i32
    return %c0_i32, %c0_i32_0 : i32, i32
  }
  func.func @transform_4(%arg0: i32) -> (i32, i32) {
    %c0_i32 = arith.constant 0 : i32
    %c0_i32_0 = arith.constant 0 : i32
    %c0_i32_1 = arith.constant 0 : i32
    return %c0_i32, %c0_i32_0 : i32, i32
  }
  func.func @transform_5(%arg0: i32) -> (i32, i32) {
    %c0_i32 = arith.constant 0 : i32
    %c0_i32_0 = arith.constant 0 : i32
    %c0_i32_1 = arith.constant 0 : i32
    return %c0_i32, %c0_i32_0 : i32, i32
  }
}

</mosaic_0001>

<bundles_post_ra>
// kernel: dc_encoder_pallas.3
= control target key start
LH: loop header
LB: loop body
LE: loop exit
PB: predicated region body
PF: predicated region fallthrough
CT: control target
= control target key end

     0   :  { %vm137_vm0 = vcmask 130048   ;;  %s2151_s1 = inlined_call_operand.vmem [shape: f32[4,128,16], index: 1, kind: input, shape index: {}]   ;;  %s2152_s2 = inlined_call_operand.vmem [shape: f32[1,16], index: 2, kind: input, shape index: {}]   ;;  %s2153_s0 = inlined_call_operand.vmem [shape: f32[128,128], index: 0, kind: input, shape index: {}]   ;;  %s2154_s3 = inlined_call_operand.vmem [shape: f32[1,16], index: 3, kind: input, shape index: {}]   ;;  %s2155_s4 = inlined_call_operand.vmem [shape: f32[1,16], index: 4, kind: input, shape index: {}]   ;;  %s2156_s5 = inlined_call_operand.vmem [shape: f32[128,16], index: 5, kind: output, shape index: {}]  }
   0x1   :  { %v52_v0 = vld [vmem:[%s2151_s1 + $0x78] sm:$0xff]  ;;  %v51_v4 = vld [vmem:[%s2151_s1 + $0x70] sm:$0xff]  ;;  %v50_v8 = vld [vmem:[%s2151_s1 + $0x68] sm:$0xff] }
   0x2   :  { %v1176_v1 = vld [vmem:[%s2151_s1 + $0xf8] sm:$0xff]  ;;  %56 = vmatpush.msra.mxu0 %v52_v0  ;;  %v1175_v5 = vld [vmem:[%s2151_s1 + $0xf0] sm:$0xff]  ;;  %v1174_v9 = vld [vmem:[%s2151_s1 + $0xe8] sm:$0xff] }
   0x3   :  { %v1192_v2 = vld [vmem:[%s2151_s1 + $0x178] sm:$0xff]  ;;  %263 = vmatpush.msra.mxu1 %v1176_v1  ;;  %v1191_v6 = vld [vmem:[%s2151_s1 + $0x170] sm:$0xff]  ;;  %v1190_v10 = vld [vmem:[%s2151_s1 + $0x168] sm:$0xff] }
   0x4   :  { %v1208_v3 = vld [vmem:[%s2151_s1 + $0x1f8] sm:$0xff]  ;;  %470 = vmatpush.msra.mxu2 %v1192_v2  ;;  %v1207_v7 = vld [vmem:[%s2151_s1 + $0x1f0] sm:$0xff]  ;;  %57 = vmatpush.msra.mxu0 %v51_v4  ;;  %v1206_v11 = vld [vmem:[%s2151_s1 + $0x1e8] sm:$0xff] }
   0x5   :  { %677 = vmatpush.msra.mxu3 %v1208_v3  ;;  %264 = vmatpush.msra.mxu1 %v1175_v5  ;;  %v49_v12 = vld [vmem:[%s2151_s1 + $0x60] sm:$0xff]  ;;  %v48_v16 = vld [vmem:[%s2151_s1 + $0x58] sm:$0xff]  ;;  %v47_v20 = vld [vmem:[%s2151_s1 + $0x50] sm:$0xff] }
   0x6   :  { %471 = vmatpush.msra.mxu2 %v1191_v6  ;;  %v1173_v13 = vld [vmem:[%s2151_s1 + $0xe0] sm:$0xff]  ;;  %58 = vmatpush.msra.mxu0 %v50_v8  ;;  %v1172_v17 = vld [vmem:[%s2151_s1 + $0xd8] sm:$0xff]  ;;  %v1171_v21 = vld [vmem:[%s2151_s1 + $0xd0] sm:$0xff] }
   0x7   :  { %678 = vmatpush.msra.mxu3 %v1207_v7  ;;  %265 = vmatpush.msra.mxu1 %v1174_v9  ;;  %v1189_v14 = vld [vmem:[%s2151_s1 + $0x160] sm:$0xff]  ;;  %v1188_v18 = vld [vmem:[%s2151_s1 + $0x158] sm:$0xff]  ;;  %v1187_v22 = vld [vmem:[%s2151_s1 + $0x150] sm:$0xff] }
   0x8   :  { %v1205_v15 = vld [vmem:[%s2151_s1 + $0x1e0] sm:$0xff]  ;;  %472 = vmatpush.msra.mxu2 %v1190_v10  ;;  %59 = vmatpush.msra.mxu0 %v49_v12  ;;  %v1204_v19 = vld [vmem:[%s2151_s1 + $0x1d8] sm:$0xff]  ;;  %v1203_v23 = vld [vmem:[%s2151_s1 + $0x1d0] sm:$0xff] }
   0x9   :  { %679 = vmatpush.msra.mxu3 %v1206_v11  ;;  %266 = vmatpush.msra.mxu1 %v1173_v13  ;;  %v46_v24 = vld [vmem:[%s2151_s1 + $0x48] sm:$0xff]  ;;  %v45_v28 = vld [vmem:[%s2151_s1 + $0x40] sm:$0xff]  ;;  %v44_v32 = vld [vmem:[%s2151_s1 + $0x38] sm:$0xff] }
   0xa   :  { %473 = vmatpush.msra.mxu2 %v1189_v14  ;;  %60 = vmatpush.msra.mxu0 %v48_v16  ;;  %v1170_v25 = vld [vmem:[%s2151_s1 + $0xc8] sm:$0xff]  ;;  %v1169_v29 = vld [vmem:[%s2151_s1 + $0xc0] sm:$0xff]  ;;  %v1168_v33 = vld [vmem:[%s2151_s1 + $0xb8] sm:$0xff] }
   0xb   :  { %680 = vmatpush.msra.mxu3 %v1205_v15  ;;  %267 = vmatpush.msra.mxu1 %v1172_v17  ;;  %v1186_v26 = vld [vmem:[%s2151_s1 + $0x148] sm:$0xff]  ;;  %v1185_v30 = vld [vmem:[%s2151_s1 + $0x140] sm:$0xff]  ;;  %v1184_v34 = vld [vmem:[%s2151_s1 + $0x138] sm:$0xff] }
   0xc   :  { %474 = vmatpush.msra.mxu2 %v1188_v18  ;;  %61 = vmatpush.msra.mxu0 %v47_v20  ;;  %v1202_v27 = vld [vmem:[%s2151_s1 + $0x1c8] sm:$0xff]  ;;  %v1201_v31 = vld [vmem:[%s2151_s1 + $0x1c0] sm:$0xff]  ;;  %v1200_v35 = vld [vmem:[%s2151_s1 + $0x1b8] sm:$0xff] }
   0xd   :  { %681 = vmatpush.msra.mxu3 %v1204_v19  ;;  %268 = vmatpush.msra.mxu1 %v1171_v21  ;;  %v43_v36 = vld [vmem:[%s2151_s1 + $0x30] sm:$0xff]  ;;  %v42_v40 = vld [vmem:[%s2151_s1 + $0x28] sm:$0xff]  ;;  %v41_v44 = vld [vmem:[%s2151_s1 + $0x20] sm:$0xff] }
   0xe   :  { %475 = vmatpush.msra.mxu2 %v1187_v22  ;;  %62 = vmatpush.msra.mxu0 %v46_v24  ;;  %v1167_v37 = vld [vmem:[%s2151_s1 + $0xb0] sm:$0xff]  ;;  %v1166_v41 = vld [vmem:[%s2151_s1 + $0xa8] sm:$0xff]  ;;  %v1165_v45 = vld [vmem:[%s2151_s1 + $0xa0] sm:$0xff] }
   0xf   :  { %682 = vmatpush.msra.mxu3 %v1203_v23  ;;  %269 = vmatpush.msra.mxu1 %v1170_v25  ;;  %v1183_v38 = vld [vmem:[%s2151_s1 + $0x130] sm:$0xff]  ;;  %v1182_v42 = vld [vmem:[%s2151_s1 + $0x128] sm:$0xff]  ;;  %v1181_v46 = vld [vmem:[%s2151_s1 + $0x120] sm:$0xff] }
  0x10   :  { %476 = vmatpush.msra.mxu2 %v1186_v26  ;;  %63 = vmatpush.msra.mxu0 %v45_v28  ;;  %v1199_v39 = vld [vmem:[%s2151_s1 + $0x1b0] sm:$0xff]  ;;  %v1198_v43 = vld [vmem:[%s2151_s1 + $0x1a8] sm:$0xff]  ;;  %v1197_v47 = vld [vmem:[%s2151_s1 + $0x1a0] sm:$0xff] }
  0x11   :  { %683 = vmatpush.msra.mxu3 %v1202_v27  ;;  %270 = vmatpush.msra.mxu1 %v1169_v29  ;;  %v40_v48 = vld [vmem:[%s2151_s1 + $0x18] sm:$0xff]  ;;  %v39_v52 = vld [vmem:[%s2151_s1 + $0x10] sm:$0xff]  ;;  %v38_v56 = vld [vmem:[%s2151_s1 + $0x8] sm:$0xff] }
  0x12   :  { %477 = vmatpush.msra.mxu2 %v1185_v30  ;;  %64 = vmatpush.msra.mxu0 %v44_v32  ;;  %v1164_v49 = vld [vmem:[%s2151_s1 + $0x98] sm:$0xff]  ;;  %v1163_v53 = vld [vmem:[%s2151_s1 + $0x90] sm:$0xff]  ;;  %v1162_v57 = vld [vmem:[%s2151_s1 + $0x88] sm:$0xff] }
  0x13   :  { %684 = vmatpush.msra.mxu3 %v1201_v31  ;;  %271 = vmatpush.msra.mxu1 %v1168_v33  ;;  %v1180_v50 = vld [vmem:[%s2151_s1 + $0x118] sm:$0xff]  ;;  %v1179_v54 = vld [vmem:[%s2151_s1 + $0x110] sm:$0xff]  ;;  %v1178_v58 = vld [vmem:[%s2151_s1 + $0x108] sm:$0xff] }
  0x14   :  { %478 = vmatpush.msra.mxu2 %v1184_v34  ;;  %65 = vmatpush.msra.mxu0 %v43_v36  ;;  %v1196_v51 = vld [vmem:[%s2151_s1 + $0x198] sm:$0xff]  ;;  %v1195_v55 = vld [vmem:[%s2151_s1 + $0x190] sm:$0xff]  ;;  %v1194_v59 = vld [vmem:[%s2151_s1 + $0x188] sm:$0xff] }
  0x15   :  { %685 = vmatpush.msra.mxu3 %v1200_v35  ;;  %272 = vmatpush.msra.mxu1 %v1167_v37  ;;  %v37_v60 = vld [vmem:[%s2151_s1] sm:$0xff]  ;;  %v21_v1 = vld [vmem:[%s2153_s0 + $0x8] sm:$0xff]  ;;  %v22_v2 = vld [vmem:[%s2153_s0 + $0x10] sm:$0xff] }
  0x16   :  { %479 = vmatpush.msra.mxu2 %v1183_v38  ;;  %66 = vmatpush.msra.mxu0 %v42_v40  ;;  %v1161_v61 = vld [vmem:[%s2151_s1 + $0x80] sm:$0xff]  ;;  %v23_v3 = vld [vmem:[%s2153_s0 + $0x18] sm:$0xff]  ;;  %v25_v5 = vld [vmem:[%s2153_s0 + $0x28] sm:$0xff] }
  0x17   :  { %686 = vmatpush.msra.mxu3 %v1199_v39  ;;  %273 = vmatpush.msra.mxu1 %v1166_v41  ;;  %v1177_v62 = vld [vmem:[%s2151_s1 + $0x100] sm:$0xff]  ;;  %v26_v6 = vld [vmem:[%s2153_s0 + $0x30] sm:$0xff]  ;;  %v27_v7 = vld [vmem:[%s2153_s0 + $0x38] sm:$0xff] }
  0x18   :  { %480 = vmatpush.msra.mxu2 %v1182_v42  ;;  %67 = vmatpush.msra.mxu0 %v41_v44  ;;  %v1193_v63 = vld [vmem:[%s2151_s1 + $0x180] sm:$0xff]  ;;  %v29_v9 = vld [vmem:[%s2153_s0 + $0x48] sm:$0xff]  ;;  %v30_v10 = vld [vmem:[%s2153_s0 + $0x50] sm:$0xff] }
  0x19   :  { %687 = vmatpush.msra.mxu3 %v1198_v43  ;;  %274 = vmatpush.msra.mxu1 %v1165_v45  ;;  %v20_v0 = vld [vmem:[%s2153_s0] sm:$0xff]  ;;  %v31_v11 = vld [vmem:[%s2153_s0 + $0x58] sm:$0xff]  ;;  %v33_v13 = vld [vmem:[%s2153_s0 + $0x68] sm:$0xff] }
  0x1a   :  { %481 = vmatpush.msra.mxu2 %v1181_v46  ;;  %68 = vmatpush.msra.mxu0 %v40_v48  ;;  %v24_v4 = vld [vmem:[%s2153_s0 + $0x20] sm:$0xff]  ;;  %v34_v14 = vld [vmem:[%s2153_s0 + $0x70] sm:$0xff]  ;;  %v35_v15 = vld [vmem:[%s2153_s0 + $0x78] sm:$0xff] }
  0x1b   :  { %688 = vmatpush.msra.mxu3 %v1197_v47  ;;  %275 = vmatpush.msra.mxu1 %v1164_v49  ;;  %v28_v8 = vld [vmem:[%s2153_s0 + $0x40] sm:$0xff] }
  0x1c   :  { %482 = vmatpush.msra.mxu2 %v1180_v50  ;;  %69 = vmatpush.msra.mxu0 %v39_v52  ;;  %v32_v12 = vld [vmem:[%s2153_s0 + $0x60] sm:$0xff] }
  0x1d   :  { %689 = vmatpush.msra.mxu3 %v1196_v51  ;;  %276 = vmatpush.msra.mxu1 %v1163_v53  ;;  %v1490_v16 = vld [vmem:[%s2152_s2] ss:$0 sm:$0xff] }
  0x1e   :  { %483 = vmatpush.msra.mxu2 %v1179_v54  ;;  %70 = vmatpush.msra.mxu0 %v38_v56 }
  0x1f   :  { %690 = vmatpush.msra.mxu3 %v1195_v55  ;;  %277 = vmatpush.msra.mxu1 %v1162_v57 }
  0x20   :  { %484 = vmatpush.msra.mxu2 %v1178_v58  ;;  %71 = vmatpush.msra.mxu0 %v37_v60 }
  0x21   :  { %691 = vmatpush.msra.mxu3 %v1194_v59  ;;  %278 = vmatpush.msra.mxu1 %v1161_v61 }
  0x22   :  { %485 = vmatpush.msra.mxu2 %v1177_v62  ;;  %72 = vmatmul.f32.vlgmr.msra.gmra.mxu0 %v20_v0 }
  0x23   :  { %692 = vmatpush.msra.mxu3 %v1193_v63  ;;  %279 = vmatmul.f32.vlgmr.msra.gmra.mxu1 %v20_v0 }
  0x24   :  { %486 = vmatmul.f32.vlgmr.msra.gmra.mxu2 %v20_v0  ;;  %693 = vmatmul.f32.vlgmr.msra.gmra.mxu3 %v20_v0 }
  0x2a   :  { %75 = vmatmul.f32.gmra.mxu0 %v21_v1 }
  0x2b   :  { %282 = vmatmul.f32.gmra.mxu1 %v21_v1 }
  0x2c   :  { %489 = vmatmul.f32.gmra.mxu2 %v21_v1  ;;  %696 = vmatmul.f32.gmra.mxu3 %v21_v1 }
  0x32   :  { %78 = vmatmul.f32.gmra.mxu0 %v22_v2 }
  0x33   :  { %285 = vmatmul.f32.gmra.mxu1 %v22_v2 }
  0x34   :  { %492 = vmatmul.f32.gmra.mxu2 %v22_v2  ;;  %699 = vmatmul.f32.gmra.mxu3 %v22_v2 }
  0x3a   :  { %81 = vmatmul.f32.gmra.mxu0 %v23_v3 }
  0x3b   :  { %288 = vmatmul.f32.gmra.mxu1 %v23_v3 }
  0x3c   :  { %495 = vmatmul.f32.gmra.mxu2 %v23_v3  ;;  %702 = vmatmul.f32.gmra.mxu3 %v23_v3 }
  0x42   :  { %84 = vmatmul.f32.gmra.mxu0 %v24_v4 }
  0x43   :  { %291 = vmatmul.f32.gmra.mxu1 %v24_v4 }
  0x44   :  { %498 = vmatmul.f32.gmra.mxu2 %v24_v4  ;;  %705 = vmatmul.f32.gmra.mxu3 %v24_v4 }
  0x4a   :  { %87 = vmatmul.f32.gmra.mxu0 %v25_v5 }
  0x4b   :  { %294 = vmatmul.f32.gmra.mxu1 %v25_v5 }
  0x4c   :  { %501 = vmatmul.f32.gmra.mxu2 %v25_v5  ;;  %708 = vmatmul.f32.gmra.mxu3 %v25_v5 }
  0x52   :  { %90 = vmatmul.f32.gmra.mxu0 %v26_v6 }
  0x53   :  { %297 = vmatmul.f32.gmra.mxu1 %v26_v6 }
  0x54   :  { %504 = vmatmul.f32.gmra.mxu2 %v26_v6  ;;  %711 = vmatmul.f32.gmra.mxu3 %v26_v6 }
  0x5a   :  { %93 = vmatmul.f32.gmra.mxu0 %v27_v7 }
  0x5b   :  { %300 = vmatmul.f32.gmra.mxu1 %v27_v7 }
  0x5c   :  { %507 = vmatmul.f32.gmra.mxu2 %v27_v7  ;;  %714 = vmatmul.f32.gmra.mxu3 %v27_v7 }
  0x62   :  { %96 = vmatmul.f32.gmra.mxu0 %v28_v8 }
  0x63   :  { %303 = vmatmul.f32.gmra.mxu1 %v28_v8 }
  0x64   :  { %510 = vmatmul.f32.gmra.mxu2 %v28_v8  ;;  %717 = vmatmul.f32.gmra.mxu3 %v28_v8 }
  0x6a   :  { %99 = vmatmul.f32.gmra.mxu0 %v29_v9 }
  0x6b   :  { %306 = vmatmul.f32.gmra.mxu1 %v29_v9 }
  0x6c   :  { %513 = vmatmul.f32.gmra.mxu2 %v29_v9  ;;  %720 = vmatmul.f32.gmra.mxu3 %v29_v9 }
  0x72   :  { %102 = vmatmul.f32.gmra.mxu0 %v30_v10 }
  0x73   :  { %309 = vmatmul.f32.gmra.mxu1 %v30_v10 }
  0x74   :  { %516 = vmatmul.f32.gmra.mxu2 %v30_v10  ;;  %723 = vmatmul.f32.gmra.mxu3 %v30_v10 }
  0x7a   :  { %105 = vmatmul.f32.gmra.mxu0 %v31_v11 }
  0x7b   :  { %312 = vmatmul.f32.gmra.mxu1 %v31_v11 }
  0x7c   :  { %519 = vmatmul.f32.gmra.mxu2 %v31_v11  ;;  %726 = vmatmul.f32.gmra.mxu3 %v31_v11 }
  0x82   :  { %108 = vmatmul.f32.gmra.mxu0 %v32_v12 }
  0x83   :  { %315 = vmatmul.f32.gmra.mxu1 %v32_v12 }
  0x84   :  { %522 = vmatmul.f32.gmra.mxu2 %v32_v12  ;;  %729 = vmatmul.f32.gmra.mxu3 %v32_v12 }
  0x8a   :  { %111 = vmatmul.f32.gmra.mxu0 %v33_v13 }
  0x8b   :  { %318 = vmatmul.f32.gmra.mxu1 %v33_v13 }
  0x8c   :  { %525 = vmatmul.f32.gmra.mxu2 %v33_v13  ;;  %732 = vmatmul.f32.gmra.mxu3 %v33_v13 }
  0x92   :  { %114 = vmatmul.f32.gmra.mxu0 %v34_v14 }
  0x93   :  { %321 = vmatmul.f32.gmra.mxu1 %v34_v14 }
  0x94   :  { %528 = vmatmul.f32.gmra.mxu2 %v34_v14  ;;  %735 = vmatmul.f32.gmra.mxu3 %v34_v14 }
  0x9a   :  { %117 = vmatmul.f32.gmra.mxu0 %v35_v15 }
  0x9b   :  { %324 = vmatmul.f32.gmra.mxu1 %v35_v15 }
  0x9c   :  { %531 = vmatmul.f32.gmra.mxu2 %v35_v15  ;;  %738 = vmatmul.f32.gmra.mxu3 %v35_v15 }
  0x9f   :  { %v73_v17 = vpop.f32.mrf.mxu0 }
  0xa0   :  { %v280_v18 = vpop.f32.mrf.mxu1  ;;  %v74_v19 = vadd.f32 %v1490_v16, %v73_v17 }
  0xa1   :  { %v281_v20 = vadd.f32 %v1490_v16, %v280_v18 }
  0xa2   :  { %v121_v21 = vmax.f32 %v74_v19, 0.0 }
  0xa3   :  { %v328_v22 = vmax.f32 %v281_v20, 0.0 }
  0xa4   :  { %138 = vst.msk [vmem:[#allocation2] sm:$0xff] %vm137_vm0, %v121_v21  ;;  %v192_v31 = vmul.f32 %v121_v21, %v121_v21  ;;  %v154_v37 = vsel %vm137_vm0, %v121_v21, 0.0 }
  0xa5   :  { %345 = vst.msk [vmem:[#allocation2 + $0x80] sm:$0xff] %vm137_vm0, %v328_v22  ;;  %v399_v32 = vmul.f32 %v328_v22, %v328_v22  ;;  %v361_v38 = vsel %vm137_vm0, %v328_v22, 0.0 }
  0xa6   :  { %v208_v43 = vsel %vm137_vm0, %v192_v31, 0.0 }
  0xa7   :  { %v487_v23 = vpop.f32.mrf.mxu2  ;;  %v694_v24 = vpop.f32.mrf.mxu3  ;;  %v415_v44 = vsel %vm137_vm0, %v399_v32, 0.0 }
  0xa8   :  { %v488_v25 = vadd.f32 %v1490_v16, %v487_v23  ;;  %v695_v26 = vadd.f32 %v1490_v16, %v694_v24  ;;  %v76_v27 = vpop.f32.mrf.mxu0  ;;  %v283_v28 = vpop.f32.mrf.mxu1 }
  0xa9   :  { %v77_v29 = vadd.f32 %v1490_v16, %v76_v27  ;;  %v284_v30 = vadd.f32 %v1490_v16, %v283_v28 }
  0xaa   :  { %v535_v33 = vmax.f32 %v488_v25, 0.0  ;;  %v742_v34 = vmax.f32 %v695_v26, 0.0 }
  0xab   :  { %v122_v35 = vmax.f32 %v77_v29, 0.0  ;;  %v329_v36 = vmax.f32 %v284_v30, 0.0 }
  0xac   :  { %552 = vst.msk [vmem:[#allocation2 + $0x100] sm:$0xff] %vm137_vm0, %v535_v33  ;;  %v606_v47 = vmul.f32 %v535_v33, %v535_v33  ;;  %v813_v48 = vmul.f32 %v742_v34, %v742_v34  ;;  %v568_v61 = vsel %vm137_vm0, %v535_v33, 0.0  ;;  %v775_v62 = vsel %vm137_vm0, %v742_v34, 0.0 }
  0xad   :  { %759 = vst.msk [vmem:[#allocation2 + $0x180] sm:$0xff] %vm137_vm0, %v742_v34  ;;  %v155_v39 = vsel %vm137_vm0, %v122_v35, 0.0  ;;  %v193_v40 = vmul.f32 %v122_v35, %v122_v35  ;;  %v362_v41 = vsel %vm137_vm0, %v329_v36, 0.0  ;;  %v400_v42 = vmul.f32 %v329_v36, %v329_v36 }
  0xae   :  { %139 = vst.msk [vmem:[#allocation2 + $0x8] sm:$0xff] %vm137_vm0, %v122_v35  ;;  %v156_v45 = vadd.f32 %v155_v39, %v154_v37  ;;  %v363_v46 = vadd.f32 %v362_v41, %v361_v38  ;;  %v622_v1 = vsel %vm137_vm0, %v606_v47, 0.0  ;;  %v829_v2 = vsel %vm137_vm0, %v813_v48, 0.0 }
  0xaf   :  { %v209_v49 = vsel %vm137_vm0, %v193_v40, 0.0  ;;  %346 = vst.msk [vmem:[#allocation2 + $0x88] sm:$0xff] %vm137_vm0, %v329_v36  ;;  %v416_v50 = vsel %vm137_vm0, %v400_v42, 0.0  ;;  %v490_v51 = vpop.f32.mrf.mxu2  ;;  %v697_v52 = vpop.f32.mrf.mxu3 }
  0xb0   :  { %v210_v53 = vadd.f32 %v209_v49, %v208_v43  ;;  %v417_v54 = vadd.f32 %v416_v50, %v415_v44  ;;  %v491_v55 = vadd.f32 %v1490_v16, %v490_v51  ;;  %v698_v56 = vadd.f32 %v1490_v16, %v697_v52  ;;  %v79_v57 = vpop.f32.mrf.mxu0  ;;  %v286_v58 = vpop.f32.mrf.mxu1 }
  0xb1   :  { %v80_v59 = vadd.f32 %v1490_v16, %v79_v57  ;;  %v287_v60 = vadd.f32 %v1490_v16, %v286_v58 }
  0xb2   :  { %v536_v63 = vmax.f32 %v491_v55, 0.0  ;;  %v743_v0 = vmax.f32 %v698_v56, 0.0 }
  0xb3   :  { %v123_v3 = vmax.f32 %v80_v59, 0.0  ;;  %v330_v4 = vmax.f32 %v287_v60, 0.0 }
  0xb4   :  { %553 = vst.msk [vmem:[#allocation2 + $0x108] sm:$0xff] %vm137_vm0, %v536_v63  ;;  %v569_v5 = vsel %vm137_vm0, %v536_v63, 0.0  ;;  %v607_v6 = vmul.f32 %v536_v63, %v536_v63  ;;  %v776_v7 = vsel %vm137_vm0, %v743_v0, 0.0  ;;  %v814_v8 = vmul.f32 %v743_v0, %v743_v0 }
  0xb5   :  { %v570_v9 = vadd.f32 %v569_v5, %v568_v61  ;;  %760 = vst.msk [vmem:[#allocation2 + $0x188] sm:$0xff] %vm137_vm0, %v743_v0  ;;  %v777_v10 = vadd.f32 %v776_v7, %v775_v62  ;;  %v157_v11 = vsel %vm137_vm0, %v123_v3, 0.0  ;;  %v194_v12 = vmul.f32 %v123_v3, %v123_v3 }
  0xb6   :  { %v623_v13 = vsel %vm137_vm0, %v607_v6, 0.0  ;;  %v830_v14 = vsel %vm137_vm0, %v814_v8, 0.0  ;;  %140 = vst.msk [vmem:[#allocation2 + $0x10] sm:$0xff] %vm137_vm0, %v123_v3  ;;  %v158_v15 = vadd.f32 %v157_v11, %v156_v45  ;;  %v364_v17 = vsel %vm137_vm0, %v330_v4, 0.0 }
  0xb7   :  { %v624_v18 = vadd.f32 %v623_v13, %v622_v1  ;;  %v831_v19 = vadd.f32 %v830_v14, %v829_v2  ;;  %v211_v20 = vsel %vm137_vm0, %v194_v12, 0.0  ;;  %347 = vst.msk [vmem:[#allocation2 + $0x90] sm:$0xff] %vm137_vm0, %v330_v4  ;;  %v365_v21 = vadd.f32 %v364_v17, %v363_v46  ;;  %v493_v22 = vpop.f32.mrf.mxu2  ;;  %v700_v23 = vpop.f32.mrf.mxu3 }
  0xb8   :  { %v212_v24 = vadd.f32 %v211_v20, %v210_v53  ;;  %v401_v25 = vmul.f32 %v330_v4, %v330_v4  ;;  %v494_v26 = vadd.f32 %v1490_v16, %v493_v22  ;;  %v701_v27 = vadd.f32 %v1490_v16, %v700_v23  ;;  %v82_v28 = vpop.f32.mrf.mxu0  ;;  %v289_v29 = vpop.f32.mrf.mxu1 }
  0xb9   :  { %v83_v30 = vadd.f32 %v1490_v16, %v82_v28  ;;  %v290_v31 = vadd.f32 %v1490_v16, %v289_v29 }
  0xba   :  { %v418_v32 = vsel %vm137_vm0, %v401_v25, 0.0  ;;  %v537_v33 = vmax.f32 %v494_v26, 0.0  ;;  %v744_v34 = vmax.f32 %v701_v27, 0.0 }
  0xbb   :  { %v419_v35 = vadd.f32 %v418_v32, %v417_v54  ;;  %v124_v36 = vmax.f32 %v83_v30, 0.0  ;;  %v331_v37 = vmax.f32 %v290_v31, 0.0 }
  0xbc   :  { %554 = vst.msk [vmem:[#allocation2 + $0x110] sm:$0xff] %vm137_vm0, %v537_v33  ;;  %v571_v38 = vsel %vm137_vm0, %v537_v33, 0.0  ;;  %v608_v39 = vmul.f32 %v537_v33, %v537_v33  ;;  %v778_v40 = vsel %vm137_vm0, %v744_v34, 0.0  ;;  %v815_v41 = vmul.f32 %v744_v34, %v744_v34 }
  0xbd   :  { %v572_v42 = vadd.f32 %v571_v38, %v570_v9  ;;  %761 = vst.msk [vmem:[#allocation2 + $0x190] sm:$0xff] %vm137_vm0, %v744_v34  ;;  %v779_v43 = vadd.f32 %v778_v40, %v777_v10  ;;  %v159_v44 = vsel %vm137_vm0, %v124_v36, 0.0  ;;  %v195_v45 = vmul.f32 %v124_v36, %v124_v36 }
  0xbe   :  { %v625_v46 = vsel %vm137_vm0, %v608_v39, 0.0  ;;  %v832_v47 = vsel %vm137_vm0, %v815_v41, 0.0  ;;  %141 = vst.msk [vmem:[#allocation2 + $0x18] sm:$0xff] %vm137_vm0, %v124_v36  ;;  %v160_v48 = vadd.f32 %v159_v44, %v158_v15  ;;  %v366_v49 = vsel %vm137_vm0, %v331_v37, 0.0 }
  0xbf   :  { %v626_v50 = vadd.f32 %v625_v46, %v624_v18  ;;  %v833_v51 = vadd.f32 %v832_v47, %v831_v19  ;;  %v213_v52 = vsel %vm137_vm0, %v195_v45, 0.0  ;;  %348 = vst.msk [vmem:[#allocation2 + $0x98] sm:$0xff] %vm137_vm0, %v331_v37  ;;  %v367_v53 = vadd.f32 %v366_v49, %v365_v21  ;;  %v496_v54 = vpop.f32.mrf.mxu2  ;;  %v703_v55 = vpop.f32.mrf.mxu3 }
  0xc0   :  { %v214_v56 = vadd.f32 %v213_v52, %v212_v24  ;;  %v402_v57 = vmul.f32 %v331_v37, %v331_v37  ;;  %v497_v58 = vadd.f32 %v1490_v16, %v496_v54  ;;  %v704_v59 = vadd.f32 %v1490_v16, %v703_v55  ;;  %v85_v60 = vpop.f32.mrf.mxu0  ;;  %v292_v61 = vpop.f32.mrf.mxu1 }
  0xc1   :  { %v86_v62 = vadd.f32 %v1490_v16, %v85_v60  ;;  %v293_v63 = vadd.f32 %v1490_v16, %v292_v61 }
  0xc2   :  { %v420_v0 = vsel %vm137_vm0, %v402_v57, 0.0  ;;  %v538_v1 = vmax.f32 %v497_v58, 0.0  ;;  %v745_v2 = vmax.f32 %v704_v59, 0.0 }
  0xc3   :  { %v421_v3 = vadd.f32 %v420_v0, %v419_v35  ;;  %v125_v4 = vmax.f32 %v86_v62, 0.0  ;;  %v332_v5 = vmax.f32 %v293_v63, 0.0 }
  0xc4   :  { %555 = vst.msk [vmem:[#allocation2 + $0x118] sm:$0xff] %vm137_vm0, %v538_v1  ;;  %v573_v6 = vsel %vm137_vm0, %v538_v1, 0.0  ;;  %v609_v7 = vmul.f32 %v538_v1, %v538_v1  ;;  %v780_v8 = vsel %vm137_vm0, %v745_v2, 0.0  ;;  %v816_v9 = vmul.f32 %v745_v2, %v745_v2 }
  0xc5   :  { %v574_v10 = vadd.f32 %v573_v6, %v572_v42  ;;  %762 = vst.msk [vmem:[#allocation2 + $0x198] sm:$0xff] %vm137_vm0, %v745_v2  ;;  %v781_v11 = vadd.f32 %v780_v8, %v779_v43  ;;  %v161_v12 = vsel %vm137_vm0, %v125_v4, 0.0  ;;  %v196_v13 = vmul.f32 %v125_v4, %v125_v4 }
  0xc6   :  { %v627_v14 = vsel %vm137_vm0, %v609_v7, 0.0  ;;  %v834_v15 = vsel %vm137_vm0, %v816_v9, 0.0  ;;  %142 = vst.msk [vmem:[#allocation2 + $0x20] sm:$0xff] %vm137_vm0, %v125_v4  ;;  %v162_v17 = vadd.f32 %v161_v12, %v160_v48  ;;  %v368_v18 = vsel %vm137_vm0, %v332_v5, 0.0 }
  0xc7   :  { %v628_v19 = vadd.f32 %v627_v14, %v626_v50  ;;  %v835_v20 = vadd.f32 %v834_v15, %v833_v51  ;;  %v215_v21 = vsel %vm137_vm0, %v196_v13, 0.0  ;;  %349 = vst.msk [vmem:[#allocation2 + $0xa0] sm:$0xff] %vm137_vm0, %v332_v5  ;;  %v369_v22 = vadd.f32 %v368_v18, %v367_v53  ;;  %v499_v23 = vpop.f32.mrf.mxu2  ;;  %v706_v24 = vpop.f32.mrf.mxu3 }
  0xc8   :  { %v216_v25 = vadd.f32 %v215_v21, %v214_v56  ;;  %v403_v26 = vmul.f32 %v332_v5, %v332_v5  ;;  %v500_v27 = vadd.f32 %v1490_v16, %v499_v23  ;;  %v707_v28 = vadd.f32 %v1490_v16, %v706_v24  ;;  %v88_v29 = vpop.f32.mrf.mxu0  ;;  %v295_v30 = vpop.f32.mrf.mxu1 }
  0xc9   :  { %v89_v31 = vadd.f32 %v1490_v16, %v88_v29  ;;  %v296_v32 = vadd.f32 %v1490_v16, %v295_v30 }
  0xca   :  { %v422_v33 = vsel %vm137_vm0, %v403_v26, 0.0  ;;  %v539_v34 = vmax.f32 %v500_v27, 0.0  ;;  %v746_v35 = vmax.f32 %v707_v28, 0.0 }
  0xcb   :  { %v423_v36 = vadd.f32 %v422_v33, %v421_v3  ;;  %v126_v37 = vmax.f32 %v89_v31, 0.0  ;;  %v333_v38 = vmax.f32 %v296_v32, 0.0 }
  0xcc   :  { %556 = vst.msk [vmem:[#allocation2 + $0x120] sm:$0xff] %vm137_vm0, %v539_v34  ;;  %v575_v39 = vsel %vm137_vm0, %v539_v34, 0.0  ;;  %v610_v40 = vmul.f32 %v539_v34, %v539_v34  ;;  %v782_v41 = vsel %vm137_vm0, %v746_v35, 0.0  ;;  %v817_v42 = vmul.f32 %v746_v35, %v746_v35 }
  0xcd   :  { %v576_v43 = vadd.f32 %v575_v39, %v574_v10  ;;  %763 = vst.msk [vmem:[#allocation2 + $0x1a0] sm:$0xff] %vm137_vm0, %v746_v35  ;;  %v783_v44 = vadd.f32 %v782_v41, %v781_v11  ;;  %v163_v45 = vsel %vm137_vm0, %v126_v37, 0.0  ;;  %v197_v46 = vmul.f32 %v126_v37, %v126_v37 }
  0xce   :  { %v629_v47 = vsel %vm137_vm0, %v610_v40, 0.0  ;;  %v836_v48 = vsel %vm137_vm0, %v817_v42, 0.0  ;;  %143 = vst.msk [vmem:[#allocation2 + $0x28] sm:$0xff] %vm137_vm0, %v126_v37  ;;  %v164_v49 = vadd.f32 %v163_v45, %v162_v17  ;;  %v370_v50 = vsel %vm137_vm0, %v333_v38, 0.0 }
  0xcf   :  { %v630_v51 = vadd.f32 %v629_v47, %v628_v19  ;;  %v837_v52 = vadd.f32 %v836_v48, %v835_v20  ;;  %v217_v53 = vsel %vm137_vm0, %v197_v46, 0.0  ;;  %350 = vst.msk [vmem:[#allocation2 + $0xa8] sm:$0xff] %vm137_vm0, %v333_v38  ;;  %v371_v54 = vadd.f32 %v370_v50, %v369_v22  ;;  %v502_v55 = vpop.f32.mrf.mxu2  ;;  %v709_v56 = vpop.f32.mrf.mxu3 }
  0xd0   :  { %v218_v57 = vadd.f32 %v217_v53, %v216_v25  ;;  %v404_v58 = vmul.f32 %v333_v38, %v333_v38  ;;  %v503_v59 = vadd.f32 %v1490_v16, %v502_v55  ;;  %v710_v60 = vadd.f32 %v1490_v16, %v709_v56  ;;  %v91_v61 = vpop.f32.mrf.mxu0  ;;  %v298_v62 = vpop.f32.mrf.mxu1 }
  0xd1   :  { %v92_v63 = vadd.f32 %v1490_v16, %v91_v61  ;;  %v299_v0 = vadd.f32 %v1490_v16, %v298_v62 }
  0xd2   :  { %v424_v1 = vsel %vm137_vm0, %v404_v58, 0.0  ;;  %v540_v2 = vmax.f32 %v503_v59, 0.0  ;;  %v747_v3 = vmax.f32 %v710_v60, 0.0 }
  0xd3   :  { %v425_v4 = vadd.f32 %v424_v1, %v423_v36  ;;  %v127_v5 = vmax.f32 %v92_v63, 0.0  ;;  %v334_v6 = vmax.f32 %v299_v0, 0.0 }
  0xd4   :  { %557 = vst.msk [vmem:[#allocation2 + $0x128] sm:$0xff] %vm137_vm0, %v540_v2  ;;  %v577_v7 = vsel %vm137_vm0, %v540_v2, 0.0  ;;  %v611_v8 = vmul.f32 %v540_v2, %v540_v2  ;;  %v784_v9 = vsel %vm137_vm0, %v747_v3, 0.0  ;;  %v818_v10 = vmul.f32 %v747_v3, %v747_v3 }
  0xd5   :  { %v578_v11 = vadd.f32 %v577_v7, %v576_v43  ;;  %764 = vst.msk [vmem:[#allocation2 + $0x1a8] sm:$0xff] %vm137_vm0, %v747_v3  ;;  %v785_v12 = vadd.f32 %v784_v9, %v783_v44  ;;  %v165_v13 = vsel %vm137_vm0, %v127_v5, 0.0  ;;  %v198_v14 = vmul.f32 %v127_v5, %v127_v5 }
  0xd6   :  { %v631_v15 = vsel %vm137_vm0, %v611_v8, 0.0  ;;  %v838_v17 = vsel %vm137_vm0, %v818_v10, 0.0  ;;  %144 = vst.msk [vmem:[#allocation2 + $0x30] sm:$0xff] %vm137_vm0, %v127_v5  ;;  %v166_v18 = vadd.f32 %v165_v13, %v164_v49  ;;  %v372_v19 = vsel %vm137_vm0, %v334_v6, 0.0 }
  0xd7   :  { %v632_v20 = vadd.f32 %v631_v15, %v630_v51  ;;  %v839_v21 = vadd.f32 %v838_v17, %v837_v52  ;;  %v219_v22 = vsel %vm137_vm0, %v198_v14, 0.0  ;;  %351 = vst.msk [vmem:[#allocation2 + $0xb0] sm:$0xff] %vm137_vm0, %v334_v6  ;;  %v373_v23 = vadd.f32 %v372_v19, %v371_v54  ;;  %v505_v24 = vpop.f32.mrf.mxu2  ;;  %v712_v25 = vpop.f32.mrf.mxu3 }
  0xd8   :  { %v220_v26 = vadd.f32 %v219_v22, %v218_v57  ;;  %v405_v27 = vmul.f32 %v334_v6, %v334_v6  ;;  %v506_v28 = vadd.f32 %v1490_v16, %v505_v24  ;;  %v713_v29 = vadd.f32 %v1490_v16, %v712_v25  ;;  %v94_v30 = vpop.f32.mrf.mxu0  ;;  %v301_v31 = vpop.f32.mrf.mxu1 }
  0xd9   :  { %v95_v32 = vadd.f32 %v1490_v16, %v94_v30  ;;  %v302_v33 = vadd.f32 %v1490_v16, %v301_v31 }
  0xda   :  { %v426_v34 = vsel %vm137_vm0, %v405_v27, 0.0  ;;  %v541_v35 = vmax.f32 %v506_v28, 0.0  ;;  %v748_v36 = vmax.f32 %v713_v29, 0.0 }
  0xdb   :  { %v427_v37 = vadd.f32 %v426_v34, %v425_v4  ;;  %v128_v38 = vmax.f32 %v95_v32, 0.0  ;;  %v335_v39 = vmax.f32 %v302_v33, 0.0 }
  0xdc   :  { %558 = vst.msk [vmem:[#allocation2 + $0x130] sm:$0xff] %vm137_vm0, %v541_v35  ;;  %v579_v40 = vsel %vm137_vm0, %v541_v35, 0.0  ;;  %v612_v41 = vmul.f32 %v541_v35, %v541_v35  ;;  %v786_v42 = vsel %vm137_vm0, %v748_v36, 0.0  ;;  %v819_v43 = vmul.f32 %v748_v36, %v748_v36 }
  0xdd   :  { %v580_v44 = vadd.f32 %v579_v40, %v578_v11  ;;  %765 = vst.msk [vmem:[#allocation2 + $0x1b0] sm:$0xff] %vm137_vm0, %v748_v36  ;;  %v787_v45 = vadd.f32 %v786_v42, %v785_v12  ;;  %v167_v46 = vsel %vm137_vm0, %v128_v38, 0.0  ;;  %v199_v47 = vmul.f32 %v128_v38, %v128_v38 }
  0xde   :  { %v633_v48 = vsel %vm137_vm0, %v612_v41, 0.0  ;;  %v840_v49 = vsel %vm137_vm0, %v819_v43, 0.0  ;;  %145 = vst.msk [vmem:[#allocation2 + $0x38] sm:$0xff] %vm137_vm0, %v128_v38  ;;  %v168_v50 = vadd.f32 %v167_v46, %v166_v18  ;;  %v374_v51 = vsel %vm137_vm0, %v335_v39, 0.0 }
  0xdf   :  { %v634_v52 = vadd.f32 %v633_v48, %v632_v20  ;;  %v841_v53 = vadd.f32 %v840_v49, %v839_v21  ;;  %v221_v54 = vsel %vm137_vm0, %v199_v47, 0.0  ;;  %352 = vst.msk [vmem:[#allocation2 + $0xb8] sm:$0xff] %vm137_vm0, %v335_v39  ;;  %v375_v55 = vadd.f32 %v374_v51, %v373_v23  ;;  %v508_v56 = vpop.f32.mrf.mxu2  ;;  %v715_v57 = vpop.f32.mrf.mxu3 }
  0xe0   :  { %v222_v58 = vadd.f32 %v221_v54, %v220_v26  ;;  %v406_v59 = vmul.f32 %v335_v39, %v335_v39  ;;  %v509_v60 = vadd.f32 %v1490_v16, %v508_v56  ;;  %v716_v61 = vadd.f32 %v1490_v16, %v715_v57  ;;  %v97_v62 = vpop.f32.mrf.mxu0  ;;  %v304_v63 = vpop.f32.mrf.mxu1 }
  0xe1   :  { %v98_v0 = vadd.f32 %v1490_v16, %v97_v62  ;;  %v305_v1 = vadd.f32 %v1490_v16, %v304_v63 }
  0xe2   :  { %v428_v2 = vsel %vm137_vm0, %v406_v59, 0.0  ;;  %v542_v3 = vmax.f32 %v509_v60, 0.0  ;;  %v749_v4 = vmax.f32 %v716_v61, 0.0 }
  0xe3   :  { %v429_v5 = vadd.f32 %v428_v2, %v427_v37  ;;  %v129_v6 = vmax.f32 %v98_v0, 0.0  ;;  %v336_v7 = vmax.f32 %v305_v1, 0.0 }
  0xe4   :  { %559 = vst.msk [vmem:[#allocation2 + $0x138] sm:$0xff] %vm137_vm0, %v542_v3  ;;  %v581_v8 = vsel %vm137_vm0, %v542_v3, 0.0  ;;  %v613_v9 = vmul.f32 %v542_v3, %v542_v3  ;;  %v788_v10 = vsel %vm137_vm0, %v749_v4, 0.0  ;;  %v820_v11 = vmul.f32 %v749_v4, %v749_v4 }
  0xe5   :  { %v582_v12 = vadd.f32 %v581_v8, %v580_v44  ;;  %766 = vst.msk [vmem:[#allocation2 + $0x1b8] sm:$0xff] %vm137_vm0, %v749_v4  ;;  %v789_v13 = vadd.f32 %v788_v10, %v787_v45  ;;  %v169_v14 = vsel %vm137_vm0, %v129_v6, 0.0  ;;  %v200_v15 = vmul.f32 %v129_v6, %v129_v6 }
  0xe6   :  { %v635_v17 = vsel %vm137_vm0, %v613_v9, 0.0  ;;  %v842_v18 = vsel %vm137_vm0, %v820_v11, 0.0  ;;  %146 = vst.msk [vmem:[#allocation2 + $0x40] sm:$0xff] %vm137_vm0, %v129_v6  ;;  %v170_v19 = vadd.f32 %v169_v14, %v168_v50  ;;  %v376_v20 = vsel %vm137_vm0, %v336_v7, 0.0 }
  0xe7   :  { %v636_v21 = vadd.f32 %v635_v17, %v634_v52  ;;  %v843_v22 = vadd.f32 %v842_v18, %v841_v53  ;;  %v223_v23 = vsel %vm137_vm0, %v200_v15, 0.0  ;;  %353 = vst.msk [vmem:[#allocation2 + $0xc0] sm:$0xff] %vm137_vm0, %v336_v7  ;;  %v377_v24 = vadd.f32 %v376_v20, %v375_v55  ;;  %v511_v25 = vpop.f32.mrf.mxu2  ;;  %v718_v26 = vpop.f32.mrf.mxu3 }
  0xe8   :  { %v224_v27 = vadd.f32 %v223_v23, %v222_v58  ;;  %v407_v28 = vmul.f32 %v336_v7, %v336_v7  ;;  %v512_v29 = vadd.f32 %v1490_v16, %v511_v25  ;;  %v719_v30 = vadd.f32 %v1490_v16, %v718_v26  ;;  %v100_v31 = vpop.f32.mrf.mxu0  ;;  %v307_v32 = vpop.f32.mrf.mxu1 }
  0xe9   :  { %v101_v33 = vadd.f32 %v1490_v16, %v100_v31  ;;  %v308_v34 = vadd.f32 %v1490_v16, %v307_v32 }
  0xea   :  { %v430_v35 = vsel %vm137_vm0, %v407_v28, 0.0  ;;  %v543_v36 = vmax.f32 %v512_v29, 0.0  ;;  %v750_v37 = vmax.f32 %v719_v30, 0.0 }
  0xeb   :  { %v431_v38 = vadd.f32 %v430_v35, %v429_v5  ;;  %v130_v39 = vmax.f32 %v101_v33, 0.0  ;;  %v337_v40 = vmax.f32 %v308_v34, 0.0 }
  0xec   :  { %560 = vst.msk [vmem:[#allocation2 + $0x140] sm:$0xff] %vm137_vm0, %v543_v36  ;;  %v583_v41 = vsel %vm137_vm0, %v543_v36, 0.0  ;;  %v614_v42 = vmul.f32 %v543_v36, %v543_v36  ;;  %v790_v43 = vsel %vm137_vm0, %v750_v37, 0.0  ;;  %v821_v44 = vmul.f32 %v750_v37, %v750_v37 }
  0xed   :  { %v584_v45 = vadd.f32 %v583_v41, %v582_v12  ;;  %767 = vst.msk [vmem:[#allocation2 + $0x1c0] sm:$0xff] %vm137_vm0, %v750_v37  ;;  %v791_v46 = vadd.f32 %v790_v43, %v789_v13  ;;  %v171_v47 = vsel %vm137_vm0, %v130_v39, 0.0  ;;  %v201_v48 = vmul.f32 %v130_v39, %v130_v39 }
  0xee   :  { %v637_v49 = vsel %vm137_vm0, %v614_v42, 0.0  ;;  %v844_v50 = vsel %vm137_vm0, %v821_v44, 0.0  ;;  %147 = vst.msk [vmem:[#allocation2 + $0x48] sm:$0xff] %vm137_vm0, %v130_v39  ;;  %v172_v51 = vadd.f32 %v171_v47, %v170_v19  ;;  %v378_v52 = vsel %vm137_vm0, %v337_v40, 0.0 }
  0xef   :  { %v638_v53 = vadd.f32 %v637_v49, %v636_v21  ;;  %v845_v54 = vadd.f32 %v844_v50, %v843_v22  ;;  %v225_v55 = vsel %vm137_vm0, %v201_v48, 0.0  ;;  %354 = vst.msk [vmem:[#allocation2 + $0xc8] sm:$0xff] %vm137_vm0, %v337_v40  ;;  %v379_v56 = vadd.f32 %v378_v52, %v377_v24  ;;  %v514_v57 = vpop.f32.mrf.mxu2  ;;  %v721_v58 = vpop.f32.mrf.mxu3 }
  0xf0   :  { %v226_v59 = vadd.f32 %v225_v55, %v224_v27  ;;  %v408_v60 = vmul.f32 %v337_v40, %v337_v40  ;;  %v515_v61 = vadd.f32 %v1490_v16, %v514_v57  ;;  %v722_v62 = vadd.f32 %v1490_v16, %v721_v58  ;;  %v103_v63 = vpop.f32.mrf.mxu0  ;;  %v310_v0 = vpop.f32.mrf.mxu1 }
  0xf1   :  { %v104_v1 = vadd.f32 %v1490_v16, %v103_v63  ;;  %v311_v2 = vadd.f32 %v1490_v16, %v310_v0 }
  0xf2   :  { %v432_v3 = vsel %vm137_vm0, %v408_v60, 0.0  ;;  %v544_v4 = vmax.f32 %v515_v61, 0.0  ;;  %v751_v5 = vmax.f32 %v722_v62, 0.0 }
  0xf3   :  { %v433_v6 = vadd.f32 %v432_v3, %v431_v38  ;;  %v131_v7 = vmax.f32 %v104_v1, 0.0  ;;  %v338_v8 = vmax.f32 %v311_v2, 0.0 }
  0xf4   :  { %561 = vst.msk [vmem:[#allocation2 + $0x148] sm:$0xff] %vm137_vm0, %v544_v4  ;;  %v585_v9 = vsel %vm137_vm0, %v544_v4, 0.0  ;;  %v615_v10 = vmul.f32 %v544_v4, %v544_v4  ;;  %v792_v11 = vsel %vm137_vm0, %v751_v5, 0.0  ;;  %v822_v12 = vmul.f32 %v751_v5, %v751_v5 }
  0xf5   :  { %v586_v13 = vadd.f32 %v585_v9, %v584_v45  ;;  %768 = vst.msk [vmem:[#allocation2 + $0x1c8] sm:$0xff] %vm137_vm0, %v751_v5  ;;  %v793_v14 = vadd.f32 %v792_v11, %v791_v46  ;;  %v173_v15 = vsel %vm137_vm0, %v131_v7, 0.0  ;;  %v202_v17 = vmul.f32 %v131_v7, %v131_v7 }
  0xf6   :  { %v639_v18 = vsel %vm137_vm0, %v615_v10, 0.0  ;;  %v846_v19 = vsel %vm137_vm0, %v822_v12, 0.0  ;;  %148 = vst.msk [vmem:[#allocation2 + $0x50] sm:$0xff] %vm137_vm0, %v131_v7  ;;  %v174_v20 = vadd.f32 %v173_v15, %v172_v51  ;;  %v380_v21 = vsel %vm137_vm0, %v338_v8, 0.0 }
  0xf7   :  { %v640_v22 = vadd.f32 %v639_v18, %v638_v53  ;;  %v847_v23 = vadd.f32 %v846_v19, %v845_v54  ;;  %v227_v24 = vsel %vm137_vm0, %v202_v17, 0.0  ;;  %355 = vst.msk [vmem:[#allocation2 + $0xd0] sm:$0xff] %vm137_vm0, %v338_v8  ;;  %v381_v25 = vadd.f32 %v380_v21, %v379_v56  ;;  %v517_v26 = vpop.f32.mrf.mxu2  ;;  %v724_v27 = vpop.f32.mrf.mxu3 }
  0xf8   :  { %v228_v28 = vadd.f32 %v227_v24, %v226_v59  ;;  %v409_v29 = vmul.f32 %v338_v8, %v338_v8  ;;  %v518_v30 = vadd.f32 %v1490_v16, %v517_v26  ;;  %v725_v31 = vadd.f32 %v1490_v16, %v724_v27  ;;  %v106_v32 = vpop.f32.mrf.mxu0  ;;  %v313_v33 = vpop.f32.mrf.mxu1 }
  0xf9   :  { %v107_v34 = vadd.f32 %v1490_v16, %v106_v32  ;;  %v314_v35 = vadd.f32 %v1490_v16, %v313_v33 }
  0xfa   :  { %v434_v36 = vsel %vm137_vm0, %v409_v29, 0.0  ;;  %v545_v37 = vmax.f32 %v518_v30, 0.0  ;;  %v752_v38 = vmax.f32 %v725_v31, 0.0 }
  0xfb   :  { %v435_v39 = vadd.f32 %v434_v36, %v433_v6  ;;  %v132_v40 = vmax.f32 %v107_v34, 0.0  ;;  %v339_v41 = vmax.f32 %v314_v35, 0.0 }
  0xfc   :  { %562 = vst.msk [vmem:[#allocation2 + $0x150] sm:$0xff] %vm137_vm0, %v545_v37  ;;  %v587_v42 = vsel %vm137_vm0, %v545_v37, 0.0  ;;  %v616_v43 = vmul.f32 %v545_v37, %v545_v37  ;;  %v794_v44 = vsel %vm137_vm0, %v752_v38, 0.0  ;;  %v823_v45 = vmul.f32 %v752_v38, %v752_v38 }
  0xfd   :  { %v588_v46 = vadd.f32 %v587_v42, %v586_v13  ;;  %769 = vst.msk [vmem:[#allocation2 + $0x1d0] sm:$0xff] %vm137_vm0, %v752_v38  ;;  %v795_v47 = vadd.f32 %v794_v44, %v793_v14  ;;  %v175_v48 = vsel %vm137_vm0, %v132_v40, 0.0  ;;  %v203_v49 = vmul.f32 %v132_v40, %v132_v40 }
  0xfe   :  { %v641_v50 = vsel %vm137_vm0, %v616_v43, 0.0  ;;  %v848_v51 = vsel %vm137_vm0, %v823_v45, 0.0  ;;  %149 = vst.msk [vmem:[#allocation2 + $0x58] sm:$0xff] %vm137_vm0, %v132_v40  ;;  %v176_v52 = vadd.f32 %v175_v48, %v174_v20  ;;  %v410_v59 = vmul.f32 %v339_v41, %v339_v41 }
  0xff   :  { %v642_v53 = vadd.f32 %v641_v50, %v640_v22  ;;  %v849_v54 = vadd.f32 %v848_v51, %v847_v23  ;;  %v229_v55 = vsel %vm137_vm0, %v203_v49, 0.0  ;;  %356 = vst.msk [vmem:[#allocation2 + $0xd8] sm:$0xff] %vm137_vm0, %v339_v41  ;;  %v520_v56 = vpop.f32.mrf.mxu2  ;;  %v727_v57 = vpop.f32.mrf.mxu3  ;;  %v382_v5 = vsel %vm137_vm0, %v339_v41, 0.0 }
 0x100   :  { %v230_v58 = vadd.f32 %v229_v55, %v228_v28  ;;  %v521_v60 = vadd.f32 %v1490_v16, %v520_v56  ;;  %v728_v61 = vadd.f32 %v1490_v16, %v727_v57  ;;  %v109_v62 = vpop.f32.mrf.mxu0  ;;  %v316_v63 = vpop.f32.mrf.mxu1  ;;  %v436_v6 = vsel %vm137_vm0, %v410_v59, 0.0 }
 0x101   :  { %v110_v0 = vadd.f32 %v1490_v16, %v109_v62  ;;  %v317_v1 = vadd.f32 %v1490_v16, %v316_v63  ;;  %v383_v12 = vadd.f32 %v382_v5, %v381_v25  ;;  %v437_v13 = vadd.f32 %v436_v6, %v435_v39 }
 0x102   :  { %v546_v2 = vmax.f32 %v521_v60, 0.0  ;;  %v753_v3 = vmax.f32 %v728_v61, 0.0  ;;  %v1216_v62 = vmov 512.0  }
 0x103   :  { %v133_v4 = vmax.f32 %v110_v0, 0.0  ;;  %v340_v7 = vmax.f32 %v317_v1, 0.0  ;;  %1211 = vrcp.f32 %v1216_v62 }
 0x104   :  { %563 = vst.msk [vmem:[#allocation2 + $0x158] sm:$0xff] %vm137_vm0, %v546_v2  ;;  %v589_v8 = vsel %vm137_vm0, %v546_v2, 0.0  ;;  %v617_v9 = vmul.f32 %v546_v2, %v546_v2  ;;  %v796_v10 = vsel %vm137_vm0, %v753_v3, 0.0  ;;  %v824_v11 = vmul.f32 %v753_v3, %v753_v3 }
 0x105   :  { %770 = vst.msk [vmem:[#allocation2 + $0x1d8] sm:$0xff] %vm137_vm0, %v753_v3  ;;  %v204_v14 = vmul.f32 %v133_v4, %v133_v4  ;;  %v590_v18 = vadd.f32 %v589_v8, %v588_v46  ;;  %v411_v19 = vmul.f32 %v340_v7, %v340_v7  ;;  %v797_v24 = vadd.f32 %v796_v10, %v795_v47 }
 0x106   :  { %150 = vst.msk [vmem:[#allocation2 + $0x60] sm:$0xff] %vm137_vm0, %v133_v4  ;;  %v177_v26 = vsel %vm137_vm0, %v133_v4, 0.0  ;;  %v643_v28 = vsel %vm137_vm0, %v617_v9, 0.0  ;;  %v850_v29 = vsel %vm137_vm0, %v824_v11, 0.0  ;;  %v384_v33 = vsel %vm137_vm0, %v340_v7, 0.0 }
 0x107   :  { %357 = vst.msk [vmem:[#allocation2 + $0xe0] sm:$0xff] %vm137_vm0, %v340_v7  ;;  %v523_v15 = vpop.f32.mrf.mxu2  ;;  %v730_v17 = vpop.f32.mrf.mxu3  ;;  %v231_v32 = vsel %vm137_vm0, %v204_v14, 0.0  ;;  %v438_v34 = vsel %vm137_vm0, %v411_v19, 0.0  ;;  %v644_v40 = vadd.f32 %v643_v28, %v642_v53  ;;  %v851_v41 = vadd.f32 %v850_v29, %v849_v54  ;;  %v1215_v28 = vld [vmem:[%s2152_s2] ss:$0 sm:$0xff] }
 0x108   :  { %v524_v20 = vadd.f32 %v1490_v16, %v523_v15  ;;  %v731_v21 = vadd.f32 %v1490_v16, %v730_v17  ;;  %v112_v22 = vpop.f32.mrf.mxu0  ;;  %v319_v23 = vpop.f32.mrf.mxu1  ;;  %v178_v42 = vadd.f32 %v177_v26, %v176_v52  ;;  %v232_v44 = vadd.f32 %v231_v32, %v230_v58 }
 0x109   :  { %v113_v27 = vadd.f32 %v1490_v16, %v112_v22  ;;  %v320_v25 = vadd.f32 %v1490_v16, %v319_v23  ;;  %v385_v45 = vadd.f32 %v384_v33, %v383_v12  ;;  %v439_v46 = vadd.f32 %v438_v34, %v437_v13  ;;  %v1718_v19 = vpop.eup %1211 }
 0x10a   :  { %v547_v30 = vmax.f32 %v524_v20, 0.0  ;;  %v754_v31 = vmax.f32 %v731_v21, 0.0  ;;  %vm872_vm1 = vweird.f32 %v1718_v19 }
 0x10b   :  { %v134_v35 = vmax.f32 %v113_v27, 0.0  ;;  %v341_v39 = vmax.f32 %v320_v25, 0.0 }
 0x10c   :  { %564 = vst.msk [vmem:[#allocation2 + $0x160] sm:$0xff] %vm137_vm0, %v547_v30  ;;  %v591_v36 = vsel %vm137_vm0, %v547_v30, 0.0  ;;  %v618_v37 = vmul.f32 %v547_v30, %v547_v30  ;;  %v798_v38 = vsel %vm137_vm0, %v754_v31, 0.0  ;;  %v825_v43 = vmul.f32 %v754_v31, %v754_v31 }
 0x10d   :  { %771 = vst.msk [vmem:[#allocation2 + $0x1e0] sm:$0xff] %vm137_vm0, %v754_v31  ;;  %v592_v47 = vadd.f32 %v591_v36, %v590_v18  ;;  %v799_v48 = vadd.f32 %v798_v38, %v797_v24  ;;  %v179_v49 = vsel %vm137_vm0, %v134_v35, 0.0  ;;  %v205_v50 = vmul.f32 %v134_v35, %v134_v35 }
 0x10e   :  { %151 = vst.msk [vmem:[#allocation2 + $0x68] sm:$0xff] %vm137_vm0, %v134_v35  ;;  %v645_v53 = vsel %vm137_vm0, %v618_v37, 0.0  ;;  %v412_v52 = vmul.f32 %v341_v39, %v341_v39  ;;  %v852_v59 = vsel %vm137_vm0, %v825_v43, 0.0  ;;  %v180_v63 = vadd.f32 %v179_v49, %v178_v42 }
 0x10f   :  { %358 = vst.msk [vmem:[#allocation2 + $0xe8] sm:$0xff] %vm137_vm0, %v341_v39  ;;  %v526_v51 = vpop.f32.mrf.mxu2  ;;  %v733_v55 = vpop.f32.mrf.mxu3  ;;  %v386_v0 = vsel %vm137_vm0, %v341_v39, 0.0  ;;  %v233_v3 = vsel %vm137_vm0, %v205_v50, 0.0  ;;  %v646_v10 = vadd.f32 %v645_v53, %v644_v40  ;;  %v853_v11 = vadd.f32 %v852_v59, %v851_v41 }
 0x110   :  { %v527_v54 = vadd.f32 %v1490_v16, %v526_v51  ;;  %v734_v56 = vadd.f32 %v1490_v16, %v733_v55  ;;  %v115_v57 = vpop.f32.mrf.mxu0  ;;  %v322_v58 = vpop.f32.mrf.mxu1  ;;  %v440_v4 = vsel %vm137_vm0, %v412_v52, 0.0  ;;  %v234_v14 = vadd.f32 %v233_v3, %v232_v44 }
 0x111   :  { %v116_v60 = vadd.f32 %v1490_v16, %v115_v57  ;;  %v323_v61 = vadd.f32 %v1490_v16, %v322_v58  ;;  %v387_v15 = vadd.f32 %v386_v0, %v385_v45  ;;  %v441_v17 = vadd.f32 %v440_v4, %v439_v46 }
 0x112   :  { %v548_v1 = vmax.f32 %v527_v54, 0.0  ;;  %v755_v2 = vmax.f32 %v734_v56, 0.0  ;;  %v1729_v36 = vmul.f32 512.0, %v1718_v19 }
 0x113   :  { %v135_v5 = vmax.f32 %v116_v60, 0.0  ;;  %v342_v6 = vmax.f32 %v323_v61, 0.0 }
 0x114   :  { %565 = vst.msk [vmem:[#allocation2 + $0x168] sm:$0xff] %vm137_vm0, %v548_v1  ;;  %v593_v7 = vsel %vm137_vm0, %v548_v1, 0.0  ;;  %v619_v8 = vmul.f32 %v548_v1, %v548_v1  ;;  %v800_v16 = vsel %vm137_vm0, %v755_v2, 0.0  ;;  %v826_v9 = vmul.f32 %v755_v2, %v755_v2 }
 0x115   :  { %772 = vst.msk [vmem:[#allocation2 + $0x1e8] sm:$0xff] %vm137_vm0, %v755_v2  ;;  %v181_v12 = vsel %vm137_vm0, %v135_v5, 0.0  ;;  %v206_v13 = vmul.f32 %v135_v5, %v135_v5  ;;  %v594_v18 = vadd.f32 %v593_v7, %v592_v47  ;;  %v801_v21 = vadd.f32 %v800_v16, %v799_v48 }
 0x116   :  { %152 = vst.msk [vmem:[#allocation2 + $0x70] sm:$0xff] %vm137_vm0, %v135_v5  ;;  %v647_v20 = vsel %vm137_vm0, %v619_v8, 0.0  ;;  %v854_v22 = vsel %vm137_vm0, %v826_v9, 0.0  ;;  %v182_v23 = vadd.f32 %v181_v12, %v180_v63  ;;  %v388_v27 = vsel %vm137_vm0, %v342_v6, 0.0 }
 0x117   :  { %359 = vst.msk [vmem:[#allocation2 + $0xf0] sm:$0xff] %vm137_vm0, %v342_v6  ;;  %v529_v24 = vpop.f32.mrf.mxu2  ;;  %v736_v26 = vpop.f32.mrf.mxu3  ;;  %v413_v25 = vmul.f32 %v342_v6, %v342_v6  ;;  %v235_v33 = vsel %vm137_vm0, %v206_v13, 0.0  ;;  %v648_v37 = vadd.f32 %v647_v20, %v646_v10  ;;  %v855_v41 = vadd.f32 %v854_v22, %v853_v11 }
 0x118   :  { %v530_v29 = vadd.f32 %v1215_v28, %v529_v24  ;;  %v737_v30 = vadd.f32 %v1215_v28, %v736_v26  ;;  %v118_v31 = vpop.f32.mrf.mxu0  ;;  %v325_v32 = vpop.f32.mrf.mxu1  ;;  %v389_v42 = vadd.f32 %v388_v27, %v387_v15  ;;  %v236_v45 = vadd.f32 %v235_v33, %v234_v14 }
 0x119   :  { %v119_v34 = vadd.f32 %v1215_v28, %v118_v31  ;;  %v326_v35 = vadd.f32 %v1215_v28, %v325_v32  ;;  %v442_v38 = vsel %vm137_vm0, %v413_v25, 0.0  ;;  %v869_v55 = vsub.f32 1.0, %v1729_v36 }
 0x11a   :  { %v549_v39 = vmax.f32 %v530_v29, 0.0  ;;  %v756_v40 = vmax.f32 %v737_v30, 0.0  ;;  %v443_v49 = vadd.f32 %v442_v38, %v441_v17 }
 0x11b   :  { %v136_v43 = vmax.f32 %v119_v34, 0.0  ;;  %v343_v44 = vmax.f32 %v326_v35, 0.0 }
 0x11c   :  { %566 = vst.msk [vmem:[#allocation2 + $0x170] sm:$0xff] %vm137_vm0, %v549_v39  ;;  %v595_v46 = vsel %vm137_vm0, %v549_v39, 0.0  ;;  %v620_v47 = vmul.f32 %v549_v39, %v549_v39  ;;  %v827_v48 = vmul.f32 %v756_v40, %v756_v40  ;;  %v802_v52 = vsel %vm137_vm0, %v756_v40, 0.0 }
 0x11d   :  { %773 = vst.msk [vmem:[#allocation2 + $0x1f0] sm:$0xff] %vm137_vm0, %v756_v40  ;;  %v183_v50 = vsel %vm137_vm0, %v136_v43, 0.0  ;;  %v207_v51 = vmul.f32 %v136_v43, %v136_v43  ;;  %v390_v56 = vsel %vm137_vm0, %v343_v44, 0.0  ;;  %v596_v57 = vadd.f32 %v595_v46, %v594_v18 }
 0x11e   :  { %v649_v53 = vsel %vm137_vm0, %v620_v47, 0.0  ;;  %153 = vst.msk [vmem:[#allocation2 + $0x78] sm:$0xff] %vm137_vm0, %v136_v43  ;;  %v184_v54 = vadd.f32 %v183_v50, %v182_v23  ;;  %v856_v58 = vsel %vm137_vm0, %v827_v48, 0.0  ;;  %v391_v60 = vadd.f32 %v390_v56, %v389_v42 }
 0x11f   :  { %v237_v59 = vsel %vm137_vm0, %v207_v51, 0.0  ;;  %360 = vst.msk [vmem:[#allocation2 + $0xf8] sm:$0xff] %vm137_vm0, %v343_v44  ;;  %v532_v61 = vpop.f32.mrf.mxu2  ;;  %v739_v62 = vpop.f32.mrf.mxu3  ;;  %v414_v1 = vmul.f32 %v343_v44, %v343_v44  ;;  %v650_v3 = vadd.f32 %v649_v53, %v648_v37  ;;  %v803_v4 = vadd.f32 %v802_v52, %v801_v21 }
 0x120   :  { %v185_v63 = vrot.slane %v184_v54, 4  ;;  %v238_v0 = vadd.f32 %v237_v59, %v236_v45  ;;  %v533_v2 = vadd.f32 %v1215_v28, %v532_v61  ;;  %v392_v5 = vrot.slane %v391_v60, 4 }
 0x121   :  { %v740_v6 = vadd.f32 %v1215_v28, %v739_v62  ;;  %v444_v16 = vsel %vm137_vm0, %v414_v1, 0.0  ;;  %v857_v10 = vadd.f32 %v856_v58, %v855_v41  ;;  %v870_v53 = vmul.f32 %v1718_v19, %v869_v55 }
 0x122   :  { %v186_v7 = vadd.f32 %v185_v63, %v184_v54  ;;  %v239_v8 = vrot.slane %v238_v0, 4  ;;  %v550_v9 = vmax.f32 %v533_v2, 0.0  ;;  %v393_v11 = vadd.f32 %v392_v5, %v391_v60 }
 0x123   :  { %v445_v12 = vadd.f32 %v444_v16, %v443_v49  ;;  %v757_v13 = vmax.f32 %v740_v6, 0.0  ;;  %v871_v1 = vadd.f32 %v1718_v19, %v870_v53 }
 0x124   :  { %v187_v14 = vrot.slane %v186_v7, 2  ;;  %v240_v15 = vadd.f32 %v239_v8, %v238_v0  ;;  %567 = vst.msk [vmem:[#allocation2 + $0x178] sm:$0xff] %vm137_vm0, %v550_v9  ;;  %v597_v17 = vsel %vm137_vm0, %v550_v9, 0.0  ;;  %v621_v18 = vmul.f32 %v550_v9, %v550_v9 }
 0x125   :  { %v394_v20 = vrot.slane %v393_v11, 2  ;;  %v446_v21 = vrot.slane %v445_v12, 4  ;;  %v598_v22 = vadd.f32 %v597_v17, %v596_v57  ;;  %774 = vst.msk [vmem:[#allocation2 + $0x1f8] sm:$0xff] %vm137_vm0, %v757_v13  ;;  %v804_v23 = vsel %vm137_vm0, %v757_v13, 0.0 }
 0x126   :  { %v188_v24 = vadd.f32 %v187_v14, %v186_v7  ;;  %v241_v26 = vrot.slane %v240_v15, 2  ;;  %v651_v27 = vsel %vm137_vm0, %v621_v18, 0.0  ;;  %v805_v25 = vadd.f32 %v804_v23, %v803_v4 }
 0x127   :  { %v395_v28 = vadd.f32 %v394_v20, %v393_v11  ;;  %v447_v29 = vadd.f32 %v446_v21, %v445_v12  ;;  %v599_v30 = vrot.slane %v598_v22, 4  ;;  %v652_v31 = vadd.f32 %v651_v27, %v650_v3 }
 0x128   :  { %v189_v32 = vrot.slane %v188_v24, 1  ;;  %v242_v33 = vadd.f32 %v241_v26, %v240_v15  ;;  %v806_v34 = vrot.slane %v805_v25, 4  ;;  %v828_v35 = vmul.f32 %v757_v13, %v757_v13 }
 0x129   :  { %v396_v37 = vrot.slane %v395_v28, 1  ;;  %v448_v38 = vrot.slane %v447_v29, 2  ;;  %v600_v39 = vadd.f32 %v599_v30, %v598_v22  ;;  %v653_v40 = vrot.slane %v652_v31, 4  ;;  %v895_v30 = vld [vmem:[#allocation2] sm:$0xff] }
 0x12a   :  { %v190_v41 = vadd.f32 %v189_v32, %v188_v24  ;;  %v243_v42 = vrot.slane %v242_v33, 1  ;;  %v807_v43 = vadd.f32 %v806_v34, %v805_v25  ;;  %v858_v44 = vsel %vm137_vm0, %v828_v35, 0.0  ;;  %v897_v32 = vld [vmem:[#allocation2 + $0x10] sm:$0xff]  ;;  %v898_v35 = vld [vmem:[#allocation2 + $0x18] sm:$0xff] }
 0x12b   :  { %v397_v45 = vadd.f32 %v396_v37, %v395_v28  ;;  %v449_v46 = vadd.f32 %v448_v38, %v447_v29  ;;  %v601_v47 = vrot.slane %v600_v39, 2  ;;  %v654_v48 = vadd.f32 %v653_v40, %v652_v31  ;;  %v892_v29 = vld [vmem:[%s2155_s4] sm:$0x1]  ;;  %v896_v31 = vld [vmem:[#allocation2 + $0x8] sm:$0xff]  ;;  %v902_v40 = vld [vmem:[#allocation2 + $0x38] sm:$0xff] }
 0x12c   :  { %v244_v49 = vadd.f32 %v243_v42, %v242_v33  ;;  %v808_v50 = vrot.slane %v807_v43, 2  ;;  %v859_v51 = vadd.f32 %v858_v44, %v857_v10  ;;  %v873_v8 = vsel %vm872_vm1, %v1718_v19, %v871_v1  ;;  %v879_v19 = vld [vmem:[%s2154_s3] sm:$0x1]  ;;  %v900_v38 = vld [vmem:[#allocation2 + $0x28] sm:$0xff] }
 0x12d   :  { %v398_v52 = vadd.f32 %v397_v45, %v190_v41  ;;  %v450_v54 = vrot.slane %v449_v46, 1  ;;  %v602_v56 = vadd.f32 %v601_v47, %v600_v39  ;;  %v655_v57 = vrot.slane %v654_v48, 2  ;;  %v899_v37 = vld [vmem:[#allocation2 + $0x20] sm:$0xff]  ;;  %v901_v39 = vld [vmem:[#allocation2 + $0x30] sm:$0xff]  ;;  %v904_v47 = vld [vmem:[#allocation2 + $0x48] sm:$0xff] }
 0x12e   :  { %v809_v58 = vadd.f32 %v808_v50, %v807_v43  ;;  %v860_v59 = vrot.slane %v859_v51, 4  ;;  %v903_v41 = vld [vmem:[#allocation2 + $0x40] sm:$0xff] }
 0x12f   :  { %v451_v60 = vadd.f32 %v450_v54, %v449_v46  ;;  %v603_v61 = vrot.slane %v602_v56, 1  ;;  %v656_v62 = vadd.f32 %v655_v57, %v654_v48  ;;  %v949_v46 = vld [vmem:[#allocation2 + $0x80] sm:$0xff]  ;;  %v905_v48 = vld [vmem:[#allocation2 + $0x50] sm:$0xff] }
 0x130   :  { %v810_v63 = vrot.slane %v809_v58, 1  ;;  %v861_v0 = vadd.f32 %v860_v59, %v859_v51  ;;  %v907_v54 = vld [vmem:[#allocation2 + $0x60] sm:$0xff]  ;;  %v909_v57 = vld [vmem:[#allocation2 + $0x70] sm:$0xff] }
 0x131   :  { %v452_v2 = vadd.f32 %v451_v60, %v244_v49  ;;  %v604_v3 = vadd.f32 %v603_v61, %v602_v56  ;;  %v657_v4 = vrot.slane %v656_v62, 1  ;;  %v906_v49 = vld [vmem:[#allocation2 + $0x58] sm:$0xff]  ;;  %v908_v56 = vld [vmem:[#allocation2 + $0x68] sm:$0xff] }
 0x132   :  { %v862_v36 = vrot.slane %v861_v0, 2  ;;  %v811_v6 = vadd.f32 %v810_v63, %v809_v58  ;;  %v951_v63 = vld [vmem:[#allocation2 + $0x90] sm:$0xff] }
 0x133   :  { %v605_v55 = vadd.f32 %v604_v3, %v398_v52  ;;  %v658_v5 = vadd.f32 %v657_v4, %v656_v62  ;;  %v950_v62 = vld [vmem:[#allocation2 + $0x88] sm:$0xff] }
 0x134   :  { %v863_v7 = vadd.f32 %v862_v36, %v861_v0  ;;  %v910_v0 = vld [vmem:[#allocation2 + $0x78] sm:$0xff] }
 0x135   :  { %v659_v16 = vadd.f32 %v658_v5, %v452_v2  ;;  %v812_v9 = vadd.f32 %v811_v6, %v605_v55  ;;  %v952_v36 = vld [vmem:[#allocation2 + $0x98] sm:$0xff]  ;;  %v953_v55 = vld [vmem:[#allocation2 + $0xa0] sm:$0xff]  ;;  %v954_v5 = vld [vmem:[#allocation2 + $0xa8] sm:$0xff] }
 0x136   :  { %v864_v10 = vrot.slane %v863_v7, 1 }
 0x137   :  { %v874_v11 = vmul.f32 %v873_v8, %v812_v9 }
 0x138   :  { %v865_v12 = vadd.f32 %v864_v10, %v863_v7 }
 0x139   :  { %v876_v14 = vmul.f32 %v874_v11, %v874_v11 }
 0x13a   :  { %v866_v13 = vadd.f32 %v865_v12, %v659_v16 }
 0x13c   :  { %v875_v15 = vmul.f32 %v873_v8, %v866_v13 }
 0x13e   :  { %v877_v17 = vsub.f32 %v875_v15, %v876_v14 }
 0x140   :  { %v878_v18 = vmax.f32 %v877_v17, 0.0 }
 0x142   :  { %v880_v20 = vadd.f32 1e-05, %v878_v18 }
 0x144   :  { %1213 = vrsqrt.f32 %v880_v20  ;;  %vm887_vm3 = vweird.f32 %v880_v20 }
 0x14a   :  { %v1214_v21 = vpop.eup %1213 }
 0x14b   :  { %v882_v22 = vmul.f32 %v1214_v21, %v880_v20  ;;  %vm888_vm2 = vweird.f32 %v1214_v21 }
 0x14c   :  { %vm889_vm4 = vmor %vm887_vm3, %vm888_vm2 }
 0x14d   :  { %v883_v23 = vmul.f32 %v1214_v21, %v882_v22 }
 0x14f   :  { %v884_v24 = vmul.f32 0.5, %v883_v23  ;;  %v955_v23 = vld [vmem:[#allocation2 + $0xb0] sm:$0xff] }
 0x151   :  { %v885_v26 = vsub.f32 1.5, %v884_v24  ;;  %v956_v24 = vld [vmem:[#allocation2 + $0xb8] sm:$0xff] }
 0x153   :  { %v886_v27 = vmul.f32 %v1214_v21, %v885_v26 }
 0x155   :  { %v890_v25 = vsel %vm889_vm4, %v1214_v21, %v886_v27 }
 0x156   :  { %v891_v28 = vmul.f32 %v890_v25, %v879_v19 }
 0x158   :  { %v893_v33 = vmul.f32 %v891_v28, %v874_v11  ;;  %v1763_v34 = vperm.slane %v891_v28, 0  ;;  %v957_v28 = vld [vmem:[#allocation2 + $0xc0] sm:$0xff] }
 0x15a   :  { %v894_v42 = vsub.f32 %v892_v29, %v893_v33  ;;  %v914_v43 = vmul.f32 %v1763_v34, %v895_v30  ;;  %v915_v44 = vmul.f32 %v1763_v34, %v896_v31  ;;  %v916_v45 = vmul.f32 %v1763_v34, %v897_v32  ;;  %v958_v29 = vld [vmem:[#allocation2 + $0xc8] sm:$0xff]  ;;  %v959_v30 = vld [vmem:[#allocation2 + $0xd0] sm:$0xff] }
 0x15b   :  { %v917_v50 = vmul.f32 %v1763_v34, %v898_v35  ;;  %v918_v51 = vmul.f32 %v1763_v34, %v899_v37  ;;  %v919_v53 = vmul.f32 %v1763_v34, %v900_v38  ;;  %v920_v52 = vmul.f32 %v1763_v34, %v901_v39  ;;  %v960_v37 = vld [vmem:[#allocation2 + $0xd8] sm:$0xff]  ;;  %v961_v38 = vld [vmem:[#allocation2 + $0xe0] sm:$0xff]  ;;  %v962_v39 = vld [vmem:[#allocation2 + $0xe8] sm:$0xff] }
 0x15c   :  { %v921_v58 = vmul.f32 %v1763_v34, %v902_v40  ;;  %v922_v59 = vmul.f32 %v1763_v34, %v903_v41  ;;  %v923_v60 = vmul.f32 %v1763_v34, %v904_v47  ;;  %v924_v61 = vmul.f32 %v1763_v34, %v905_v48 }
 0x15d   :  { %v925_v1 = vmul.f32 %v1763_v34, %v906_v49  ;;  %v926_v2 = vmul.f32 %v1763_v34, %v907_v54  ;;  %v927_v3 = vmul.f32 %v1763_v34, %v908_v56  ;;  %v928_v4 = vmul.f32 %v1763_v34, %v909_v57 }
 0x15e   :  { %v929_v6 = vmul.f32 %v1763_v34, %v910_v0  ;;  %v1781_v7 = vperm.slane %v894_v42, 0  ;;  %v965_v8 = vmul.f32 %v949_v46, %v1763_v34  ;;  %v966_v16 = vmul.f32 %v950_v62, %v1763_v34 }
 0x15f   :  { %v967_v9 = vmul.f32 %v951_v63, %v1763_v34  ;;  %v968_v10 = vmul.f32 %v952_v36, %v1763_v34  ;;  %v969_v11 = vmul.f32 %v953_v55, %v1763_v34  ;;  %v970_v12 = vmul.f32 %v954_v5, %v1763_v34  ;;  %v1067_v5 = vld [vmem:[#allocation2 + $0x1b0] sm:$0xff]  ;;  %v1068_v55 = vld [vmem:[#allocation2 + $0x1b8] sm:$0xff] }
 0x160   :  { %v1790_v13 = vadd.f32 %v1781_v7, %v914_v43  ;;  %v1793_v14 = vadd.f32 %v1781_v7, %v915_v44  ;;  %v1796_v15 = vadd.f32 %v1781_v7, %v916_v45  ;;  %v1799_v17 = vadd.f32 %v1781_v7, %v917_v50  ;;  %v963_v44 = vld [vmem:[#allocation2 + $0xf0] sm:$0xff]  ;;  %v964_v45 = vld [vmem:[#allocation2 + $0xf8] sm:$0xff] }
 0x161   :  { %v1802_v18 = vadd.f32 %v1781_v7, %v918_v51  ;;  %v1805_v20 = vadd.f32 %v1781_v7, %v919_v53  ;;  %v1808_v21 = vadd.f32 %v1781_v7, %v920_v52  ;;  %v1811_v22 = vadd.f32 %v1781_v7, %v921_v58 }
 0x162   :  { %v1814_v26 = vadd.f32 %v1781_v7, %v922_v59  ;;  %v1817_v19 = vadd.f32 %v1781_v7, %v923_v60  ;;  %v1820_v27 = vadd.f32 %v1781_v7, %v924_v61  ;;  %v1823_v25 = vadd.f32 %v1781_v7, %v925_v1 }
 0x163   :  { %v1826_v31 = vadd.f32 %v1781_v7, %v926_v2  ;;  %v1829_v32 = vadd.f32 %v1781_v7, %v927_v3  ;;  %v1832_v33 = vadd.f32 %v1781_v7, %v928_v4  ;;  %v1835_v35 = vadd.f32 %v1781_v7, %v929_v6 }
 0x164   :  { %2169 = vst [vmem:[#allocation3_spill] sm:$0xff] %v1820_v27  ;;  %v971_v40 = vmul.f32 %v955_v23, %v1763_v34  ;;  %v972_v41 = vmul.f32 %v956_v24, %v1763_v34  ;;  %v973_v42 = vmul.f32 %v957_v28, %v1763_v34  ;;  %v974_v43 = vmul.f32 %v958_v29, %v1763_v34  ;;  %v1015_v28 = vld [vmem:[#allocation2 + $0x110] sm:$0xff]  ;;  %v1016_v29 = vld [vmem:[#allocation2 + $0x118] sm:$0xff]  ;;  %v1026_v24 = vld [vmem:[#allocation2 + $0x168] sm:$0xff] }
 0x165   :  { %2170 = vst [vmem:[#allocation4_spill] sm:$0xff] %v1823_v25  ;;  %v975_v46 = vmul.f32 %v959_v30, %v1763_v34  ;;  %v976_v47 = vmul.f32 %v960_v37, %v1763_v34  ;;  %v977_v48 = vmul.f32 %v961_v38, %v1763_v34  ;;  %v978_v49 = vmul.f32 %v962_v39, %v1763_v34  ;;  %v1017_v30 = vld [vmem:[#allocation2 + $0x120] sm:$0xff]  ;;  %v1024_v37 = vld [vmem:[#allocation2 + $0x158] sm:$0xff] }
 0x166   :  { %2171 = vst [vmem:[#allocation5_spill] sm:$0xff] %v1826_v31  ;;  %v979_v50 = vmul.f32 %v963_v44, %v1763_v34  ;;  %v980_v51 = vmul.f32 %v964_v45, %v1763_v34  ;;  %v1848_v53 = vadd.f32 %v965_v8, %v1781_v7  ;;  %v1851_v52 = vadd.f32 %v966_v16, %v1781_v7  ;;  %v1025_v44 = vld [vmem:[#allocation2 + $0x160] sm:$0xff]  ;;  %v1076_v25 = vld [vmem:[#allocation2 + $0x1f8] sm:$0xff] }
 0x167   :  { %2172 = vst [vmem:[#allocation6_spill] sm:$0xff] %v1829_v32  ;;  %v1854_v54 = vadd.f32 %v967_v9, %v1781_v7  ;;  %v1857_v56 = vadd.f32 %v968_v10, %v1781_v7  ;;  %v1860_v57 = vadd.f32 %v969_v11, %v1781_v7  ;;  %v1863_v58 = vadd.f32 %v970_v12, %v1781_v7  ;;  %v1013_v9 = vld [vmem:[#allocation2 + $0x100] sm:$0xff]  ;;  %v1014_v10 = vld [vmem:[#allocation2 + $0x108] sm:$0xff]  ;;  %v1027_v12 = vld [vmem:[#allocation2 + $0x170] sm:$0xff] }
 0x168   :  { %2173 = vst [vmem:[#allocation7_spill] sm:$0xff] %v1832_v33  ;;  %v1866_v59 = vadd.f32 %v971_v40, %v1781_v7  ;;  %v1869_v60 = vadd.f32 %v972_v41, %v1781_v7  ;;  %v1872_v61 = vadd.f32 %v973_v42, %v1781_v7  ;;  %v1875_v62 = vadd.f32 %v974_v43, %v1781_v7  ;;  %v1018_v41 = vld [vmem:[#allocation2 + $0x128] sm:$0xff]  ;;  %v1019_v42 = vld [vmem:[#allocation2 + $0x130] sm:$0xff]  ;;  %v1020_v43 = vld [vmem:[#allocation2 + $0x138] sm:$0xff] }
 0x169   :  { %2174 = vst [vmem:[#allocation8_spill] sm:$0xff] %v1835_v35  ;;  %v1878_v63 = vadd.f32 %v975_v46, %v1781_v7  ;;  %v1881_v0 = vadd.f32 %v976_v47, %v1781_v7  ;;  %v1884_v1 = vadd.f32 %v977_v48, %v1781_v7  ;;  %v1887_v2 = vadd.f32 %v978_v49, %v1781_v7  ;;  %v1021_v48 = vld [vmem:[#allocation2 + $0x140] sm:$0xff]  ;;  %v1022_v49 = vld [vmem:[#allocation2 + $0x148] sm:$0xff]  ;;  %v1028_v11 = vld [vmem:[#allocation2 + $0x178] sm:$0xff] }
 0x16a   :  { %v1890_v3 = vadd.f32 %v979_v50, %v1781_v7  ;;  %v1893_v4 = vadd.f32 %v980_v51, %v1781_v7  ;;  %v1029_v46 = vmul.f32 %v1013_v9, %v1763_v34  ;;  %v1030_v47 = vmul.f32 %v1014_v10, %v1763_v34  ;;  %v1023_v50 = vld [vmem:[#allocation2 + $0x150] sm:$0xff]  ;;  %v1065_v8 = vld [vmem:[#allocation2 + $0x1a0] sm:$0xff]  ;;  %v1070_v35 = vld [vmem:[#allocation2 + $0x1c8] sm:$0xff] }
 0x16b   :  { %2175 = vst [vmem:[#allocation9_spill] sm:$0xff] %v1878_v63  ;;  %v1031_v51 = vmul.f32 %v1015_v28, %v1763_v34  ;;  %v1032_v40 = vmul.f32 %v1016_v29, %v1763_v34  ;;  %v1033_v39 = vmul.f32 %v1017_v30, %v1763_v34  ;;  %v1034_v38 = vmul.f32 %v1018_v41, %v1763_v34  ;;  %v1073_v32 = vld [vmem:[#allocation2 + $0x1e0] sm:$0xff] }
 0x16c   :  { %2176 = vst [vmem:[#allocation10_spill] sm:$0xff] %v1881_v0  ;;  %v1035_v45 = vmul.f32 %v1019_v42, %v1763_v34  ;;  %v1036_v9 = vmul.f32 %v1020_v43, %v1763_v34  ;;  %v1037_v10 = vmul.f32 %v1021_v48, %v1763_v34  ;;  %v1038_v23 = vmul.f32 %v1022_v49, %v1763_v34  ;;  %v1075_v0 = vld [vmem:[#allocation2 + $0x1f0] sm:$0xff] }
 0x16d   :  { %2177 = vst [vmem:[#allocation11_spill] sm:$0xff] %v1884_v1  ;;  %v1039_v28 = vmul.f32 %v1023_v50, %v1763_v34  ;;  %v1040_v29 = vmul.f32 %v1024_v37, %v1763_v34  ;;  %v1041_v30 = vmul.f32 %v1025_v44, %v1763_v34  ;;  %v1042_v41 = vmul.f32 %v1026_v24, %v1763_v34  ;;  %v1074_v1 = vld [vmem:[#allocation2 + $0x1e8] sm:$0xff] }
 0x16e   :  { %2178 = vst [vmem:[#allocation12_spill] sm:$0xff] %v1887_v2  ;;  %v1043_v16 = vmul.f32 %v1027_v12, %v1763_v34  ;;  %v1044_v42 = vmul.f32 %v1028_v11, %v1763_v34  ;;  %v1944_v43 = vadd.f32 %v1029_v46, %v1781_v7  ;;  %v1947_v48 = vadd.f32 %v1030_v47, %v1781_v7  ;;  %v1061_v12 = vld [vmem:[#allocation2 + $0x180] sm:$0xff]  ;;  %v1062_v11 = vld [vmem:[#allocation2 + $0x188] sm:$0xff] }
 0x16f   :  { %2179 = vst [vmem:[#allocation13_spill] sm:$0xff] %v1890_v3  ;;  %v1950_v49 = vadd.f32 %v1031_v51, %v1781_v7  ;;  %v1953_v50 = vadd.f32 %v1032_v40, %v1781_v7  ;;  %v1956_v37 = vadd.f32 %v1033_v39, %v1781_v7  ;;  %v1959_v24 = vadd.f32 %v1034_v38, %v1781_v7  ;;  %v1063_v51 = vld [vmem:[#allocation2 + $0x190] sm:$0xff]  ;;  %v1064_v39 = vld [vmem:[#allocation2 + $0x198] sm:$0xff] }
 0x170   :  { %2180 = vst [vmem:[#allocation14_spill] sm:$0xff] %v1893_v4  ;;  %v1962_v44 = vadd.f32 %v1035_v45, %v1781_v7  ;;  %v1965_v46 = vadd.f32 %v1036_v9, %v1781_v7  ;;  %v1968_v47 = vadd.f32 %v1037_v10, %v1781_v7  ;;  %v1971_v40 = vadd.f32 %v1038_v23, %v1781_v7  ;;  %v1066_v10 = vld [vmem:[#allocation2 + $0x1a8] sm:$0xff]  ;;  %v1069_v4 = vld [vmem:[#allocation2 + $0x1c0] sm:$0xff] }
 0x171   :  { %v1974_v38 = vadd.f32 %v1039_v28, %v1781_v7  ;;  %v1977_v6 = vadd.f32 %v1040_v29, %v1781_v7  ;;  %v1980_v45 = vadd.f32 %v1041_v30, %v1781_v7  ;;  %v1983_v9 = vadd.f32 %v1042_v41, %v1781_v7  ;;  %v1071_v30 = vld [vmem:[#allocation2 + $0x1d0] sm:$0xff] }
 0x172   :  { %v1986_v23 = vadd.f32 %v1043_v16, %v1781_v7  ;;  %v1989_v36 = vadd.f32 %v1044_v42, %v1781_v7  ;;  %v1077_v28 = vmul.f32 %v1061_v12, %v1763_v34  ;;  %v1078_v29 = vmul.f32 %v1062_v11, %v1763_v34  ;;  %v1072_v16 = vld [vmem:[#allocation2 + $0x1d8] sm:$0xff] }
 0x173   :  { %v1079_v3 = vmul.f32 %v1063_v51, %v1763_v34  ;;  %v1080_v41 = vmul.f32 %v1064_v39, %v1763_v34  ;;  %v1081_v33 = vmul.f32 %v1065_v8, %v1763_v34  ;;  %v1082_v2 = vmul.f32 %v1066_v10, %v1763_v34 }
 0x174   :  { %v1083_v42 = vmul.f32 %v1067_v5, %v1763_v34  ;;  %v1084_v12 = vmul.f32 %v1068_v55, %v1763_v34  ;;  %v1085_v11 = vmul.f32 %v1069_v4, %v1763_v34  ;;  %v1086_v31 = vmul.f32 %v1070_v35, %v1763_v34 }
 0x175   :  { %v1087_v51 = vmul.f32 %v1071_v30, %v1763_v34  ;;  %v1088_v39 = vmul.f32 %v1072_v16, %v1763_v34  ;;  %v1089_v8 = vmul.f32 %v1073_v32, %v1763_v34  ;;  %v1090_v10 = vmul.f32 %v1074_v1, %v1763_v34 }
 0x176   :  { %v1091_v63 = vmul.f32 %v1075_v0, %v1763_v34  ;;  %v1092_v5 = vmul.f32 %v1076_v25, %v1763_v34  ;;  %v1093_v55 = vadd.f32 %v1077_v28, %v1781_v7  ;;  %v1094_v4 = vadd.f32 %v1078_v29, %v1781_v7 }
 0x177   :  { %v1095_v35 = vadd.f32 %v1079_v3, %v1781_v7  ;;  %v1096_v27 = vadd.f32 %v1080_v41, %v1781_v7  ;;  %v1097_v30 = vadd.f32 %v1081_v33, %v1781_v7  ;;  %v1098_v16 = vadd.f32 %v1082_v2, %v1781_v7 }
 0x178   :  { %v1099_v32 = vadd.f32 %v1083_v42, %v1781_v7  ;;  %v1100_v1 = vadd.f32 %v1084_v12, %v1781_v7  ;;  %v1101_v0 = vadd.f32 %v1085_v11, %v1781_v7  ;;  %v1102_v34 = vadd.f32 %v1086_v31, %v1781_v7 }
 0x179   :  { %v1103_v25 = vadd.f32 %v1087_v51, %v1781_v7  ;;  %v1104_v28 = vadd.f32 %v1088_v39, %v1781_v7  ;;  %v1105_v3 = vadd.f32 %v1089_v8, %v1781_v7  ;;  %v1106_v29 = vadd.f32 %v1090_v10, %v1781_v7 }
 0x17a   :  { %v1107_v33 = vadd.f32 %v1091_v63, %v1781_v7  ;;  %v1108_v2 = vadd.f32 %v1092_v5, %v1781_v7  ;;  %v1109_v41 = vmax.f32 %v1944_v43, %v1093_v55  ;;  %v1110_v42 = vmax.f32 %v1947_v48, %v1094_v4  ;;  %v2197_v5 = vld [vmem:[#allocation5_spill] sm:$0xff]  ;;  %v2200_v4 = vld [vmem:[#allocation6_spill] sm:$0xff] }
 0x17b   :  { %v1111_v12 = vmax.f32 %v1950_v49, %v1095_v35  ;;  %v1112_v31 = vmax.f32 %v1953_v50, %v1096_v27  ;;  %v1113_v11 = vmax.f32 %v1956_v37, %v1097_v30  ;;  %v1114_v51 = vmax.f32 %v1959_v24, %v1098_v16  ;;  %v2203_v30 = vld [vmem:[#allocation7_spill] sm:$0xff]  ;;  %v2204_v16 = vld [vmem:[#allocation13_spill] sm:$0xff] }
 0x17c   :  { %v1115_v39 = vmax.f32 %v1962_v44, %v1099_v32  ;;  %v1116_v8 = vmax.f32 %v1965_v46, %v1100_v1  ;;  %v1117_v63 = vmax.f32 %v1968_v47, %v1101_v0  ;;  %v1118_v7 = vmax.f32 %v1971_v40, %v1102_v34  ;;  %v2206_v0 = vld [vmem:[#allocation8_spill] sm:$0xff]  ;;  %v2207_v34 = vld [vmem:[#allocation14_spill] sm:$0xff] }
 0x17d   :  { %v1119_v43 = vmax.f32 %v1974_v38, %v1103_v25  ;;  %v1120_v48 = vmax.f32 %v1977_v6, %v1104_v28  ;;  %v1121_v49 = vmax.f32 %v1980_v45, %v1105_v3  ;;  %v1122_v27 = vmax.f32 %v1983_v9, %v1106_v29 }
 0x17e   :  { %v1123_v50 = vmax.f32 %v1986_v23, %v1107_v33  ;;  %v1124_v37 = vmax.f32 %v1989_v36, %v1108_v2  ;;  %v2181_v24 = vmax.f32 %v1790_v13, %v1848_v53  ;;  %v2182_v46 = vmax.f32 %v1793_v14, %v1851_v52  ;;  %v2194_v23 = vld [vmem:[#allocation4_spill] sm:$0xff] }
 0x17f   :  { %v2183_v40 = vmax.f32 %v1796_v15, %v1854_v54  ;;  %v2184_v38 = vmax.f32 %v1799_v17, %v1857_v56  ;;  %v2185_v9 = vmax.f32 %v1802_v18, %v1860_v57  ;;  %v2186_v13 = vmax.f32 %v1805_v20, %v1863_v58  ;;  %v2191_v20 = vld [vmem:[#allocation3_spill] sm:$0xff] }
 0x180   :  { %v1125_v44 = vmax.f32 %v2181_v24, %v1109_v41  ;;  %v1126_v47 = vmax.f32 %v2182_v46, %v1110_v42  ;;  %v2187_v14 = vmax.f32 %v1808_v21, %v1866_v59  ;;  %v2188_v15 = vmax.f32 %v1811_v22, %v1869_v60  ;;  %v2192_v21 = vld [vmem:[#allocation9_spill] sm:$0xff]  ;;  %v2195_v22 = vld [vmem:[#allocation10_spill] sm:$0xff] }
 0x181   :  { %v1127_v6 = vmax.f32 %v2183_v40, %v1111_v12  ;;  %v1128_v45 = vmax.f32 %v2184_v38, %v1112_v31  ;;  %v1129_v36 = vmax.f32 %v2185_v9, %v1113_v11  ;;  %v1130_v53 = vmax.f32 %v2186_v13, %v1114_v51 }
 0x182   :  { %v1131_v52 = vmax.f32 %v2187_v14, %v1115_v39  ;;  %v1132_v54 = vmax.f32 %v2188_v15, %v1116_v8  ;;  %v2189_v17 = vmax.f32 %v1814_v26, %v1872_v61  ;;  %v2190_v18 = vmax.f32 %v1817_v19, %v1875_v62  ;;  %1141 = vst.msk [vmem:[%s2156_s5] sm:$0xff] %vm137_vm0, %v1125_v44  ;;  %v2198_v26 = vld [vmem:[#allocation11_spill] sm:$0xff]  ;;  %v2201_v19 = vld [vmem:[#allocation12_spill] sm:$0xff] }
 0x183   :  { %v2193_v58 = vmax.f32 %v2191_v20, %v2192_v21  ;;  %v2196_v60 = vmax.f32 %v2194_v23, %v2195_v22  ;;  %v2199_v61 = vmax.f32 %v2197_v5, %v2198_v26  ;;  %v2202_v62 = vmax.f32 %v2200_v4, %v2201_v19  ;;  %1142 = vst.msk [vmem:[%s2156_s5 + $0x8] sm:$0xff] %vm137_vm0, %v1126_v47 }
 0x184   :  { %v1133_v56 = vmax.f32 %v2189_v17, %v1117_v63  ;;  %v1134_v57 = vmax.f32 %v2190_v18, %v1118_v7  ;;  %v2205_v32 = vmax.f32 %v2203_v30, %v2204_v16  ;;  %v2208_v25 = vmax.f32 %v2206_v0, %v2207_v34  ;;  %1143 = vst.msk [vmem:[%s2156_s5 + $0x10] sm:$0xff] %vm137_vm0, %v1127_v6 }
 0x185   :  { %v1135_v59 = vmax.f32 %v2193_v58, %v1119_v43  ;;  %v1136_v10 = vmax.f32 %v2196_v60, %v1120_v48  ;;  %v1137_v55 = vmax.f32 %v2199_v61, %v1121_v49  ;;  %v1138_v35 = vmax.f32 %v2202_v62, %v1122_v27  ;;  %1144 = vst.msk [vmem:[%s2156_s5 + $0x18] sm:$0xff] %vm137_vm0, %v1128_v45 }
 0x186   :  { %v1139_v1 = vmax.f32 %v2205_v32, %v1123_v50  ;;  %v1140_v28 = vmax.f32 %v2208_v25, %v1124_v37  ;;  %1145 = vst.msk [vmem:[%s2156_s5 + $0x20] sm:$0xff] %vm137_vm0, %v1129_v36 }
 0x187   :  { %1146 = vst.msk [vmem:[%s2156_s5 + $0x28] sm:$0xff] %vm137_vm0, %v1130_v53 }
 0x188   :  { %1147 = vst.msk [vmem:[%s2156_s5 + $0x30] sm:$0xff] %vm137_vm0, %v1131_v52 }
 0x189   :  { %1148 = vst.msk [vmem:[%s2156_s5 + $0x38] sm:$0xff] %vm137_vm0, %v1132_v54 }
 0x18a   :  { %1149 = vst.msk [vmem:[%s2156_s5 + $0x40] sm:$0xff] %vm137_vm0, %v1133_v56 }
 0x18b   :  { %1150 = vst.msk [vmem:[%s2156_s5 + $0x48] sm:$0xff] %vm137_vm0, %v1134_v57 }
 0x18c   :  { %1151 = vst.msk [vmem:[%s2156_s5 + $0x50] sm:$0xff] %vm137_vm0, %v1135_v59 }
 0x18d   :  { %1152 = vst.msk [vmem:[%s2156_s5 + $0x58] sm:$0xff] %vm137_vm0, %v1136_v10 }
 0x18e   :  { %1153 = vst.msk [vmem:[%s2156_s5 + $0x60] sm:$0xff] %vm137_vm0, %v1137_v55 }
 0x18f   :  { %1154 = vst.msk [vmem:[%s2156_s5 + $0x68] sm:$0xff] %vm137_vm0, %v1138_v35 }
 0x190   :  { %1155 = vst.msk [vmem:[%s2156_s5 + $0x70] sm:$0xff] %vm137_vm0, %v1139_v1 }
 0x191   :  { %1156 = vst.msk [vmem:[%s2156_s5 + $0x78] sm:$0xff] %vm137_vm0, %v1140_v28 }

// kernel: dc_encoder_pallas.2
= control target key start
LH: loop header
LB: loop body
LE: loop exit
PB: predicated region body
PF: predicated region fallthrough
CT: control target
= control target key end

     0   :  { %vm96_vm0 = vcmask 523264   ;;  %vm562_vm1 = vcmask 64512   ;;  %s8689_s1 = inlined_call_operand.vmem [shape: f32[4,64,8], index: 1, kind: input, shape index: {}]   ;;  %s8690_s0 = inlined_call_operand.vmem [shape: f32[512,64], index: 0, kind: input, shape index: {}]   ;;  %s8691_s2 = inlined_call_operand.vmem [shape: f32[1,8], index: 2, kind: input, shape index: {}]   ;;  %s8692_s3 = inlined_call_operand.vmem [shape: f32[1,8], index: 3, kind: input, shape index: {}]   ;;  %s8693_s4 = inlined_call_operand.vmem [shape: f32[1,8], index: 4, kind: input, shape index: {}]   ;;  %s8694_s5 = inlined_call_operand.vmem [shape: f32[512,8], index: 5, kind: output, shape index: {}]  }
   0x1   :  { %v92_v0 = vld [vmem:[%s8689_s1 + $0x38] sm:$0xff]  ;;  %v91_v4 = vld [vmem:[%s8689_s1 + $0x30] sm:$0xff]  ;;  %v90_v8 = vld [vmem:[%s8689_s1 + $0x28] sm:$0xff] }
   0x2   :  { %v4129_v1 = vld [vmem:[%s8689_s1 + $0x78] sm:$0xff]  ;;  %297 = vmatpush.msra.mxu0 %v92_v0  ;;  %v4128_v5 = vld [vmem:[%s8689_s1 + $0x70] sm:$0xff]  ;;  %v4127_v9 = vld [vmem:[%s8689_s1 + $0x68] sm:$0xff] }
   0x3   :  { %v4201_v2 = vld [vmem:[%s8689_s1 + $0xb8] sm:$0xff]  ;;  %976 = vmatpush.msra.mxu1 %v4129_v1  ;;  %v4200_v6 = vld [vmem:[%s8689_s1 + $0xb0] sm:$0xff]  ;;  %v4199_v10 = vld [vmem:[%s8689_s1 + $0xa8] sm:$0xff] }
   0x4   :  { %v4273_v3 = vld [vmem:[%s8689_s1 + $0xf8] sm:$0xff]  ;;  %1655 = vmatpush.msra.mxu2 %v4201_v2  ;;  %v4272_v7 = vld [vmem:[%s8689_s1 + $0xf0] sm:$0xff]  ;;  %298 = vmatpush.msra.mxu0 %v91_v4  ;;  %v4271_v11 = vld [vmem:[%s8689_s1 + $0xe8] sm:$0xff] }
   0x5   :  { %2334 = vmatpush.msra.mxu3 %v4273_v3  ;;  %977 = vmatpush.msra.mxu1 %v4128_v5  ;;  %v89_v12 = vld [vmem:[%s8689_s1 + $0x20] sm:$0xff]  ;;  %v88_v16 = vld [vmem:[%s8689_s1 + $0x18] sm:$0xff]  ;;  %v87_v20 = vld [vmem:[%s8689_s1 + $0x10] sm:$0xff] }
   0x6   :  { %1656 = vmatpush.msra.mxu2 %v4200_v6  ;;  %v4126_v13 = vld [vmem:[%s8689_s1 + $0x60] sm:$0xff]  ;;  %299 = vmatpush.msra.mxu0 %v90_v8  ;;  %v4125_v17 = vld [vmem:[%s8689_s1 + $0x58] sm:$0xff]  ;;  %v4124_v21 = vld [vmem:[%s8689_s1 + $0x50] sm:$0xff] }
   0x7   :  { %2335 = vmatpush.msra.mxu3 %v4272_v7  ;;  %978 = vmatpush.msra.mxu1 %v4127_v9  ;;  %v4198_v14 = vld [vmem:[%s8689_s1 + $0xa0] sm:$0xff]  ;;  %v4197_v18 = vld [vmem:[%s8689_s1 + $0x98] sm:$0xff]  ;;  %v4196_v22 = vld [vmem:[%s8689_s1 + $0x90] sm:$0xff] }
   0x8   :  { %v4270_v15 = vld [vmem:[%s8689_s1 + $0xe0] sm:$0xff]  ;;  %1657 = vmatpush.msra.mxu2 %v4199_v10  ;;  %300 = vmatpush.msra.mxu0 %v89_v12  ;;  %v4269_v19 = vld [vmem:[%s8689_s1 + $0xd8] sm:$0xff]  ;;  %v4268_v23 = vld [vmem:[%s8689_s1 + $0xd0] sm:$0xff] }
   0x9   :  { %2336 = vmatpush.msra.mxu3 %v4271_v11  ;;  %979 = vmatpush.msra.mxu1 %v4126_v13  ;;  %v86_v24 = vld [vmem:[%s8689_s1 + $0x8] sm:$0xff]  ;;  %v85_v28 = vld [vmem:[%s8689_s1] sm:$0xff]  ;;  %v22_v34 = vld [vmem:[%s8690_s0 + $0x10] sm:$0xff] }
   0xa   :  { %1658 = vmatpush.msra.mxu2 %v4198_v14  ;;  %301 = vmatpush.msra.mxu0 %v88_v16  ;;  %v4123_v25 = vld [vmem:[%s8689_s1 + $0x48] sm:$0xff]  ;;  %v4122_v29 = vld [vmem:[%s8689_s1 + $0x40] sm:$0xff]  ;;  %v23_v35 = vld [vmem:[%s8690_s0 + $0x18] sm:$0xff] }
   0xb   :  { %2337 = vmatpush.msra.mxu3 %v4270_v15  ;;  %980 = vmatpush.msra.mxu1 %v4125_v17  ;;  %v4195_v26 = vld [vmem:[%s8689_s1 + $0x88] sm:$0xff]  ;;  %v4194_v30 = vld [vmem:[%s8689_s1 + $0x80] sm:$0xff]  ;;  %v26_v38 = vld [vmem:[%s8690_s0 + $0x30] sm:$0xff] }
   0xc   :  { %1659 = vmatpush.msra.mxu2 %v4197_v18  ;;  %302 = vmatpush.msra.mxu0 %v87_v20  ;;  %v4267_v27 = vld [vmem:[%s8689_s1 + $0xc8] sm:$0xff]  ;;  %v4266_v31 = vld [vmem:[%s8689_s1 + $0xc0] sm:$0xff]  ;;  %v27_v39 = vld [vmem:[%s8690_s0 + $0x38] sm:$0xff] }
   0xd   :  { %2338 = vmatpush.msra.mxu3 %v4269_v19  ;;  %981 = vmatpush.msra.mxu1 %v4124_v21  ;;  %v20_v32 = vld [vmem:[%s8690_s0] sm:$0xff]  ;;  %v21_v33 = vld [vmem:[%s8690_s0 + $0x8] sm:$0xff]  ;;  %v30_v42 = vld [vmem:[%s8690_s0 + $0x50] sm:$0xff] }
   0xe   :  { %1660 = vmatpush.msra.mxu2 %v4196_v22  ;;  %303 = vmatpush.msra.mxu0 %v86_v24  ;;  %v24_v36 = vld [vmem:[%s8690_s0 + $0x20] sm:$0xff]  ;;  %v25_v37 = vld [vmem:[%s8690_s0 + $0x28] sm:$0xff]  ;;  %v31_v43 = vld [vmem:[%s8690_s0 + $0x58] sm:$0xff] }
   0xf   :  { %2339 = vmatpush.msra.mxu3 %v4268_v23  ;;  %982 = vmatpush.msra.mxu1 %v4123_v25  ;;  %v28_v40 = vld [vmem:[%s8690_s0 + $0x40] sm:$0xff]  ;;  %v29_v41 = vld [vmem:[%s8690_s0 + $0x48] sm:$0xff]  ;;  %v34_v46 = vld [vmem:[%s8690_s0 + $0x70] sm:$0xff] }
  0x10   :  { %1661 = vmatpush.msra.mxu2 %v4195_v26  ;;  %304 = vmatpush.msra.mxu0 %v85_v28  ;;  %v32_v44 = vld [vmem:[%s8690_s0 + $0x60] sm:$0xff]  ;;  %v33_v45 = vld [vmem:[%s8690_s0 + $0x68] sm:$0xff]  ;;  %v35_v47 = vld [vmem:[%s8690_s0 + $0x78] sm:$0xff] }
  0x11   :  { %2340 = vmatpush.msra.mxu3 %v4267_v27  ;;  %983 = vmatpush.msra.mxu1 %v4122_v29  ;;  %v4590_v48 = vld [vmem:[%s8691_s2] ss:$0 sm:$0xff]  ;;  %v37_v62 = vld [vmem:[%s8690_s0 + $0x88] sm:$0xff]  ;;  %v38_v29 = vld [vmem:[%s8690_s0 + $0x90] sm:$0xff] }
  0x12   :  { %1662 = vmatpush.msra.mxu2 %v4194_v30  ;;  %4058 = vmatmul.msk.f32.vlgmr.msra.gmra.mxu0 %vm96_vm0, %v20_v32  ;;  %v36_v51 = vld [vmem:[%s8690_s0 + $0x80] sm:$0xff] }
  0x13   :  { %2341 = vmatpush.msra.mxu3 %v4266_v31  ;;  %4130 = vmatmul.msk.f32.vlgmr.msra.gmra.mxu1 %vm96_vm0, %v20_v32 }
  0x14   :  { %4202 = vmatmul.msk.f32.vlgmr.msra.gmra.mxu2 %vm96_vm0, %v20_v32  ;;  %4274 = vmatmul.msk.f32.vlgmr.msra.gmra.mxu3 %vm96_vm0, %v20_v32 }
  0x1a   :  { %4059 = vmatmul.msk.f32.gmra.mxu0 %vm96_vm0, %v21_v33 }
  0x1b   :  { %4131 = vmatmul.msk.f32.gmra.mxu1 %vm96_vm0, %v21_v33 }
  0x1c   :  { %4203 = vmatmul.msk.f32.gmra.mxu2 %vm96_vm0, %v21_v33  ;;  %4275 = vmatmul.msk.f32.gmra.mxu3 %vm96_vm0, %v21_v33 }
  0x22   :  { %4060 = vmatmul.msk.f32.gmra.mxu0 %vm96_vm0, %v22_v34 }
  0x23   :  { %4132 = vmatmul.msk.f32.gmra.mxu1 %vm96_vm0, %v22_v34 }
  0x24   :  { %4204 = vmatmul.msk.f32.gmra.mxu2 %vm96_vm0, %v22_v34  ;;  %4276 = vmatmul.msk.f32.gmra.mxu3 %vm96_vm0, %v22_v34 }
  0x2a   :  { %4061 = vmatmul.msk.f32.gmra.mxu0 %vm96_vm0, %v23_v35 }
  0x2b   :  { %4133 = vmatmul.msk.f32.gmra.mxu1 %vm96_vm0, %v23_v35 }
  0x2c   :  { %4205 = vmatmul.msk.f32.gmra.mxu2 %vm96_vm0, %v23_v35  ;;  %4277 = vmatmul.msk.f32.gmra.mxu3 %vm96_vm0, %v23_v35 }
  0x32   :  { %4062 = vmatmul.msk.f32.gmra.mxu0 %vm96_vm0, %v24_v36 }
  0x33   :  { %4134 = vmatmul.msk.f32.gmra.mxu1 %vm96_vm0, %v24_v36 }
  0x34   :  { %4206 = vmatmul.msk.f32.gmra.mxu2 %vm96_vm0, %v24_v36  ;;  %4278 = vmatmul.msk.f32.gmra.mxu3 %vm96_vm0, %v24_v36 }
  0x3a   :  { %4063 = vmatmul.msk.f32.gmra.mxu0 %vm96_vm0, %v25_v37 }
  0x3b   :  { %4135 = vmatmul.msk.f32.gmra.mxu1 %vm96_vm0, %v25_v37 }
  0x3c   :  { %4207 = vmatmul.msk.f32.gmra.mxu2 %vm96_vm0, %v25_v37  ;;  %4279 = vmatmul.msk.f32.gmra.mxu3 %vm96_vm0, %v25_v37 }
  0x42   :  { %4064 = vmatmul.msk.f32.gmra.mxu0 %vm96_vm0, %v26_v38 }
  0x43   :  { %4136 = vmatmul.msk.f32.gmra.mxu1 %vm96_vm0, %v26_v38 }
  0x44   :  { %4208 = vmatmul.msk.f32.gmra.mxu2 %vm96_vm0, %v26_v38  ;;  %4280 = vmatmul.msk.f32.gmra.mxu3 %vm96_vm0, %v26_v38 }
  0x4a   :  { %4065 = vmatmul.msk.f32.gmra.mxu0 %vm96_vm0, %v27_v39 }
  0x4b   :  { %4137 = vmatmul.msk.f32.gmra.mxu1 %vm96_vm0, %v27_v39 }
  0x4c   :  { %4209 = vmatmul.msk.f32.gmra.mxu2 %vm96_vm0, %v27_v39  ;;  %4281 = vmatmul.msk.f32.gmra.mxu3 %vm96_vm0, %v27_v39 }
  0x52   :  { %4066 = vmatmul.msk.f32.gmra.mxu0 %vm96_vm0, %v28_v40 }
  0x53   :  { %4138 = vmatmul.msk.f32.gmra.mxu1 %vm96_vm0, %v28_v40 }
  0x54   :  { %4210 = vmatmul.msk.f32.gmra.mxu2 %vm96_vm0, %v28_v40  ;;  %4282 = vmatmul.msk.f32.gmra.mxu3 %vm96_vm0, %v28_v40 }
  0x5a   :  { %4067 = vmatmul.msk.f32.gmra.mxu0 %vm96_vm0, %v29_v41 }
  0x5b   :  { %4139 = vmatmul.msk.f32.gmra.mxu1 %vm96_vm0, %v29_v41 }
  0x5c   :  { %4211 = vmatmul.msk.f32.gmra.mxu2 %vm96_vm0, %v29_v41  ;;  %4283 = vmatmul.msk.f32.gmra.mxu3 %vm96_vm0, %v29_v41 }
  0x62   :  { %4068 = vmatmul.msk.f32.gmra.mxu0 %vm96_vm0, %v30_v42 }
  0x63   :  { %4140 = vmatmul.msk.f32.gmra.mxu1 %vm96_vm0, %v30_v42 }
  0x64   :  { %4212 = vmatmul.msk.f32.gmra.mxu2 %vm96_vm0, %v30_v42  ;;  %4284 = vmatmul.msk.f32.gmra.mxu3 %vm96_vm0, %v30_v42 }
  0x6a   :  { %4069 = vmatmul.msk.f32.gmra.mxu0 %vm96_vm0, %v31_v43 }
  0x6b   :  { %4141 = vmatmul.msk.f32.gmra.mxu1 %vm96_vm0, %v31_v43 }
  0x6c   :  { %4213 = vmatmul.msk.f32.gmra.mxu2 %vm96_vm0, %v31_v43  ;;  %4285 = vmatmul.msk.f32.gmra.mxu3 %vm96_vm0, %v31_v43 }
  0x72   :  { %4070 = vmatmul.msk.f32.gmra.mxu0 %vm96_vm0, %v32_v44 }
  0x73   :  { %4142 = vmatmul.msk.f32.gmra.mxu1 %vm96_vm0, %v32_v44 }
  0x74   :  { %4214 = vmatmul.msk.f32.gmra.mxu2 %vm96_vm0, %v32_v44  ;;  %4286 = vmatmul.msk.f32.gmra.mxu3 %vm96_vm0, %v32_v44 }
  0x7a   :  { %4071 = vmatmul.msk.f32.gmra.mxu0 %vm96_vm0, %v33_v45 }
  0x7b   :  { %4143 = vmatmul.msk.f32.gmra.mxu1 %vm96_vm0, %v33_v45 }
  0x7c   :  { %4215 = vmatmul.msk.f32.gmra.mxu2 %vm96_vm0, %v33_v45  ;;  %4287 = vmatmul.msk.f32.gmra.mxu3 %vm96_vm0, %v33_v45 }
  0x82   :  { %4072 = vmatmul.msk.f32.gmra.mxu0 %vm96_vm0, %v34_v46 }
  0x83   :  { %4144 = vmatmul.msk.f32.gmra.mxu1 %vm96_vm0, %v34_v46 }
  0x84   :  { %4216 = vmatmul.msk.f32.gmra.mxu2 %vm96_vm0, %v34_v46  ;;  %4288 = vmatmul.msk.f32.gmra.mxu3 %vm96_vm0, %v34_v46 }
  0x8a   :  { %4073 = vmatmul.msk.f32.gmra.mxu0 %vm96_vm0, %v35_v47 }
  0x8b   :  { %4145 = vmatmul.msk.f32.gmra.mxu1 %vm96_vm0, %v35_v47 }
  0x8c   :  { %4217 = vmatmul.msk.f32.gmra.mxu2 %vm96_vm0, %v35_v47  ;;  %4289 = vmatmul.msk.f32.gmra.mxu3 %vm96_vm0, %v35_v47 }
  0x8f   :  { %v306_v49 = vpop.f32.mrf.mxu0 }
  0x90   :  { %v985_v50 = vpop.f32.mrf.mxu1  ;;  %v307_v52 = vadd.f32 %v4590_v48, %v306_v49 }
  0x91   :  { %v986_v53 = vadd.f32 %v4590_v48, %v985_v50 }
  0x92   :  { %v498_v54 = vmax.f32 %v307_v52, 0.0  ;;  %4074 = vmatmul.msk.f32.gmra.mxu0 %vm96_vm0, %v36_v51 }
  0x93   :  { %v1177_v55 = vmax.f32 %v986_v53, 0.0  ;;  %4146 = vmatmul.msk.f32.gmra.mxu1 %vm96_vm0, %v36_v51 }
  0x94   :  { %4218 = vmatmul.msk.f32.gmra.mxu2 %vm96_vm0, %v36_v51  ;;  %4290 = vmatmul.msk.f32.gmra.mxu3 %vm96_vm0, %v36_v51  ;;  %563 = vst.msk [vmem:[#allocation2] sm:$0xff] %vm562_vm1, %v498_v54  ;;  %v761_v1 = vmul.f32 %v498_v54, %v498_v54  ;;  %v627_v7 = vsel %vm562_vm1, %v498_v54, 0.0 }
  0x95   :  { %1242 = vst.msk [vmem:[#allocation2 + $0x200] sm:$0xff] %vm562_vm1, %v1177_v55  ;;  %v1440_v2 = vmul.f32 %v1177_v55, %v1177_v55  ;;  %v1306_v8 = vsel %vm562_vm1, %v1177_v55, 0.0 }
  0x96   :  { %v825_v13 = vsel %vm562_vm1, %v761_v1, 0.0  ;;  %v39_v1 = vld [vmem:[%s8690_s0 + $0x98] sm:$0xff] }
  0x97   :  { %v1664_v56 = vpop.f32.mrf.mxu2  ;;  %v2343_v57 = vpop.f32.mrf.mxu3  ;;  %v1504_v14 = vsel %vm562_vm1, %v1440_v2, 0.0 }
  0x98   :  { %v1665_v58 = vadd.f32 %v4590_v48, %v1664_v56  ;;  %v2344_v59 = vadd.f32 %v4590_v48, %v2343_v57  ;;  %v309_v60 = vpop.f32.mrf.mxu0  ;;  %v988_v61 = vpop.f32.mrf.mxu1 }
  0x99   :  { %v310_v63 = vadd.f32 %v4590_v48, %v309_v60  ;;  %v989_v0 = vadd.f32 %v4590_v48, %v988_v61 }
  0x9a   :  { %v1856_v3 = vmax.f32 %v1665_v58, 0.0  ;;  %v2535_v4 = vmax.f32 %v2344_v59, 0.0  ;;  %4075 = vmatmul.msk.f32.gmra.mxu0 %vm96_vm0, %v37_v62 }
  0x9b   :  { %v499_v5 = vmax.f32 %v310_v63, 0.0  ;;  %v1178_v6 = vmax.f32 %v989_v0, 0.0  ;;  %4147 = vmatmul.msk.f32.gmra.mxu1 %vm96_vm0, %v37_v62 }
  0x9c   :  { %1921 = vst.msk [vmem:[#allocation2 + $0x400] sm:$0xff] %vm562_vm1, %v1856_v3  ;;  %4219 = vmatmul.msk.f32.gmra.mxu2 %vm96_vm0, %v37_v62  ;;  %4291 = vmatmul.msk.f32.gmra.mxu3 %vm96_vm0, %v37_v62  ;;  %v2119_v17 = vmul.f32 %v1856_v3, %v1856_v3  ;;  %v2798_v18 = vmul.f32 %v2535_v4, %v2535_v4  ;;  %v1985_v32 = vsel %vm562_vm1, %v1856_v3, 0.0  ;;  %v2664_v33 = vsel %vm562_vm1, %v2535_v4, 0.0 }
  0x9d   :  { %2600 = vst.msk [vmem:[#allocation2 + $0x600] sm:$0xff] %vm562_vm1, %v2535_v4  ;;  %v628_v9 = vsel %vm562_vm1, %v499_v5, 0.0  ;;  %v762_v10 = vmul.f32 %v499_v5, %v499_v5  ;;  %v1307_v11 = vsel %vm562_vm1, %v1178_v6, 0.0  ;;  %v1441_v12 = vmul.f32 %v1178_v6, %v1178_v6 }
  0x9e   :  { %564 = vst.msk [vmem:[#allocation2 + $0x8] sm:$0xff] %vm562_vm1, %v499_v5  ;;  %v629_v15 = vadd.f32 %v628_v9, %v627_v7  ;;  %v1308_v16 = vadd.f32 %v1307_v11, %v1306_v8  ;;  %v2183_v36 = vsel %vm562_vm1, %v2119_v17, 0.0  ;;  %v2862_v37 = vsel %vm562_vm1, %v2798_v18, 0.0 }
  0x9f   :  { %v826_v19 = vsel %vm562_vm1, %v762_v10, 0.0  ;;  %1243 = vst.msk [vmem:[#allocation2 + $0x208] sm:$0xff] %vm562_vm1, %v1178_v6  ;;  %v1505_v20 = vsel %vm562_vm1, %v1441_v12, 0.0  ;;  %v1667_v21 = vpop.f32.mrf.mxu2  ;;  %v2346_v22 = vpop.f32.mrf.mxu3 }
  0xa0   :  { %v827_v23 = vadd.f32 %v826_v19, %v825_v13  ;;  %v1506_v24 = vadd.f32 %v1505_v20, %v1504_v14  ;;  %v1668_v25 = vadd.f32 %v4590_v48, %v1667_v21  ;;  %v2347_v26 = vadd.f32 %v4590_v48, %v2346_v22  ;;  %v312_v27 = vpop.f32.mrf.mxu0  ;;  %v991_v28 = vpop.f32.mrf.mxu1 }
  0xa1   :  { %v313_v30 = vadd.f32 %v4590_v48, %v312_v27  ;;  %v992_v31 = vadd.f32 %v4590_v48, %v991_v28 }
  0xa2   :  { %v1857_v34 = vmax.f32 %v1668_v25, 0.0  ;;  %v2536_v35 = vmax.f32 %v2347_v26, 0.0  ;;  %4076 = vmatmul.msk.f32.gmra.mxu0 %vm96_vm0, %v38_v29 }
  0xa3   :  { %v500_v38 = vmax.f32 %v313_v30, 0.0  ;;  %v1179_v39 = vmax.f32 %v992_v31, 0.0  ;;  %4148 = vmatmul.msk.f32.gmra.mxu1 %vm96_vm0, %v38_v29 }
  0xa4   :  { %1922 = vst.msk [vmem:[#allocation2 + $0x408] sm:$0xff] %vm562_vm1, %v1857_v34  ;;  %v1986_v40 = vsel %vm562_vm1, %v1857_v34, 0.0  ;;  %v2120_v41 = vmul.f32 %v1857_v34, %v1857_v34  ;;  %v2665_v42 = vsel %vm562_vm1, %v2536_v35, 0.0  ;;  %v2799_v43 = vmul.f32 %v2536_v35, %v2536_v35  ;;  %4220 = vmatmul.msk.f32.gmra.mxu2 %vm96_vm0, %v38_v29  ;;  %4292 = vmatmul.msk.f32.gmra.mxu3 %vm96_vm0, %v38_v29  ;;  %v40_v34 = vld [vmem:[%s8690_s0 + $0xa0] sm:$0xff] }
  0xa5   :  { %v1987_v44 = vadd.f32 %v1986_v40, %v1985_v32  ;;  %2601 = vst.msk [vmem:[#allocation2 + $0x608] sm:$0xff] %vm562_vm1, %v2536_v35  ;;  %v2666_v45 = vadd.f32 %v2665_v42, %v2664_v33  ;;  %v630_v46 = vsel %vm562_vm1, %v500_v38, 0.0  ;;  %v763_v47 = vmul.f32 %v500_v38, %v500_v38 }
  0xa6   :  { %v2184_v49 = vsel %vm562_vm1, %v2120_v41, 0.0  ;;  %v2863_v50 = vsel %vm562_vm1, %v2799_v43, 0.0  ;;  %565 = vst.msk [vmem:[#allocation2 + $0x10] sm:$0xff] %vm562_vm1, %v500_v38  ;;  %v631_v51 = vadd.f32 %v630_v46, %v629_v15  ;;  %v1309_v52 = vsel %vm562_vm1, %v1179_v39, 0.0 }
  0xa7   :  { %v2185_v53 = vadd.f32 %v2184_v49, %v2183_v36  ;;  %v2864_v54 = vadd.f32 %v2863_v50, %v2862_v37  ;;  %v828_v55 = vsel %vm562_vm1, %v763_v47, 0.0  ;;  %1244 = vst.msk [vmem:[#allocation2 + $0x210] sm:$0xff] %vm562_vm1, %v1179_v39  ;;  %v1310_v56 = vadd.f32 %v1309_v52, %v1308_v16  ;;  %v1670_v57 = vpop.f32.mrf.mxu2  ;;  %v2349_v58 = vpop.f32.mrf.mxu3 }
  0xa8   :  { %v829_v59 = vadd.f32 %v828_v55, %v827_v23  ;;  %v1442_v60 = vmul.f32 %v1179_v39, %v1179_v39  ;;  %v1671_v61 = vadd.f32 %v4590_v48, %v1670_v57  ;;  %v2350_v62 = vadd.f32 %v4590_v48, %v2349_v58  ;;  %v315_v63 = vpop.f32.mrf.mxu0  ;;  %v994_v0 = vpop.f32.mrf.mxu1 }
  0xa9   :  { %v316_v2 = vadd.f32 %v4590_v48, %v315_v63  ;;  %v995_v3 = vadd.f32 %v4590_v48, %v994_v0 }
  0xaa   :  { %v1507_v4 = vsel %vm562_vm1, %v1442_v60, 0.0  ;;  %v1858_v5 = vmax.f32 %v1671_v61, 0.0  ;;  %v2537_v6 = vmax.f32 %v2350_v62, 0.0  ;;  %4077 = vmatmul.msk.f32.gmra.mxu0 %vm96_vm0, %v39_v1 }
  0xab   :  { %v1508_v7 = vadd.f32 %v1507_v4, %v1506_v24  ;;  %v501_v8 = vmax.f32 %v316_v2, 0.0  ;;  %v1180_v9 = vmax.f32 %v995_v3, 0.0  ;;  %4149 = vmatmul.msk.f32.gmra.mxu1 %vm96_vm0, %v39_v1  ;;  %v41_v4 = vld [vmem:[%s8690_s0 + $0xa8] sm:$0xff] }
  0xac   :  { %1923 = vst.msk [vmem:[#allocation2 + $0x410] sm:$0xff] %vm562_vm1, %v1858_v5  ;;  %v1988_v10 = vsel %vm562_vm1, %v1858_v5, 0.0  ;;  %v2121_v11 = vmul.f32 %v1858_v5, %v1858_v5  ;;  %v2667_v12 = vsel %vm562_vm1, %v2537_v6, 0.0  ;;  %v2800_v13 = vmul.f32 %v2537_v6, %v2537_v6  ;;  %4221 = vmatmul.msk.f32.gmra.mxu2 %vm96_vm0, %v39_v1  ;;  %4293 = vmatmul.msk.f32.gmra.mxu3 %vm96_vm0, %v39_v1 }
  0xad   :  { %v1989_v14 = vadd.f32 %v1988_v10, %v1987_v44  ;;  %2602 = vst.msk [vmem:[#allocation2 + $0x610] sm:$0xff] %vm562_vm1, %v2537_v6  ;;  %v2668_v15 = vadd.f32 %v2667_v12, %v2666_v45  ;;  %v632_v16 = vsel %vm562_vm1, %v501_v8, 0.0  ;;  %v764_v17 = vmul.f32 %v501_v8, %v501_v8 }
  0xae   :  { %v2186_v18 = vsel %vm562_vm1, %v2121_v11, 0.0  ;;  %v2865_v19 = vsel %vm562_vm1, %v2800_v13, 0.0  ;;  %566 = vst.msk [vmem:[#allocation2 + $0x18] sm:$0xff] %vm562_vm1, %v501_v8  ;;  %v633_v20 = vadd.f32 %v632_v16, %v631_v51  ;;  %v1311_v21 = vsel %vm562_vm1, %v1180_v9, 0.0 }
  0xaf   :  { %v2187_v22 = vadd.f32 %v2186_v18, %v2185_v53  ;;  %v2866_v23 = vadd.f32 %v2865_v19, %v2864_v54  ;;  %v830_v24 = vsel %vm562_vm1, %v764_v17, 0.0  ;;  %1245 = vst.msk [vmem:[#allocation2 + $0x218] sm:$0xff] %vm562_vm1, %v1180_v9  ;;  %v1312_v25 = vadd.f32 %v1311_v21, %v1310_v56  ;;  %v1673_v26 = vpop.f32.mrf.mxu2  ;;  %v2352_v27 = vpop.f32.mrf.mxu3 }
  0xb0   :  { %v831_v28 = vadd.f32 %v830_v24, %v829_v59  ;;  %v1443_v29 = vmul.f32 %v1180_v9, %v1180_v9  ;;  %v1674_v30 = vadd.f32 %v4590_v48, %v1673_v26  ;;  %v2353_v31 = vadd.f32 %v4590_v48, %v2352_v27  ;;  %v318_v32 = vpop.f32.mrf.mxu0  ;;  %v997_v33 = vpop.f32.mrf.mxu1 }
  0xb1   :  { %v319_v35 = vadd.f32 %v4590_v48, %v318_v32  ;;  %v998_v36 = vadd.f32 %v4590_v48, %v997_v33 }
  0xb2   :  { %v1509_v37 = vsel %vm562_vm1, %v1443_v29, 0.0  ;;  %v1859_v38 = vmax.f32 %v1674_v30, 0.0  ;;  %v2538_v39 = vmax.f32 %v2353_v31, 0.0  ;;  %4078 = vmatmul.msk.f32.gmra.mxu0 %vm96_vm0, %v40_v34 }
  0xb3   :  { %v1510_v40 = vadd.f32 %v1509_v37, %v1508_v7  ;;  %v502_v41 = vmax.f32 %v319_v35, 0.0  ;;  %v1181_v42 = vmax.f32 %v998_v36, 0.0  ;;  %4150 = vmatmul.msk.f32.gmra.mxu1 %vm96_vm0, %v40_v34  ;;  %v42_v37 = vld [vmem:[%s8690_s0 + $0xb0] sm:$0xff] }
  0xb4   :  { %1924 = vst.msk [vmem:[#allocation2 + $0x418] sm:$0xff] %vm562_vm1, %v1859_v38  ;;  %v1990_v43 = vsel %vm562_vm1, %v1859_v38, 0.0  ;;  %v2122_v44 = vmul.f32 %v1859_v38, %v1859_v38  ;;  %v2669_v45 = vsel %vm562_vm1, %v2538_v39, 0.0  ;;  %v2801_v46 = vmul.f32 %v2538_v39, %v2538_v39  ;;  %4222 = vmatmul.msk.f32.gmra.mxu2 %vm96_vm0, %v40_v34  ;;  %4294 = vmatmul.msk.f32.gmra.mxu3 %vm96_vm0, %v40_v34 }
  0xb5   :  { %v1991_v47 = vadd.f32 %v1990_v43, %v1989_v14  ;;  %2603 = vst.msk [vmem:[#allocation2 + $0x618] sm:$0xff] %vm562_vm1, %v2538_v39  ;;  %v2670_v49 = vadd.f32 %v2669_v45, %v2668_v15  ;;  %v634_v50 = vsel %vm562_vm1, %v502_v41, 0.0  ;;  %v765_v51 = vmul.f32 %v502_v41, %v502_v41 }
  0xb6   :  { %v2188_v52 = vsel %vm562_vm1, %v2122_v44, 0.0  ;;  %v2867_v53 = vsel %vm562_vm1, %v2801_v46, 0.0  ;;  %567 = vst.msk [vmem:[#allocation2 + $0x20] sm:$0xff] %vm562_vm1, %v502_v41  ;;  %v635_v54 = vadd.f32 %v634_v50, %v633_v20  ;;  %v1313_v55 = vsel %vm562_vm1, %v1181_v42, 0.0 }
  0xb7   :  { %v2189_v56 = vadd.f32 %v2188_v52, %v2187_v22  ;;  %v2868_v57 = vadd.f32 %v2867_v53, %v2866_v23  ;;  %v832_v58 = vsel %vm562_vm1, %v765_v51, 0.0  ;;  %1246 = vst.msk [vmem:[#allocation2 + $0x220] sm:$0xff] %vm562_vm1, %v1181_v42  ;;  %v1314_v59 = vadd.f32 %v1313_v55, %v1312_v25  ;;  %v1676_v60 = vpop.f32.mrf.mxu2  ;;  %v2355_v61 = vpop.f32.mrf.mxu3 }
  0xb8   :  { %v833_v62 = vadd.f32 %v832_v58, %v831_v28  ;;  %v1444_v63 = vmul.f32 %v1181_v42, %v1181_v42  ;;  %v1677_v0 = vadd.f32 %v4590_v48, %v1676_v60  ;;  %v2356_v1 = vadd.f32 %v4590_v48, %v2355_v61  ;;  %v321_v2 = vpop.f32.mrf.mxu0  ;;  %v1000_v3 = vpop.f32.mrf.mxu1 }
  0xb9   :  { %v322_v5 = vadd.f32 %v4590_v48, %v321_v2  ;;  %v1001_v6 = vadd.f32 %v4590_v48, %v1000_v3 }
  0xba   :  { %v1511_v7 = vsel %vm562_vm1, %v1444_v63, 0.0  ;;  %v1860_v8 = vmax.f32 %v1677_v0, 0.0  ;;  %v2539_v9 = vmax.f32 %v2356_v1, 0.0  ;;  %4079 = vmatmul.msk.f32.gmra.mxu0 %vm96_vm0, %v41_v4 }
  0xbb   :  { %v1512_v10 = vadd.f32 %v1511_v7, %v1510_v40  ;;  %v503_v11 = vmax.f32 %v322_v5, 0.0  ;;  %v1182_v12 = vmax.f32 %v1001_v6, 0.0  ;;  %4151 = vmatmul.msk.f32.gmra.mxu1 %vm96_vm0, %v41_v4  ;;  %v43_v7 = vld [vmem:[%s8690_s0 + $0xb8] sm:$0xff] }
  0xbc   :  { %1925 = vst.msk [vmem:[#allocation2 + $0x420] sm:$0xff] %vm562_vm1, %v1860_v8  ;;  %v1992_v13 = vsel %vm562_vm1, %v1860_v8, 0.0  ;;  %v2123_v14 = vmul.f32 %v1860_v8, %v1860_v8  ;;  %v2671_v15 = vsel %vm562_vm1, %v2539_v9, 0.0  ;;  %v2802_v16 = vmul.f32 %v2539_v9, %v2539_v9  ;;  %4223 = vmatmul.msk.f32.gmra.mxu2 %vm96_vm0, %v41_v4  ;;  %4295 = vmatmul.msk.f32.gmra.mxu3 %vm96_vm0, %v41_v4 }
  0xbd   :  { %v1993_v17 = vadd.f32 %v1992_v13, %v1991_v47  ;;  %2604 = vst.msk [vmem:[#allocation2 + $0x620] sm:$0xff] %vm562_vm1, %v2539_v9  ;;  %v2672_v18 = vadd.f32 %v2671_v15, %v2670_v49  ;;  %v636_v19 = vsel %vm562_vm1, %v503_v11, 0.0  ;;  %v766_v20 = vmul.f32 %v503_v11, %v503_v11 }
  0xbe   :  { %v2190_v21 = vsel %vm562_vm1, %v2123_v14, 0.0  ;;  %v2869_v22 = vsel %vm562_vm1, %v2802_v16, 0.0  ;;  %568 = vst.msk [vmem:[#allocation2 + $0x28] sm:$0xff] %vm562_vm1, %v503_v11  ;;  %v637_v23 = vadd.f32 %v636_v19, %v635_v54  ;;  %v1315_v24 = vsel %vm562_vm1, %v1182_v12, 0.0 }
  0xbf   :  { %v2191_v25 = vadd.f32 %v2190_v21, %v2189_v56  ;;  %v2870_v26 = vadd.f32 %v2869_v22, %v2868_v57  ;;  %v834_v27 = vsel %vm562_vm1, %v766_v20, 0.0  ;;  %1247 = vst.msk [vmem:[#allocation2 + $0x228] sm:$0xff] %vm562_vm1, %v1182_v12  ;;  %v1316_v28 = vadd.f32 %v1315_v24, %v1314_v59  ;;  %v1679_v29 = vpop.f32.mrf.mxu2  ;;  %v2358_v30 = vpop.f32.mrf.mxu3 }
  0xc0   :  { %v835_v31 = vadd.f32 %v834_v27, %v833_v62  ;;  %v1445_v32 = vmul.f32 %v1182_v12, %v1182_v12  ;;  %v1680_v33 = vadd.f32 %v4590_v48, %v1679_v29  ;;  %v2359_v34 = vadd.f32 %v4590_v48, %v2358_v30  ;;  %v324_v35 = vpop.f32.mrf.mxu0  ;;  %v1003_v36 = vpop.f32.mrf.mxu1 }
  0xc1   :  { %v325_v38 = vadd.f32 %v4590_v48, %v324_v35  ;;  %v1004_v39 = vadd.f32 %v4590_v48, %v1003_v36 }
  0xc2   :  { %v1513_v40 = vsel %vm562_vm1, %v1445_v32, 0.0  ;;  %v1861_v41 = vmax.f32 %v1680_v33, 0.0  ;;  %v2540_v42 = vmax.f32 %v2359_v34, 0.0  ;;  %4080 = vmatmul.msk.f32.gmra.mxu0 %vm96_vm0, %v42_v37 }
  0xc3   :  { %v1514_v43 = vadd.f32 %v1513_v40, %v1512_v10  ;;  %v504_v44 = vmax.f32 %v325_v38, 0.0  ;;  %v1183_v45 = vmax.f32 %v1004_v39, 0.0  ;;  %4152 = vmatmul.msk.f32.gmra.mxu1 %vm96_vm0, %v42_v37  ;;  %v44_v40 = vld [vmem:[%s8690_s0 + $0xc0] sm:$0xff] }
  0xc4   :  { %1926 = vst.msk [vmem:[#allocation2 + $0x428] sm:$0xff] %vm562_vm1, %v1861_v41  ;;  %v1994_v46 = vsel %vm562_vm1, %v1861_v41, 0.0  ;;  %v2124_v47 = vmul.f32 %v1861_v41, %v1861_v41  ;;  %v2673_v49 = vsel %vm562_vm1, %v2540_v42, 0.0  ;;  %v2803_v50 = vmul.f32 %v2540_v42, %v2540_v42  ;;  %4224 = vmatmul.msk.f32.gmra.mxu2 %vm96_vm0, %v42_v37  ;;  %4296 = vmatmul.msk.f32.gmra.mxu3 %vm96_vm0, %v42_v37 }
  0xc5   :  { %v1995_v51 = vadd.f32 %v1994_v46, %v1993_v17  ;;  %2605 = vst.msk [vmem:[#allocation2 + $0x628] sm:$0xff] %vm562_vm1, %v2540_v42  ;;  %v2674_v52 = vadd.f32 %v2673_v49, %v2672_v18  ;;  %v638_v53 = vsel %vm562_vm1, %v504_v44, 0.0  ;;  %v767_v54 = vmul.f32 %v504_v44, %v504_v44 }
  0xc6   :  { %v2192_v55 = vsel %vm562_vm1, %v2124_v47, 0.0  ;;  %v2871_v56 = vsel %vm562_vm1, %v2803_v50, 0.0  ;;  %569 = vst.msk [vmem:[#allocation2 + $0x30] sm:$0xff] %vm562_vm1, %v504_v44  ;;  %v639_v57 = vadd.f32 %v638_v53, %v637_v23  ;;  %v1317_v58 = vsel %vm562_vm1, %v1183_v45, 0.0 }
  0xc7   :  { %v2193_v59 = vadd.f32 %v2192_v55, %v2191_v25  ;;  %v2872_v60 = vadd.f32 %v2871_v56, %v2870_v26  ;;  %v836_v61 = vsel %vm562_vm1, %v767_v54, 0.0  ;;  %1248 = vst.msk [vmem:[#allocation2 + $0x230] sm:$0xff] %vm562_vm1, %v1183_v45  ;;  %v1318_v62 = vadd.f32 %v1317_v58, %v1316_v28  ;;  %v1682_v63 = vpop.f32.mrf.mxu2  ;;  %v2361_v0 = vpop.f32.mrf.mxu3 }
  0xc8   :  { %v837_v1 = vadd.f32 %v836_v61, %v835_v31  ;;  %v1446_v2 = vmul.f32 %v1183_v45, %v1183_v45  ;;  %v1683_v3 = vadd.f32 %v4590_v48, %v1682_v63  ;;  %v2362_v4 = vadd.f32 %v4590_v48, %v2361_v0  ;;  %v327_v5 = vpop.f32.mrf.mxu0  ;;  %v1006_v6 = vpop.f32.mrf.mxu1 }
  0xc9   :  { %v328_v8 = vadd.f32 %v4590_v48, %v327_v5  ;;  %v1007_v9 = vadd.f32 %v4590_v48, %v1006_v6 }
  0xca   :  { %v1515_v10 = vsel %vm562_vm1, %v1446_v2, 0.0  ;;  %v1862_v11 = vmax.f32 %v1683_v3, 0.0  ;;  %v2541_v12 = vmax.f32 %v2362_v4, 0.0  ;;  %4081 = vmatmul.msk.f32.gmra.mxu0 %vm96_vm0, %v43_v7 }
  0xcb   :  { %v1516_v13 = vadd.f32 %v1515_v10, %v1514_v43  ;;  %v505_v14 = vmax.f32 %v328_v8, 0.0  ;;  %v1184_v15 = vmax.f32 %v1007_v9, 0.0  ;;  %4153 = vmatmul.msk.f32.gmra.mxu1 %vm96_vm0, %v43_v7  ;;  %v45_v10 = vld [vmem:[%s8690_s0 + $0xc8] sm:$0xff] }
  0xcc   :  { %1927 = vst.msk [vmem:[#allocation2 + $0x430] sm:$0xff] %vm562_vm1, %v1862_v11  ;;  %v1996_v16 = vsel %vm562_vm1, %v1862_v11, 0.0  ;;  %v2125_v17 = vmul.f32 %v1862_v11, %v1862_v11  ;;  %v2675_v18 = vsel %vm562_vm1, %v2541_v12, 0.0  ;;  %v2804_v19 = vmul.f32 %v2541_v12, %v2541_v12  ;;  %4225 = vmatmul.msk.f32.gmra.mxu2 %vm96_vm0, %v43_v7  ;;  %4297 = vmatmul.msk.f32.gmra.mxu3 %vm96_vm0, %v43_v7 }
  0xcd   :  { %v1997_v20 = vadd.f32 %v1996_v16, %v1995_v51  ;;  %2606 = vst.msk [vmem:[#allocation2 + $0x630] sm:$0xff] %vm562_vm1, %v2541_v12  ;;  %v2676_v21 = vadd.f32 %v2675_v18, %v2674_v52  ;;  %v640_v22 = vsel %vm562_vm1, %v505_v14, 0.0  ;;  %v768_v23 = vmul.f32 %v505_v14, %v505_v14 }
  0xce   :  { %v2194_v24 = vsel %vm562_vm1, %v2125_v17, 0.0  ;;  %v2873_v25 = vsel %vm562_vm1, %v2804_v19, 0.0  ;;  %570 = vst.msk [vmem:[#allocation2 + $0x38] sm:$0xff] %vm562_vm1, %v505_v14  ;;  %v641_v26 = vadd.f32 %v640_v22, %v639_v57  ;;  %v1319_v27 = vsel %vm562_vm1, %v1184_v15, 0.0 }
  0xcf   :  { %v2195_v28 = vadd.f32 %v2194_v24, %v2193_v59  ;;  %v2874_v29 = vadd.f32 %v2873_v25, %v2872_v60  ;;  %v838_v30 = vsel %vm562_vm1, %v768_v23, 0.0  ;;  %1249 = vst.msk [vmem:[#allocation2 + $0x238] sm:$0xff] %vm562_vm1, %v1184_v15  ;;  %v1320_v31 = vadd.f32 %v1319_v27, %v1318_v62  ;;  %v1685_v32 = vpop.f32.mrf.mxu2  ;;  %v2364_v33 = vpop.f32.mrf.mxu3 }
  0xd0   :  { %v839_v34 = vadd.f32 %v838_v30, %v837_v1  ;;  %v1447_v35 = vmul.f32 %v1184_v15, %v1184_v15  ;;  %v1686_v36 = vadd.f32 %v4590_v48, %v1685_v32  ;;  %v2365_v37 = vadd.f32 %v4590_v48, %v2364_v33  ;;  %v330_v38 = vpop.f32.mrf.mxu0  ;;  %v1009_v39 = vpop.f32.mrf.mxu1 }
  0xd1   :  { %v331_v41 = vadd.f32 %v4590_v48, %v330_v38  ;;  %v1010_v42 = vadd.f32 %v4590_v48, %v1009_v39 }
  0xd2   :  { %v1517_v43 = vsel %vm562_vm1, %v1447_v35, 0.0  ;;  %v1863_v44 = vmax.f32 %v1686_v36, 0.0  ;;  %v2542_v45 = vmax.f32 %v2365_v37, 0.0  ;;  %4082 = vmatmul.msk.f32.gmra.mxu0 %vm96_vm0, %v44_v40 }
  0xd3   :  { %v1518_v46 = vadd.f32 %v1517_v43, %v1516_v13  ;;  %v506_v47 = vmax.f32 %v331_v41, 0.0  ;;  %v1185_v49 = vmax.f32 %v1010_v42, 0.0  ;;  %4154 = vmatmul.msk.f32.gmra.mxu1 %vm96_vm0, %v44_v40  ;;  %v46_v43 = vld [vmem:[%s8690_s0 + $0xd0] sm:$0xff] }
  0xd4   :  { %1928 = vst.msk [vmem:[#allocation2 + $0x438] sm:$0xff] %vm562_vm1, %v1863_v44  ;;  %v1998_v50 = vsel %vm562_vm1, %v1863_v44, 0.0  ;;  %v2126_v51 = vmul.f32 %v1863_v44, %v1863_v44  ;;  %v2677_v52 = vsel %vm562_vm1, %v2542_v45, 0.0  ;;  %v2805_v53 = vmul.f32 %v2542_v45, %v2542_v45  ;;  %4226 = vmatmul.msk.f32.gmra.mxu2 %vm96_vm0, %v44_v40  ;;  %4298 = vmatmul.msk.f32.gmra.mxu3 %vm96_vm0, %v44_v40 }
  0xd5   :  { %v1999_v54 = vadd.f32 %v1998_v50, %v1997_v20  ;;  %2607 = vst.msk [vmem:[#allocation2 + $0x638] sm:$0xff] %vm562_vm1, %v2542_v45  ;;  %v2678_v55 = vadd.f32 %v2677_v52, %v2676_v21  ;;  %v642_v56 = vsel %vm562_vm1, %v506_v47, 0.0  ;;  %v769_v57 = vmul.f32 %v506_v47, %v506_v47 }
  0xd6   :  { %v2196_v58 = vsel %vm562_vm1, %v2126_v51, 0.0  ;;  %v2875_v59 = vsel %vm562_vm1, %v2805_v53, 0.0  ;;  %571 = vst.msk [vmem:[#allocation2 + $0x40] sm:$0xff] %vm562_vm1, %v506_v47  ;;  %v643_v60 = vadd.f32 %v642_v56, %v641_v26  ;;  %v1321_v61 = vsel %vm562_vm1, %v1185_v49, 0.0 }
  0xd7   :  { %v2197_v62 = vadd.f32 %v2196_v58, %v2195_v28  ;;  %v2876_v63 = vadd.f32 %v2875_v59, %v2874_v29  ;;  %v840_v0 = vsel %vm562_vm1, %v769_v57, 0.0  ;;  %1250 = vst.msk [vmem:[#allocation2 + $0x240] sm:$0xff] %vm562_vm1, %v1185_v49  ;;  %v1322_v1 = vadd.f32 %v1321_v61, %v1320_v31  ;;  %v1688_v2 = vpop.f32.mrf.mxu2  ;;  %v2367_v3 = vpop.f32.mrf.mxu3 }
  0xd8   :  { %v841_v4 = vadd.f32 %v840_v0, %v839_v34  ;;  %v1448_v5 = vmul.f32 %v1185_v49, %v1185_v49  ;;  %v1689_v6 = vadd.f32 %v4590_v48, %v1688_v2  ;;  %v2368_v7 = vadd.f32 %v4590_v48, %v2367_v3  ;;  %v333_v8 = vpop.f32.mrf.mxu0  ;;  %v1012_v9 = vpop.f32.mrf.mxu1 }
  0xd9   :  { %v334_v11 = vadd.f32 %v4590_v48, %v333_v8  ;;  %v1013_v12 = vadd.f32 %v4590_v48, %v1012_v9 }
  0xda   :  { %v1519_v13 = vsel %vm562_vm1, %v1448_v5, 0.0  ;;  %v1864_v14 = vmax.f32 %v1689_v6, 0.0  ;;  %v2543_v15 = vmax.f32 %v2368_v7, 0.0  ;;  %4083 = vmatmul.msk.f32.gmra.mxu0 %vm96_vm0, %v45_v10 }
  0xdb   :  { %v1520_v16 = vadd.f32 %v1519_v13, %v1518_v46  ;;  %v507_v17 = vmax.f32 %v334_v11, 0.0  ;;  %v1186_v18 = vmax.f32 %v1013_v12, 0.0  ;;  %4155 = vmatmul.msk.f32.gmra.mxu1 %vm96_vm0, %v45_v10  ;;  %v47_v13 = vld [vmem:[%s8690_s0 + $0xd8] sm:$0xff] }
  0xdc   :  { %1929 = vst.msk [vmem:[#allocation2 + $0x440] sm:$0xff] %vm562_vm1, %v1864_v14  ;;  %v2000_v19 = vsel %vm562_vm1, %v1864_v14, 0.0  ;;  %v2127_v20 = vmul.f32 %v1864_v14, %v1864_v14  ;;  %v2679_v21 = vsel %vm562_vm1, %v2543_v15, 0.0  ;;  %v2806_v22 = vmul.f32 %v2543_v15, %v2543_v15  ;;  %4227 = vmatmul.msk.f32.gmra.mxu2 %vm96_vm0, %v45_v10  ;;  %4299 = vmatmul.msk.f32.gmra.mxu3 %vm96_vm0, %v45_v10 }
  0xdd   :  { %v2001_v23 = vadd.f32 %v2000_v19, %v1999_v54  ;;  %2608 = vst.msk [vmem:[#allocation2 + $0x640] sm:$0xff] %vm562_vm1, %v2543_v15  ;;  %v2680_v24 = vadd.f32 %v2679_v21, %v2678_v55  ;;  %v644_v25 = vsel %vm562_vm1, %v507_v17, 0.0  ;;  %v770_v26 = vmul.f32 %v507_v17, %v507_v17 }
  0xde   :  { %v2198_v27 = vsel %vm562_vm1, %v2127_v20, 0.0  ;;  %v2877_v28 = vsel %vm562_vm1, %v2806_v22, 0.0  ;;  %572 = vst.msk [vmem:[#allocation2 + $0x48] sm:$0xff] %vm562_vm1, %v507_v17  ;;  %v645_v29 = vadd.f32 %v644_v25, %v643_v60  ;;  %v1323_v30 = vsel %vm562_vm1, %v1186_v18, 0.0 }
  0xdf   :  { %v2199_v31 = vadd.f32 %v2198_v27, %v2197_v62  ;;  %v2878_v32 = vadd.f32 %v2877_v28, %v2876_v63  ;;  %v842_v33 = vsel %vm562_vm1, %v770_v26, 0.0  ;;  %1251 = vst.msk [vmem:[#allocation2 + $0x248] sm:$0xff] %vm562_vm1, %v1186_v18  ;;  %v1324_v34 = vadd.f32 %v1323_v30, %v1322_v1  ;;  %v1691_v35 = vpop.f32.mrf.mxu2  ;;  %v2370_v36 = vpop.f32.mrf.mxu3 }
  0xe0   :  { %v843_v37 = vadd.f32 %v842_v33, %v841_v4  ;;  %v1449_v38 = vmul.f32 %v1186_v18, %v1186_v18  ;;  %v1692_v39 = vadd.f32 %v4590_v48, %v1691_v35  ;;  %v2371_v40 = vadd.f32 %v4590_v48, %v2370_v36  ;;  %v336_v41 = vpop.f32.mrf.mxu0  ;;  %v1015_v42 = vpop.f32.mrf.mxu1 }
  0xe1   :  { %v337_v44 = vadd.f32 %v4590_v48, %v336_v41  ;;  %v1016_v45 = vadd.f32 %v4590_v48, %v1015_v42 }
  0xe2   :  { %v1521_v46 = vsel %vm562_vm1, %v1449_v38, 0.0  ;;  %v1865_v47 = vmax.f32 %v1692_v39, 0.0  ;;  %v2544_v49 = vmax.f32 %v2371_v40, 0.0  ;;  %4084 = vmatmul.msk.f32.gmra.mxu0 %vm96_vm0, %v46_v43 }
  0xe3   :  { %v1522_v50 = vadd.f32 %v1521_v46, %v1520_v16  ;;  %v508_v51 = vmax.f32 %v337_v44, 0.0  ;;  %v1187_v52 = vmax.f32 %v1016_v45, 0.0  ;;  %4156 = vmatmul.msk.f32.gmra.mxu1 %vm96_vm0, %v46_v43  ;;  %v48_v46 = vld [vmem:[%s8690_s0 + $0xe0] sm:$0xff] }
  0xe4   :  { %1930 = vst.msk [vmem:[#allocation2 + $0x448] sm:$0xff] %vm562_vm1, %v1865_v47  ;;  %v2002_v53 = vsel %vm562_vm1, %v1865_v47, 0.0  ;;  %v2128_v54 = vmul.f32 %v1865_v47, %v1865_v47  ;;  %v2681_v55 = vsel %vm562_vm1, %v2544_v49, 0.0  ;;  %v2807_v56 = vmul.f32 %v2544_v49, %v2544_v49  ;;  %4228 = vmatmul.msk.f32.gmra.mxu2 %vm96_vm0, %v46_v43  ;;  %4300 = vmatmul.msk.f32.gmra.mxu3 %vm96_vm0, %v46_v43 }
  0xe5   :  { %v2003_v57 = vadd.f32 %v2002_v53, %v2001_v23  ;;  %2609 = vst.msk [vmem:[#allocation2 + $0x648] sm:$0xff] %vm562_vm1, %v2544_v49  ;;  %v2682_v58 = vadd.f32 %v2681_v55, %v2680_v24  ;;  %v646_v59 = vsel %vm562_vm1, %v508_v51, 0.0  ;;  %v771_v60 = vmul.f32 %v508_v51, %v508_v51 }
  0xe6   :  { %v2200_v61 = vsel %vm562_vm1, %v2128_v54, 0.0  ;;  %v2879_v62 = vsel %vm562_vm1, %v2807_v56, 0.0  ;;  %573 = vst.msk [vmem:[#allocation2 + $0x50] sm:$0xff] %vm562_vm1, %v508_v51  ;;  %v647_v63 = vadd.f32 %v646_v59, %v645_v29  ;;  %v1325_v0 = vsel %vm562_vm1, %v1187_v52, 0.0 }
  0xe7   :  { %v2201_v1 = vadd.f32 %v2200_v61, %v2199_v31  ;;  %v2880_v2 = vadd.f32 %v2879_v62, %v2878_v32  ;;  %v844_v3 = vsel %vm562_vm1, %v771_v60, 0.0  ;;  %1252 = vst.msk [vmem:[#allocation2 + $0x250] sm:$0xff] %vm562_vm1, %v1187_v52  ;;  %v1326_v4 = vadd.f32 %v1325_v0, %v1324_v34  ;;  %v1694_v5 = vpop.f32.mrf.mxu2  ;;  %v2373_v6 = vpop.f32.mrf.mxu3 }
  0xe8   :  { %v845_v7 = vadd.f32 %v844_v3, %v843_v37  ;;  %v1450_v8 = vmul.f32 %v1187_v52, %v1187_v52  ;;  %v1695_v9 = vadd.f32 %v4590_v48, %v1694_v5  ;;  %v2374_v10 = vadd.f32 %v4590_v48, %v2373_v6  ;;  %v339_v11 = vpop.f32.mrf.mxu0  ;;  %v1018_v12 = vpop.f32.mrf.mxu1 }
  0xe9   :  { %v340_v14 = vadd.f32 %v4590_v48, %v339_v11  ;;  %v1019_v15 = vadd.f32 %v4590_v48, %v1018_v12 }
  0xea   :  { %v1523_v16 = vsel %vm562_vm1, %v1450_v8, 0.0  ;;  %v1866_v17 = vmax.f32 %v1695_v9, 0.0  ;;  %v2545_v18 = vmax.f32 %v2374_v10, 0.0  ;;  %4085 = vmatmul.msk.f32.gmra.mxu0 %vm96_vm0, %v47_v13 }
  0xeb   :  { %v1524_v19 = vadd.f32 %v1523_v16, %v1522_v50  ;;  %v509_v20 = vmax.f32 %v340_v14, 0.0  ;;  %v1188_v21 = vmax.f32 %v1019_v15, 0.0  ;;  %4157 = vmatmul.msk.f32.gmra.mxu1 %vm96_vm0, %v47_v13  ;;  %v49_v16 = vld [vmem:[%s8690_s0 + $0xe8] sm:$0xff] }
  0xec   :  { %1931 = vst.msk [vmem:[#allocation2 + $0x450] sm:$0xff] %vm562_vm1, %v1866_v17  ;;  %v2004_v22 = vsel %vm562_vm1, %v1866_v17, 0.0  ;;  %v2129_v23 = vmul.f32 %v1866_v17, %v1866_v17  ;;  %v2683_v24 = vsel %vm562_vm1, %v2545_v18, 0.0  ;;  %v2808_v25 = vmul.f32 %v2545_v18, %v2545_v18  ;;  %4229 = vmatmul.msk.f32.gmra.mxu2 %vm96_vm0, %v47_v13  ;;  %4301 = vmatmul.msk.f32.gmra.mxu3 %vm96_vm0, %v47_v13  ;;  %v4890_v17 = vld [vmem:[%s8691_s2] ss:$0 sm:$0xff] }
  0xed   :  { %v2005_v26 = vadd.f32 %v2004_v22, %v2003_v57  ;;  %2610 = vst.msk [vmem:[#allocation2 + $0x650] sm:$0xff] %vm562_vm1, %v2545_v18  ;;  %v2684_v27 = vadd.f32 %v2683_v24, %v2682_v58  ;;  %v648_v28 = vsel %vm562_vm1, %v509_v20, 0.0  ;;  %v772_v29 = vmul.f32 %v509_v20, %v509_v20 }
  0xee   :  { %v2202_v30 = vsel %vm562_vm1, %v2129_v23, 0.0  ;;  %v2881_v31 = vsel %vm562_vm1, %v2808_v25, 0.0  ;;  %574 = vst.msk [vmem:[#allocation2 + $0x58] sm:$0xff] %vm562_vm1, %v509_v20  ;;  %v649_v32 = vadd.f32 %v648_v28, %v647_v63  ;;  %v1327_v33 = vsel %vm562_vm1, %v1188_v21, 0.0 }
  0xef   :  { %v2203_v34 = vadd.f32 %v2202_v30, %v2201_v1  ;;  %v2882_v35 = vadd.f32 %v2881_v31, %v2880_v2  ;;  %v846_v36 = vsel %vm562_vm1, %v772_v29, 0.0  ;;  %1253 = vst.msk [vmem:[#allocation2 + $0x258] sm:$0xff] %vm562_vm1, %v1188_v21  ;;  %v1328_v37 = vadd.f32 %v1327_v33, %v1326_v4  ;;  %v1697_v38 = vpop.f32.mrf.mxu2  ;;  %v2376_v39 = vpop.f32.mrf.mxu3 }
  0xf0   :  { %v847_v40 = vadd.f32 %v846_v36, %v845_v7  ;;  %v1451_v41 = vmul.f32 %v1188_v21, %v1188_v21  ;;  %v1698_v42 = vadd.f32 %v4590_v48, %v1697_v38  ;;  %v2377_v43 = vadd.f32 %v4590_v48, %v2376_v39  ;;  %v342_v44 = vpop.f32.mrf.mxu0  ;;  %v1021_v45 = vpop.f32.mrf.mxu1 }
  0xf1   :  { %v343_v47 = vadd.f32 %v4590_v48, %v342_v44  ;;  %v1022_v49 = vadd.f32 %v4590_v48, %v1021_v45 }
  0xf2   :  { %v1525_v50 = vsel %vm562_vm1, %v1451_v41, 0.0  ;;  %v1867_v51 = vmax.f32 %v1698_v42, 0.0  ;;  %v2546_v52 = vmax.f32 %v2377_v43, 0.0  ;;  %4086 = vmatmul.msk.f32.gmra.mxu0 %vm96_vm0, %v48_v46 }
  0xf3   :  { %v1526_v53 = vadd.f32 %v1525_v50, %v1524_v19  ;;  %v510_v54 = vmax.f32 %v343_v47, 0.0  ;;  %v1189_v55 = vmax.f32 %v1022_v49, 0.0  ;;  %4158 = vmatmul.msk.f32.gmra.mxu1 %vm96_vm0, %v48_v46  ;;  %v50_v50 = vld [vmem:[%s8690_s0 + $0xf0] sm:$0xff] }
  0xf4   :  { %1932 = vst.msk [vmem:[#allocation2 + $0x458] sm:$0xff] %vm562_vm1, %v1867_v51  ;;  %v2006_v56 = vsel %vm562_vm1, %v1867_v51, 0.0  ;;  %v2130_v57 = vmul.f32 %v1867_v51, %v1867_v51  ;;  %v2685_v58 = vsel %vm562_vm1, %v2546_v52, 0.0  ;;  %v2809_v59 = vmul.f32 %v2546_v52, %v2546_v52  ;;  %4230 = vmatmul.msk.f32.gmra.mxu2 %vm96_vm0, %v48_v46  ;;  %4302 = vmatmul.msk.f32.gmra.mxu3 %vm96_vm0, %v48_v46 }
  0xf5   :  { %v2007_v60 = vadd.f32 %v2006_v56, %v2005_v26  ;;  %2611 = vst.msk [vmem:[#allocation2 + $0x658] sm:$0xff] %vm562_vm1, %v2546_v52  ;;  %v2686_v61 = vadd.f32 %v2685_v58, %v2684_v27  ;;  %v650_v62 = vsel %vm562_vm1, %v510_v54, 0.0  ;;  %v773_v63 = vmul.f32 %v510_v54, %v510_v54 }
  0xf6   :  { %v2204_v0 = vsel %vm562_vm1, %v2130_v57, 0.0  ;;  %v2883_v1 = vsel %vm562_vm1, %v2809_v59, 0.0  ;;  %575 = vst.msk [vmem:[#allocation2 + $0x60] sm:$0xff] %vm562_vm1, %v510_v54  ;;  %v651_v2 = vadd.f32 %v650_v62, %v649_v32  ;;  %v1329_v3 = vsel %vm562_vm1, %v1189_v55, 0.0 }
  0xf7   :  { %v2205_v4 = vadd.f32 %v2204_v0, %v2203_v34  ;;  %v2884_v5 = vadd.f32 %v2883_v1, %v2882_v35  ;;  %v848_v6 = vsel %vm562_vm1, %v773_v63, 0.0  ;;  %1254 = vst.msk [vmem:[#allocation2 + $0x260] sm:$0xff] %vm562_vm1, %v1189_v55  ;;  %v1330_v7 = vadd.f32 %v1329_v3, %v1328_v37  ;;  %v1700_v8 = vpop.f32.mrf.mxu2  ;;  %v2379_v9 = vpop.f32.mrf.mxu3 }
  0xf8   :  { %v849_v10 = vadd.f32 %v848_v6, %v847_v40  ;;  %v1452_v11 = vmul.f32 %v1189_v55, %v1189_v55  ;;  %v1701_v12 = vadd.f32 %v4590_v48, %v1700_v8  ;;  %v2380_v13 = vadd.f32 %v4590_v48, %v2379_v9  ;;  %v345_v14 = vpop.f32.mrf.mxu0  ;;  %v1024_v15 = vpop.f32.mrf.mxu1 }
  0xf9   :  { %v346_v18 = vadd.f32 %v4890_v17, %v345_v14  ;;  %v1025_v19 = vadd.f32 %v4890_v17, %v1024_v15 }
  0xfa   :  { %v1527_v20 = vsel %vm562_vm1, %v1452_v11, 0.0  ;;  %v1868_v21 = vmax.f32 %v1701_v12, 0.0  ;;  %v2547_v22 = vmax.f32 %v2380_v13, 0.0  ;;  %4087 = vmatmul.msk.f32.gmra.mxu0 %vm96_vm0, %v49_v16 }
  0xfb   :  { %v1528_v48 = vadd.f32 %v1527_v20, %v1526_v53  ;;  %v511_v23 = vmax.f32 %v346_v18, 0.0  ;;  %v1190_v24 = vmax.f32 %v1025_v19, 0.0  ;;  %4159 = vmatmul.msk.f32.gmra.mxu1 %vm96_vm0, %v49_v16  ;;  %v51_v20 = vld [vmem:[%s8690_s0 + $0xf8] sm:$0xff] }
  0xfc   :  { %1933 = vst.msk [vmem:[#allocation2 + $0x460] sm:$0xff] %vm562_vm1, %v1868_v21  ;;  %v2008_v25 = vsel %vm562_vm1, %v1868_v21, 0.0  ;;  %v2131_v26 = vmul.f32 %v1868_v21, %v1868_v21  ;;  %v2687_v27 = vsel %vm562_vm1, %v2547_v22, 0.0  ;;  %v2810_v28 = vmul.f32 %v2547_v22, %v2547_v22  ;;  %4231 = vmatmul.msk.f32.gmra.mxu2 %vm96_vm0, %v49_v16  ;;  %4303 = vmatmul.msk.f32.gmra.mxu3 %vm96_vm0, %v49_v16 }
  0xfd   :  { %v2009_v29 = vadd.f32 %v2008_v25, %v2007_v60  ;;  %2612 = vst.msk [vmem:[#allocation2 + $0x660] sm:$0xff] %vm562_vm1, %v2547_v22  ;;  %v2688_v30 = vadd.f32 %v2687_v27, %v2686_v61  ;;  %v652_v31 = vsel %vm562_vm1, %v511_v23, 0.0  ;;  %v774_v32 = vmul.f32 %v511_v23, %v511_v23 }
  0xfe   :  { %v2206_v33 = vsel %vm562_vm1, %v2131_v26, 0.0  ;;  %v2885_v34 = vsel %vm562_vm1, %v2810_v28, 0.0  ;;  %576 = vst.msk [vmem:[#allocation2 + $0x68] sm:$0xff] %vm562_vm1, %v511_v23  ;;  %v653_v35 = vadd.f32 %v652_v31, %v651_v2  ;;  %v1331_v36 = vsel %vm562_vm1, %v1190_v24, 0.0 }
  0xff   :  { %v2207_v37 = vadd.f32 %v2206_v33, %v2205_v4  ;;  %v2886_v38 = vadd.f32 %v2885_v34, %v2884_v5  ;;  %v850_v39 = vsel %vm562_vm1, %v774_v32, 0.0  ;;  %1255 = vst.msk [vmem:[#allocation2 + $0x268] sm:$0xff] %vm562_vm1, %v1190_v24  ;;  %v1332_v40 = vadd.f32 %v1331_v36, %v1330_v7  ;;  %v1703_v41 = vpop.f32.mrf.mxu2  ;;  %v2382_v42 = vpop.f32.mrf.mxu3 }
 0x100   :  { %v851_v43 = vadd.f32 %v850_v39, %v849_v10  ;;  %v1453_v44 = vmul.f32 %v1190_v24, %v1190_v24  ;;  %v1704_v45 = vadd.f32 %v4890_v17, %v1703_v41  ;;  %v2383_v46 = vadd.f32 %v4890_v17, %v2382_v42  ;;  %v348_v47 = vpop.f32.mrf.mxu0  ;;  %v1027_v49 = vpop.f32.mrf.mxu1 }
 0x101   :  { %v349_v51 = vadd.f32 %v4890_v17, %v348_v47  ;;  %v1028_v52 = vadd.f32 %v4890_v17, %v1027_v49 }
 0x102   :  { %v1529_v53 = vsel %vm562_vm1, %v1453_v44, 0.0  ;;  %v1869_v54 = vmax.f32 %v1704_v45, 0.0  ;;  %v2548_v55 = vmax.f32 %v2383_v46, 0.0  ;;  %4088 = vmatmul.msk.f32.gmra.mxu0 %vm96_vm0, %v50_v50 }
 0x103   :  { %v1530_v56 = vadd.f32 %v1529_v53, %v1528_v48  ;;  %v512_v57 = vmax.f32 %v349_v51, 0.0  ;;  %v1191_v58 = vmax.f32 %v1028_v52, 0.0  ;;  %4160 = vmatmul.msk.f32.gmra.mxu1 %vm96_vm0, %v50_v50  ;;  %v52_v53 = vld [vmem:[%s8690_s0 + $0x100] sm:$0xff] }
 0x104   :  { %1934 = vst.msk [vmem:[#allocation2 + $0x468] sm:$0xff] %vm562_vm1, %v1869_v54  ;;  %v2010_v59 = vsel %vm562_vm1, %v1869_v54, 0.0  ;;  %v2132_v60 = vmul.f32 %v1869_v54, %v1869_v54  ;;  %v2689_v61 = vsel %vm562_vm1, %v2548_v55, 0.0  ;;  %v2811_v62 = vmul.f32 %v2548_v55, %v2548_v55  ;;  %4232 = vmatmul.msk.f32.gmra.mxu2 %vm96_vm0, %v50_v50  ;;  %4304 = vmatmul.msk.f32.gmra.mxu3 %vm96_vm0, %v50_v50 }
 0x105   :  { %v2011_v63 = vadd.f32 %v2010_v59, %v2009_v29  ;;  %2613 = vst.msk [vmem:[#allocation2 + $0x668] sm:$0xff] %vm562_vm1, %v2548_v55  ;;  %v2690_v0 = vadd.f32 %v2689_v61, %v2688_v30  ;;  %v654_v1 = vsel %vm562_vm1, %v512_v57, 0.0  ;;  %v775_v2 = vmul.f32 %v512_v57, %v512_v57 }
 0x106   :  { %v2208_v3 = vsel %vm562_vm1, %v2132_v60, 0.0  ;;  %v2887_v4 = vsel %vm562_vm1, %v2811_v62, 0.0  ;;  %577 = vst.msk [vmem:[#allocation2 + $0x70] sm:$0xff] %vm562_vm1, %v512_v57  ;;  %v655_v5 = vadd.f32 %v654_v1, %v653_v35  ;;  %v1333_v6 = vsel %vm562_vm1, %v1191_v58, 0.0 }
 0x107   :  { %v2209_v7 = vadd.f32 %v2208_v3, %v2207_v37  ;;  %v2888_v8 = vadd.f32 %v2887_v4, %v2886_v38  ;;  %v852_v9 = vsel %vm562_vm1, %v775_v2, 0.0  ;;  %1256 = vst.msk [vmem:[#allocation2 + $0x270] sm:$0xff] %vm562_vm1, %v1191_v58  ;;  %v1334_v10 = vadd.f32 %v1333_v6, %v1332_v40  ;;  %v1706_v11 = vpop.f32.mrf.mxu2  ;;  %v2385_v12 = vpop.f32.mrf.mxu3 }
 0x108   :  { %v853_v13 = vadd.f32 %v852_v9, %v851_v43  ;;  %v1454_v14 = vmul.f32 %v1191_v58, %v1191_v58  ;;  %v1707_v15 = vadd.f32 %v4890_v17, %v1706_v11  ;;  %v2386_v16 = vadd.f32 %v4890_v17, %v2385_v12  ;;  %v351_v18 = vpop.f32.mrf.mxu0  ;;  %v1030_v19 = vpop.f32.mrf.mxu1 }
 0x109   :  { %v352_v21 = vadd.f32 %v4890_v17, %v351_v18  ;;  %v1031_v22 = vadd.f32 %v4890_v17, %v1030_v19 }
 0x10a   :  { %v1531_v48 = vsel %vm562_vm1, %v1454_v14, 0.0  ;;  %v1870_v23 = vmax.f32 %v1707_v15, 0.0  ;;  %v2549_v24 = vmax.f32 %v2386_v16, 0.0  ;;  %4089 = vmatmul.msk.f32.gmra.mxu0 %vm96_vm0, %v51_v20 }
 0x10b   :  { %v1532_v25 = vadd.f32 %v1531_v48, %v1530_v56  ;;  %v513_v26 = vmax.f32 %v352_v21, 0.0  ;;  %v1192_v27 = vmax.f32 %v1031_v22, 0.0  ;;  %4161 = vmatmul.msk.f32.gmra.mxu1 %vm96_vm0, %v51_v20  ;;  %v53_v48 = vld [vmem:[%s8690_s0 + $0x108] sm:$0xff] }
 0x10c   :  { %1935 = vst.msk [vmem:[#allocation2 + $0x470] sm:$0xff] %vm562_vm1, %v1870_v23  ;;  %v2012_v28 = vsel %vm562_vm1, %v1870_v23, 0.0  ;;  %v2133_v29 = vmul.f32 %v1870_v23, %v1870_v23  ;;  %v2691_v30 = vsel %vm562_vm1, %v2549_v24, 0.0  ;;  %v2812_v31 = vmul.f32 %v2549_v24, %v2549_v24  ;;  %4233 = vmatmul.msk.f32.gmra.mxu2 %vm96_vm0, %v51_v20  ;;  %4305 = vmatmul.msk.f32.gmra.mxu3 %vm96_vm0, %v51_v20 }
 0x10d   :  { %v2013_v32 = vadd.f32 %v2012_v28, %v2011_v63  ;;  %2614 = vst.msk [vmem:[#allocation2 + $0x670] sm:$0xff] %vm562_vm1, %v2549_v24  ;;  %v2692_v33 = vadd.f32 %v2691_v30, %v2690_v0  ;;  %v656_v34 = vsel %vm562_vm1, %v513_v26, 0.0  ;;  %v776_v35 = vmul.f32 %v513_v26, %v513_v26 }
 0x10e   :  { %v2210_v36 = vsel %vm562_vm1, %v2133_v29, 0.0  ;;  %v2889_v37 = vsel %vm562_vm1, %v2812_v31, 0.0  ;;  %578 = vst.msk [vmem:[#allocation2 + $0x78] sm:$0xff] %vm562_vm1, %v513_v26  ;;  %v657_v38 = vadd.f32 %v656_v34, %v655_v5  ;;  %v1335_v39 = vsel %vm562_vm1, %v1192_v27, 0.0 }
 0x10f   :  { %v2211_v40 = vadd.f32 %v2210_v36, %v2209_v7  ;;  %v2890_v41 = vadd.f32 %v2889_v37, %v2888_v8  ;;  %v854_v42 = vsel %vm562_vm1, %v776_v35, 0.0  ;;  %1257 = vst.msk [vmem:[#allocation2 + $0x278] sm:$0xff] %vm562_vm1, %v1192_v27  ;;  %v1336_v43 = vadd.f32 %v1335_v39, %v1334_v10  ;;  %v1709_v44 = vpop.f32.mrf.mxu2  ;;  %v2388_v45 = vpop.f32.mrf.mxu3 }
 0x110   :  { %v855_v46 = vadd.f32 %v854_v42, %v853_v13  ;;  %v1455_v47 = vmul.f32 %v1192_v27, %v1192_v27  ;;  %v1710_v49 = vadd.f32 %v4890_v17, %v1709_v44  ;;  %v2389_v50 = vadd.f32 %v4890_v17, %v2388_v45  ;;  %v354_v51 = vpop.f32.mrf.mxu0  ;;  %v1033_v52 = vpop.f32.mrf.mxu1 }
 0x111   :  { %v355_v54 = vadd.f32 %v4890_v17, %v354_v51  ;;  %v1034_v55 = vadd.f32 %v4890_v17, %v1033_v52 }
 0x112   :  { %v1533_v56 = vsel %vm562_vm1, %v1455_v47, 0.0  ;;  %v1871_v57 = vmax.f32 %v1710_v49, 0.0  ;;  %v2550_v58 = vmax.f32 %v2389_v50, 0.0  ;;  %4090 = vmatmul.msk.f32.gmra.mxu0 %vm96_vm0, %v52_v53 }
 0x113   :  { %v1534_v59 = vadd.f32 %v1533_v56, %v1532_v25  ;;  %v514_v60 = vmax.f32 %v355_v54, 0.0  ;;  %v1193_v61 = vmax.f32 %v1034_v55, 0.0  ;;  %4162 = vmatmul.msk.f32.gmra.mxu1 %vm96_vm0, %v52_v53  ;;  %v54_v56 = vld [vmem:[%s8690_s0 + $0x110] sm:$0xff] }
 0x114   :  { %1936 = vst.msk [vmem:[#allocation2 + $0x478] sm:$0xff] %vm562_vm1, %v1871_v57  ;;  %v2014_v62 = vsel %vm562_vm1, %v1871_v57, 0.0  ;;  %v2134_v63 = vmul.f32 %v1871_v57, %v1871_v57  ;;  %v2693_v0 = vsel %vm562_vm1, %v2550_v58, 0.0  ;;  %v2813_v1 = vmul.f32 %v2550_v58, %v2550_v58  ;;  %4234 = vmatmul.msk.f32.gmra.mxu2 %vm96_vm0, %v52_v53  ;;  %4306 = vmatmul.msk.f32.gmra.mxu3 %vm96_vm0, %v52_v53 }
 0x115   :  { %v2015_v2 = vadd.f32 %v2014_v62, %v2013_v32  ;;  %2615 = vst.msk [vmem:[#allocation2 + $0x678] sm:$0xff] %vm562_vm1, %v2550_v58  ;;  %v2694_v3 = vadd.f32 %v2693_v0, %v2692_v33  ;;  %v658_v4 = vsel %vm562_vm1, %v514_v60, 0.0  ;;  %v777_v5 = vmul.f32 %v514_v60, %v514_v60 }
 0x116   :  { %v2212_v6 = vsel %vm562_vm1, %v2134_v63, 0.0  ;;  %v2891_v7 = vsel %vm562_vm1, %v2813_v1, 0.0  ;;  %579 = vst.msk [vmem:[#allocation2 + $0x80] sm:$0xff] %vm562_vm1, %v514_v60  ;;  %v659_v8 = vadd.f32 %v658_v4, %v657_v38  ;;  %v1337_v9 = vsel %vm562_vm1, %v1193_v61, 0.0 }
 0x117   :  { %v2213_v10 = vadd.f32 %v2212_v6, %v2211_v40  ;;  %v2892_v11 = vadd.f32 %v2891_v7, %v2890_v41  ;;  %v856_v12 = vsel %vm562_vm1, %v777_v5, 0.0  ;;  %1258 = vst.msk [vmem:[#allocation2 + $0x280] sm:$0xff] %vm562_vm1, %v1193_v61  ;;  %v1338_v13 = vadd.f32 %v1337_v9, %v1336_v43  ;;  %v1712_v14 = vpop.f32.mrf.mxu2  ;;  %v2391_v15 = vpop.f32.mrf.mxu3 }
 0x118   :  { %v857_v16 = vadd.f32 %v856_v12, %v855_v46  ;;  %v1456_v18 = vmul.f32 %v1193_v61, %v1193_v61  ;;  %v1713_v19 = vadd.f32 %v4890_v17, %v1712_v14  ;;  %v2392_v20 = vadd.f32 %v4890_v17, %v2391_v15  ;;  %v357_v21 = vpop.f32.mrf.mxu0  ;;  %v1036_v22 = vpop.f32.mrf.mxu1 }
 0x119   :  { %v358_v23 = vadd.f32 %v4890_v17, %v357_v21  ;;  %v1037_v24 = vadd.f32 %v4890_v17, %v1036_v22 }
 0x11a   :  { %v1535_v25 = vsel %vm562_vm1, %v1456_v18, 0.0  ;;  %v1872_v26 = vmax.f32 %v1713_v19, 0.0  ;;  %v2551_v27 = vmax.f32 %v2392_v20, 0.0  ;;  %4091 = vmatmul.msk.f32.gmra.mxu0 %vm96_vm0, %v53_v48 }
 0x11b   :  { %v1536_v28 = vadd.f32 %v1535_v25, %v1534_v59  ;;  %v515_v29 = vmax.f32 %v358_v23, 0.0  ;;  %v1194_v30 = vmax.f32 %v1037_v24, 0.0  ;;  %4163 = vmatmul.msk.f32.gmra.mxu1 %vm96_vm0, %v53_v48  ;;  %v55_v25 = vld [vmem:[%s8690_s0 + $0x118] sm:$0xff] }
 0x11c   :  { %1937 = vst.msk [vmem:[#allocation2 + $0x480] sm:$0xff] %vm562_vm1, %v1872_v26  ;;  %v2016_v31 = vsel %vm562_vm1, %v1872_v26, 0.0  ;;  %v2135_v32 = vmul.f32 %v1872_v26, %v1872_v26  ;;  %v2695_v33 = vsel %vm562_vm1, %v2551_v27, 0.0  ;;  %v2814_v34 = vmul.f32 %v2551_v27, %v2551_v27  ;;  %4235 = vmatmul.msk.f32.gmra.mxu2 %vm96_vm0, %v53_v48  ;;  %4307 = vmatmul.msk.f32.gmra.mxu3 %vm96_vm0, %v53_v48 }
 0x11d   :  { %v2017_v35 = vadd.f32 %v2016_v31, %v2015_v2  ;;  %2616 = vst.msk [vmem:[#allocation2 + $0x680] sm:$0xff] %vm562_vm1, %v2551_v27  ;;  %v2696_v36 = vadd.f32 %v2695_v33, %v2694_v3  ;;  %v660_v37 = vsel %vm562_vm1, %v515_v29, 0.0  ;;  %v778_v38 = vmul.f32 %v515_v29, %v515_v29 }
 0x11e   :  { %v2214_v39 = vsel %vm562_vm1, %v2135_v32, 0.0  ;;  %v2893_v40 = vsel %vm562_vm1, %v2814_v34, 0.0  ;;  %580 = vst.msk [vmem:[#allocation2 + $0x88] sm:$0xff] %vm562_vm1, %v515_v29  ;;  %v661_v41 = vadd.f32 %v660_v37, %v659_v8  ;;  %v1339_v42 = vsel %vm562_vm1, %v1194_v30, 0.0 }
 0x11f   :  { %v2215_v43 = vadd.f32 %v2214_v39, %v2213_v10  ;;  %v2894_v44 = vadd.f32 %v2893_v40, %v2892_v11  ;;  %v858_v45 = vsel %vm562_vm1, %v778_v38, 0.0  ;;  %1259 = vst.msk [vmem:[#allocation2 + $0x288] sm:$0xff] %vm562_vm1, %v1194_v30  ;;  %v1340_v46 = vadd.f32 %v1339_v42, %v1338_v13  ;;  %v1715_v47 = vpop.f32.mrf.mxu2  ;;  %v2394_v49 = vpop.f32.mrf.mxu3 }
 0x120   :  { %v859_v50 = vadd.f32 %v858_v45, %v857_v16  ;;  %v1457_v51 = vmul.f32 %v1194_v30, %v1194_v30  ;;  %v1716_v52 = vadd.f32 %v4890_v17, %v1715_v47  ;;  %v2395_v53 = vadd.f32 %v4890_v17, %v2394_v49  ;;  %v360_v54 = vpop.f32.mrf.mxu0  ;;  %v1039_v55 = vpop.f32.mrf.mxu1 }
 0x121   :  { %v361_v57 = vadd.f32 %v4890_v17, %v360_v54  ;;  %v1040_v58 = vadd.f32 %v4890_v17, %v1039_v55 }
 0x122   :  { %v1537_v59 = vsel %vm562_vm1, %v1457_v51, 0.0  ;;  %v1873_v60 = vmax.f32 %v1716_v52, 0.0  ;;  %v2552_v61 = vmax.f32 %v2395_v53, 0.0  ;;  %4092 = vmatmul.msk.f32.gmra.mxu0 %vm96_vm0, %v54_v56 }
 0x123   :  { %v1538_v62 = vadd.f32 %v1537_v59, %v1536_v28  ;;  %v516_v63 = vmax.f32 %v361_v57, 0.0  ;;  %v1195_v0 = vmax.f32 %v1040_v58, 0.0  ;;  %4164 = vmatmul.msk.f32.gmra.mxu1 %vm96_vm0, %v54_v56  ;;  %v56_v59 = vld [vmem:[%s8690_s0 + $0x120] sm:$0xff] }
 0x124   :  { %1938 = vst.msk [vmem:[#allocation2 + $0x488] sm:$0xff] %vm562_vm1, %v1873_v60  ;;  %v2018_v1 = vsel %vm562_vm1, %v1873_v60, 0.0  ;;  %v2136_v2 = vmul.f32 %v1873_v60, %v1873_v60  ;;  %v2697_v3 = vsel %vm562_vm1, %v2552_v61, 0.0  ;;  %v2815_v4 = vmul.f32 %v2552_v61, %v2552_v61  ;;  %4236 = vmatmul.msk.f32.gmra.mxu2 %vm96_vm0, %v54_v56  ;;  %4308 = vmatmul.msk.f32.gmra.mxu3 %vm96_vm0, %v54_v56 }
 0x125   :  { %v2019_v5 = vadd.f32 %v2018_v1, %v2017_v35  ;;  %2617 = vst.msk [vmem:[#allocation2 + $0x688] sm:$0xff] %vm562_vm1, %v2552_v61  ;;  %v2698_v6 = vadd.f32 %v2697_v3, %v2696_v36  ;;  %v662_v7 = vsel %vm562_vm1, %v516_v63, 0.0  ;;  %v779_v8 = vmul.f32 %v516_v63, %v516_v63 }
 0x126   :  { %v2216_v9 = vsel %vm562_vm1, %v2136_v2, 0.0  ;;  %v2895_v10 = vsel %vm562_vm1, %v2815_v4, 0.0  ;;  %581 = vst.msk [vmem:[#allocation2 + $0x90] sm:$0xff] %vm562_vm1, %v516_v63  ;;  %v663_v11 = vadd.f32 %v662_v7, %v661_v41  ;;  %v1341_v12 = vsel %vm562_vm1, %v1195_v0, 0.0 }
 0x127   :  { %v2217_v13 = vadd.f32 %v2216_v9, %v2215_v43  ;;  %v2896_v14 = vadd.f32 %v2895_v10, %v2894_v44  ;;  %v860_v15 = vsel %vm562_vm1, %v779_v8, 0.0  ;;  %1260 = vst.msk [vmem:[#allocation2 + $0x290] sm:$0xff] %vm562_vm1, %v1195_v0  ;;  %v1342_v16 = vadd.f32 %v1341_v12, %v1340_v46  ;;  %v1718_v18 = vpop.f32.mrf.mxu2  ;;  %v2397_v19 = vpop.f32.mrf.mxu3 }
 0x128   :  { %v861_v20 = vadd.f32 %v860_v15, %v859_v50  ;;  %v1458_v21 = vmul.f32 %v1195_v0, %v1195_v0  ;;  %v1719_v22 = vadd.f32 %v4890_v17, %v1718_v18  ;;  %v2398_v48 = vadd.f32 %v4890_v17, %v2397_v19  ;;  %v363_v23 = vpop.f32.mrf.mxu0  ;;  %v1042_v24 = vpop.f32.mrf.mxu1 }
 0x129   :  { %v364_v26 = vadd.f32 %v4890_v17, %v363_v23  ;;  %v1043_v27 = vadd.f32 %v4890_v17, %v1042_v24 }
 0x12a   :  { %v1539_v28 = vsel %vm562_vm1, %v1458_v21, 0.0  ;;  %v1874_v29 = vmax.f32 %v1719_v22, 0.0  ;;  %v2553_v30 = vmax.f32 %v2398_v48, 0.0  ;;  %4093 = vmatmul.msk.f32.gmra.mxu0 %vm96_vm0, %v55_v25 }
 0x12b   :  { %v1540_v31 = vadd.f32 %v1539_v28, %v1538_v62  ;;  %v517_v32 = vmax.f32 %v364_v26, 0.0  ;;  %v1196_v33 = vmax.f32 %v1043_v27, 0.0  ;;  %4165 = vmatmul.msk.f32.gmra.mxu1 %vm96_vm0, %v55_v25  ;;  %v57_v28 = vld [vmem:[%s8690_s0 + $0x128] sm:$0xff] }
 0x12c   :  { %1939 = vst.msk [vmem:[#allocation2 + $0x490] sm:$0xff] %vm562_vm1, %v1874_v29  ;;  %v2020_v34 = vsel %vm562_vm1, %v1874_v29, 0.0  ;;  %v2137_v35 = vmul.f32 %v1874_v29, %v1874_v29  ;;  %v2699_v36 = vsel %vm562_vm1, %v2553_v30, 0.0  ;;  %v2816_v37 = vmul.f32 %v2553_v30, %v2553_v30  ;;  %4237 = vmatmul.msk.f32.gmra.mxu2 %vm96_vm0, %v55_v25  ;;  %4309 = vmatmul.msk.f32.gmra.mxu3 %vm96_vm0, %v55_v25 }
 0x12d   :  { %v2021_v38 = vadd.f32 %v2020_v34, %v2019_v5  ;;  %2618 = vst.msk [vmem:[#allocation2 + $0x690] sm:$0xff] %vm562_vm1, %v2553_v30  ;;  %v2700_v39 = vadd.f32 %v2699_v36, %v2698_v6  ;;  %v664_v40 = vsel %vm562_vm1, %v517_v32, 0.0  ;;  %v780_v41 = vmul.f32 %v517_v32, %v517_v32 }
 0x12e   :  { %v2218_v42 = vsel %vm562_vm1, %v2137_v35, 0.0  ;;  %v2897_v43 = vsel %vm562_vm1, %v2816_v37, 0.0  ;;  %582 = vst.msk [vmem:[#allocation2 + $0x98] sm:$0xff] %vm562_vm1, %v517_v32  ;;  %v665_v44 = vadd.f32 %v664_v40, %v663_v11  ;;  %v1343_v45 = vsel %vm562_vm1, %v1196_v33, 0.0 }
 0x12f   :  { %v2219_v46 = vadd.f32 %v2218_v42, %v2217_v13  ;;  %v2898_v47 = vadd.f32 %v2897_v43, %v2896_v14  ;;  %v862_v49 = vsel %vm562_vm1, %v780_v41, 0.0  ;;  %1261 = vst.msk [vmem:[#allocation2 + $0x298] sm:$0xff] %vm562_vm1, %v1196_v33  ;;  %v1344_v50 = vadd.f32 %v1343_v45, %v1342_v16  ;;  %v1721_v51 = vpop.f32.mrf.mxu2  ;;  %v2400_v52 = vpop.f32.mrf.mxu3 }
 0x130   :  { %v863_v53 = vadd.f32 %v862_v49, %v861_v20  ;;  %v1459_v54 = vmul.f32 %v1196_v33, %v1196_v33  ;;  %v1722_v55 = vadd.f32 %v4890_v17, %v1721_v51  ;;  %v2401_v56 = vadd.f32 %v4890_v17, %v2400_v52  ;;  %v366_v57 = vpop.f32.mrf.mxu0  ;;  %v1045_v58 = vpop.f32.mrf.mxu1 }
 0x131   :  { %v367_v60 = vadd.f32 %v4890_v17, %v366_v57  ;;  %v1046_v61 = vadd.f32 %v4890_v17, %v1045_v58 }
 0x132   :  { %v1541_v62 = vsel %vm562_vm1, %v1459_v54, 0.0  ;;  %v1875_v63 = vmax.f32 %v1722_v55, 0.0  ;;  %v2554_v0 = vmax.f32 %v2401_v56, 0.0  ;;  %4094 = vmatmul.msk.f32.gmra.mxu0 %vm96_vm0, %v56_v59 }
 0x133   :  { %v1542_v1 = vadd.f32 %v1541_v62, %v1540_v31  ;;  %v518_v2 = vmax.f32 %v367_v60, 0.0  ;;  %v1197_v3 = vmax.f32 %v1046_v61, 0.0  ;;  %4166 = vmatmul.msk.f32.gmra.mxu1 %vm96_vm0, %v56_v59  ;;  %v58_v62 = vld [vmem:[%s8690_s0 + $0x130] sm:$0xff] }
 0x134   :  { %1940 = vst.msk [vmem:[#allocation2 + $0x498] sm:$0xff] %vm562_vm1, %v1875_v63  ;;  %v2022_v4 = vsel %vm562_vm1, %v1875_v63, 0.0  ;;  %v2138_v5 = vmul.f32 %v1875_v63, %v1875_v63  ;;  %v2701_v6 = vsel %vm562_vm1, %v2554_v0, 0.0  ;;  %v2817_v7 = vmul.f32 %v2554_v0, %v2554_v0  ;;  %4238 = vmatmul.msk.f32.gmra.mxu2 %vm96_vm0, %v56_v59  ;;  %4310 = vmatmul.msk.f32.gmra.mxu3 %vm96_vm0, %v56_v59 }
 0x135   :  { %v2023_v8 = vadd.f32 %v2022_v4, %v2021_v38  ;;  %2619 = vst.msk [vmem:[#allocation2 + $0x698] sm:$0xff] %vm562_vm1, %v2554_v0  ;;  %v2702_v9 = vadd.f32 %v2701_v6, %v2700_v39  ;;  %v666_v10 = vsel %vm562_vm1, %v518_v2, 0.0  ;;  %v781_v11 = vmul.f32 %v518_v2, %v518_v2 }
 0x136   :  { %v2220_v12 = vsel %vm562_vm1, %v2138_v5, 0.0  ;;  %v2899_v13 = vsel %vm562_vm1, %v2817_v7, 0.0  ;;  %583 = vst.msk [vmem:[#allocation2 + $0xa0] sm:$0xff] %vm562_vm1, %v518_v2  ;;  %v667_v14 = vadd.f32 %v666_v10, %v665_v44  ;;  %v1345_v15 = vsel %vm562_vm1, %v1197_v3, 0.0 }
 0x137   :  { %v2221_v16 = vadd.f32 %v2220_v12, %v2219_v46  ;;  %v2900_v18 = vadd.f32 %v2899_v13, %v2898_v47  ;;  %v864_v19 = vsel %vm562_vm1, %v781_v11, 0.0  ;;  %1262 = vst.msk [vmem:[#allocation2 + $0x2a0] sm:$0xff] %vm562_vm1, %v1197_v3  ;;  %v1346_v20 = vadd.f32 %v1345_v15, %v1344_v50  ;;  %v1724_v21 = vpop.f32.mrf.mxu2  ;;  %v2403_v22 = vpop.f32.mrf.mxu3 }
 0x138   :  { %v865_v48 = vadd.f32 %v864_v19, %v863_v53  ;;  %v1460_v23 = vmul.f32 %v1197_v3, %v1197_v3  ;;  %v1725_v24 = vadd.f32 %v4890_v17, %v1724_v21  ;;  %v2404_v25 = vadd.f32 %v4890_v17, %v2403_v22  ;;  %v369_v26 = vpop.f32.mrf.mxu0  ;;  %v1048_v27 = vpop.f32.mrf.mxu1 }
 0x139   :  { %v370_v29 = vadd.f32 %v4890_v17, %v369_v26  ;;  %v1049_v30 = vadd.f32 %v4890_v17, %v1048_v27 }
 0x13a   :  { %v1543_v31 = vsel %vm562_vm1, %v1460_v23, 0.0  ;;  %v1876_v32 = vmax.f32 %v1725_v24, 0.0  ;;  %v2555_v33 = vmax.f32 %v2404_v25, 0.0  ;;  %4095 = vmatmul.msk.f32.gmra.mxu0 %vm96_vm0, %v57_v28 }
 0x13b   :  { %v1544_v34 = vadd.f32 %v1543_v31, %v1542_v1  ;;  %v519_v35 = vmax.f32 %v370_v29, 0.0  ;;  %v1198_v36 = vmax.f32 %v1049_v30, 0.0  ;;  %4167 = vmatmul.msk.f32.gmra.mxu1 %vm96_vm0, %v57_v28  ;;  %v59_v31 = vld [vmem:[%s8690_s0 + $0x138] sm:$0xff] }
 0x13c   :  { %1941 = vst.msk [vmem:[#allocation2 + $0x4a0] sm:$0xff] %vm562_vm1, %v1876_v32  ;;  %v2024_v37 = vsel %vm562_vm1, %v1876_v32, 0.0  ;;  %v2139_v38 = vmul.f32 %v1876_v32, %v1876_v32  ;;  %v2703_v39 = vsel %vm562_vm1, %v2555_v33, 0.0  ;;  %v2818_v40 = vmul.f32 %v2555_v33, %v2555_v33  ;;  %4239 = vmatmul.msk.f32.gmra.mxu2 %vm96_vm0, %v57_v28  ;;  %4311 = vmatmul.msk.f32.gmra.mxu3 %vm96_vm0, %v57_v28 }
 0x13d   :  { %v2025_v41 = vadd.f32 %v2024_v37, %v2023_v8  ;;  %2620 = vst.msk [vmem:[#allocation2 + $0x6a0] sm:$0xff] %vm562_vm1, %v2555_v33  ;;  %v2704_v42 = vadd.f32 %v2703_v39, %v2702_v9  ;;  %v668_v43 = vsel %vm562_vm1, %v519_v35, 0.0  ;;  %v782_v44 = vmul.f32 %v519_v35, %v519_v35 }
 0x13e   :  { %v2222_v45 = vsel %vm562_vm1, %v2139_v38, 0.0  ;;  %v2901_v46 = vsel %vm562_vm1, %v2818_v40, 0.0  ;;  %584 = vst.msk [vmem:[#allocation2 + $0xa8] sm:$0xff] %vm562_vm1, %v519_v35  ;;  %v669_v47 = vadd.f32 %v668_v43, %v667_v14  ;;  %v1347_v49 = vsel %vm562_vm1, %v1198_v36, 0.0 }
 0x13f   :  { %v2223_v50 = vadd.f32 %v2222_v45, %v2221_v16  ;;  %v2902_v51 = vadd.f32 %v2901_v46, %v2900_v18  ;;  %v866_v52 = vsel %vm562_vm1, %v782_v44, 0.0  ;;  %1263 = vst.msk [vmem:[#allocation2 + $0x2a8] sm:$0xff] %vm562_vm1, %v1198_v36  ;;  %v1348_v53 = vadd.f32 %v1347_v49, %v1346_v20  ;;  %v1727_v54 = vpop.f32.mrf.mxu2  ;;  %v2406_v55 = vpop.f32.mrf.mxu3 }
 0x140   :  { %v867_v56 = vadd.f32 %v866_v52, %v865_v48  ;;  %v1461_v57 = vmul.f32 %v1198_v36, %v1198_v36  ;;  %v1728_v58 = vadd.f32 %v4890_v17, %v1727_v54  ;;  %v2407_v59 = vadd.f32 %v4890_v17, %v2406_v55  ;;  %v372_v60 = vpop.f32.mrf.mxu0  ;;  %v1051_v61 = vpop.f32.mrf.mxu1 }
 0x141   :  { %v373_v63 = vadd.f32 %v4890_v17, %v372_v60  ;;  %v1052_v0 = vadd.f32 %v4890_v17, %v1051_v61 }
 0x142   :  { %v1545_v1 = vsel %vm562_vm1, %v1461_v57, 0.0  ;;  %v1877_v2 = vmax.f32 %v1728_v58, 0.0  ;;  %v2556_v3 = vmax.f32 %v2407_v59, 0.0  ;;  %4096 = vmatmul.msk.f32.gmra.mxu0 %vm96_vm0, %v58_v62 }
 0x143   :  { %v1546_v4 = vadd.f32 %v1545_v1, %v1544_v34  ;;  %v520_v5 = vmax.f32 %v373_v63, 0.0  ;;  %v1199_v6 = vmax.f32 %v1052_v0, 0.0  ;;  %4168 = vmatmul.msk.f32.gmra.mxu1 %vm96_vm0, %v58_v62  ;;  %v60_v1 = vld [vmem:[%s8690_s0 + $0x140] sm:$0xff] }
 0x144   :  { %1942 = vst.msk [vmem:[#allocation2 + $0x4a8] sm:$0xff] %vm562_vm1, %v1877_v2  ;;  %v2026_v7 = vsel %vm562_vm1, %v1877_v2, 0.0  ;;  %v2140_v8 = vmul.f32 %v1877_v2, %v1877_v2  ;;  %v2705_v9 = vsel %vm562_vm1, %v2556_v3, 0.0  ;;  %v2819_v10 = vmul.f32 %v2556_v3, %v2556_v3  ;;  %4240 = vmatmul.msk.f32.gmra.mxu2 %vm96_vm0, %v58_v62  ;;  %4312 = vmatmul.msk.f32.gmra.mxu3 %vm96_vm0, %v58_v62 }
 0x145   :  { %v2027_v11 = vadd.f32 %v2026_v7, %v2025_v41  ;;  %2621 = vst.msk [vmem:[#allocation2 + $0x6a8] sm:$0xff] %vm562_vm1, %v2556_v3  ;;  %v2706_v12 = vadd.f32 %v2705_v9, %v2704_v42  ;;  %v670_v13 = vsel %vm562_vm1, %v520_v5, 0.0  ;;  %v783_v14 = vmul.f32 %v520_v5, %v520_v5 }
 0x146   :  { %v2224_v15 = vsel %vm562_vm1, %v2140_v8, 0.0  ;;  %v2903_v16 = vsel %vm562_vm1, %v2819_v10, 0.0  ;;  %585 = vst.msk [vmem:[#allocation2 + $0xb0] sm:$0xff] %vm562_vm1, %v520_v5  ;;  %v671_v18 = vadd.f32 %v670_v13, %v669_v47  ;;  %v1349_v19 = vsel %vm562_vm1, %v1199_v6, 0.0 }
 0x147   :  { %v2225_v20 = vadd.f32 %v2224_v15, %v2223_v50  ;;  %v2904_v21 = vadd.f32 %v2903_v16, %v2902_v51  ;;  %v868_v22 = vsel %vm562_vm1, %v783_v14, 0.0  ;;  %1264 = vst.msk [vmem:[#allocation2 + $0x2b0] sm:$0xff] %vm562_vm1, %v1199_v6  ;;  %v1350_v48 = vadd.f32 %v1349_v19, %v1348_v53  ;;  %v1730_v23 = vpop.f32.mrf.mxu2  ;;  %v2409_v24 = vpop.f32.mrf.mxu3 }
 0x148   :  { %v869_v25 = vadd.f32 %v868_v22, %v867_v56  ;;  %v1462_v26 = vmul.f32 %v1199_v6, %v1199_v6  ;;  %v1731_v27 = vadd.f32 %v4890_v17, %v1730_v23  ;;  %v2410_v28 = vadd.f32 %v4890_v17, %v2409_v24  ;;  %v375_v29 = vpop.f32.mrf.mxu0  ;;  %v1054_v30 = vpop.f32.mrf.mxu1 }
 0x149   :  { %v376_v32 = vadd.f32 %v4890_v17, %v375_v29  ;;  %v1055_v33 = vadd.f32 %v4890_v17, %v1054_v30 }
 0x14a   :  { %v1547_v34 = vsel %vm562_vm1, %v1462_v26, 0.0  ;;  %v1878_v35 = vmax.f32 %v1731_v27, 0.0  ;;  %v2557_v36 = vmax.f32 %v2410_v28, 0.0  ;;  %4097 = vmatmul.msk.f32.gmra.mxu0 %vm96_vm0, %v59_v31 }
 0x14b   :  { %v1548_v37 = vadd.f32 %v1547_v34, %v1546_v4  ;;  %v521_v38 = vmax.f32 %v376_v32, 0.0  ;;  %v1200_v39 = vmax.f32 %v1055_v33, 0.0  ;;  %4169 = vmatmul.msk.f32.gmra.mxu1 %vm96_vm0, %v59_v31  ;;  %v61_v34 = vld [vmem:[%s8690_s0 + $0x148] sm:$0xff] }
 0x14c   :  { %1943 = vst.msk [vmem:[#allocation2 + $0x4b0] sm:$0xff] %vm562_vm1, %v1878_v35  ;;  %v2028_v40 = vsel %vm562_vm1, %v1878_v35, 0.0  ;;  %v2141_v41 = vmul.f32 %v1878_v35, %v1878_v35  ;;  %v2707_v42 = vsel %vm562_vm1, %v2557_v36, 0.0  ;;  %v2820_v43 = vmul.f32 %v2557_v36, %v2557_v36  ;;  %4241 = vmatmul.msk.f32.gmra.mxu2 %vm96_vm0, %v59_v31  ;;  %4313 = vmatmul.msk.f32.gmra.mxu3 %vm96_vm0, %v59_v31 }
 0x14d   :  { %v2029_v44 = vadd.f32 %v2028_v40, %v2027_v11  ;;  %2622 = vst.msk [vmem:[#allocation2 + $0x6b0] sm:$0xff] %vm562_vm1, %v2557_v36  ;;  %v2708_v45 = vadd.f32 %v2707_v42, %v2706_v12  ;;  %v672_v46 = vsel %vm562_vm1, %v521_v38, 0.0  ;;  %v784_v47 = vmul.f32 %v521_v38, %v521_v38 }
 0x14e   :  { %v2226_v49 = vsel %vm562_vm1, %v2141_v41, 0.0  ;;  %v2905_v50 = vsel %vm562_vm1, %v2820_v43, 0.0  ;;  %586 = vst.msk [vmem:[#allocation2 + $0xb8] sm:$0xff] %vm562_vm1, %v521_v38  ;;  %v673_v51 = vadd.f32 %v672_v46, %v671_v18  ;;  %v1351_v52 = vsel %vm562_vm1, %v1200_v39, 0.0 }
 0x14f   :  { %v2227_v53 = vadd.f32 %v2226_v49, %v2225_v20  ;;  %v2906_v54 = vadd.f32 %v2905_v50, %v2904_v21  ;;  %v870_v55 = vsel %vm562_vm1, %v784_v47, 0.0  ;;  %1265 = vst.msk [vmem:[#allocation2 + $0x2b8] sm:$0xff] %vm562_vm1, %v1200_v39  ;;  %v1352_v56 = vadd.f32 %v1351_v52, %v1350_v48  ;;  %v1733_v57 = vpop.f32.mrf.mxu2  ;;  %v2412_v58 = vpop.f32.mrf.mxu3 }
 0x150   :  { %v871_v59 = vadd.f32 %v870_v55, %v869_v25  ;;  %v1463_v60 = vmul.f32 %v1200_v39, %v1200_v39  ;;  %v1734_v61 = vadd.f32 %v4890_v17, %v1733_v57  ;;  %v2413_v62 = vadd.f32 %v4890_v17, %v2412_v58  ;;  %v378_v63 = vpop.f32.mrf.mxu0  ;;  %v1057_v0 = vpop.f32.mrf.mxu1 }
 0x151   :  { %v379_v2 = vadd.f32 %v4890_v17, %v378_v63  ;;  %v1058_v3 = vadd.f32 %v4890_v17, %v1057_v0  ;;  %v5189_v63 = vld [vmem:[%s8691_s2] ss:$0 sm:$0xff] }
 0x152   :  { %v1549_v4 = vsel %vm562_vm1, %v1463_v60, 0.0  ;;  %v1879_v5 = vmax.f32 %v1734_v61, 0.0  ;;  %v2558_v6 = vmax.f32 %v2413_v62, 0.0  ;;  %4098 = vmatmul.msk.f32.gmra.mxu0 %vm96_vm0, %v60_v1 }
 0x153   :  { %v1550_v7 = vadd.f32 %v1549_v4, %v1548_v37  ;;  %v522_v8 = vmax.f32 %v379_v2, 0.0  ;;  %v1201_v9 = vmax.f32 %v1058_v3, 0.0  ;;  %4170 = vmatmul.msk.f32.gmra.mxu1 %vm96_vm0, %v60_v1  ;;  %v62_v4 = vld [vmem:[%s8690_s0 + $0x150] sm:$0xff] }
 0x154   :  { %1944 = vst.msk [vmem:[#allocation2 + $0x4b8] sm:$0xff] %vm562_vm1, %v1879_v5  ;;  %v2030_v10 = vsel %vm562_vm1, %v1879_v5, 0.0  ;;  %v2142_v11 = vmul.f32 %v1879_v5, %v1879_v5  ;;  %v2709_v12 = vsel %vm562_vm1, %v2558_v6, 0.0  ;;  %v2821_v13 = vmul.f32 %v2558_v6, %v2558_v6  ;;  %4242 = vmatmul.msk.f32.gmra.mxu2 %vm96_vm0, %v60_v1  ;;  %4314 = vmatmul.msk.f32.gmra.mxu3 %vm96_vm0, %v60_v1 }
 0x155   :  { %v2031_v14 = vadd.f32 %v2030_v10, %v2029_v44  ;;  %2623 = vst.msk [vmem:[#allocation2 + $0x6b8] sm:$0xff] %vm562_vm1, %v2558_v6  ;;  %v2710_v15 = vadd.f32 %v2709_v12, %v2708_v45  ;;  %v674_v16 = vsel %vm562_vm1, %v522_v8, 0.0  ;;  %v785_v18 = vmul.f32 %v522_v8, %v522_v8 }
 0x156   :  { %v2228_v19 = vsel %vm562_vm1, %v2142_v11, 0.0  ;;  %v2907_v20 = vsel %vm562_vm1, %v2821_v13, 0.0  ;;  %587 = vst.msk [vmem:[#allocation2 + $0xc0] sm:$0xff] %vm562_vm1, %v522_v8  ;;  %v675_v21 = vadd.f32 %v674_v16, %v673_v51  ;;  %v1353_v22 = vsel %vm562_vm1, %v1201_v9, 0.0 }
 0x157   :  { %v2229_v48 = vadd.f32 %v2228_v19, %v2227_v53  ;;  %v2908_v23 = vadd.f32 %v2907_v20, %v2906_v54  ;;  %v872_v24 = vsel %vm562_vm1, %v785_v18, 0.0  ;;  %1266 = vst.msk [vmem:[#allocation2 + $0x2c0] sm:$0xff] %vm562_vm1, %v1201_v9  ;;  %v1354_v25 = vadd.f32 %v1353_v22, %v1352_v56  ;;  %v1736_v26 = vpop.f32.mrf.mxu2  ;;  %v2415_v27 = vpop.f32.mrf.mxu3 }
 0x158   :  { %v873_v28 = vadd.f32 %v872_v24, %v871_v59  ;;  %v1464_v29 = vmul.f32 %v1201_v9, %v1201_v9  ;;  %v1737_v30 = vadd.f32 %v4890_v17, %v1736_v26  ;;  %v2416_v31 = vadd.f32 %v4890_v17, %v2415_v27  ;;  %v381_v32 = vpop.f32.mrf.mxu0  ;;  %v1060_v33 = vpop.f32.mrf.mxu1 }
 0x159   :  { %v382_v35 = vadd.f32 %v4890_v17, %v381_v32  ;;  %v1061_v36 = vadd.f32 %v4890_v17, %v1060_v33 }
 0x15a   :  { %v1551_v37 = vsel %vm562_vm1, %v1464_v29, 0.0  ;;  %v1880_v38 = vmax.f32 %v1737_v30, 0.0  ;;  %v2559_v39 = vmax.f32 %v2416_v31, 0.0  ;;  %4099 = vmatmul.msk.f32.gmra.mxu0 %vm96_vm0, %v61_v34 }
 0x15b   :  { %v1552_v40 = vadd.f32 %v1551_v37, %v1550_v7  ;;  %v523_v41 = vmax.f32 %v382_v35, 0.0  ;;  %v1202_v42 = vmax.f32 %v1061_v36, 0.0  ;;  %4171 = vmatmul.msk.f32.gmra.mxu1 %vm96_vm0, %v61_v34  ;;  %v63_v37 = vld [vmem:[%s8690_s0 + $0x158] sm:$0xff] }
 0x15c   :  { %1945 = vst.msk [vmem:[#allocation2 + $0x4c0] sm:$0xff] %vm562_vm1, %v1880_v38  ;;  %v2032_v43 = vsel %vm562_vm1, %v1880_v38, 0.0  ;;  %v2143_v44 = vmul.f32 %v1880_v38, %v1880_v38  ;;  %v2711_v45 = vsel %vm562_vm1, %v2559_v39, 0.0  ;;  %v2822_v46 = vmul.f32 %v2559_v39, %v2559_v39  ;;  %4243 = vmatmul.msk.f32.gmra.mxu2 %vm96_vm0, %v61_v34  ;;  %4315 = vmatmul.msk.f32.gmra.mxu3 %vm96_vm0, %v61_v34 }
 0x15d   :  { %v2033_v17 = vadd.f32 %v2032_v43, %v2031_v14  ;;  %2624 = vst.msk [vmem:[#allocation2 + $0x6c0] sm:$0xff] %vm562_vm1, %v2559_v39  ;;  %v2712_v47 = vadd.f32 %v2711_v45, %v2710_v15  ;;  %v676_v49 = vsel %vm562_vm1, %v523_v41, 0.0  ;;  %v786_v50 = vmul.f32 %v523_v41, %v523_v41 }
 0x15e   :  { %v2230_v51 = vsel %vm562_vm1, %v2143_v44, 0.0  ;;  %v2909_v52 = vsel %vm562_vm1, %v2822_v46, 0.0  ;;  %588 = vst.msk [vmem:[#allocation2 + $0xc8] sm:$0xff] %vm562_vm1, %v523_v41  ;;  %v677_v53 = vadd.f32 %v676_v49, %v675_v21  ;;  %v1355_v54 = vsel %vm562_vm1, %v1202_v42, 0.0 }
 0x15f   :  { %v2231_v55 = vadd.f32 %v2230_v51, %v2229_v48  ;;  %v2910_v56 = vadd.f32 %v2909_v52, %v2908_v23  ;;  %v874_v57 = vsel %vm562_vm1, %v786_v50, 0.0  ;;  %1267 = vst.msk [vmem:[#allocation2 + $0x2c8] sm:$0xff] %vm562_vm1, %v1202_v42  ;;  %v1356_v58 = vadd.f32 %v1355_v54, %v1354_v25  ;;  %v1739_v59 = vpop.f32.mrf.mxu2  ;;  %v2418_v60 = vpop.f32.mrf.mxu3 }
 0x160   :  { %v875_v61 = vadd.f32 %v874_v57, %v873_v28  ;;  %v1465_v62 = vmul.f32 %v1202_v42, %v1202_v42  ;;  %v1740_v0 = vadd.f32 %v5189_v63, %v1739_v59  ;;  %v2419_v1 = vadd.f32 %v5189_v63, %v2418_v60  ;;  %v384_v2 = vpop.f32.mrf.mxu0  ;;  %v1063_v3 = vpop.f32.mrf.mxu1 }
 0x161   :  { %v385_v5 = vadd.f32 %v5189_v63, %v384_v2  ;;  %v1064_v6 = vadd.f32 %v5189_v63, %v1063_v3 }
 0x162   :  { %v1553_v7 = vsel %vm562_vm1, %v1465_v62, 0.0  ;;  %v1881_v8 = vmax.f32 %v1740_v0, 0.0  ;;  %v2560_v9 = vmax.f32 %v2419_v1, 0.0  ;;  %4100 = vmatmul.msk.f32.gmra.mxu0 %vm96_vm0, %v62_v4 }
 0x163   :  { %v1554_v10 = vadd.f32 %v1553_v7, %v1552_v40  ;;  %v524_v11 = vmax.f32 %v385_v5, 0.0  ;;  %v1203_v12 = vmax.f32 %v1064_v6, 0.0  ;;  %4172 = vmatmul.msk.f32.gmra.mxu1 %vm96_vm0, %v62_v4  ;;  %v64_v7 = vld [vmem:[%s8690_s0 + $0x160] sm:$0xff] }
 0x164   :  { %1946 = vst.msk [vmem:[#allocation2 + $0x4c8] sm:$0xff] %vm562_vm1, %v1881_v8  ;;  %v2034_v13 = vsel %vm562_vm1, %v1881_v8, 0.0  ;;  %v2144_v14 = vmul.f32 %v1881_v8, %v1881_v8  ;;  %v2713_v15 = vsel %vm562_vm1, %v2560_v9, 0.0  ;;  %v2823_v16 = vmul.f32 %v2560_v9, %v2560_v9  ;;  %4244 = vmatmul.msk.f32.gmra.mxu2 %vm96_vm0, %v62_v4  ;;  %4316 = vmatmul.msk.f32.gmra.mxu3 %vm96_vm0, %v62_v4 }
 0x165   :  { %v2035_v18 = vadd.f32 %v2034_v13, %v2033_v17  ;;  %2625 = vst.msk [vmem:[#allocation2 + $0x6c8] sm:$0xff] %vm562_vm1, %v2560_v9  ;;  %v2714_v19 = vadd.f32 %v2713_v15, %v2712_v47  ;;  %v678_v20 = vsel %vm562_vm1, %v524_v11, 0.0  ;;  %v787_v21 = vmul.f32 %v524_v11, %v524_v11 }
 0x166   :  { %v2232_v22 = vsel %vm562_vm1, %v2144_v14, 0.0  ;;  %v2911_v48 = vsel %vm562_vm1, %v2823_v16, 0.0  ;;  %589 = vst.msk [vmem:[#allocation2 + $0xd0] sm:$0xff] %vm562_vm1, %v524_v11  ;;  %v679_v23 = vadd.f32 %v678_v20, %v677_v53  ;;  %v1357_v24 = vsel %vm562_vm1, %v1203_v12, 0.0 }
 0x167   :  { %v2233_v25 = vadd.f32 %v2232_v22, %v2231_v55  ;;  %v2912_v26 = vadd.f32 %v2911_v48, %v2910_v56  ;;  %v876_v27 = vsel %vm562_vm1, %v787_v21, 0.0  ;;  %1268 = vst.msk [vmem:[#allocation2 + $0x2d0] sm:$0xff] %vm562_vm1, %v1203_v12  ;;  %v1358_v28 = vadd.f32 %v1357_v24, %v1356_v58  ;;  %v1742_v29 = vpop.f32.mrf.mxu2  ;;  %v2421_v30 = vpop.f32.mrf.mxu3 }
 0x168   :  { %v877_v31 = vadd.f32 %v876_v27, %v875_v61  ;;  %v1466_v32 = vmul.f32 %v1203_v12, %v1203_v12  ;;  %v1743_v33 = vadd.f32 %v5189_v63, %v1742_v29  ;;  %v2422_v34 = vadd.f32 %v5189_v63, %v2421_v30  ;;  %v387_v35 = vpop.f32.mrf.mxu0  ;;  %v1066_v36 = vpop.f32.mrf.mxu1 }
 0x169   :  { %v388_v38 = vadd.f32 %v5189_v63, %v387_v35  ;;  %v1067_v39 = vadd.f32 %v5189_v63, %v1066_v36 }
 0x16a   :  { %v1555_v40 = vsel %vm562_vm1, %v1466_v32, 0.0  ;;  %v1882_v41 = vmax.f32 %v1743_v33, 0.0  ;;  %v2561_v42 = vmax.f32 %v2422_v34, 0.0  ;;  %4101 = vmatmul.msk.f32.gmra.mxu0 %vm96_vm0, %v63_v37 }
 0x16b   :  { %v1556_v43 = vadd.f32 %v1555_v40, %v1554_v10  ;;  %v525_v44 = vmax.f32 %v388_v38, 0.0  ;;  %v1204_v45 = vmax.f32 %v1067_v39, 0.0  ;;  %4173 = vmatmul.msk.f32.gmra.mxu1 %vm96_vm0, %v63_v37  ;;  %v65_v40 = vld [vmem:[%s8690_s0 + $0x168] sm:$0xff] }
 0x16c   :  { %1947 = vst.msk [vmem:[#allocation2 + $0x4d0] sm:$0xff] %vm562_vm1, %v1882_v41  ;;  %v2036_v46 = vsel %vm562_vm1, %v1882_v41, 0.0  ;;  %v2145_v17 = vmul.f32 %v1882_v41, %v1882_v41  ;;  %v2715_v47 = vsel %vm562_vm1, %v2561_v42, 0.0  ;;  %v2824_v49 = vmul.f32 %v2561_v42, %v2561_v42  ;;  %4245 = vmatmul.msk.f32.gmra.mxu2 %vm96_vm0, %v63_v37  ;;  %4317 = vmatmul.msk.f32.gmra.mxu3 %vm96_vm0, %v63_v37 }
 0x16d   :  { %v2037_v50 = vadd.f32 %v2036_v46, %v2035_v18  ;;  %2626 = vst.msk [vmem:[#allocation2 + $0x6d0] sm:$0xff] %vm562_vm1, %v2561_v42  ;;  %v2716_v51 = vadd.f32 %v2715_v47, %v2714_v19  ;;  %v680_v52 = vsel %vm562_vm1, %v525_v44, 0.0  ;;  %v788_v53 = vmul.f32 %v525_v44, %v525_v44 }
 0x16e   :  { %v2234_v54 = vsel %vm562_vm1, %v2145_v17, 0.0  ;;  %v2913_v55 = vsel %vm562_vm1, %v2824_v49, 0.0  ;;  %590 = vst.msk [vmem:[#allocation2 + $0xd8] sm:$0xff] %vm562_vm1, %v525_v44  ;;  %v681_v56 = vadd.f32 %v680_v52, %v679_v23  ;;  %v1359_v57 = vsel %vm562_vm1, %v1204_v45, 0.0 }
 0x16f   :  { %v2235_v58 = vadd.f32 %v2234_v54, %v2233_v25  ;;  %v2914_v59 = vadd.f32 %v2913_v55, %v2912_v26  ;;  %v878_v60 = vsel %vm562_vm1, %v788_v53, 0.0  ;;  %1269 = vst.msk [vmem:[#allocation2 + $0x2d8] sm:$0xff] %vm562_vm1, %v1204_v45  ;;  %v1360_v61 = vadd.f32 %v1359_v57, %v1358_v28  ;;  %v1745_v62 = vpop.f32.mrf.mxu2  ;;  %v2424_v0 = vpop.f32.mrf.mxu3 }
 0x170   :  { %v879_v1 = vadd.f32 %v878_v60, %v877_v31  ;;  %v1467_v2 = vmul.f32 %v1204_v45, %v1204_v45  ;;  %v1746_v3 = vadd.f32 %v5189_v63, %v1745_v62  ;;  %v2425_v4 = vadd.f32 %v5189_v63, %v2424_v0  ;;  %v390_v5 = vpop.f32.mrf.mxu0  ;;  %v1069_v6 = vpop.f32.mrf.mxu1 }
 0x171   :  { %v391_v8 = vadd.f32 %v5189_v63, %v390_v5  ;;  %v1070_v9 = vadd.f32 %v5189_v63, %v1069_v6 }
 0x172   :  { %v1557_v10 = vsel %vm562_vm1, %v1467_v2, 0.0  ;;  %v1883_v11 = vmax.f32 %v1746_v3, 0.0  ;;  %v2562_v12 = vmax.f32 %v2425_v4, 0.0  ;;  %4102 = vmatmul.msk.f32.gmra.mxu0 %vm96_vm0, %v64_v7 }
 0x173   :  { %v1558_v13 = vadd.f32 %v1557_v10, %v1556_v43  ;;  %v526_v14 = vmax.f32 %v391_v8, 0.0  ;;  %v1205_v15 = vmax.f32 %v1070_v9, 0.0  ;;  %4174 = vmatmul.msk.f32.gmra.mxu1 %vm96_vm0, %v64_v7  ;;  %v66_v10 = vld [vmem:[%s8690_s0 + $0x170] sm:$0xff] }
 0x174   :  { %1948 = vst.msk [vmem:[#allocation2 + $0x4d8] sm:$0xff] %vm562_vm1, %v1883_v11  ;;  %v2038_v16 = vsel %vm562_vm1, %v1883_v11, 0.0  ;;  %v2146_v18 = vmul.f32 %v1883_v11, %v1883_v11  ;;  %v2717_v19 = vsel %vm562_vm1, %v2562_v12, 0.0  ;;  %v2825_v20 = vmul.f32 %v2562_v12, %v2562_v12  ;;  %4246 = vmatmul.msk.f32.gmra.mxu2 %vm96_vm0, %v64_v7  ;;  %4318 = vmatmul.msk.f32.gmra.mxu3 %vm96_vm0, %v64_v7 }
 0x175   :  { %v2039_v21 = vadd.f32 %v2038_v16, %v2037_v50  ;;  %2627 = vst.msk [vmem:[#allocation2 + $0x6d8] sm:$0xff] %vm562_vm1, %v2562_v12  ;;  %v2718_v22 = vadd.f32 %v2717_v19, %v2716_v51  ;;  %v682_v48 = vsel %vm562_vm1, %v526_v14, 0.0  ;;  %v789_v23 = vmul.f32 %v526_v14, %v526_v14 }
 0x176   :  { %v2236_v24 = vsel %vm562_vm1, %v2146_v18, 0.0  ;;  %v2915_v25 = vsel %vm562_vm1, %v2825_v20, 0.0  ;;  %591 = vst.msk [vmem:[#allocation2 + $0xe0] sm:$0xff] %vm562_vm1, %v526_v14  ;;  %v683_v26 = vadd.f32 %v682_v48, %v681_v56  ;;  %v1361_v27 = vsel %vm562_vm1, %v1205_v15, 0.0 }
 0x177   :  { %v2237_v28 = vadd.f32 %v2236_v24, %v2235_v58  ;;  %v2916_v29 = vadd.f32 %v2915_v25, %v2914_v59  ;;  %v880_v30 = vsel %vm562_vm1, %v789_v23, 0.0  ;;  %1270 = vst.msk [vmem:[#allocation2 + $0x2e0] sm:$0xff] %vm562_vm1, %v1205_v15  ;;  %v1362_v31 = vadd.f32 %v1361_v27, %v1360_v61  ;;  %v1748_v32 = vpop.f32.mrf.mxu2  ;;  %v2427_v33 = vpop.f32.mrf.mxu3 }
 0x178   :  { %v881_v34 = vadd.f32 %v880_v30, %v879_v1  ;;  %v1468_v35 = vmul.f32 %v1205_v15, %v1205_v15  ;;  %v1749_v36 = vadd.f32 %v5189_v63, %v1748_v32  ;;  %v2428_v37 = vadd.f32 %v5189_v63, %v2427_v33  ;;  %v393_v38 = vpop.f32.mrf.mxu0  ;;  %v1072_v39 = vpop.f32.mrf.mxu1 }
 0x179   :  { %v394_v41 = vadd.f32 %v5189_v63, %v393_v38  ;;  %v1073_v42 = vadd.f32 %v5189_v63, %v1072_v39 }
 0x17a   :  { %v1559_v43 = vsel %vm562_vm1, %v1468_v35, 0.0  ;;  %v1884_v44 = vmax.f32 %v1749_v36, 0.0  ;;  %v2563_v45 = vmax.f32 %v2428_v37, 0.0  ;;  %4103 = vmatmul.msk.f32.gmra.mxu0 %vm96_vm0, %v65_v40 }
 0x17b   :  { %v1560_v46 = vadd.f32 %v1559_v43, %v1558_v13  ;;  %v527_v17 = vmax.f32 %v394_v41, 0.0  ;;  %v1206_v47 = vmax.f32 %v1073_v42, 0.0  ;;  %4175 = vmatmul.msk.f32.gmra.mxu1 %vm96_vm0, %v65_v40  ;;  %v67_v43 = vld [vmem:[%s8690_s0 + $0x178] sm:$0xff] }
 0x17c   :  { %1949 = vst.msk [vmem:[#allocation2 + $0x4e0] sm:$0xff] %vm562_vm1, %v1884_v44  ;;  %v2040_v49 = vsel %vm562_vm1, %v1884_v44, 0.0  ;;  %v2147_v50 = vmul.f32 %v1884_v44, %v1884_v44  ;;  %v2719_v51 = vsel %vm562_vm1, %v2563_v45, 0.0  ;;  %v2826_v52 = vmul.f32 %v2563_v45, %v2563_v45  ;;  %4247 = vmatmul.msk.f32.gmra.mxu2 %vm96_vm0, %v65_v40  ;;  %4319 = vmatmul.msk.f32.gmra.mxu3 %vm96_vm0, %v65_v40 }
 0x17d   :  { %v2041_v53 = vadd.f32 %v2040_v49, %v2039_v21  ;;  %2628 = vst.msk [vmem:[#allocation2 + $0x6e0] sm:$0xff] %vm562_vm1, %v2563_v45  ;;  %v2720_v54 = vadd.f32 %v2719_v51, %v2718_v22  ;;  %v684_v55 = vsel %vm562_vm1, %v527_v17, 0.0  ;;  %v790_v56 = vmul.f32 %v527_v17, %v527_v17 }
 0x17e   :  { %v2238_v57 = vsel %vm562_vm1, %v2147_v50, 0.0  ;;  %v2917_v58 = vsel %vm562_vm1, %v2826_v52, 0.0  ;;  %592 = vst.msk [vmem:[#allocation2 + $0xe8] sm:$0xff] %vm562_vm1, %v527_v17  ;;  %v685_v59 = vadd.f32 %v684_v55, %v683_v26  ;;  %v1363_v60 = vsel %vm562_vm1, %v1206_v47, 0.0 }
 0x17f   :  { %v2239_v61 = vadd.f32 %v2238_v57, %v2237_v28  ;;  %v2918_v62 = vadd.f32 %v2917_v58, %v2916_v29  ;;  %v882_v0 = vsel %vm562_vm1, %v790_v56, 0.0  ;;  %1271 = vst.msk [vmem:[#allocation2 + $0x2e8] sm:$0xff] %vm562_vm1, %v1206_v47  ;;  %v1364_v1 = vadd.f32 %v1363_v60, %v1362_v31  ;;  %v1751_v2 = vpop.f32.mrf.mxu2  ;;  %v2430_v3 = vpop.f32.mrf.mxu3 }
 0x180   :  { %v883_v4 = vadd.f32 %v882_v0, %v881_v34  ;;  %v1469_v5 = vmul.f32 %v1206_v47, %v1206_v47  ;;  %v1752_v6 = vadd.f32 %v5189_v63, %v1751_v2  ;;  %v2431_v7 = vadd.f32 %v5189_v63, %v2430_v3  ;;  %v396_v8 = vpop.f32.mrf.mxu0  ;;  %v1075_v9 = vpop.f32.mrf.mxu1 }
 0x181   :  { %v397_v11 = vadd.f32 %v5189_v63, %v396_v8  ;;  %v1076_v12 = vadd.f32 %v5189_v63, %v1075_v9 }
 0x182   :  { %v1561_v13 = vsel %vm562_vm1, %v1469_v5, 0.0  ;;  %v1885_v14 = vmax.f32 %v1752_v6, 0.0  ;;  %v2564_v15 = vmax.f32 %v2431_v7, 0.0  ;;  %4104 = vmatmul.msk.f32.gmra.mxu0 %vm96_vm0, %v66_v10 }
 0x183   :  { %v1562_v16 = vadd.f32 %v1561_v13, %v1560_v46  ;;  %v528_v18 = vmax.f32 %v397_v11, 0.0  ;;  %v1207_v19 = vmax.f32 %v1076_v12, 0.0  ;;  %4176 = vmatmul.msk.f32.gmra.mxu1 %vm96_vm0, %v66_v10  ;;  %v68_v13 = vld [vmem:[%s8690_s0 + $0x180] sm:$0xff] }
 0x184   :  { %1950 = vst.msk [vmem:[#allocation2 + $0x4e8] sm:$0xff] %vm562_vm1, %v1885_v14  ;;  %v2042_v20 = vsel %vm562_vm1, %v1885_v14, 0.0  ;;  %v2148_v21 = vmul.f32 %v1885_v14, %v1885_v14  ;;  %v2721_v22 = vsel %vm562_vm1, %v2564_v15, 0.0  ;;  %v2827_v48 = vmul.f32 %v2564_v15, %v2564_v15  ;;  %4248 = vmatmul.msk.f32.gmra.mxu2 %vm96_vm0, %v66_v10  ;;  %4320 = vmatmul.msk.f32.gmra.mxu3 %vm96_vm0, %v66_v10 }
 0x185   :  { %v2043_v23 = vadd.f32 %v2042_v20, %v2041_v53  ;;  %2629 = vst.msk [vmem:[#allocation2 + $0x6e8] sm:$0xff] %vm562_vm1, %v2564_v15  ;;  %v2722_v24 = vadd.f32 %v2721_v22, %v2720_v54  ;;  %v686_v25 = vsel %vm562_vm1, %v528_v18, 0.0  ;;  %v791_v26 = vmul.f32 %v528_v18, %v528_v18 }
 0x186   :  { %v2240_v27 = vsel %vm562_vm1, %v2148_v21, 0.0  ;;  %v2919_v28 = vsel %vm562_vm1, %v2827_v48, 0.0  ;;  %593 = vst.msk [vmem:[#allocation2 + $0xf0] sm:$0xff] %vm562_vm1, %v528_v18  ;;  %v687_v29 = vadd.f32 %v686_v25, %v685_v59  ;;  %v1365_v30 = vsel %vm562_vm1, %v1207_v19, 0.0 }
 0x187   :  { %v2241_v31 = vadd.f32 %v2240_v27, %v2239_v61  ;;  %v2920_v32 = vadd.f32 %v2919_v28, %v2918_v62  ;;  %v884_v33 = vsel %vm562_vm1, %v791_v26, 0.0  ;;  %1272 = vst.msk [vmem:[#allocation2 + $0x2f0] sm:$0xff] %vm562_vm1, %v1207_v19  ;;  %v1366_v34 = vadd.f32 %v1365_v30, %v1364_v1  ;;  %v1754_v35 = vpop.f32.mrf.mxu2  ;;  %v2433_v36 = vpop.f32.mrf.mxu3 }
 0x188   :  { %v885_v37 = vadd.f32 %v884_v33, %v883_v4  ;;  %v1470_v38 = vmul.f32 %v1207_v19, %v1207_v19  ;;  %v1755_v39 = vadd.f32 %v5189_v63, %v1754_v35  ;;  %v2434_v40 = vadd.f32 %v5189_v63, %v2433_v36  ;;  %v399_v41 = vpop.f32.mrf.mxu0  ;;  %v1078_v42 = vpop.f32.mrf.mxu1 }
 0x189   :  { %v400_v44 = vadd.f32 %v5189_v63, %v399_v41  ;;  %v1079_v45 = vadd.f32 %v5189_v63, %v1078_v42 }
 0x18a   :  { %v1563_v46 = vsel %vm562_vm1, %v1470_v38, 0.0  ;;  %v1886_v17 = vmax.f32 %v1755_v39, 0.0  ;;  %v2565_v47 = vmax.f32 %v2434_v40, 0.0  ;;  %4105 = vmatmul.msk.f32.gmra.mxu0 %vm96_vm0, %v67_v43 }
 0x18b   :  { %v1564_v49 = vadd.f32 %v1563_v46, %v1562_v16  ;;  %v529_v50 = vmax.f32 %v400_v44, 0.0  ;;  %v1208_v51 = vmax.f32 %v1079_v45, 0.0  ;;  %4177 = vmatmul.msk.f32.gmra.mxu1 %vm96_vm0, %v67_v43  ;;  %v69_v46 = vld [vmem:[%s8690_s0 + $0x188] sm:$0xff] }
 0x18c   :  { %1951 = vst.msk [vmem:[#allocation2 + $0x4f0] sm:$0xff] %vm562_vm1, %v1886_v17  ;;  %v2044_v52 = vsel %vm562_vm1, %v1886_v17, 0.0  ;;  %v2149_v53 = vmul.f32 %v1886_v17, %v1886_v17  ;;  %v2723_v54 = vsel %vm562_vm1, %v2565_v47, 0.0  ;;  %v2828_v55 = vmul.f32 %v2565_v47, %v2565_v47  ;;  %4249 = vmatmul.msk.f32.gmra.mxu2 %vm96_vm0, %v67_v43  ;;  %4321 = vmatmul.msk.f32.gmra.mxu3 %vm96_vm0, %v67_v43 }
 0x18d   :  { %v2045_v56 = vadd.f32 %v2044_v52, %v2043_v23  ;;  %2630 = vst.msk [vmem:[#allocation2 + $0x6f0] sm:$0xff] %vm562_vm1, %v2565_v47  ;;  %v2724_v57 = vadd.f32 %v2723_v54, %v2722_v24  ;;  %v688_v58 = vsel %vm562_vm1, %v529_v50, 0.0  ;;  %v792_v59 = vmul.f32 %v529_v50, %v529_v50 }
 0x18e   :  { %v2242_v60 = vsel %vm562_vm1, %v2149_v53, 0.0  ;;  %v2921_v61 = vsel %vm562_vm1, %v2828_v55, 0.0  ;;  %594 = vst.msk [vmem:[#allocation2 + $0xf8] sm:$0xff] %vm562_vm1, %v529_v50  ;;  %v689_v62 = vadd.f32 %v688_v58, %v687_v29  ;;  %v1367_v0 = vsel %vm562_vm1, %v1208_v51, 0.0 }
 0x18f   :  { %v2243_v1 = vadd.f32 %v2242_v60, %v2241_v31  ;;  %v2922_v2 = vadd.f32 %v2921_v61, %v2920_v32  ;;  %v886_v3 = vsel %vm562_vm1, %v792_v59, 0.0  ;;  %1273 = vst.msk [vmem:[#allocation2 + $0x2f8] sm:$0xff] %vm562_vm1, %v1208_v51  ;;  %v1368_v4 = vadd.f32 %v1367_v0, %v1366_v34  ;;  %v1757_v5 = vpop.f32.mrf.mxu2  ;;  %v2436_v6 = vpop.f32.mrf.mxu3 }
 0x190   :  { %v887_v7 = vadd.f32 %v886_v3, %v885_v37  ;;  %v1471_v8 = vmul.f32 %v1208_v51, %v1208_v51  ;;  %v1758_v9 = vadd.f32 %v5189_v63, %v1757_v5  ;;  %v2437_v10 = vadd.f32 %v5189_v63, %v2436_v6  ;;  %v402_v11 = vpop.f32.mrf.mxu0  ;;  %v1081_v12 = vpop.f32.mrf.mxu1 }
 0x191   :  { %v403_v14 = vadd.f32 %v5189_v63, %v402_v11  ;;  %v1082_v15 = vadd.f32 %v5189_v63, %v1081_v12 }
 0x192   :  { %v1565_v16 = vsel %vm562_vm1, %v1471_v8, 0.0  ;;  %v1887_v18 = vmax.f32 %v1758_v9, 0.0  ;;  %v2566_v19 = vmax.f32 %v2437_v10, 0.0  ;;  %4106 = vmatmul.msk.f32.gmra.mxu0 %vm96_vm0, %v68_v13 }
 0x193   :  { %v1566_v20 = vadd.f32 %v1565_v16, %v1564_v49  ;;  %v530_v21 = vmax.f32 %v403_v14, 0.0  ;;  %v1209_v22 = vmax.f32 %v1082_v15, 0.0  ;;  %4178 = vmatmul.msk.f32.gmra.mxu1 %vm96_vm0, %v68_v13  ;;  %v70_v16 = vld [vmem:[%s8690_s0 + $0x190] sm:$0xff] }
 0x194   :  { %1952 = vst.msk [vmem:[#allocation2 + $0x4f8] sm:$0xff] %vm562_vm1, %v1887_v18  ;;  %v2046_v48 = vsel %vm562_vm1, %v1887_v18, 0.0  ;;  %v2150_v23 = vmul.f32 %v1887_v18, %v1887_v18  ;;  %v2725_v24 = vsel %vm562_vm1, %v2566_v19, 0.0  ;;  %v2829_v25 = vmul.f32 %v2566_v19, %v2566_v19  ;;  %4250 = vmatmul.msk.f32.gmra.mxu2 %vm96_vm0, %v68_v13  ;;  %4322 = vmatmul.msk.f32.gmra.mxu3 %vm96_vm0, %v68_v13 }
 0x195   :  { %v2047_v26 = vadd.f32 %v2046_v48, %v2045_v56  ;;  %2631 = vst.msk [vmem:[#allocation2 + $0x6f8] sm:$0xff] %vm562_vm1, %v2566_v19  ;;  %v2726_v27 = vadd.f32 %v2725_v24, %v2724_v57  ;;  %v690_v28 = vsel %vm562_vm1, %v530_v21, 0.0  ;;  %v793_v29 = vmul.f32 %v530_v21, %v530_v21 }
 0x196   :  { %v2244_v30 = vsel %vm562_vm1, %v2150_v23, 0.0  ;;  %v2923_v31 = vsel %vm562_vm1, %v2829_v25, 0.0  ;;  %595 = vst.msk [vmem:[#allocation2 + $0x100] sm:$0xff] %vm562_vm1, %v530_v21  ;;  %v691_v32 = vadd.f32 %v690_v28, %v689_v62  ;;  %v1369_v33 = vsel %vm562_vm1, %v1209_v22, 0.0 }
 0x197   :  { %v2245_v34 = vadd.f32 %v2244_v30, %v2243_v1  ;;  %v2924_v35 = vadd.f32 %v2923_v31, %v2922_v2  ;;  %v888_v36 = vsel %vm562_vm1, %v793_v29, 0.0  ;;  %1274 = vst.msk [vmem:[#allocation2 + $0x300] sm:$0xff] %vm562_vm1, %v1209_v22  ;;  %v1370_v37 = vadd.f32 %v1369_v33, %v1368_v4  ;;  %v1760_v38 = vpop.f32.mrf.mxu2  ;;  %v2439_v39 = vpop.f32.mrf.mxu3 }
 0x198   :  { %v889_v40 = vadd.f32 %v888_v36, %v887_v7  ;;  %v1472_v41 = vmul.f32 %v1209_v22, %v1209_v22  ;;  %v1761_v42 = vadd.f32 %v5189_v63, %v1760_v38  ;;  %v2440_v43 = vadd.f32 %v5189_v63, %v2439_v39  ;;  %v405_v44 = vpop.f32.mrf.mxu0  ;;  %v1084_v45 = vpop.f32.mrf.mxu1 }
 0x199   :  { %v406_v17 = vadd.f32 %v5189_v63, %v405_v44  ;;  %v1085_v47 = vadd.f32 %v5189_v63, %v1084_v45 }
 0x19a   :  { %v1567_v49 = vsel %vm562_vm1, %v1472_v41, 0.0  ;;  %v1888_v50 = vmax.f32 %v1761_v42, 0.0  ;;  %v2567_v51 = vmax.f32 %v2440_v43, 0.0  ;;  %4107 = vmatmul.msk.f32.gmra.mxu0 %vm96_vm0, %v69_v46 }
 0x19b   :  { %v1568_v52 = vadd.f32 %v1567_v49, %v1566_v20  ;;  %v531_v53 = vmax.f32 %v406_v17, 0.0  ;;  %v1210_v54 = vmax.f32 %v1085_v47, 0.0  ;;  %4179 = vmatmul.msk.f32.gmra.mxu1 %vm96_vm0, %v69_v46  ;;  %v71_v49 = vld [vmem:[%s8690_s0 + $0x198] sm:$0xff] }
 0x19c   :  { %1953 = vst.msk [vmem:[#allocation2 + $0x500] sm:$0xff] %vm562_vm1, %v1888_v50  ;;  %v2048_v55 = vsel %vm562_vm1, %v1888_v50, 0.0  ;;  %v2151_v56 = vmul.f32 %v1888_v50, %v1888_v50  ;;  %v2727_v57 = vsel %vm562_vm1, %v2567_v51, 0.0  ;;  %v2830_v58 = vmul.f32 %v2567_v51, %v2567_v51  ;;  %4251 = vmatmul.msk.f32.gmra.mxu2 %vm96_vm0, %v69_v46  ;;  %4323 = vmatmul.msk.f32.gmra.mxu3 %vm96_vm0, %v69_v46 }
 0x19d   :  { %v2049_v59 = vadd.f32 %v2048_v55, %v2047_v26  ;;  %2632 = vst.msk [vmem:[#allocation2 + $0x700] sm:$0xff] %vm562_vm1, %v2567_v51  ;;  %v2728_v60 = vadd.f32 %v2727_v57, %v2726_v27  ;;  %v692_v61 = vsel %vm562_vm1, %v531_v53, 0.0  ;;  %v794_v62 = vmul.f32 %v531_v53, %v531_v53 }
 0x19e   :  { %v2246_v0 = vsel %vm562_vm1, %v2151_v56, 0.0  ;;  %v2925_v1 = vsel %vm562_vm1, %v2830_v58, 0.0  ;;  %596 = vst.msk [vmem:[#allocation2 + $0x108] sm:$0xff] %vm562_vm1, %v531_v53  ;;  %v693_v2 = vadd.f32 %v692_v61, %v691_v32  ;;  %v1371_v3 = vsel %vm562_vm1, %v1210_v54, 0.0 }
 0x19f   :  { %v2247_v4 = vadd.f32 %v2246_v0, %v2245_v34  ;;  %v2926_v5 = vadd.f32 %v2925_v1, %v2924_v35  ;;  %v890_v6 = vsel %vm562_vm1, %v794_v62, 0.0  ;;  %1275 = vst.msk [vmem:[#allocation2 + $0x308] sm:$0xff] %vm562_vm1, %v1210_v54  ;;  %v1372_v7 = vadd.f32 %v1371_v3, %v1370_v37  ;;  %v1763_v8 = vpop.f32.mrf.mxu2  ;;  %v2442_v9 = vpop.f32.mrf.mxu3 }
 0x1a0   :  { %v891_v10 = vadd.f32 %v890_v6, %v889_v40  ;;  %v1473_v11 = vmul.f32 %v1210_v54, %v1210_v54  ;;  %v1764_v12 = vadd.f32 %v5189_v63, %v1763_v8  ;;  %v2443_v13 = vadd.f32 %v5189_v63, %v2442_v9  ;;  %v408_v14 = vpop.f32.mrf.mxu0  ;;  %v1087_v15 = vpop.f32.mrf.mxu1 }
 0x1a1   :  { %v409_v18 = vadd.f32 %v5189_v63, %v408_v14  ;;  %v1088_v19 = vadd.f32 %v5189_v63, %v1087_v15 }
 0x1a2   :  { %v1569_v20 = vsel %vm562_vm1, %v1473_v11, 0.0  ;;  %v1889_v21 = vmax.f32 %v1764_v12, 0.0  ;;  %v2568_v22 = vmax.f32 %v2443_v13, 0.0  ;;  %4108 = vmatmul.msk.f32.gmra.mxu0 %vm96_vm0, %v70_v16 }
 0x1a3   :  { %v1570_v48 = vadd.f32 %v1569_v20, %v1568_v52  ;;  %v532_v23 = vmax.f32 %v409_v18, 0.0  ;;  %v1211_v24 = vmax.f32 %v1088_v19, 0.0  ;;  %4180 = vmatmul.msk.f32.gmra.mxu1 %vm96_vm0, %v70_v16  ;;  %v72_v20 = vld [vmem:[%s8690_s0 + $0x1a0] sm:$0xff] }
 0x1a4   :  { %1954 = vst.msk [vmem:[#allocation2 + $0x508] sm:$0xff] %vm562_vm1, %v1889_v21  ;;  %v2050_v25 = vsel %vm562_vm1, %v1889_v21, 0.0  ;;  %v2152_v26 = vmul.f32 %v1889_v21, %v1889_v21  ;;  %v2729_v27 = vsel %vm562_vm1, %v2568_v22, 0.0  ;;  %v2831_v28 = vmul.f32 %v2568_v22, %v2568_v22  ;;  %4252 = vmatmul.msk.f32.gmra.mxu2 %vm96_vm0, %v70_v16  ;;  %4324 = vmatmul.msk.f32.gmra.mxu3 %vm96_vm0, %v70_v16 }
 0x1a5   :  { %v2051_v29 = vadd.f32 %v2050_v25, %v2049_v59  ;;  %2633 = vst.msk [vmem:[#allocation2 + $0x708] sm:$0xff] %vm562_vm1, %v2568_v22  ;;  %v2730_v30 = vadd.f32 %v2729_v27, %v2728_v60  ;;  %v694_v31 = vsel %vm562_vm1, %v532_v23, 0.0  ;;  %v795_v32 = vmul.f32 %v532_v23, %v532_v23 }
 0x1a6   :  { %v2248_v33 = vsel %vm562_vm1, %v2152_v26, 0.0  ;;  %v2927_v34 = vsel %vm562_vm1, %v2831_v28, 0.0  ;;  %597 = vst.msk [vmem:[#allocation2 + $0x110] sm:$0xff] %vm562_vm1, %v532_v23  ;;  %v695_v35 = vadd.f32 %v694_v31, %v693_v2  ;;  %v1373_v36 = vsel %vm562_vm1, %v1211_v24, 0.0 }
 0x1a7   :  { %v2249_v37 = vadd.f32 %v2248_v33, %v2247_v4  ;;  %v2928_v38 = vadd.f32 %v2927_v34, %v2926_v5  ;;  %v892_v39 = vsel %vm562_vm1, %v795_v32, 0.0  ;;  %1276 = vst.msk [vmem:[#allocation2 + $0x310] sm:$0xff] %vm562_vm1, %v1211_v24  ;;  %v1374_v40 = vadd.f32 %v1373_v36, %v1372_v7  ;;  %v1766_v41 = vpop.f32.mrf.mxu2  ;;  %v2445_v42 = vpop.f32.mrf.mxu3 }
 0x1a8   :  { %v893_v43 = vadd.f32 %v892_v39, %v891_v10  ;;  %v1474_v44 = vmul.f32 %v1211_v24, %v1211_v24  ;;  %v1767_v45 = vadd.f32 %v5189_v63, %v1766_v41  ;;  %v2446_v46 = vadd.f32 %v5189_v63, %v2445_v42  ;;  %v411_v17 = vpop.f32.mrf.mxu0  ;;  %v1090_v47 = vpop.f32.mrf.mxu1 }
 0x1a9   :  { %v412_v50 = vadd.f32 %v5189_v63, %v411_v17  ;;  %v1091_v51 = vadd.f32 %v5189_v63, %v1090_v47 }
 0x1aa   :  { %v1571_v52 = vsel %vm562_vm1, %v1474_v44, 0.0  ;;  %v1890_v53 = vmax.f32 %v1767_v45, 0.0  ;;  %v2569_v54 = vmax.f32 %v2446_v46, 0.0  ;;  %4109 = vmatmul.msk.f32.gmra.mxu0 %vm96_vm0, %v71_v49 }
 0x1ab   :  { %v1572_v55 = vadd.f32 %v1571_v52, %v1570_v48  ;;  %v533_v56 = vmax.f32 %v412_v50, 0.0  ;;  %v1212_v57 = vmax.f32 %v1091_v51, 0.0  ;;  %4181 = vmatmul.msk.f32.gmra.mxu1 %vm96_vm0, %v71_v49  ;;  %v73_v52 = vld [vmem:[%s8690_s0 + $0x1a8] sm:$0xff] }
 0x1ac   :  { %1955 = vst.msk [vmem:[#allocation2 + $0x510] sm:$0xff] %vm562_vm1, %v1890_v53  ;;  %v2052_v58 = vsel %vm562_vm1, %v1890_v53, 0.0  ;;  %v2153_v59 = vmul.f32 %v1890_v53, %v1890_v53  ;;  %v2731_v60 = vsel %vm562_vm1, %v2569_v54, 0.0  ;;  %v2832_v61 = vmul.f32 %v2569_v54, %v2569_v54  ;;  %4253 = vmatmul.msk.f32.gmra.mxu2 %vm96_vm0, %v71_v49  ;;  %4325 = vmatmul.msk.f32.gmra.mxu3 %vm96_vm0, %v71_v49 }
 0x1ad   :  { %v2053_v62 = vadd.f32 %v2052_v58, %v2051_v29  ;;  %2634 = vst.msk [vmem:[#allocation2 + $0x710] sm:$0xff] %vm562_vm1, %v2569_v54  ;;  %v2732_v0 = vadd.f32 %v2731_v60, %v2730_v30  ;;  %v696_v1 = vsel %vm562_vm1, %v533_v56, 0.0  ;;  %v796_v2 = vmul.f32 %v533_v56, %v533_v56 }
 0x1ae   :  { %v2250_v3 = vsel %vm562_vm1, %v2153_v59, 0.0  ;;  %v2929_v4 = vsel %vm562_vm1, %v2832_v61, 0.0  ;;  %598 = vst.msk [vmem:[#allocation2 + $0x118] sm:$0xff] %vm562_vm1, %v533_v56  ;;  %v697_v5 = vadd.f32 %v696_v1, %v695_v35  ;;  %v1375_v6 = vsel %vm562_vm1, %v1212_v57, 0.0 }
 0x1af   :  { %v2251_v7 = vadd.f32 %v2250_v3, %v2249_v37  ;;  %v2930_v8 = vadd.f32 %v2929_v4, %v2928_v38  ;;  %v894_v9 = vsel %vm562_vm1, %v796_v2, 0.0  ;;  %1277 = vst.msk [vmem:[#allocation2 + $0x318] sm:$0xff] %vm562_vm1, %v1212_v57  ;;  %v1376_v10 = vadd.f32 %v1375_v6, %v1374_v40  ;;  %v1769_v11 = vpop.f32.mrf.mxu2  ;;  %v2448_v12 = vpop.f32.mrf.mxu3 }
 0x1b0   :  { %v895_v13 = vadd.f32 %v894_v9, %v893_v43  ;;  %v1475_v14 = vmul.f32 %v1212_v57, %v1212_v57  ;;  %v1770_v15 = vadd.f32 %v5189_v63, %v1769_v11  ;;  %v2449_v16 = vadd.f32 %v5189_v63, %v2448_v12  ;;  %v414_v18 = vpop.f32.mrf.mxu0  ;;  %v1093_v19 = vpop.f32.mrf.mxu1 }
 0x1b1   :  { %v415_v21 = vadd.f32 %v5189_v63, %v414_v18  ;;  %v1094_v22 = vadd.f32 %v5189_v63, %v1093_v19 }
 0x1b2   :  { %v1573_v48 = vsel %vm562_vm1, %v1475_v14, 0.0  ;;  %v1891_v23 = vmax.f32 %v1770_v15, 0.0  ;;  %v2570_v24 = vmax.f32 %v2449_v16, 0.0  ;;  %4110 = vmatmul.msk.f32.gmra.mxu0 %vm96_vm0, %v72_v20 }
 0x1b3   :  { %v1574_v25 = vadd.f32 %v1573_v48, %v1572_v55  ;;  %v534_v26 = vmax.f32 %v415_v21, 0.0  ;;  %v1213_v27 = vmax.f32 %v1094_v22, 0.0  ;;  %4182 = vmatmul.msk.f32.gmra.mxu1 %vm96_vm0, %v72_v20  ;;  %v74_v48 = vld [vmem:[%s8690_s0 + $0x1b0] sm:$0xff] }
 0x1b4   :  { %1956 = vst.msk [vmem:[#allocation2 + $0x518] sm:$0xff] %vm562_vm1, %v1891_v23  ;;  %v2054_v28 = vsel %vm562_vm1, %v1891_v23, 0.0  ;;  %v2154_v29 = vmul.f32 %v1891_v23, %v1891_v23  ;;  %v2733_v30 = vsel %vm562_vm1, %v2570_v24, 0.0  ;;  %v2833_v31 = vmul.f32 %v2570_v24, %v2570_v24  ;;  %4254 = vmatmul.msk.f32.gmra.mxu2 %vm96_vm0, %v72_v20  ;;  %4326 = vmatmul.msk.f32.gmra.mxu3 %vm96_vm0, %v72_v20 }
 0x1b5   :  { %v2055_v32 = vadd.f32 %v2054_v28, %v2053_v62  ;;  %2635 = vst.msk [vmem:[#allocation2 + $0x718] sm:$0xff] %vm562_vm1, %v2570_v24  ;;  %v2734_v33 = vadd.f32 %v2733_v30, %v2732_v0  ;;  %v698_v34 = vsel %vm562_vm1, %v534_v26, 0.0  ;;  %v797_v35 = vmul.f32 %v534_v26, %v534_v26 }
 0x1b6   :  { %v2252_v36 = vsel %vm562_vm1, %v2154_v29, 0.0  ;;  %v2931_v37 = vsel %vm562_vm1, %v2833_v31, 0.0  ;;  %599 = vst.msk [vmem:[#allocation2 + $0x120] sm:$0xff] %vm562_vm1, %v534_v26  ;;  %v699_v38 = vadd.f32 %v698_v34, %v697_v5  ;;  %v1377_v39 = vsel %vm562_vm1, %v1213_v27, 0.0 }
 0x1b7   :  { %v2253_v40 = vadd.f32 %v2252_v36, %v2251_v7  ;;  %v2932_v41 = vadd.f32 %v2931_v37, %v2930_v8  ;;  %v896_v42 = vsel %vm562_vm1, %v797_v35, 0.0  ;;  %1278 = vst.msk [vmem:[#allocation2 + $0x320] sm:$0xff] %vm562_vm1, %v1213_v27  ;;  %v1378_v43 = vadd.f32 %v1377_v39, %v1376_v10  ;;  %v1772_v44 = vpop.f32.mrf.mxu2  ;;  %v2451_v45 = vpop.f32.mrf.mxu3 }
 0x1b8   :  { %v897_v46 = vadd.f32 %v896_v42, %v895_v13  ;;  %v1476_v17 = vmul.f32 %v1213_v27, %v1213_v27  ;;  %v1773_v47 = vadd.f32 %v5189_v63, %v1772_v44  ;;  %v2452_v49 = vadd.f32 %v5189_v63, %v2451_v45  ;;  %v417_v50 = vpop.f32.mrf.mxu0  ;;  %v1096_v51 = vpop.f32.mrf.mxu1 }
 0x1b9   :  { %v418_v53 = vadd.f32 %v5189_v63, %v417_v50  ;;  %v1097_v54 = vadd.f32 %v5189_v63, %v1096_v51  ;;  %v5493_v50 = vld [vmem:[%s8691_s2] ss:$0 sm:$0xff] }
 0x1ba   :  { %v1575_v55 = vsel %vm562_vm1, %v1476_v17, 0.0  ;;  %v1892_v56 = vmax.f32 %v1773_v47, 0.0  ;;  %v2571_v57 = vmax.f32 %v2452_v49, 0.0  ;;  %4111 = vmatmul.msk.f32.gmra.mxu0 %vm96_vm0, %v73_v52 }
 0x1bb   :  { %v1576_v58 = vadd.f32 %v1575_v55, %v1574_v25  ;;  %v535_v59 = vmax.f32 %v418_v53, 0.0  ;;  %v1214_v60 = vmax.f32 %v1097_v54, 0.0  ;;  %4183 = vmatmul.msk.f32.gmra.mxu1 %vm96_vm0, %v73_v52  ;;  %v75_v55 = vld [vmem:[%s8690_s0 + $0x1b8] sm:$0xff] }
 0x1bc   :  { %1957 = vst.msk [vmem:[#allocation2 + $0x520] sm:$0xff] %vm562_vm1, %v1892_v56  ;;  %v2056_v61 = vsel %vm562_vm1, %v1892_v56, 0.0  ;;  %v2155_v62 = vmul.f32 %v1892_v56, %v1892_v56  ;;  %v2735_v0 = vsel %vm562_vm1, %v2571_v57, 0.0  ;;  %v2834_v1 = vmul.f32 %v2571_v57, %v2571_v57  ;;  %4255 = vmatmul.msk.f32.gmra.mxu2 %vm96_vm0, %v73_v52  ;;  %4327 = vmatmul.msk.f32.gmra.mxu3 %vm96_vm0, %v73_v52 }
 0x1bd   :  { %v2057_v2 = vadd.f32 %v2056_v61, %v2055_v32  ;;  %2636 = vst.msk [vmem:[#allocation2 + $0x720] sm:$0xff] %vm562_vm1, %v2571_v57  ;;  %v2736_v3 = vadd.f32 %v2735_v0, %v2734_v33  ;;  %v700_v4 = vsel %vm562_vm1, %v535_v59, 0.0  ;;  %v798_v5 = vmul.f32 %v535_v59, %v535_v59 }
 0x1be   :  { %v2254_v6 = vsel %vm562_vm1, %v2155_v62, 0.0  ;;  %v2933_v7 = vsel %vm562_vm1, %v2834_v1, 0.0  ;;  %600 = vst.msk [vmem:[#allocation2 + $0x128] sm:$0xff] %vm562_vm1, %v535_v59  ;;  %v701_v8 = vadd.f32 %v700_v4, %v699_v38  ;;  %v1379_v9 = vsel %vm562_vm1, %v1214_v60, 0.0 }
 0x1bf   :  { %v2255_v10 = vadd.f32 %v2254_v6, %v2253_v40  ;;  %v2934_v11 = vadd.f32 %v2933_v7, %v2932_v41  ;;  %v898_v12 = vsel %vm562_vm1, %v798_v5, 0.0  ;;  %1279 = vst.msk [vmem:[#allocation2 + $0x328] sm:$0xff] %vm562_vm1, %v1214_v60  ;;  %v1380_v13 = vadd.f32 %v1379_v9, %v1378_v43  ;;  %v1775_v14 = vpop.f32.mrf.mxu2  ;;  %v2454_v15 = vpop.f32.mrf.mxu3 }
 0x1c0   :  { %v899_v16 = vadd.f32 %v898_v12, %v897_v46  ;;  %v1477_v18 = vmul.f32 %v1214_v60, %v1214_v60  ;;  %v1776_v19 = vadd.f32 %v5189_v63, %v1775_v14  ;;  %v2455_v20 = vadd.f32 %v5189_v63, %v2454_v15  ;;  %v420_v21 = vpop.f32.mrf.mxu0  ;;  %v1099_v22 = vpop.f32.mrf.mxu1 }
 0x1c1   :  { %v421_v23 = vadd.f32 %v5189_v63, %v420_v21  ;;  %v1100_v24 = vadd.f32 %v5189_v63, %v1099_v22 }
 0x1c2   :  { %v1577_v25 = vsel %vm562_vm1, %v1477_v18, 0.0  ;;  %v1893_v26 = vmax.f32 %v1776_v19, 0.0  ;;  %v2572_v27 = vmax.f32 %v2455_v20, 0.0  ;;  %4112 = vmatmul.msk.f32.gmra.mxu0 %vm96_vm0, %v74_v48 }
 0x1c3   :  { %v1578_v28 = vadd.f32 %v1577_v25, %v1576_v58  ;;  %v536_v29 = vmax.f32 %v421_v23, 0.0  ;;  %v1215_v30 = vmax.f32 %v1100_v24, 0.0  ;;  %4184 = vmatmul.msk.f32.gmra.mxu1 %vm96_vm0, %v74_v48  ;;  %v76_v25 = vld [vmem:[%s8690_s0 + $0x1c0] sm:$0xff] }
 0x1c4   :  { %1958 = vst.msk [vmem:[#allocation2 + $0x528] sm:$0xff] %vm562_vm1, %v1893_v26  ;;  %v2058_v31 = vsel %vm562_vm1, %v1893_v26, 0.0  ;;  %v2156_v32 = vmul.f32 %v1893_v26, %v1893_v26  ;;  %v2737_v33 = vsel %vm562_vm1, %v2572_v27, 0.0  ;;  %v2835_v34 = vmul.f32 %v2572_v27, %v2572_v27  ;;  %4256 = vmatmul.msk.f32.gmra.mxu2 %vm96_vm0, %v74_v48  ;;  %4328 = vmatmul.msk.f32.gmra.mxu3 %vm96_vm0, %v74_v48 }
 0x1c5   :  { %v2059_v63 = vadd.f32 %v2058_v31, %v2057_v2  ;;  %2637 = vst.msk [vmem:[#allocation2 + $0x728] sm:$0xff] %vm562_vm1, %v2572_v27  ;;  %v2738_v35 = vadd.f32 %v2737_v33, %v2736_v3  ;;  %v702_v36 = vsel %vm562_vm1, %v536_v29, 0.0  ;;  %v799_v37 = vmul.f32 %v536_v29, %v536_v29 }
 0x1c6   :  { %v2256_v38 = vsel %vm562_vm1, %v2156_v32, 0.0  ;;  %v2935_v39 = vsel %vm562_vm1, %v2835_v34, 0.0  ;;  %601 = vst.msk [vmem:[#allocation2 + $0x130] sm:$0xff] %vm562_vm1, %v536_v29  ;;  %v703_v40 = vadd.f32 %v702_v36, %v701_v8  ;;  %v1381_v41 = vsel %vm562_vm1, %v1215_v30, 0.0 }
 0x1c7   :  { %v2257_v42 = vadd.f32 %v2256_v38, %v2255_v10  ;;  %v2936_v43 = vadd.f32 %v2935_v39, %v2934_v11  ;;  %v900_v44 = vsel %vm562_vm1, %v799_v37, 0.0  ;;  %1280 = vst.msk [vmem:[#allocation2 + $0x330] sm:$0xff] %vm562_vm1, %v1215_v30  ;;  %v1382_v45 = vadd.f32 %v1381_v41, %v1380_v13  ;;  %v1778_v46 = vpop.f32.mrf.mxu2  ;;  %v2457_v17 = vpop.f32.mrf.mxu3 }
 0x1c8   :  { %v901_v47 = vadd.f32 %v900_v44, %v899_v16  ;;  %v1478_v49 = vmul.f32 %v1215_v30, %v1215_v30  ;;  %v1779_v51 = vadd.f32 %v5493_v50, %v1778_v46  ;;  %v2458_v52 = vadd.f32 %v5493_v50, %v2457_v17  ;;  %v423_v53 = vpop.f32.mrf.mxu0  ;;  %v1102_v54 = vpop.f32.mrf.mxu1 }
 0x1c9   :  { %v424_v56 = vadd.f32 %v5493_v50, %v423_v53  ;;  %v1103_v57 = vadd.f32 %v5493_v50, %v1102_v54 }
 0x1ca   :  { %v1579_v58 = vsel %vm562_vm1, %v1478_v49, 0.0  ;;  %v1894_v59 = vmax.f32 %v1779_v51, 0.0  ;;  %v2573_v60 = vmax.f32 %v2458_v52, 0.0  ;;  %4113 = vmatmul.msk.f32.gmra.mxu0 %vm96_vm0, %v75_v55 }
 0x1cb   :  { %v1580_v61 = vadd.f32 %v1579_v58, %v1578_v28  ;;  %v537_v62 = vmax.f32 %v424_v56, 0.0  ;;  %v1216_v0 = vmax.f32 %v1103_v57, 0.0  ;;  %4185 = vmatmul.msk.f32.gmra.mxu1 %vm96_vm0, %v75_v55  ;;  %v77_v58 = vld [vmem:[%s8690_s0 + $0x1c8] sm:$0xff] }
 0x1cc   :  { %1959 = vst.msk [vmem:[#allocation2 + $0x530] sm:$0xff] %vm562_vm1, %v1894_v59  ;;  %v2060_v1 = vsel %vm562_vm1, %v1894_v59, 0.0  ;;  %v2157_v2 = vmul.f32 %v1894_v59, %v1894_v59  ;;  %v2739_v3 = vsel %vm562_vm1, %v2573_v60, 0.0  ;;  %v2836_v4 = vmul.f32 %v2573_v60, %v2573_v60  ;;  %4257 = vmatmul.msk.f32.gmra.mxu2 %vm96_vm0, %v75_v55  ;;  %4329 = vmatmul.msk.f32.gmra.mxu3 %vm96_vm0, %v75_v55 }
 0x1cd   :  { %v2061_v5 = vadd.f32 %v2060_v1, %v2059_v63  ;;  %2638 = vst.msk [vmem:[#allocation2 + $0x730] sm:$0xff] %vm562_vm1, %v2573_v60  ;;  %v2740_v6 = vadd.f32 %v2739_v3, %v2738_v35  ;;  %v704_v7 = vsel %vm562_vm1, %v537_v62, 0.0  ;;  %v800_v8 = vmul.f32 %v537_v62, %v537_v62 }
 0x1ce   :  { %v2258_v9 = vsel %vm562_vm1, %v2157_v2, 0.0  ;;  %v2937_v10 = vsel %vm562_vm1, %v2836_v4, 0.0  ;;  %602 = vst.msk [vmem:[#allocation2 + $0x138] sm:$0xff] %vm562_vm1, %v537_v62  ;;  %v705_v11 = vadd.f32 %v704_v7, %v703_v40  ;;  %v1383_v12 = vsel %vm562_vm1, %v1216_v0, 0.0 }
 0x1cf   :  { %v2259_v13 = vadd.f32 %v2258_v9, %v2257_v42  ;;  %v2938_v14 = vadd.f32 %v2937_v10, %v2936_v43  ;;  %v902_v15 = vsel %vm562_vm1, %v800_v8, 0.0  ;;  %1281 = vst.msk [vmem:[#allocation2 + $0x338] sm:$0xff] %vm562_vm1, %v1216_v0  ;;  %v1384_v16 = vadd.f32 %v1383_v12, %v1382_v45  ;;  %v1781_v18 = vpop.f32.mrf.mxu2  ;;  %v2460_v19 = vpop.f32.mrf.mxu3 }
 0x1d0   :  { %v903_v20 = vadd.f32 %v902_v15, %v901_v47  ;;  %v1479_v21 = vmul.f32 %v1216_v0, %v1216_v0  ;;  %v1782_v22 = vadd.f32 %v5493_v50, %v1781_v18  ;;  %v2461_v48 = vadd.f32 %v5493_v50, %v2460_v19  ;;  %v426_v23 = vpop.f32.mrf.mxu0  ;;  %v1105_v24 = vpop.f32.mrf.mxu1 }
 0x1d1   :  { %v427_v26 = vadd.f32 %v5493_v50, %v426_v23  ;;  %v1106_v27 = vadd.f32 %v5493_v50, %v1105_v24 }
 0x1d2   :  { %v1581_v28 = vsel %vm562_vm1, %v1479_v21, 0.0  ;;  %v1895_v29 = vmax.f32 %v1782_v22, 0.0  ;;  %v2574_v30 = vmax.f32 %v2461_v48, 0.0  ;;  %4114 = vmatmul.msk.f32.gmra.mxu0 %vm96_vm0, %v76_v25 }
 0x1d3   :  { %v1582_v31 = vadd.f32 %v1581_v28, %v1580_v61  ;;  %v538_v32 = vmax.f32 %v427_v26, 0.0  ;;  %v1217_v33 = vmax.f32 %v1106_v27, 0.0  ;;  %4186 = vmatmul.msk.f32.gmra.mxu1 %vm96_vm0, %v76_v25  ;;  %v78_v28 = vld [vmem:[%s8690_s0 + $0x1d0] sm:$0xff] }
 0x1d4   :  { %1960 = vst.msk [vmem:[#allocation2 + $0x538] sm:$0xff] %vm562_vm1, %v1895_v29  ;;  %v2062_v34 = vsel %vm562_vm1, %v1895_v29, 0.0  ;;  %v2158_v63 = vmul.f32 %v1895_v29, %v1895_v29  ;;  %v2741_v35 = vsel %vm562_vm1, %v2574_v30, 0.0  ;;  %v2837_v36 = vmul.f32 %v2574_v30, %v2574_v30  ;;  %4258 = vmatmul.msk.f32.gmra.mxu2 %vm96_vm0, %v76_v25  ;;  %4330 = vmatmul.msk.f32.gmra.mxu3 %vm96_vm0, %v76_v25 }
 0x1d5   :  { %v2063_v37 = vadd.f32 %v2062_v34, %v2061_v5  ;;  %2639 = vst.msk [vmem:[#allocation2 + $0x738] sm:$0xff] %vm562_vm1, %v2574_v30  ;;  %v2742_v38 = vadd.f32 %v2741_v35, %v2740_v6  ;;  %v706_v39 = vsel %vm562_vm1, %v538_v32, 0.0  ;;  %v801_v40 = vmul.f32 %v538_v32, %v538_v32 }
 0x1d6   :  { %v2260_v41 = vsel %vm562_vm1, %v2158_v63, 0.0  ;;  %v2939_v42 = vsel %vm562_vm1, %v2837_v36, 0.0  ;;  %603 = vst.msk [vmem:[#allocation2 + $0x140] sm:$0xff] %vm562_vm1, %v538_v32  ;;  %v707_v43 = vadd.f32 %v706_v39, %v705_v11  ;;  %v1385_v44 = vsel %vm562_vm1, %v1217_v33, 0.0 }
 0x1d7   :  { %v2261_v45 = vadd.f32 %v2260_v41, %v2259_v13  ;;  %v2940_v46 = vadd.f32 %v2939_v42, %v2938_v14  ;;  %v904_v17 = vsel %vm562_vm1, %v801_v40, 0.0  ;;  %1282 = vst.msk [vmem:[#allocation2 + $0x340] sm:$0xff] %vm562_vm1, %v1217_v33  ;;  %v1386_v47 = vadd.f32 %v1385_v44, %v1384_v16  ;;  %v1784_v49 = vpop.f32.mrf.mxu2  ;;  %v2463_v51 = vpop.f32.mrf.mxu3 }
 0x1d8   :  { %v905_v52 = vadd.f32 %v904_v17, %v903_v20  ;;  %v1480_v53 = vmul.f32 %v1217_v33, %v1217_v33  ;;  %v1785_v54 = vadd.f32 %v5493_v50, %v1784_v49  ;;  %v2464_v55 = vadd.f32 %v5493_v50, %v2463_v51  ;;  %v429_v56 = vpop.f32.mrf.mxu0  ;;  %v1108_v57 = vpop.f32.mrf.mxu1 }
 0x1d9   :  { %v430_v59 = vadd.f32 %v5493_v50, %v429_v56  ;;  %v1109_v60 = vadd.f32 %v5493_v50, %v1108_v57 }
 0x1da   :  { %v1583_v61 = vsel %vm562_vm1, %v1480_v53, 0.0  ;;  %v1896_v62 = vmax.f32 %v1785_v54, 0.0  ;;  %v2575_v0 = vmax.f32 %v2464_v55, 0.0  ;;  %4115 = vmatmul.msk.f32.gmra.mxu0 %vm96_vm0, %v77_v58 }
 0x1db   :  { %v1584_v1 = vadd.f32 %v1583_v61, %v1582_v31  ;;  %v539_v2 = vmax.f32 %v430_v59, 0.0  ;;  %v1218_v3 = vmax.f32 %v1109_v60, 0.0  ;;  %4187 = vmatmul.msk.f32.gmra.mxu1 %vm96_vm0, %v77_v58  ;;  %v79_v61 = vld [vmem:[%s8690_s0 + $0x1d8] sm:$0xff] }
 0x1dc   :  { %1961 = vst.msk [vmem:[#allocation2 + $0x540] sm:$0xff] %vm562_vm1, %v1896_v62  ;;  %v2064_v4 = vsel %vm562_vm1, %v1896_v62, 0.0  ;;  %v2159_v5 = vmul.f32 %v1896_v62, %v1896_v62  ;;  %v2743_v6 = vsel %vm562_vm1, %v2575_v0, 0.0  ;;  %v2838_v7 = vmul.f32 %v2575_v0, %v2575_v0  ;;  %4259 = vmatmul.msk.f32.gmra.mxu2 %vm96_vm0, %v77_v58  ;;  %4331 = vmatmul.msk.f32.gmra.mxu3 %vm96_vm0, %v77_v58 }
 0x1dd   :  { %v2065_v8 = vadd.f32 %v2064_v4, %v2063_v37  ;;  %2640 = vst.msk [vmem:[#allocation2 + $0x740] sm:$0xff] %vm562_vm1, %v2575_v0  ;;  %v2744_v9 = vadd.f32 %v2743_v6, %v2742_v38  ;;  %v708_v10 = vsel %vm562_vm1, %v539_v2, 0.0  ;;  %v802_v11 = vmul.f32 %v539_v2, %v539_v2 }
 0x1de   :  { %v2262_v12 = vsel %vm562_vm1, %v2159_v5, 0.0  ;;  %v2941_v13 = vsel %vm562_vm1, %v2838_v7, 0.0  ;;  %604 = vst.msk [vmem:[#allocation2 + $0x148] sm:$0xff] %vm562_vm1, %v539_v2  ;;  %v709_v14 = vadd.f32 %v708_v10, %v707_v43  ;;  %v1387_v15 = vsel %vm562_vm1, %v1218_v3, 0.0 }
 0x1df   :  { %v2263_v16 = vadd.f32 %v2262_v12, %v2261_v45  ;;  %v2942_v18 = vadd.f32 %v2941_v13, %v2940_v46  ;;  %v906_v19 = vsel %vm562_vm1, %v802_v11, 0.0  ;;  %1283 = vst.msk [vmem:[#allocation2 + $0x348] sm:$0xff] %vm562_vm1, %v1218_v3  ;;  %v1388_v20 = vadd.f32 %v1387_v15, %v1386_v47  ;;  %v1787_v21 = vpop.f32.mrf.mxu2  ;;  %v2466_v22 = vpop.f32.mrf.mxu3 }
 0x1e0   :  { %v907_v48 = vadd.f32 %v906_v19, %v905_v52  ;;  %v1481_v23 = vmul.f32 %v1218_v3, %v1218_v3  ;;  %v1788_v24 = vadd.f32 %v5493_v50, %v1787_v21  ;;  %v2467_v25 = vadd.f32 %v5493_v50, %v2466_v22  ;;  %v432_v26 = vpop.f32.mrf.mxu0  ;;  %v1111_v27 = vpop.f32.mrf.mxu1 }
 0x1e1   :  { %v433_v29 = vadd.f32 %v5493_v50, %v432_v26  ;;  %v1112_v30 = vadd.f32 %v5493_v50, %v1111_v27 }
 0x1e2   :  { %v1585_v31 = vsel %vm562_vm1, %v1481_v23, 0.0  ;;  %v1897_v32 = vmax.f32 %v1788_v24, 0.0  ;;  %v2576_v33 = vmax.f32 %v2467_v25, 0.0  ;;  %4116 = vmatmul.msk.f32.gmra.mxu0 %vm96_vm0, %v78_v28 }
 0x1e3   :  { %v1586_v34 = vadd.f32 %v1585_v31, %v1584_v1  ;;  %v540_v63 = vmax.f32 %v433_v29, 0.0  ;;  %v1219_v35 = vmax.f32 %v1112_v30, 0.0  ;;  %4188 = vmatmul.msk.f32.gmra.mxu1 %vm96_vm0, %v78_v28  ;;  %v80_v31 = vld [vmem:[%s8690_s0 + $0x1e0] sm:$0xff] }
 0x1e4   :  { %1962 = vst.msk [vmem:[#allocation2 + $0x548] sm:$0xff] %vm562_vm1, %v1897_v32  ;;  %v2066_v36 = vsel %vm562_vm1, %v1897_v32, 0.0  ;;  %v2160_v37 = vmul.f32 %v1897_v32, %v1897_v32  ;;  %v2745_v38 = vsel %vm562_vm1, %v2576_v33, 0.0  ;;  %v2839_v39 = vmul.f32 %v2576_v33, %v2576_v33  ;;  %4260 = vmatmul.msk.f32.gmra.mxu2 %vm96_vm0, %v78_v28  ;;  %4332 = vmatmul.msk.f32.gmra.mxu3 %vm96_vm0, %v78_v28 }
 0x1e5   :  { %v2067_v40 = vadd.f32 %v2066_v36, %v2065_v8  ;;  %2641 = vst.msk [vmem:[#allocation2 + $0x748] sm:$0xff] %vm562_vm1, %v2576_v33  ;;  %v2746_v41 = vadd.f32 %v2745_v38, %v2744_v9  ;;  %v710_v42 = vsel %vm562_vm1, %v540_v63, 0.0  ;;  %v803_v43 = vmul.f32 %v540_v63, %v540_v63 }
 0x1e6   :  { %v2264_v44 = vsel %vm562_vm1, %v2160_v37, 0.0  ;;  %v2943_v45 = vsel %vm562_vm1, %v2839_v39, 0.0  ;;  %605 = vst.msk [vmem:[#allocation2 + $0x150] sm:$0xff] %vm562_vm1, %v540_v63  ;;  %v711_v46 = vadd.f32 %v710_v42, %v709_v14  ;;  %v1389_v17 = vsel %vm562_vm1, %v1219_v35, 0.0 }
 0x1e7   :  { %v2265_v47 = vadd.f32 %v2264_v44, %v2263_v16  ;;  %v2944_v49 = vadd.f32 %v2943_v45, %v2942_v18  ;;  %v908_v51 = vsel %vm562_vm1, %v803_v43, 0.0  ;;  %1284 = vst.msk [vmem:[#allocation2 + $0x350] sm:$0xff] %vm562_vm1, %v1219_v35  ;;  %v1390_v52 = vadd.f32 %v1389_v17, %v1388_v20  ;;  %v1790_v53 = vpop.f32.mrf.mxu2  ;;  %v2469_v54 = vpop.f32.mrf.mxu3 }
 0x1e8   :  { %v909_v55 = vadd.f32 %v908_v51, %v907_v48  ;;  %v1482_v56 = vmul.f32 %v1219_v35, %v1219_v35  ;;  %v1791_v57 = vadd.f32 %v5493_v50, %v1790_v53  ;;  %v2470_v58 = vadd.f32 %v5493_v50, %v2469_v54  ;;  %v435_v59 = vpop.f32.mrf.mxu0  ;;  %v1114_v60 = vpop.f32.mrf.mxu1 }
 0x1e9   :  { %v436_v62 = vadd.f32 %v5493_v50, %v435_v59  ;;  %v1115_v0 = vadd.f32 %v5493_v50, %v1114_v60 }
 0x1ea   :  { %v1587_v1 = vsel %vm562_vm1, %v1482_v56, 0.0  ;;  %v1898_v2 = vmax.f32 %v1791_v57, 0.0  ;;  %v2577_v3 = vmax.f32 %v2470_v58, 0.0  ;;  %4117 = vmatmul.msk.f32.gmra.mxu0 %vm96_vm0, %v79_v61 }
 0x1eb   :  { %v1588_v4 = vadd.f32 %v1587_v1, %v1586_v34  ;;  %v541_v5 = vmax.f32 %v436_v62, 0.0  ;;  %v1220_v6 = vmax.f32 %v1115_v0, 0.0  ;;  %4189 = vmatmul.msk.f32.gmra.mxu1 %vm96_vm0, %v79_v61  ;;  %v81_v1 = vld [vmem:[%s8690_s0 + $0x1e8] sm:$0xff] }
 0x1ec   :  { %1963 = vst.msk [vmem:[#allocation2 + $0x550] sm:$0xff] %vm562_vm1, %v1898_v2  ;;  %v2068_v7 = vsel %vm562_vm1, %v1898_v2, 0.0  ;;  %v2161_v8 = vmul.f32 %v1898_v2, %v1898_v2  ;;  %v2747_v9 = vsel %vm562_vm1, %v2577_v3, 0.0  ;;  %v2840_v10 = vmul.f32 %v2577_v3, %v2577_v3  ;;  %4261 = vmatmul.msk.f32.gmra.mxu2 %vm96_vm0, %v79_v61  ;;  %4333 = vmatmul.msk.f32.gmra.mxu3 %vm96_vm0, %v79_v61 }
 0x1ed   :  { %v2069_v11 = vadd.f32 %v2068_v7, %v2067_v40  ;;  %2642 = vst.msk [vmem:[#allocation2 + $0x750] sm:$0xff] %vm562_vm1, %v2577_v3  ;;  %v2748_v12 = vadd.f32 %v2747_v9, %v2746_v41  ;;  %v712_v13 = vsel %vm562_vm1, %v541_v5, 0.0  ;;  %v804_v14 = vmul.f32 %v541_v5, %v541_v5 }
 0x1ee   :  { %v2266_v15 = vsel %vm562_vm1, %v2161_v8, 0.0  ;;  %v2945_v16 = vsel %vm562_vm1, %v2840_v10, 0.0  ;;  %606 = vst.msk [vmem:[#allocation2 + $0x158] sm:$0xff] %vm562_vm1, %v541_v5  ;;  %v713_v18 = vadd.f32 %v712_v13, %v711_v46  ;;  %v1391_v19 = vsel %vm562_vm1, %v1220_v6, 0.0 }
 0x1ef   :  { %v2267_v20 = vadd.f32 %v2266_v15, %v2265_v47  ;;  %v2946_v21 = vadd.f32 %v2945_v16, %v2944_v49  ;;  %v910_v22 = vsel %vm562_vm1, %v804_v14, 0.0  ;;  %1285 = vst.msk [vmem:[#allocation2 + $0x358] sm:$0xff] %vm562_vm1, %v1220_v6  ;;  %v1392_v48 = vadd.f32 %v1391_v19, %v1390_v52  ;;  %v1793_v23 = vpop.f32.mrf.mxu2  ;;  %v2472_v24 = vpop.f32.mrf.mxu3 }
 0x1f0   :  { %v911_v25 = vadd.f32 %v910_v22, %v909_v55  ;;  %v1483_v26 = vmul.f32 %v1220_v6, %v1220_v6  ;;  %v1794_v27 = vadd.f32 %v5493_v50, %v1793_v23  ;;  %v2473_v28 = vadd.f32 %v5493_v50, %v2472_v24  ;;  %v438_v29 = vpop.f32.mrf.mxu0  ;;  %v1117_v30 = vpop.f32.mrf.mxu1 }
 0x1f1   :  { %v439_v32 = vadd.f32 %v5493_v50, %v438_v29  ;;  %v1118_v33 = vadd.f32 %v5493_v50, %v1117_v30 }
 0x1f2   :  { %v1589_v34 = vsel %vm562_vm1, %v1483_v26, 0.0  ;;  %v1899_v63 = vmax.f32 %v1794_v27, 0.0  ;;  %v2578_v35 = vmax.f32 %v2473_v28, 0.0  ;;  %4118 = vmatmul.msk.f32.gmra.mxu0 %vm96_vm0, %v80_v31 }
 0x1f3   :  { %v1590_v36 = vadd.f32 %v1589_v34, %v1588_v4  ;;  %v542_v37 = vmax.f32 %v439_v32, 0.0  ;;  %v1221_v38 = vmax.f32 %v1118_v33, 0.0  ;;  %4190 = vmatmul.msk.f32.gmra.mxu1 %vm96_vm0, %v80_v31  ;;  %v82_v34 = vld [vmem:[%s8690_s0 + $0x1f0] sm:$0xff] }
 0x1f4   :  { %1964 = vst.msk [vmem:[#allocation2 + $0x558] sm:$0xff] %vm562_vm1, %v1899_v63  ;;  %v2070_v39 = vsel %vm562_vm1, %v1899_v63, 0.0  ;;  %v2162_v40 = vmul.f32 %v1899_v63, %v1899_v63  ;;  %v2749_v41 = vsel %vm562_vm1, %v2578_v35, 0.0  ;;  %v2841_v42 = vmul.f32 %v2578_v35, %v2578_v35  ;;  %4262 = vmatmul.msk.f32.gmra.mxu2 %vm96_vm0, %v80_v31  ;;  %4334 = vmatmul.msk.f32.gmra.mxu3 %vm96_vm0, %v80_v31 }
 0x1f5   :  { %v2071_v43 = vadd.f32 %v2070_v39, %v2069_v11  ;;  %2643 = vst.msk [vmem:[#allocation2 + $0x758] sm:$0xff] %vm562_vm1, %v2578_v35  ;;  %v2750_v44 = vadd.f32 %v2749_v41, %v2748_v12  ;;  %v714_v45 = vsel %vm562_vm1, %v542_v37, 0.0  ;;  %v805_v46 = vmul.f32 %v542_v37, %v542_v37 }
 0x1f6   :  { %v2268_v17 = vsel %vm562_vm1, %v2162_v40, 0.0  ;;  %v2947_v47 = vsel %vm562_vm1, %v2841_v42, 0.0  ;;  %607 = vst.msk [vmem:[#allocation2 + $0x160] sm:$0xff] %vm562_vm1, %v542_v37  ;;  %v715_v49 = vadd.f32 %v714_v45, %v713_v18  ;;  %v1393_v51 = vsel %vm562_vm1, %v1221_v38, 0.0 }
 0x1f7   :  { %v2269_v52 = vadd.f32 %v2268_v17, %v2267_v20  ;;  %v2948_v53 = vadd.f32 %v2947_v47, %v2946_v21  ;;  %v912_v54 = vsel %vm562_vm1, %v805_v46, 0.0  ;;  %1286 = vst.msk [vmem:[#allocation2 + $0x360] sm:$0xff] %vm562_vm1, %v1221_v38  ;;  %v1394_v55 = vadd.f32 %v1393_v51, %v1392_v48  ;;  %v1796_v56 = vpop.f32.mrf.mxu2  ;;  %v2475_v57 = vpop.f32.mrf.mxu3 }
 0x1f8   :  { %v913_v58 = vadd.f32 %v912_v54, %v911_v25  ;;  %v1484_v59 = vmul.f32 %v1221_v38, %v1221_v38  ;;  %v1797_v60 = vadd.f32 %v5493_v50, %v1796_v56  ;;  %v2476_v61 = vadd.f32 %v5493_v50, %v2475_v57  ;;  %v441_v62 = vpop.f32.mrf.mxu0  ;;  %v1120_v0 = vpop.f32.mrf.mxu1 }
 0x1f9   :  { %v442_v2 = vadd.f32 %v5493_v50, %v441_v62  ;;  %v1121_v3 = vadd.f32 %v5493_v50, %v1120_v0 }
 0x1fa   :  { %v1591_v4 = vsel %vm562_vm1, %v1484_v59, 0.0  ;;  %v1900_v5 = vmax.f32 %v1797_v60, 0.0  ;;  %v2579_v6 = vmax.f32 %v2476_v61, 0.0  ;;  %4119 = vmatmul.msk.f32.gmra.mxu0 %vm96_vm0, %v81_v1 }
 0x1fb   :  { %v1592_v7 = vadd.f32 %v1591_v4, %v1590_v36  ;;  %v543_v8 = vmax.f32 %v442_v2, 0.0  ;;  %v1222_v9 = vmax.f32 %v1121_v3, 0.0  ;;  %4191 = vmatmul.msk.f32.gmra.mxu1 %vm96_vm0, %v81_v1  ;;  %v83_v4 = vld [vmem:[%s8690_s0 + $0x1f8] sm:$0xff] }
 0x1fc   :  { %1965 = vst.msk [vmem:[#allocation2 + $0x560] sm:$0xff] %vm562_vm1, %v1900_v5  ;;  %v2072_v10 = vsel %vm562_vm1, %v1900_v5, 0.0  ;;  %v2163_v11 = vmul.f32 %v1900_v5, %v1900_v5  ;;  %v2751_v12 = vsel %vm562_vm1, %v2579_v6, 0.0  ;;  %v2842_v13 = vmul.f32 %v2579_v6, %v2579_v6  ;;  %4263 = vmatmul.msk.f32.gmra.mxu2 %vm96_vm0, %v81_v1  ;;  %4335 = vmatmul.msk.f32.gmra.mxu3 %vm96_vm0, %v81_v1 }
 0x1fd   :  { %v2073_v14 = vadd.f32 %v2072_v10, %v2071_v43  ;;  %2644 = vst.msk [vmem:[#allocation2 + $0x760] sm:$0xff] %vm562_vm1, %v2579_v6  ;;  %v2752_v15 = vadd.f32 %v2751_v12, %v2750_v44  ;;  %v716_v16 = vsel %vm562_vm1, %v543_v8, 0.0  ;;  %v806_v18 = vmul.f32 %v543_v8, %v543_v8 }
 0x1fe   :  { %v2270_v19 = vsel %vm562_vm1, %v2163_v11, 0.0  ;;  %v2949_v20 = vsel %vm562_vm1, %v2842_v13, 0.0  ;;  %608 = vst.msk [vmem:[#allocation2 + $0x168] sm:$0xff] %vm562_vm1, %v543_v8  ;;  %v717_v21 = vadd.f32 %v716_v16, %v715_v49  ;;  %v1395_v22 = vsel %vm562_vm1, %v1222_v9, 0.0 }
 0x1ff   :  { %v2271_v48 = vadd.f32 %v2270_v19, %v2269_v52  ;;  %v2950_v23 = vadd.f32 %v2949_v20, %v2948_v53  ;;  %v914_v24 = vsel %vm562_vm1, %v806_v18, 0.0  ;;  %1287 = vst.msk [vmem:[#allocation2 + $0x368] sm:$0xff] %vm562_vm1, %v1222_v9  ;;  %v1396_v25 = vadd.f32 %v1395_v22, %v1394_v55  ;;  %v1799_v26 = vpop.f32.mrf.mxu2  ;;  %v2478_v27 = vpop.f32.mrf.mxu3 }
 0x200   :  { %v915_v28 = vadd.f32 %v914_v24, %v913_v58  ;;  %v1485_v29 = vmul.f32 %v1222_v9, %v1222_v9  ;;  %v1800_v30 = vadd.f32 %v5493_v50, %v1799_v26  ;;  %v2479_v31 = vadd.f32 %v5493_v50, %v2478_v27  ;;  %v444_v32 = vpop.f32.mrf.mxu0  ;;  %v1123_v33 = vpop.f32.mrf.mxu1 }
 0x201   :  { %v445_v63 = vadd.f32 %v5493_v50, %v444_v32  ;;  %v1124_v35 = vadd.f32 %v5493_v50, %v1123_v33 }
 0x202   :  { %v1593_v36 = vsel %vm562_vm1, %v1485_v29, 0.0  ;;  %v1901_v37 = vmax.f32 %v1800_v30, 0.0  ;;  %v2580_v38 = vmax.f32 %v2479_v31, 0.0  ;;  %4120 = vmatmul.msk.f32.gmra.mxu0 %vm96_vm0, %v82_v34 }
 0x203   :  { %v1594_v39 = vadd.f32 %v1593_v36, %v1592_v7  ;;  %v544_v40 = vmax.f32 %v445_v63, 0.0  ;;  %v1223_v41 = vmax.f32 %v1124_v35, 0.0  ;;  %4192 = vmatmul.msk.f32.gmra.mxu1 %vm96_vm0, %v82_v34 }
 0x204   :  { %1966 = vst.msk [vmem:[#allocation2 + $0x568] sm:$0xff] %vm562_vm1, %v1901_v37  ;;  %v2074_v42 = vsel %vm562_vm1, %v1901_v37, 0.0  ;;  %v2164_v43 = vmul.f32 %v1901_v37, %v1901_v37  ;;  %v2753_v44 = vsel %vm562_vm1, %v2580_v38, 0.0  ;;  %v2843_v45 = vmul.f32 %v2580_v38, %v2580_v38  ;;  %4264 = vmatmul.msk.f32.gmra.mxu2 %vm96_vm0, %v82_v34  ;;  %4336 = vmatmul.msk.f32.gmra.mxu3 %vm96_vm0, %v82_v34 }
 0x205   :  { %v2075_v46 = vadd.f32 %v2074_v42, %v2073_v14  ;;  %2645 = vst.msk [vmem:[#allocation2 + $0x768] sm:$0xff] %vm562_vm1, %v2580_v38  ;;  %v2754_v17 = vadd.f32 %v2753_v44, %v2752_v15  ;;  %v718_v47 = vsel %vm562_vm1, %v544_v40, 0.0  ;;  %v807_v49 = vmul.f32 %v544_v40, %v544_v40 }
 0x206   :  { %v2272_v51 = vsel %vm562_vm1, %v2164_v43, 0.0  ;;  %v2951_v52 = vsel %vm562_vm1, %v2843_v45, 0.0  ;;  %609 = vst.msk [vmem:[#allocation2 + $0x170] sm:$0xff] %vm562_vm1, %v544_v40  ;;  %v719_v53 = vadd.f32 %v718_v47, %v717_v21  ;;  %v1397_v54 = vsel %vm562_vm1, %v1223_v41, 0.0 }
 0x207   :  { %v2273_v55 = vadd.f32 %v2272_v51, %v2271_v48  ;;  %v2952_v56 = vadd.f32 %v2951_v52, %v2950_v23  ;;  %v916_v57 = vsel %vm562_vm1, %v807_v49, 0.0  ;;  %1288 = vst.msk [vmem:[#allocation2 + $0x370] sm:$0xff] %vm562_vm1, %v1223_v41  ;;  %v1398_v58 = vadd.f32 %v1397_v54, %v1396_v25  ;;  %v1802_v59 = vpop.f32.mrf.mxu2  ;;  %v2481_v60 = vpop.f32.mrf.mxu3 }
 0x208   :  { %v917_v61 = vadd.f32 %v916_v57, %v915_v28  ;;  %v1486_v62 = vmul.f32 %v1223_v41, %v1223_v41  ;;  %v1803_v0 = vadd.f32 %v5493_v50, %v1802_v59  ;;  %v2482_v1 = vadd.f32 %v5493_v50, %v2481_v60  ;;  %v447_v2 = vpop.f32.mrf.mxu0  ;;  %v1126_v3 = vpop.f32.mrf.mxu1 }
 0x209   :  { %v448_v5 = vadd.f32 %v5493_v50, %v447_v2  ;;  %v1127_v6 = vadd.f32 %v5493_v50, %v1126_v3 }
 0x20a   :  { %v1595_v7 = vsel %vm562_vm1, %v1486_v62, 0.0  ;;  %v1902_v8 = vmax.f32 %v1803_v0, 0.0  ;;  %v2581_v9 = vmax.f32 %v2482_v1, 0.0  ;;  %4121 = vmatmul.msk.f32.gmra.mxu0 %vm96_vm0, %v83_v4 }
 0x20b   :  { %v1596_v10 = vadd.f32 %v1595_v7, %v1594_v39  ;;  %v545_v11 = vmax.f32 %v448_v5, 0.0  ;;  %v1224_v12 = vmax.f32 %v1127_v6, 0.0  ;;  %4193 = vmatmul.msk.f32.gmra.mxu1 %vm96_vm0, %v83_v4 }
 0x20c   :  { %1967 = vst.msk [vmem:[#allocation2 + $0x570] sm:$0xff] %vm562_vm1, %v1902_v8  ;;  %v2076_v13 = vsel %vm562_vm1, %v1902_v8, 0.0  ;;  %v2165_v14 = vmul.f32 %v1902_v8, %v1902_v8  ;;  %v2755_v15 = vsel %vm562_vm1, %v2581_v9, 0.0  ;;  %v2844_v16 = vmul.f32 %v2581_v9, %v2581_v9  ;;  %4265 = vmatmul.msk.f32.gmra.mxu2 %vm96_vm0, %v83_v4  ;;  %4337 = vmatmul.msk.f32.gmra.mxu3 %vm96_vm0, %v83_v4 }
 0x20d   :  { %v2077_v18 = vadd.f32 %v2076_v13, %v2075_v46  ;;  %2646 = vst.msk [vmem:[#allocation2 + $0x770] sm:$0xff] %vm562_vm1, %v2581_v9  ;;  %v2756_v19 = vadd.f32 %v2755_v15, %v2754_v17  ;;  %v720_v20 = vsel %vm562_vm1, %v545_v11, 0.0  ;;  %v808_v21 = vmul.f32 %v545_v11, %v545_v11 }
 0x20e   :  { %v2274_v22 = vsel %vm562_vm1, %v2165_v14, 0.0  ;;  %v2953_v48 = vsel %vm562_vm1, %v2844_v16, 0.0  ;;  %610 = vst.msk [vmem:[#allocation2 + $0x178] sm:$0xff] %vm562_vm1, %v545_v11  ;;  %v721_v23 = vadd.f32 %v720_v20, %v719_v53  ;;  %v1399_v24 = vsel %vm562_vm1, %v1224_v12, 0.0 }
 0x20f   :  { %v2275_v25 = vadd.f32 %v2274_v22, %v2273_v55  ;;  %v2954_v26 = vadd.f32 %v2953_v48, %v2952_v56  ;;  %v918_v27 = vsel %vm562_vm1, %v808_v21, 0.0  ;;  %1289 = vst.msk [vmem:[#allocation2 + $0x378] sm:$0xff] %vm562_vm1, %v1224_v12  ;;  %v1400_v28 = vadd.f32 %v1399_v24, %v1398_v58  ;;  %v1805_v29 = vpop.f32.mrf.mxu2  ;;  %v2484_v30 = vpop.f32.mrf.mxu3 }
 0x210   :  { %v919_v31 = vadd.f32 %v918_v27, %v917_v61  ;;  %v1487_v32 = vmul.f32 %v1224_v12, %v1224_v12  ;;  %v1806_v33 = vadd.f32 %v5493_v50, %v1805_v29  ;;  %v2485_v34 = vadd.f32 %v5493_v50, %v2484_v30  ;;  %v450_v63 = vpop.f32.mrf.mxu0  ;;  %v1129_v35 = vpop.f32.mrf.mxu1 }
 0x211   :  { %v451_v36 = vadd.f32 %v5493_v50, %v450_v63  ;;  %v1130_v37 = vadd.f32 %v5493_v50, %v1129_v35 }
 0x212   :  { %v1597_v38 = vsel %vm562_vm1, %v1487_v32, 0.0  ;;  %v1903_v39 = vmax.f32 %v1806_v33, 0.0  ;;  %v2582_v40 = vmax.f32 %v2485_v34, 0.0 }
 0x213   :  { %v1598_v41 = vadd.f32 %v1597_v38, %v1596_v10  ;;  %v546_v42 = vmax.f32 %v451_v36, 0.0  ;;  %v1225_v43 = vmax.f32 %v1130_v37, 0.0 }
 0x214   :  { %1968 = vst.msk [vmem:[#allocation2 + $0x578] sm:$0xff] %vm562_vm1, %v1903_v39  ;;  %v2078_v44 = vsel %vm562_vm1, %v1903_v39, 0.0  ;;  %v2166_v45 = vmul.f32 %v1903_v39, %v1903_v39  ;;  %v2757_v46 = vsel %vm562_vm1, %v2582_v40, 0.0  ;;  %v2845_v17 = vmul.f32 %v2582_v40, %v2582_v40 }
 0x215   :  { %v2079_v47 = vadd.f32 %v2078_v44, %v2077_v18  ;;  %2647 = vst.msk [vmem:[#allocation2 + $0x778] sm:$0xff] %vm562_vm1, %v2582_v40  ;;  %v2758_v49 = vadd.f32 %v2757_v46, %v2756_v19  ;;  %v722_v51 = vsel %vm562_vm1, %v546_v42, 0.0  ;;  %v809_v52 = vmul.f32 %v546_v42, %v546_v42 }
 0x216   :  { %v2276_v53 = vsel %vm562_vm1, %v2166_v45, 0.0  ;;  %v2955_v54 = vsel %vm562_vm1, %v2845_v17, 0.0  ;;  %611 = vst.msk [vmem:[#allocation2 + $0x180] sm:$0xff] %vm562_vm1, %v546_v42  ;;  %v723_v55 = vadd.f32 %v722_v51, %v721_v23  ;;  %v1401_v56 = vsel %vm562_vm1, %v1225_v43, 0.0 }
 0x217   :  { %v2277_v57 = vadd.f32 %v2276_v53, %v2275_v25  ;;  %v2956_v58 = vadd.f32 %v2955_v54, %v2954_v26  ;;  %v920_v59 = vsel %vm562_vm1, %v809_v52, 0.0  ;;  %1290 = vst.msk [vmem:[#allocation2 + $0x380] sm:$0xff] %vm562_vm1, %v1225_v43  ;;  %v1402_v60 = vadd.f32 %v1401_v56, %v1400_v28  ;;  %v1808_v61 = vpop.f32.mrf.mxu2  ;;  %v2487_v62 = vpop.f32.mrf.mxu3 }
 0x218   :  { %v921_v0 = vadd.f32 %v920_v59, %v919_v31  ;;  %v1488_v1 = vmul.f32 %v1225_v43, %v1225_v43  ;;  %v1809_v2 = vadd.f32 %v5493_v50, %v1808_v61  ;;  %v2488_v3 = vadd.f32 %v5493_v50, %v2487_v62  ;;  %v453_v4 = vpop.f32.mrf.mxu0  ;;  %v1132_v5 = vpop.f32.mrf.mxu1 }
 0x219   :  { %v454_v6 = vadd.f32 %v5493_v50, %v453_v4  ;;  %v1133_v7 = vadd.f32 %v5493_v50, %v1132_v5 }
 0x21a   :  { %v1599_v8 = vsel %vm562_vm1, %v1488_v1, 0.0  ;;  %v1904_v9 = vmax.f32 %v1809_v2, 0.0  ;;  %v2583_v10 = vmax.f32 %v2488_v3, 0.0 }
 0x21b   :  { %v1600_v11 = vadd.f32 %v1599_v8, %v1598_v41  ;;  %v547_v12 = vmax.f32 %v454_v6, 0.0  ;;  %v1226_v13 = vmax.f32 %v1133_v7, 0.0 }
 0x21c   :  { %1969 = vst.msk [vmem:[#allocation2 + $0x580] sm:$0xff] %vm562_vm1, %v1904_v9  ;;  %v2080_v14 = vsel %vm562_vm1, %v1904_v9, 0.0  ;;  %v2167_v15 = vmul.f32 %v1904_v9, %v1904_v9  ;;  %v2759_v16 = vsel %vm562_vm1, %v2583_v10, 0.0  ;;  %v2846_v18 = vmul.f32 %v2583_v10, %v2583_v10 }
 0x21d   :  { %v2081_v19 = vadd.f32 %v2080_v14, %v2079_v47  ;;  %2648 = vst.msk [vmem:[#allocation2 + $0x780] sm:$0xff] %vm562_vm1, %v2583_v10  ;;  %v2760_v20 = vadd.f32 %v2759_v16, %v2758_v49  ;;  %v724_v21 = vsel %vm562_vm1, %v547_v12, 0.0  ;;  %v810_v22 = vmul.f32 %v547_v12, %v547_v12 }
 0x21e   :  { %v2278_v48 = vsel %vm562_vm1, %v2167_v15, 0.0  ;;  %v2957_v23 = vsel %vm562_vm1, %v2846_v18, 0.0  ;;  %612 = vst.msk [vmem:[#allocation2 + $0x188] sm:$0xff] %vm562_vm1, %v547_v12  ;;  %v725_v24 = vadd.f32 %v724_v21, %v723_v55  ;;  %v1403_v25 = vsel %vm562_vm1, %v1226_v13, 0.0 }
 0x21f   :  { %v2279_v26 = vadd.f32 %v2278_v48, %v2277_v57  ;;  %v2958_v27 = vadd.f32 %v2957_v23, %v2956_v58  ;;  %v922_v28 = vsel %vm562_vm1, %v810_v22, 0.0  ;;  %1291 = vst.msk [vmem:[#allocation2 + $0x388] sm:$0xff] %vm562_vm1, %v1226_v13  ;;  %v1404_v29 = vadd.f32 %v1403_v25, %v1402_v60  ;;  %v1811_v30 = vpop.f32.mrf.mxu2  ;;  %v2490_v31 = vpop.f32.mrf.mxu3 }
 0x220   :  { %v923_v32 = vadd.f32 %v922_v28, %v921_v0  ;;  %v1489_v33 = vmul.f32 %v1226_v13, %v1226_v13  ;;  %v1812_v34 = vadd.f32 %v5493_v50, %v1811_v30  ;;  %v2491_v63 = vadd.f32 %v5493_v50, %v2490_v31  ;;  %v456_v35 = vpop.f32.mrf.mxu0  ;;  %v1135_v36 = vpop.f32.mrf.mxu1 }
 0x221   :  { %v457_v37 = vadd.f32 %v5493_v50, %v456_v35  ;;  %v1136_v38 = vadd.f32 %v5493_v50, %v1135_v36 }
 0x222   :  { %v1601_v39 = vsel %vm562_vm1, %v1489_v33, 0.0  ;;  %v1905_v40 = vmax.f32 %v1812_v34, 0.0  ;;  %v2584_v41 = vmax.f32 %v2491_v63, 0.0  ;;  %v5769_v34 = vld [vmem:[%s8691_s2] ss:$0 sm:$0xff] }
 0x223   :  { %v1602_v42 = vadd.f32 %v1601_v39, %v1600_v11  ;;  %v548_v43 = vmax.f32 %v457_v37, 0.0  ;;  %v1227_v44 = vmax.f32 %v1136_v38, 0.0 }
 0x224   :  { %1970 = vst.msk [vmem:[#allocation2 + $0x588] sm:$0xff] %vm562_vm1, %v1905_v40  ;;  %v2082_v45 = vsel %vm562_vm1, %v1905_v40, 0.0  ;;  %v2168_v46 = vmul.f32 %v1905_v40, %v1905_v40  ;;  %v2761_v17 = vsel %vm562_vm1, %v2584_v41, 0.0  ;;  %v2847_v47 = vmul.f32 %v2584_v41, %v2584_v41 }
 0x225   :  { %v2083_v49 = vadd.f32 %v2082_v45, %v2081_v19  ;;  %2649 = vst.msk [vmem:[#allocation2 + $0x788] sm:$0xff] %vm562_vm1, %v2584_v41  ;;  %v2762_v51 = vadd.f32 %v2761_v17, %v2760_v20  ;;  %v726_v52 = vsel %vm562_vm1, %v548_v43, 0.0  ;;  %v811_v53 = vmul.f32 %v548_v43, %v548_v43 }
 0x226   :  { %v2280_v54 = vsel %vm562_vm1, %v2168_v46, 0.0  ;;  %v2959_v55 = vsel %vm562_vm1, %v2847_v47, 0.0  ;;  %613 = vst.msk [vmem:[#allocation2 + $0x190] sm:$0xff] %vm562_vm1, %v548_v43  ;;  %v727_v56 = vadd.f32 %v726_v52, %v725_v24  ;;  %v1405_v57 = vsel %vm562_vm1, %v1227_v44, 0.0 }
 0x227   :  { %v2281_v58 = vadd.f32 %v2280_v54, %v2279_v26  ;;  %v2960_v59 = vadd.f32 %v2959_v55, %v2958_v27  ;;  %v924_v60 = vsel %vm562_vm1, %v811_v53, 0.0  ;;  %1292 = vst.msk [vmem:[#allocation2 + $0x390] sm:$0xff] %vm562_vm1, %v1227_v44  ;;  %v1406_v61 = vadd.f32 %v1405_v57, %v1404_v29  ;;  %v1814_v62 = vpop.f32.mrf.mxu2  ;;  %v2493_v0 = vpop.f32.mrf.mxu3 }
 0x228   :  { %v925_v1 = vadd.f32 %v924_v60, %v923_v32  ;;  %v1490_v2 = vmul.f32 %v1227_v44, %v1227_v44  ;;  %v1815_v3 = vadd.f32 %v5493_v50, %v1814_v62  ;;  %v2494_v4 = vadd.f32 %v5493_v50, %v2493_v0  ;;  %v459_v5 = vpop.f32.mrf.mxu0  ;;  %v1138_v6 = vpop.f32.mrf.mxu1 }
 0x229   :  { %v460_v7 = vadd.f32 %v5493_v50, %v459_v5  ;;  %v1139_v8 = vadd.f32 %v5493_v50, %v1138_v6 }
 0x22a   :  { %v1603_v9 = vsel %vm562_vm1, %v1490_v2, 0.0  ;;  %v1906_v10 = vmax.f32 %v1815_v3, 0.0  ;;  %v2585_v11 = vmax.f32 %v2494_v4, 0.0 }
 0x22b   :  { %v1604_v12 = vadd.f32 %v1603_v9, %v1602_v42  ;;  %v549_v13 = vmax.f32 %v460_v7, 0.0  ;;  %v1228_v14 = vmax.f32 %v1139_v8, 0.0 }
 0x22c   :  { %1971 = vst.msk [vmem:[#allocation2 + $0x590] sm:$0xff] %vm562_vm1, %v1906_v10  ;;  %v2084_v15 = vsel %vm562_vm1, %v1906_v10, 0.0  ;;  %v2169_v16 = vmul.f32 %v1906_v10, %v1906_v10  ;;  %v2763_v18 = vsel %vm562_vm1, %v2585_v11, 0.0  ;;  %v2848_v19 = vmul.f32 %v2585_v11, %v2585_v11 }
 0x22d   :  { %v2085_v20 = vadd.f32 %v2084_v15, %v2083_v49  ;;  %2650 = vst.msk [vmem:[#allocation2 + $0x790] sm:$0xff] %vm562_vm1, %v2585_v11  ;;  %v2764_v21 = vadd.f32 %v2763_v18, %v2762_v51  ;;  %v728_v50 = vsel %vm562_vm1, %v549_v13, 0.0  ;;  %v812_v22 = vmul.f32 %v549_v13, %v549_v13 }
 0x22e   :  { %v2282_v48 = vsel %vm562_vm1, %v2169_v16, 0.0  ;;  %v2961_v23 = vsel %vm562_vm1, %v2848_v19, 0.0  ;;  %614 = vst.msk [vmem:[#allocation2 + $0x198] sm:$0xff] %vm562_vm1, %v549_v13  ;;  %v729_v24 = vadd.f32 %v728_v50, %v727_v56  ;;  %v1407_v25 = vsel %vm562_vm1, %v1228_v14, 0.0 }
 0x22f   :  { %v2283_v26 = vadd.f32 %v2282_v48, %v2281_v58  ;;  %v2962_v27 = vadd.f32 %v2961_v23, %v2960_v59  ;;  %v926_v28 = vsel %vm562_vm1, %v812_v22, 0.0  ;;  %1293 = vst.msk [vmem:[#allocation2 + $0x398] sm:$0xff] %vm562_vm1, %v1228_v14  ;;  %v1408_v29 = vadd.f32 %v1407_v25, %v1406_v61  ;;  %v1817_v30 = vpop.f32.mrf.mxu2  ;;  %v2496_v31 = vpop.f32.mrf.mxu3 }
 0x230   :  { %v927_v32 = vadd.f32 %v926_v28, %v925_v1  ;;  %v1491_v33 = vmul.f32 %v1228_v14, %v1228_v14  ;;  %v1818_v63 = vadd.f32 %v5769_v34, %v1817_v30  ;;  %v2497_v35 = vadd.f32 %v5769_v34, %v2496_v31  ;;  %v462_v36 = vpop.f32.mrf.mxu0  ;;  %v1141_v37 = vpop.f32.mrf.mxu1 }
 0x231   :  { %v463_v38 = vadd.f32 %v5769_v34, %v462_v36  ;;  %v1142_v39 = vadd.f32 %v5769_v34, %v1141_v37 }
 0x232   :  { %v1605_v40 = vsel %vm562_vm1, %v1491_v33, 0.0  ;;  %v1907_v41 = vmax.f32 %v1818_v63, 0.0  ;;  %v2586_v42 = vmax.f32 %v2497_v35, 0.0 }
 0x233   :  { %v1606_v43 = vadd.f32 %v1605_v40, %v1604_v12  ;;  %v550_v44 = vmax.f32 %v463_v38, 0.0  ;;  %v1229_v45 = vmax.f32 %v1142_v39, 0.0 }
 0x234   :  { %1972 = vst.msk [vmem:[#allocation2 + $0x598] sm:$0xff] %vm562_vm1, %v1907_v41  ;;  %v2086_v46 = vsel %vm562_vm1, %v1907_v41, 0.0  ;;  %v2170_v17 = vmul.f32 %v1907_v41, %v1907_v41  ;;  %v2765_v47 = vsel %vm562_vm1, %v2586_v42, 0.0  ;;  %v2849_v49 = vmul.f32 %v2586_v42, %v2586_v42 }
 0x235   :  { %v2087_v51 = vadd.f32 %v2086_v46, %v2085_v20  ;;  %2651 = vst.msk [vmem:[#allocation2 + $0x798] sm:$0xff] %vm562_vm1, %v2586_v42  ;;  %v2766_v52 = vadd.f32 %v2765_v47, %v2764_v21  ;;  %v730_v53 = vsel %vm562_vm1, %v550_v44, 0.0  ;;  %v813_v54 = vmul.f32 %v550_v44, %v550_v44 }
 0x236   :  { %v2284_v55 = vsel %vm562_vm1, %v2170_v17, 0.0  ;;  %v2963_v56 = vsel %vm562_vm1, %v2849_v49, 0.0  ;;  %615 = vst.msk [vmem:[#allocation2 + $0x1a0] sm:$0xff] %vm562_vm1, %v550_v44  ;;  %v731_v57 = vadd.f32 %v730_v53, %v729_v24  ;;  %v1409_v58 = vsel %vm562_vm1, %v1229_v45, 0.0 }
 0x237   :  { %v2285_v59 = vadd.f32 %v2284_v55, %v2283_v26  ;;  %v2964_v60 = vadd.f32 %v2963_v56, %v2962_v27  ;;  %v928_v61 = vsel %vm562_vm1, %v813_v54, 0.0  ;;  %1294 = vst.msk [vmem:[#allocation2 + $0x3a0] sm:$0xff] %vm562_vm1, %v1229_v45  ;;  %v1410_v62 = vadd.f32 %v1409_v58, %v1408_v29  ;;  %v1820_v0 = vpop.f32.mrf.mxu2  ;;  %v2499_v1 = vpop.f32.mrf.mxu3 }
 0x238   :  { %v929_v2 = vadd.f32 %v928_v61, %v927_v32  ;;  %v1492_v3 = vmul.f32 %v1229_v45, %v1229_v45  ;;  %v1821_v4 = vadd.f32 %v5769_v34, %v1820_v0  ;;  %v2500_v5 = vadd.f32 %v5769_v34, %v2499_v1  ;;  %v465_v6 = vpop.f32.mrf.mxu0  ;;  %v1144_v7 = vpop.f32.mrf.mxu1 }
 0x239   :  { %v466_v8 = vadd.f32 %v5769_v34, %v465_v6  ;;  %v1145_v9 = vadd.f32 %v5769_v34, %v1144_v7 }
 0x23a   :  { %v1607_v10 = vsel %vm562_vm1, %v1492_v3, 0.0  ;;  %v1908_v11 = vmax.f32 %v1821_v4, 0.0  ;;  %v2587_v12 = vmax.f32 %v2500_v5, 0.0 }
 0x23b   :  { %v1608_v13 = vadd.f32 %v1607_v10, %v1606_v43  ;;  %v551_v14 = vmax.f32 %v466_v8, 0.0  ;;  %v1230_v15 = vmax.f32 %v1145_v9, 0.0 }
 0x23c   :  { %1973 = vst.msk [vmem:[#allocation2 + $0x5a0] sm:$0xff] %vm562_vm1, %v1908_v11  ;;  %v2088_v16 = vsel %vm562_vm1, %v1908_v11, 0.0  ;;  %v2171_v18 = vmul.f32 %v1908_v11, %v1908_v11  ;;  %v2767_v19 = vsel %vm562_vm1, %v2587_v12, 0.0  ;;  %v2850_v20 = vmul.f32 %v2587_v12, %v2587_v12 }
 0x23d   :  { %v2089_v21 = vadd.f32 %v2088_v16, %v2087_v51  ;;  %2652 = vst.msk [vmem:[#allocation2 + $0x7a0] sm:$0xff] %vm562_vm1, %v2587_v12  ;;  %v2768_v50 = vadd.f32 %v2767_v19, %v2766_v52  ;;  %v732_v22 = vsel %vm562_vm1, %v551_v14, 0.0  ;;  %v814_v48 = vmul.f32 %v551_v14, %v551_v14 }
 0x23e   :  { %v2286_v23 = vsel %vm562_vm1, %v2171_v18, 0.0  ;;  %v2965_v24 = vsel %vm562_vm1, %v2850_v20, 0.0  ;;  %616 = vst.msk [vmem:[#allocation2 + $0x1a8] sm:$0xff] %vm562_vm1, %v551_v14  ;;  %v733_v25 = vadd.f32 %v732_v22, %v731_v57  ;;  %v1411_v26 = vsel %vm562_vm1, %v1230_v15, 0.0 }
 0x23f   :  { %v2287_v27 = vadd.f32 %v2286_v23, %v2285_v59  ;;  %v2966_v28 = vadd.f32 %v2965_v24, %v2964_v60  ;;  %v930_v29 = vsel %vm562_vm1, %v814_v48, 0.0  ;;  %1295 = vst.msk [vmem:[#allocation2 + $0x3a8] sm:$0xff] %vm562_vm1, %v1230_v15  ;;  %v1412_v30 = vadd.f32 %v1411_v26, %v1410_v62  ;;  %v1823_v31 = vpop.f32.mrf.mxu2  ;;  %v2502_v32 = vpop.f32.mrf.mxu3 }
 0x240   :  { %v931_v33 = vadd.f32 %v930_v29, %v929_v2  ;;  %v1493_v63 = vmul.f32 %v1230_v15, %v1230_v15  ;;  %v1824_v35 = vadd.f32 %v5769_v34, %v1823_v31  ;;  %v2503_v36 = vadd.f32 %v5769_v34, %v2502_v32  ;;  %v468_v37 = vpop.f32.mrf.mxu0  ;;  %v1147_v38 = vpop.f32.mrf.mxu1 }
 0x241   :  { %v469_v39 = vadd.f32 %v5769_v34, %v468_v37  ;;  %v1148_v40 = vadd.f32 %v5769_v34, %v1147_v38 }
 0x242   :  { %v1609_v41 = vsel %vm562_vm1, %v1493_v63, 0.0  ;;  %v1909_v42 = vmax.f32 %v1824_v35, 0.0  ;;  %v2588_v43 = vmax.f32 %v2503_v36, 0.0 }
 0x243   :  { %v1610_v44 = vadd.f32 %v1609_v41, %v1608_v13  ;;  %v552_v45 = vmax.f32 %v469_v39, 0.0  ;;  %v1231_v46 = vmax.f32 %v1148_v40, 0.0 }
 0x244   :  { %1974 = vst.msk [vmem:[#allocation2 + $0x5a8] sm:$0xff] %vm562_vm1, %v1909_v42  ;;  %v2090_v17 = vsel %vm562_vm1, %v1909_v42, 0.0  ;;  %v2172_v47 = vmul.f32 %v1909_v42, %v1909_v42  ;;  %v2769_v49 = vsel %vm562_vm1, %v2588_v43, 0.0  ;;  %v2851_v51 = vmul.f32 %v2588_v43, %v2588_v43 }
 0x245   :  { %v2091_v52 = vadd.f32 %v2090_v17, %v2089_v21  ;;  %2653 = vst.msk [vmem:[#allocation2 + $0x7a8] sm:$0xff] %vm562_vm1, %v2588_v43  ;;  %v2770_v53 = vadd.f32 %v2769_v49, %v2768_v50  ;;  %v734_v54 = vsel %vm562_vm1, %v552_v45, 0.0  ;;  %v815_v55 = vmul.f32 %v552_v45, %v552_v45 }
 0x246   :  { %v2288_v56 = vsel %vm562_vm1, %v2172_v47, 0.0  ;;  %v2967_v57 = vsel %vm562_vm1, %v2851_v51, 0.0  ;;  %617 = vst.msk [vmem:[#allocation2 + $0x1b0] sm:$0xff] %vm562_vm1, %v552_v45  ;;  %v735_v58 = vadd.f32 %v734_v54, %v733_v25  ;;  %v1413_v59 = vsel %vm562_vm1, %v1231_v46, 0.0 }
 0x247   :  { %v2289_v60 = vadd.f32 %v2288_v56, %v2287_v27  ;;  %v2968_v61 = vadd.f32 %v2967_v57, %v2966_v28  ;;  %v932_v62 = vsel %vm562_vm1, %v815_v55, 0.0  ;;  %1296 = vst.msk [vmem:[#allocation2 + $0x3b0] sm:$0xff] %vm562_vm1, %v1231_v46  ;;  %v1414_v0 = vadd.f32 %v1413_v59, %v1412_v30  ;;  %v1826_v1 = vpop.f32.mrf.mxu2  ;;  %v2505_v2 = vpop.f32.mrf.mxu3 }
 0x248   :  { %v933_v3 = vadd.f32 %v932_v62, %v931_v33  ;;  %v1494_v4 = vmul.f32 %v1231_v46, %v1231_v46  ;;  %v1827_v5 = vadd.f32 %v5769_v34, %v1826_v1  ;;  %v2506_v6 = vadd.f32 %v5769_v34, %v2505_v2  ;;  %v471_v7 = vpop.f32.mrf.mxu0  ;;  %v1150_v8 = vpop.f32.mrf.mxu1 }
 0x249   :  { %v472_v9 = vadd.f32 %v5769_v34, %v471_v7  ;;  %v1151_v10 = vadd.f32 %v5769_v34, %v1150_v8 }
 0x24a   :  { %v1611_v11 = vsel %vm562_vm1, %v1494_v4, 0.0  ;;  %v1910_v12 = vmax.f32 %v1827_v5, 0.0  ;;  %v2589_v13 = vmax.f32 %v2506_v6, 0.0 }
 0x24b   :  { %v1612_v14 = vadd.f32 %v1611_v11, %v1610_v44  ;;  %v553_v15 = vmax.f32 %v472_v9, 0.0  ;;  %v1232_v16 = vmax.f32 %v1151_v10, 0.0 }
 0x24c   :  { %1975 = vst.msk [vmem:[#allocation2 + $0x5b0] sm:$0xff] %vm562_vm1, %v1910_v12  ;;  %v2092_v18 = vsel %vm562_vm1, %v1910_v12, 0.0  ;;  %v2173_v19 = vmul.f32 %v1910_v12, %v1910_v12  ;;  %v2771_v20 = vsel %vm562_vm1, %v2589_v13, 0.0  ;;  %v2852_v21 = vmul.f32 %v2589_v13, %v2589_v13 }
 0x24d   :  { %v2093_v50 = vadd.f32 %v2092_v18, %v2091_v52  ;;  %2654 = vst.msk [vmem:[#allocation2 + $0x7b0] sm:$0xff] %vm562_vm1, %v2589_v13  ;;  %v2772_v22 = vadd.f32 %v2771_v20, %v2770_v53  ;;  %v736_v48 = vsel %vm562_vm1, %v553_v15, 0.0  ;;  %v816_v23 = vmul.f32 %v553_v15, %v553_v15 }
 0x24e   :  { %v2290_v24 = vsel %vm562_vm1, %v2173_v19, 0.0  ;;  %v2969_v25 = vsel %vm562_vm1, %v2852_v21, 0.0  ;;  %618 = vst.msk [vmem:[#allocation2 + $0x1b8] sm:$0xff] %vm562_vm1, %v553_v15  ;;  %v737_v26 = vadd.f32 %v736_v48, %v735_v58  ;;  %v1415_v27 = vsel %vm562_vm1, %v1232_v16, 0.0 }
 0x24f   :  { %v2291_v28 = vadd.f32 %v2290_v24, %v2289_v60  ;;  %v2970_v29 = vadd.f32 %v2969_v25, %v2968_v61  ;;  %v934_v30 = vsel %vm562_vm1, %v816_v23, 0.0  ;;  %1297 = vst.msk [vmem:[#allocation2 + $0x3b8] sm:$0xff] %vm562_vm1, %v1232_v16  ;;  %v1416_v31 = vadd.f32 %v1415_v27, %v1414_v0  ;;  %v1829_v32 = vpop.f32.mrf.mxu2  ;;  %v2508_v33 = vpop.f32.mrf.mxu3 }
 0x250   :  { %v935_v63 = vadd.f32 %v934_v30, %v933_v3  ;;  %v1495_v35 = vmul.f32 %v1232_v16, %v1232_v16  ;;  %v1830_v36 = vadd.f32 %v5769_v34, %v1829_v32  ;;  %v2509_v37 = vadd.f32 %v5769_v34, %v2508_v33  ;;  %v474_v38 = vpop.f32.mrf.mxu0  ;;  %v1153_v39 = vpop.f32.mrf.mxu1 }
 0x251   :  { %v475_v40 = vadd.f32 %v5769_v34, %v474_v38  ;;  %v1154_v41 = vadd.f32 %v5769_v34, %v1153_v39 }
 0x252   :  { %v1613_v42 = vsel %vm562_vm1, %v1495_v35, 0.0  ;;  %v1911_v43 = vmax.f32 %v1830_v36, 0.0  ;;  %v2590_v44 = vmax.f32 %v2509_v37, 0.0 }
 0x253   :  { %v1614_v45 = vadd.f32 %v1613_v42, %v1612_v14  ;;  %v554_v46 = vmax.f32 %v475_v40, 0.0  ;;  %v1233_v17 = vmax.f32 %v1154_v41, 0.0 }
 0x254   :  { %1976 = vst.msk [vmem:[#allocation2 + $0x5b8] sm:$0xff] %vm562_vm1, %v1911_v43  ;;  %v2094_v47 = vsel %vm562_vm1, %v1911_v43, 0.0  ;;  %v2174_v49 = vmul.f32 %v1911_v43, %v1911_v43  ;;  %v2773_v51 = vsel %vm562_vm1, %v2590_v44, 0.0  ;;  %v2853_v52 = vmul.f32 %v2590_v44, %v2590_v44 }
 0x255   :  { %v2095_v53 = vadd.f32 %v2094_v47, %v2093_v50  ;;  %2655 = vst.msk [vmem:[#allocation2 + $0x7b8] sm:$0xff] %vm562_vm1, %v2590_v44  ;;  %v2774_v54 = vadd.f32 %v2773_v51, %v2772_v22  ;;  %v738_v55 = vsel %vm562_vm1, %v554_v46, 0.0  ;;  %v817_v56 = vmul.f32 %v554_v46, %v554_v46 }
 0x256   :  { %v2292_v57 = vsel %vm562_vm1, %v2174_v49, 0.0  ;;  %v2971_v58 = vsel %vm562_vm1, %v2853_v52, 0.0  ;;  %619 = vst.msk [vmem:[#allocation2 + $0x1c0] sm:$0xff] %vm562_vm1, %v554_v46  ;;  %v739_v59 = vadd.f32 %v738_v55, %v737_v26  ;;  %v1417_v60 = vsel %vm562_vm1, %v1233_v17, 0.0 }
 0x257   :  { %v2293_v61 = vadd.f32 %v2292_v57, %v2291_v28  ;;  %v2972_v62 = vadd.f32 %v2971_v58, %v2970_v29  ;;  %v936_v0 = vsel %vm562_vm1, %v817_v56, 0.0  ;;  %1298 = vst.msk [vmem:[#allocation2 + $0x3c0] sm:$0xff] %vm562_vm1, %v1233_v17  ;;  %v1418_v1 = vadd.f32 %v1417_v60, %v1416_v31  ;;  %v1832_v2 = vpop.f32.mrf.mxu2  ;;  %v2511_v3 = vpop.f32.mrf.mxu3 }
 0x258   :  { %v937_v4 = vadd.f32 %v936_v0, %v935_v63  ;;  %v1496_v5 = vmul.f32 %v1233_v17, %v1233_v17  ;;  %v1833_v6 = vadd.f32 %v5769_v34, %v1832_v2  ;;  %v2512_v7 = vadd.f32 %v5769_v34, %v2511_v3  ;;  %v477_v8 = vpop.f32.mrf.mxu0  ;;  %v1156_v9 = vpop.f32.mrf.mxu1 }
 0x259   :  { %v478_v10 = vadd.f32 %v5769_v34, %v477_v8  ;;  %v1157_v11 = vadd.f32 %v5769_v34, %v1156_v9 }
 0x25a   :  { %v1615_v12 = vsel %vm562_vm1, %v1496_v5, 0.0  ;;  %v1912_v13 = vmax.f32 %v1833_v6, 0.0  ;;  %v2591_v14 = vmax.f32 %v2512_v7, 0.0 }
 0x25b   :  { %v1616_v15 = vadd.f32 %v1615_v12, %v1614_v45  ;;  %v555_v16 = vmax.f32 %v478_v10, 0.0  ;;  %v1234_v18 = vmax.f32 %v1157_v11, 0.0 }
 0x25c   :  { %1977 = vst.msk [vmem:[#allocation2 + $0x5c0] sm:$0xff] %vm562_vm1, %v1912_v13  ;;  %v2096_v19 = vsel %vm562_vm1, %v1912_v13, 0.0  ;;  %v2175_v20 = vmul.f32 %v1912_v13, %v1912_v13  ;;  %v2775_v21 = vsel %vm562_vm1, %v2591_v14, 0.0  ;;  %v2854_v50 = vmul.f32 %v2591_v14, %v2591_v14 }
 0x25d   :  { %v2097_v22 = vadd.f32 %v2096_v19, %v2095_v53  ;;  %2656 = vst.msk [vmem:[#allocation2 + $0x7c0] sm:$0xff] %vm562_vm1, %v2591_v14  ;;  %v2776_v48 = vadd.f32 %v2775_v21, %v2774_v54  ;;  %v740_v23 = vsel %vm562_vm1, %v555_v16, 0.0  ;;  %v818_v24 = vmul.f32 %v555_v16, %v555_v16 }
 0x25e   :  { %v2294_v25 = vsel %vm562_vm1, %v2175_v20, 0.0  ;;  %v2973_v26 = vsel %vm562_vm1, %v2854_v50, 0.0  ;;  %620 = vst.msk [vmem:[#allocation2 + $0x1c8] sm:$0xff] %vm562_vm1, %v555_v16  ;;  %v741_v27 = vadd.f32 %v740_v23, %v739_v59  ;;  %v1419_v28 = vsel %vm562_vm1, %v1234_v18, 0.0 }
 0x25f   :  { %v2295_v29 = vadd.f32 %v2294_v25, %v2293_v61  ;;  %v2974_v30 = vadd.f32 %v2973_v26, %v2972_v62  ;;  %v938_v31 = vsel %vm562_vm1, %v818_v24, 0.0  ;;  %1299 = vst.msk [vmem:[#allocation2 + $0x3c8] sm:$0xff] %vm562_vm1, %v1234_v18  ;;  %v1420_v32 = vadd.f32 %v1419_v28, %v1418_v1  ;;  %v1835_v33 = vpop.f32.mrf.mxu2  ;;  %v2514_v63 = vpop.f32.mrf.mxu3 }
 0x260   :  { %v939_v35 = vadd.f32 %v938_v31, %v937_v4  ;;  %v1497_v36 = vmul.f32 %v1234_v18, %v1234_v18  ;;  %v1836_v37 = vadd.f32 %v5769_v34, %v1835_v33  ;;  %v2515_v38 = vadd.f32 %v5769_v34, %v2514_v63  ;;  %v480_v39 = vpop.f32.mrf.mxu0  ;;  %v1159_v40 = vpop.f32.mrf.mxu1 }
 0x261   :  { %v481_v41 = vadd.f32 %v5769_v34, %v480_v39  ;;  %v1160_v42 = vadd.f32 %v5769_v34, %v1159_v40 }
 0x262   :  { %v1617_v43 = vsel %vm562_vm1, %v1497_v36, 0.0  ;;  %v1913_v44 = vmax.f32 %v1836_v37, 0.0  ;;  %v2592_v45 = vmax.f32 %v2515_v38, 0.0 }
 0x263   :  { %v1618_v46 = vadd.f32 %v1617_v43, %v1616_v15  ;;  %v556_v17 = vmax.f32 %v481_v41, 0.0  ;;  %v1235_v47 = vmax.f32 %v1160_v42, 0.0 }
 0x264   :  { %1978 = vst.msk [vmem:[#allocation2 + $0x5c8] sm:$0xff] %vm562_vm1, %v1913_v44  ;;  %v2098_v49 = vsel %vm562_vm1, %v1913_v44, 0.0  ;;  %v2176_v51 = vmul.f32 %v1913_v44, %v1913_v44  ;;  %v2777_v52 = vsel %vm562_vm1, %v2592_v45, 0.0  ;;  %v2855_v53 = vmul.f32 %v2592_v45, %v2592_v45 }
 0x265   :  { %v2099_v54 = vadd.f32 %v2098_v49, %v2097_v22  ;;  %2657 = vst.msk [vmem:[#allocation2 + $0x7c8] sm:$0xff] %vm562_vm1, %v2592_v45  ;;  %v2778_v55 = vadd.f32 %v2777_v52, %v2776_v48  ;;  %v742_v56 = vsel %vm562_vm1, %v556_v17, 0.0  ;;  %v819_v57 = vmul.f32 %v556_v17, %v556_v17 }
 0x266   :  { %v2296_v58 = vsel %vm562_vm1, %v2176_v51, 0.0  ;;  %v2975_v59 = vsel %vm562_vm1, %v2855_v53, 0.0  ;;  %621 = vst.msk [vmem:[#allocation2 + $0x1d0] sm:$0xff] %vm562_vm1, %v556_v17  ;;  %v743_v60 = vadd.f32 %v742_v56, %v741_v27  ;;  %v1421_v61 = vsel %vm562_vm1, %v1235_v47, 0.0 }
 0x267   :  { %v2297_v62 = vadd.f32 %v2296_v58, %v2295_v29  ;;  %v2976_v0 = vadd.f32 %v2975_v59, %v2974_v30  ;;  %v940_v1 = vsel %vm562_vm1, %v819_v57, 0.0  ;;  %1300 = vst.msk [vmem:[#allocation2 + $0x3d0] sm:$0xff] %vm562_vm1, %v1235_v47  ;;  %v1422_v2 = vadd.f32 %v1421_v61, %v1420_v32  ;;  %v1838_v3 = vpop.f32.mrf.mxu2  ;;  %v2517_v4 = vpop.f32.mrf.mxu3 }
 0x268   :  { %v941_v5 = vadd.f32 %v940_v1, %v939_v35  ;;  %v1498_v6 = vmul.f32 %v1235_v47, %v1235_v47  ;;  %v1839_v7 = vadd.f32 %v5769_v34, %v1838_v3  ;;  %v2518_v8 = vadd.f32 %v5769_v34, %v2517_v4  ;;  %v483_v9 = vpop.f32.mrf.mxu0  ;;  %v1162_v10 = vpop.f32.mrf.mxu1 }
 0x269   :  { %v484_v11 = vadd.f32 %v5769_v34, %v483_v9  ;;  %v1163_v12 = vadd.f32 %v5769_v34, %v1162_v10 }
 0x26a   :  { %v1619_v13 = vsel %vm562_vm1, %v1498_v6, 0.0  ;;  %v1914_v14 = vmax.f32 %v1839_v7, 0.0  ;;  %v2593_v15 = vmax.f32 %v2518_v8, 0.0 }
 0x26b   :  { %v1620_v16 = vadd.f32 %v1619_v13, %v1618_v46  ;;  %v557_v18 = vmax.f32 %v484_v11, 0.0  ;;  %v1236_v19 = vmax.f32 %v1163_v12, 0.0 }
 0x26c   :  { %1979 = vst.msk [vmem:[#allocation2 + $0x5d0] sm:$0xff] %vm562_vm1, %v1914_v14  ;;  %v2100_v20 = vsel %vm562_vm1, %v1914_v14, 0.0  ;;  %v2177_v21 = vmul.f32 %v1914_v14, %v1914_v14  ;;  %v2779_v50 = vsel %vm562_vm1, %v2593_v15, 0.0  ;;  %v2856_v22 = vmul.f32 %v2593_v15, %v2593_v15 }
 0x26d   :  { %v2101_v48 = vadd.f32 %v2100_v20, %v2099_v54  ;;  %2658 = vst.msk [vmem:[#allocation2 + $0x7d0] sm:$0xff] %vm562_vm1, %v2593_v15  ;;  %v2780_v23 = vadd.f32 %v2779_v50, %v2778_v55  ;;  %v744_v24 = vsel %vm562_vm1, %v557_v18, 0.0  ;;  %v820_v25 = vmul.f32 %v557_v18, %v557_v18 }
 0x26e   :  { %v2298_v26 = vsel %vm562_vm1, %v2177_v21, 0.0  ;;  %v2977_v27 = vsel %vm562_vm1, %v2856_v22, 0.0  ;;  %622 = vst.msk [vmem:[#allocation2 + $0x1d8] sm:$0xff] %vm562_vm1, %v557_v18  ;;  %v745_v28 = vadd.f32 %v744_v24, %v743_v60  ;;  %v1423_v29 = vsel %vm562_vm1, %v1236_v19, 0.0 }
 0x26f   :  { %v2299_v30 = vadd.f32 %v2298_v26, %v2297_v62  ;;  %v2978_v31 = vadd.f32 %v2977_v27, %v2976_v0  ;;  %v942_v32 = vsel %vm562_vm1, %v820_v25, 0.0  ;;  %1301 = vst.msk [vmem:[#allocation2 + $0x3d8] sm:$0xff] %vm562_vm1, %v1236_v19  ;;  %v1424_v33 = vadd.f32 %v1423_v29, %v1422_v2  ;;  %v1841_v63 = vpop.f32.mrf.mxu2  ;;  %v2520_v35 = vpop.f32.mrf.mxu3 }
 0x270   :  { %v943_v36 = vadd.f32 %v942_v32, %v941_v5  ;;  %v1499_v37 = vmul.f32 %v1236_v19, %v1236_v19  ;;  %v1842_v38 = vadd.f32 %v5769_v34, %v1841_v63  ;;  %v2521_v39 = vadd.f32 %v5769_v34, %v2520_v35  ;;  %v486_v40 = vpop.f32.mrf.mxu0  ;;  %v1165_v41 = vpop.f32.mrf.mxu1 }
 0x271   :  { %v487_v42 = vadd.f32 %v5769_v34, %v486_v40  ;;  %v1166_v43 = vadd.f32 %v5769_v34, %v1165_v41 }
 0x272   :  { %v1621_v44 = vsel %vm562_vm1, %v1499_v37, 0.0  ;;  %v1915_v45 = vmax.f32 %v1842_v38, 0.0  ;;  %v2594_v46 = vmax.f32 %v2521_v39, 0.0 }
 0x273   :  { %v1622_v17 = vadd.f32 %v1621_v44, %v1620_v16  ;;  %v558_v47 = vmax.f32 %v487_v42, 0.0  ;;  %v1237_v49 = vmax.f32 %v1166_v43, 0.0 }
 0x274   :  { %1980 = vst.msk [vmem:[#allocation2 + $0x5d8] sm:$0xff] %vm562_vm1, %v1915_v45  ;;  %v2102_v51 = vsel %vm562_vm1, %v1915_v45, 0.0  ;;  %v2178_v52 = vmul.f32 %v1915_v45, %v1915_v45  ;;  %v2781_v53 = vsel %vm562_vm1, %v2594_v46, 0.0  ;;  %v2857_v54 = vmul.f32 %v2594_v46, %v2594_v46 }
 0x275   :  { %v2103_v55 = vadd.f32 %v2102_v51, %v2101_v48  ;;  %2659 = vst.msk [vmem:[#allocation2 + $0x7d8] sm:$0xff] %vm562_vm1, %v2594_v46  ;;  %v2782_v56 = vadd.f32 %v2781_v53, %v2780_v23  ;;  %v746_v57 = vsel %vm562_vm1, %v558_v47, 0.0  ;;  %v821_v58 = vmul.f32 %v558_v47, %v558_v47 }
 0x276   :  { %v2300_v59 = vsel %vm562_vm1, %v2178_v52, 0.0  ;;  %v2979_v60 = vsel %vm562_vm1, %v2857_v54, 0.0  ;;  %623 = vst.msk [vmem:[#allocation2 + $0x1e0] sm:$0xff] %vm562_vm1, %v558_v47  ;;  %v747_v61 = vadd.f32 %v746_v57, %v745_v28  ;;  %v1425_v62 = vsel %vm562_vm1, %v1237_v49, 0.0 }
 0x277   :  { %v2301_v0 = vadd.f32 %v2300_v59, %v2299_v30  ;;  %v2980_v1 = vadd.f32 %v2979_v60, %v2978_v31  ;;  %v944_v2 = vsel %vm562_vm1, %v821_v58, 0.0  ;;  %1302 = vst.msk [vmem:[#allocation2 + $0x3e0] sm:$0xff] %vm562_vm1, %v1237_v49  ;;  %v1426_v3 = vadd.f32 %v1425_v62, %v1424_v33  ;;  %v1844_v4 = vpop.f32.mrf.mxu2  ;;  %v2523_v5 = vpop.f32.mrf.mxu3 }
 0x278   :  { %v945_v6 = vadd.f32 %v944_v2, %v943_v36  ;;  %v1500_v7 = vmul.f32 %v1237_v49, %v1237_v49  ;;  %v1845_v8 = vadd.f32 %v5769_v34, %v1844_v4  ;;  %v2524_v9 = vadd.f32 %v5769_v34, %v2523_v5  ;;  %v489_v10 = vpop.f32.mrf.mxu0  ;;  %v1168_v11 = vpop.f32.mrf.mxu1 }
 0x279   :  { %v490_v12 = vadd.f32 %v5769_v34, %v489_v10  ;;  %v1169_v13 = vadd.f32 %v5769_v34, %v1168_v11  ;;  %v4348_v47 = vmov 2048.0  }
 0x27a   :  { %v1623_v14 = vsel %vm562_vm1, %v1500_v7, 0.0  ;;  %v1916_v15 = vmax.f32 %v1845_v8, 0.0  ;;  %v2595_v16 = vmax.f32 %v2524_v9, 0.0  ;;  %4340 = vrcp.f32 %v4348_v47 }
 0x27b   :  { %v1624_v18 = vadd.f32 %v1623_v14, %v1622_v17  ;;  %v559_v19 = vmax.f32 %v490_v12, 0.0  ;;  %v1238_v20 = vmax.f32 %v1169_v13, 0.0 }
 0x27c   :  { %1981 = vst.msk [vmem:[#allocation2 + $0x5e0] sm:$0xff] %vm562_vm1, %v1916_v15  ;;  %v2104_v21 = vsel %vm562_vm1, %v1916_v15, 0.0  ;;  %v2179_v50 = vmul.f32 %v1916_v15, %v1916_v15  ;;  %v2783_v22 = vsel %vm562_vm1, %v2595_v16, 0.0  ;;  %v2858_v48 = vmul.f32 %v2595_v16, %v2595_v16 }
 0x27d   :  { %v2105_v23 = vadd.f32 %v2104_v21, %v2103_v55  ;;  %2660 = vst.msk [vmem:[#allocation2 + $0x7e0] sm:$0xff] %vm562_vm1, %v2595_v16  ;;  %v2784_v24 = vadd.f32 %v2783_v22, %v2782_v56  ;;  %v748_v25 = vsel %vm562_vm1, %v559_v19, 0.0  ;;  %v822_v26 = vmul.f32 %v559_v19, %v559_v19 }
 0x27e   :  { %v2302_v27 = vsel %vm562_vm1, %v2179_v50, 0.0  ;;  %v2981_v28 = vsel %vm562_vm1, %v2858_v48, 0.0  ;;  %624 = vst.msk [vmem:[#allocation2 + $0x1e8] sm:$0xff] %vm562_vm1, %v559_v19  ;;  %v749_v29 = vadd.f32 %v748_v25, %v747_v61  ;;  %v1427_v30 = vsel %vm562_vm1, %v1238_v20, 0.0 }
 0x27f   :  { %v2303_v31 = vadd.f32 %v2302_v27, %v2301_v0  ;;  %v2982_v32 = vadd.f32 %v2981_v28, %v2980_v1  ;;  %v946_v33 = vsel %vm562_vm1, %v822_v26, 0.0  ;;  %1303 = vst.msk [vmem:[#allocation2 + $0x3e8] sm:$0xff] %vm562_vm1, %v1238_v20  ;;  %v1428_v63 = vadd.f32 %v1427_v30, %v1426_v3  ;;  %v1847_v35 = vpop.f32.mrf.mxu2  ;;  %v2526_v36 = vpop.f32.mrf.mxu3 }
 0x280   :  { %v947_v37 = vadd.f32 %v946_v33, %v945_v6  ;;  %v1501_v38 = vmul.f32 %v1238_v20, %v1238_v20  ;;  %v1848_v39 = vadd.f32 %v5769_v34, %v1847_v35  ;;  %v2527_v40 = vadd.f32 %v5769_v34, %v2526_v36  ;;  %v492_v41 = vpop.f32.mrf.mxu0  ;;  %v1171_v42 = vpop.f32.mrf.mxu1 }
 0x281   :  { %v493_v43 = vadd.f32 %v5769_v34, %v492_v41  ;;  %v1172_v44 = vadd.f32 %v5769_v34, %v1171_v42  ;;  %v5947_v8 = vpop.eup %4340 }
 0x282   :  { %v1625_v45 = vsel %vm562_vm1, %v1501_v38, 0.0  ;;  %v1917_v46 = vmax.f32 %v1848_v39, 0.0  ;;  %v2596_v17 = vmax.f32 %v2527_v40, 0.0  ;;  %v5955_v48 = vmul.f32 2048.0, %v5947_v8 }
 0x283   :  { %v1626_v49 = vadd.f32 %v1625_v45, %v1624_v18  ;;  %v560_v51 = vmax.f32 %v493_v43, 0.0  ;;  %v1239_v52 = vmax.f32 %v1172_v44, 0.0  ;;  %vm3001_vm2 = vweird.f32 %v5947_v8 }
 0x284   :  { %1982 = vst.msk [vmem:[#allocation2 + $0x5e8] sm:$0xff] %vm562_vm1, %v1917_v46  ;;  %v2106_v53 = vsel %vm562_vm1, %v1917_v46, 0.0  ;;  %v2180_v54 = vmul.f32 %v1917_v46, %v1917_v46  ;;  %v2785_v55 = vsel %vm562_vm1, %v2596_v17, 0.0  ;;  %v2859_v56 = vmul.f32 %v2596_v17, %v2596_v17 }
 0x285   :  { %v2107_v57 = vadd.f32 %v2106_v53, %v2105_v23  ;;  %2661 = vst.msk [vmem:[#allocation2 + $0x7e8] sm:$0xff] %vm562_vm1, %v2596_v17  ;;  %v2786_v58 = vadd.f32 %v2785_v55, %v2784_v24  ;;  %v750_v59 = vsel %vm562_vm1, %v560_v51, 0.0  ;;  %v823_v60 = vmul.f32 %v560_v51, %v560_v51 }
 0x286   :  { %v2304_v61 = vsel %vm562_vm1, %v2180_v54, 0.0  ;;  %v2983_v62 = vsel %vm562_vm1, %v2859_v56, 0.0  ;;  %625 = vst.msk [vmem:[#allocation2 + $0x1f0] sm:$0xff] %vm562_vm1, %v560_v51  ;;  %v751_v0 = vadd.f32 %v750_v59, %v749_v29  ;;  %v1429_v1 = vsel %vm562_vm1, %v1239_v52, 0.0 }
 0x287   :  { %v2305_v2 = vadd.f32 %v2304_v61, %v2303_v31  ;;  %v2984_v3 = vadd.f32 %v2983_v62, %v2982_v32  ;;  %v948_v4 = vsel %vm562_vm1, %v823_v60, 0.0  ;;  %1304 = vst.msk [vmem:[#allocation2 + $0x3f0] sm:$0xff] %vm562_vm1, %v1239_v52  ;;  %v1430_v5 = vadd.f32 %v1429_v1, %v1428_v63  ;;  %v1850_v6 = vpop.f32.mrf.mxu2  ;;  %v2529_v7 = vpop.f32.mrf.mxu3 }
 0x288   :  { %v949_v9 = vadd.f32 %v948_v4, %v947_v37  ;;  %v1502_v10 = vmul.f32 %v1239_v52, %v1239_v52  ;;  %v1851_v11 = vadd.f32 %v5769_v34, %v1850_v6  ;;  %v2530_v12 = vadd.f32 %v5769_v34, %v2529_v7  ;;  %v495_v13 = vpop.f32.mrf.mxu0  ;;  %v1174_v14 = vpop.f32.mrf.mxu1 }
 0x289   :  { %v496_v15 = vadd.f32 %v5769_v34, %v495_v13  ;;  %v1175_v16 = vadd.f32 %v5769_v34, %v1174_v14  ;;  %v2998_v55 = vsub.f32 1.0, %v5955_v48 }
 0x28a   :  { %v1627_v18 = vsel %vm562_vm1, %v1502_v10, 0.0  ;;  %v1918_v19 = vmax.f32 %v1851_v11, 0.0  ;;  %v2597_v20 = vmax.f32 %v2530_v12, 0.0 }
 0x28b   :  { %v1628_v21 = vadd.f32 %v1627_v18, %v1626_v49  ;;  %v561_v50 = vmax.f32 %v496_v15, 0.0  ;;  %v1240_v22 = vmax.f32 %v1175_v16, 0.0 }
 0x28c   :  { %1983 = vst.msk [vmem:[#allocation2 + $0x5f0] sm:$0xff] %vm562_vm1, %v1918_v19  ;;  %v2108_v23 = vsel %vm562_vm1, %v1918_v19, 0.0  ;;  %v2181_v24 = vmul.f32 %v1918_v19, %v1918_v19  ;;  %v2787_v25 = vsel %vm562_vm1, %v2597_v20, 0.0  ;;  %v2860_v26 = vmul.f32 %v2597_v20, %v2597_v20 }
 0x28d   :  { %v2109_v27 = vadd.f32 %v2108_v23, %v2107_v57  ;;  %2662 = vst.msk [vmem:[#allocation2 + $0x7f0] sm:$0xff] %vm562_vm1, %v2597_v20  ;;  %v2788_v28 = vadd.f32 %v2787_v25, %v2786_v58  ;;  %v752_v29 = vsel %vm562_vm1, %v561_v50, 0.0  ;;  %v824_v30 = vmul.f32 %v561_v50, %v561_v50 }
 0x28e   :  { %v2306_v31 = vsel %vm562_vm1, %v2181_v24, 0.0  ;;  %v2985_v32 = vsel %vm562_vm1, %v2860_v26, 0.0  ;;  %626 = vst.msk [vmem:[#allocation2 + $0x1f8] sm:$0xff] %vm562_vm1, %v561_v50  ;;  %v753_v33 = vadd.f32 %v752_v29, %v751_v0  ;;  %v1431_v63 = vsel %vm562_vm1, %v1240_v22, 0.0 }
 0x28f   :  { %v2307_v35 = vadd.f32 %v2306_v31, %v2305_v2  ;;  %v2986_v36 = vadd.f32 %v2985_v32, %v2984_v3  ;;  %v950_v37 = vsel %vm562_vm1, %v824_v30, 0.0  ;;  %1305 = vst.msk [vmem:[#allocation2 + $0x3f8] sm:$0xff] %vm562_vm1, %v1240_v22  ;;  %v1432_v38 = vadd.f32 %v1431_v63, %v1430_v5  ;;  %v1853_v39 = vpop.f32.mrf.mxu2  ;;  %v2532_v40 = vpop.f32.mrf.mxu3 }
 0x290   :  { %v754_v41 = vrot.slane %v753_v33, 4  ;;  %v951_v42 = vadd.f32 %v950_v37, %v949_v9  ;;  %v1503_v43 = vmul.f32 %v1240_v22, %v1240_v22  ;;  %v1854_v44 = vadd.f32 %v5769_v34, %v1853_v39 }
 0x291   :  { %v1433_v45 = vrot.slane %v1432_v38, 4  ;;  %v2533_v46 = vadd.f32 %v5769_v34, %v2532_v40 }
 0x292   :  { %v755_v17 = vadd.f32 %v754_v41, %v753_v33  ;;  %v952_v47 = vrot.slane %v951_v42, 4  ;;  %v1629_v49 = vsel %vm562_vm1, %v1503_v43, 0.0  ;;  %v1919_v51 = vmax.f32 %v1854_v44, 0.0 }
 0x293   :  { %v1434_v52 = vadd.f32 %v1433_v45, %v1432_v38  ;;  %v1630_v53 = vadd.f32 %v1629_v49, %v1628_v21  ;;  %v2598_v54 = vmax.f32 %v2533_v46, 0.0 }
 0x294   :  { %v756_v56 = vrot.slane %v755_v17, 2  ;;  %v953_v57 = vadd.f32 %v952_v47, %v951_v42  ;;  %1984 = vst.msk [vmem:[#allocation2 + $0x5f8] sm:$0xff] %vm562_vm1, %v1919_v51  ;;  %v2110_v58 = vsel %vm562_vm1, %v1919_v51, 0.0  ;;  %v2182_v59 = vmul.f32 %v1919_v51, %v1919_v51 }
 0x295   :  { %v1435_v60 = vrot.slane %v1434_v52, 2  ;;  %v1631_v61 = vrot.slane %v1630_v53, 4  ;;  %v2111_v34 = vadd.f32 %v2110_v58, %v2109_v27  ;;  %2663 = vst.msk [vmem:[#allocation2 + $0x7f8] sm:$0xff] %vm562_vm1, %v2598_v54  ;;  %v2789_v62 = vsel %vm562_vm1, %v2598_v54, 0.0 }
 0x296   :  { %v757_v0 = vadd.f32 %v756_v56, %v755_v17  ;;  %v954_v1 = vrot.slane %v953_v57, 2  ;;  %v2308_v2 = vsel %vm562_vm1, %v2182_v59, 0.0  ;;  %v2790_v3 = vadd.f32 %v2789_v62, %v2788_v28 }
 0x297   :  { %v1436_v4 = vadd.f32 %v1435_v60, %v1434_v52  ;;  %v1632_v5 = vadd.f32 %v1631_v61, %v1630_v53  ;;  %v2112_v6 = vrot.slane %v2111_v34, 4  ;;  %v2309_v7 = vadd.f32 %v2308_v2, %v2307_v35 }
 0x298   :  { %v758_v9 = vrot.slane %v757_v0, 1  ;;  %v955_v10 = vadd.f32 %v954_v1, %v953_v57  ;;  %v2791_v11 = vrot.slane %v2790_v3, 4  ;;  %v2861_v12 = vmul.f32 %v2598_v54, %v2598_v54 }
 0x299   :  { %v1437_v13 = vrot.slane %v1436_v4, 1  ;;  %v1633_v14 = vrot.slane %v1632_v5, 2  ;;  %v2113_v15 = vadd.f32 %v2112_v6, %v2111_v34  ;;  %v2310_v16 = vrot.slane %v2309_v7, 4  ;;  %v3025_v6 = vld [vmem:[#allocation2 + $0x8] sm:$0xff] }
 0x29a   :  { %v759_v18 = vadd.f32 %v758_v9, %v757_v0  ;;  %v956_v19 = vrot.slane %v955_v10, 1  ;;  %v2792_v20 = vadd.f32 %v2791_v11, %v2790_v3  ;;  %v2987_v21 = vsel %vm562_vm1, %v2861_v12, 0.0  ;;  %v5988_v9 = vld [vmem:[%s8693_s4] sm:$0x1]  ;;  %v3029_v12 = vld [vmem:[#allocation2 + $0x28] sm:$0xff] }
 0x29b   :  { %v1438_v50 = vadd.f32 %v1437_v13, %v1436_v4  ;;  %v1634_v22 = vadd.f32 %v1633_v14, %v1632_v5  ;;  %v2114_v48 = vrot.slane %v2113_v15, 2  ;;  %v2311_v23 = vadd.f32 %v2310_v16, %v2309_v7  ;;  %v3024_v5 = vld [vmem:[#allocation2] sm:$0xff]  ;;  %v3026_v7 = vld [vmem:[#allocation2 + $0x10] sm:$0xff]  ;;  %v3031_v16 = vld [vmem:[#allocation2 + $0x38] sm:$0xff] }
 0x29c   :  { %v957_v24 = vadd.f32 %v956_v19, %v955_v10  ;;  %v2793_v25 = vrot.slane %v2792_v20, 2  ;;  %v2988_v26 = vadd.f32 %v2987_v21, %v2986_v36  ;;  %v2999_v27 = vmul.f32 %v5947_v8, %v2998_v55  ;;  %v3027_v10 = vld [vmem:[#allocation2 + $0x18] sm:$0xff]  ;;  %v3028_v11 = vld [vmem:[#allocation2 + $0x20] sm:$0xff]  ;;  %v3030_v13 = vld [vmem:[#allocation2 + $0x30] sm:$0xff] }
 0x29d   :  { %v1439_v28 = vadd.f32 %v1438_v50, %v759_v18  ;;  %v1635_v29 = vrot.slane %v1634_v22, 1  ;;  %v2115_v30 = vadd.f32 %v2114_v48, %v2113_v15  ;;  %v2312_v31 = vrot.slane %v2311_v23, 2  ;;  %v3032_v18 = vld [vmem:[#allocation2 + $0x40] sm:$0xff]  ;;  %v3033_v19 = vld [vmem:[#allocation2 + $0x48] sm:$0xff]  ;;  %v3035_v21 = vld [vmem:[#allocation2 + $0x58] sm:$0xff] }
 0x29e   :  { %v2794_v32 = vadd.f32 %v2793_v25, %v2792_v20  ;;  %v2989_v33 = vrot.slane %v2988_v26, 4  ;;  %v3000_v40 = vadd.f32 %v5947_v8, %v2999_v27  ;;  %v3034_v20 = vld [vmem:[#allocation2 + $0x50] sm:$0xff]  ;;  %v3036_v50 = vld [vmem:[#allocation2 + $0x60] sm:$0xff]  ;;  %v3039_v27 = vld [vmem:[#allocation2 + $0x78] sm:$0xff] }
 0x29f   :  { %v1636_v63 = vadd.f32 %v1635_v29, %v1634_v22  ;;  %v2116_v35 = vrot.slane %v2115_v30, 1  ;;  %v2313_v37 = vadd.f32 %v2312_v31, %v2311_v23  ;;  %v3037_v22 = vld [vmem:[#allocation2 + $0x68] sm:$0xff]  ;;  %v3038_v48 = vld [vmem:[#allocation2 + $0x70] sm:$0xff]  ;;  %v3079_v23 = vld [vmem:[#allocation2 + $0x1b8] sm:$0xff] }
 0x2a0   :  { %v2795_v38 = vrot.slane %v2794_v32, 1  ;;  %v2990_v39 = vadd.f32 %v2989_v33, %v2988_v26  ;;  %v3002_v47 = vsel %vm3001_vm2, %v5947_v8, %v3000_v40  ;;  %v3008_v8 = vld [vmem:[%s8692_s3] sm:$0x1]  ;;  %v3041_v29 = vld [vmem:[#allocation2 + $0x88] sm:$0xff] }
 0x2a1   :  { %v1637_v41 = vadd.f32 %v1636_v63, %v957_v24  ;;  %v2117_v42 = vadd.f32 %v2116_v35, %v2115_v30  ;;  %v2314_v43 = vrot.slane %v2313_v37, 1  ;;  %v3042_v30 = vld [vmem:[#allocation2 + $0x90] sm:$0xff]  ;;  %v3043_v35 = vld [vmem:[#allocation2 + $0x98] sm:$0xff] }
 0x2a2   :  { %v2991_v36 = vrot.slane %v2990_v39, 2  ;;  %v2796_v46 = vadd.f32 %v2795_v38, %v2794_v32  ;;  %v3045_v38 = vld [vmem:[#allocation2 + $0xa8] sm:$0xff] }
 0x2a3   :  { %v2118_v44 = vadd.f32 %v2117_v42, %v1439_v28  ;;  %v2315_v45 = vadd.f32 %v2314_v43, %v2313_v37  ;;  %v3040_v28 = vld [vmem:[#allocation2 + $0x80] sm:$0xff] }
 0x2a4   :  { %v2992_v17 = vadd.f32 %v2991_v36, %v2990_v39  ;;  %v3044_v37 = vld [vmem:[#allocation2 + $0xa0] sm:$0xff]  ;;  %v3046_v39 = vld [vmem:[#allocation2 + $0xb0] sm:$0xff]  ;;  %v3047_v36 = vld [vmem:[#allocation2 + $0xb8] sm:$0xff] }
 0x2a5   :  { %v2316_v49 = vadd.f32 %v2315_v45, %v1637_v41  ;;  %v2797_v51 = vadd.f32 %v2796_v46, %v2118_v44  ;;  %v3048_v44 = vld [vmem:[#allocation2 + $0xc0] sm:$0xff]  ;;  %v3049_v45 = vld [vmem:[#allocation2 + $0xc8] sm:$0xff]  ;;  %v3050_v46 = vld [vmem:[#allocation2 + $0xd0] sm:$0xff] }
 0x2a6   :  { %v2993_v52 = vrot.slane %v2992_v17, 1 }
 0x2a7   :  { %v3003_v53 = vmul.f32 %v3002_v47, %v2797_v51 }
 0x2a8   :  { %v2994_v54 = vadd.f32 %v2993_v52, %v2992_v17  ;;  %v3051_v52 = vld [vmem:[#allocation2 + $0xd8] sm:$0xff] }
 0x2a9   :  { %v3005_v56 = vmul.f32 %v3003_v53, %v3003_v53 }
 0x2aa   :  { %v2995_v55 = vadd.f32 %v2994_v54, %v2316_v49  ;;  %v3053_v54 = vld [vmem:[#allocation2 + $0xe8] sm:$0xff] }
 0x2ac   :  { %v3004_v57 = vmul.f32 %v3002_v47, %v2995_v55  ;;  %v3054_v55 = vld [vmem:[#allocation2 + $0xf0] sm:$0xff] }
 0x2ae   :  { %v3006_v58 = vsub.f32 %v3004_v57, %v3005_v56 }
 0x2b0   :  { %v3007_v59 = vmax.f32 %v3006_v58, 0.0 }
 0x2b2   :  { %v3009_v60 = vadd.f32 1e-05, %v3007_v59 }
 0x2b4   :  { %4342 = vrsqrt.f32 %v3009_v60  ;;  %vm3016_vm4 = vweird.f32 %v3009_v60 }
 0x2ba   :  { %v4343_v61 = vpop.eup %4342 }
 0x2bb   :  { %v3011_v34 = vmul.f32 %v4343_v61, %v3009_v60  ;;  %vm3017_vm3 = vweird.f32 %v4343_v61  ;;  %v3055_v60 = vld [vmem:[#allocation2 + $0xf8] sm:$0xff] }
 0x2bc   :  { %vm3018_vm5 = vmor %vm3016_vm4, %vm3017_vm3 }
 0x2bd   :  { %v3012_v62 = vmul.f32 %v4343_v61, %v3011_v34  ;;  %v3057_v34 = vld [vmem:[#allocation2 + $0x108] sm:$0xff] }
 0x2bf   :  { %v3013_v0 = vmul.f32 0.5, %v3012_v62  ;;  %v3058_v62 = vld [vmem:[#allocation2 + $0x110] sm:$0xff] }
 0x2c1   :  { %v3014_v1 = vsub.f32 1.5, %v3013_v0 }
 0x2c3   :  { %v3015_v2 = vmul.f32 %v4343_v61, %v3014_v1 }
 0x2c5   :  { %v3019_v3 = vsel %vm3018_vm5, %v4343_v61, %v3015_v2  ;;  %v3056_v61 = vld [vmem:[#allocation2 + $0x100] sm:$0xff] }
 0x2c6   :  { %v3020_v4 = vmul.f32 %v3019_v3, %v3008_v8  ;;  %v3059_v3 = vld [vmem:[#allocation2 + $0x118] sm:$0xff] }
 0x2c8   :  { %v5990_v14 = vmul.f32 %v3020_v4, %v3003_v53  ;;  %v5992_v15 = vperm.slane %v3020_v4, 0  ;;  %v3052_v53 = vld [vmem:[#allocation2 + $0xe0] sm:$0xff] }
 0x2c9   :  { %v3060_v4 = vld [vmem:[#allocation2 + $0x120] sm:$0xff] }
 0x2ca   :  { %8955 = vst [vmem:[#allocation3_spill] sm:$0xff] %v5992_v15  ;;  %v5997_v24 = vmul.f32 %v5992_v15, %v3024_v5  ;;  %v6000_v25 = vmul.f32 %v5992_v15, %v3025_v6  ;;  %v6003_v26 = vmul.f32 %v5992_v15, %v3026_v7  ;;  %v6006_v31 = vmul.f32 %v5992_v15, %v3027_v10  ;;  %v3061_v5 = vld [vmem:[#allocation2 + $0x128] sm:$0xff]  ;;  %v3062_v6 = vld [vmem:[#allocation2 + $0x130] sm:$0xff] }
 0x2cb   :  { %v6009_v32 = vmul.f32 %v5992_v15, %v3028_v11  ;;  %v6012_v33 = vmul.f32 %v5992_v15, %v3029_v12  ;;  %v6015_v63 = vmul.f32 %v5992_v15, %v3030_v13  ;;  %v6018_v40 = vmul.f32 %v5992_v15, %v3031_v16  ;;  %v3063_v13 = vld [vmem:[#allocation2 + $0x138] sm:$0xff]  ;;  %v3064_v16 = vld [vmem:[#allocation2 + $0x140] sm:$0xff] }
 0x2cc   :  { %v6021_v41 = vmul.f32 %v5992_v15, %v3032_v18  ;;  %v6024_v42 = vmul.f32 %v5992_v15, %v3033_v19  ;;  %v6027_v43 = vmul.f32 %v5992_v15, %v3034_v20  ;;  %v6030_v17 = vmul.f32 %v5992_v15, %v3035_v21  ;;  %v3065_v18 = vld [vmem:[#allocation2 + $0x148] sm:$0xff] }
 0x2cd   :  { %v6033_v47 = vmul.f32 %v5992_v15, %v3036_v50  ;;  %v6036_v49 = vmul.f32 %v5992_v15, %v3037_v22  ;;  %v6039_v51 = vmul.f32 %v5992_v15, %v3038_v48  ;;  %v6042_v56 = vmul.f32 %v5992_v15, %v3039_v27  ;;  %v3066_v22 = vld [vmem:[#allocation2 + $0x150] sm:$0xff]  ;;  %v3067_v48 = vld [vmem:[#allocation2 + $0x158] sm:$0xff]  ;;  %v3068_v27 = vld [vmem:[#allocation2 + $0x160] sm:$0xff] }
 0x2ce   :  { %v6045_v57 = vmul.f32 %v5992_v15, %v3040_v28  ;;  %v6048_v58 = vmul.f32 %v5992_v15, %v3041_v29  ;;  %v6051_v59 = vmul.f32 %v5992_v15, %v3042_v30  ;;  %v6054_v0 = vmul.f32 %v5992_v15, %v3043_v35 }
 0x2cf   :  { %v6057_v1 = vmul.f32 %v5992_v15, %v3044_v37  ;;  %v6060_v8 = vmul.f32 %v5992_v15, %v3045_v38  ;;  %v6063_v2 = vmul.f32 %v5992_v15, %v3046_v39  ;;  %v6066_v7 = vmul.f32 %v5992_v15, %v3047_v36  ;;  %v3069_v37 = vld [vmem:[#allocation2 + $0x168] sm:$0xff]  ;;  %v3070_v38 = vld [vmem:[#allocation2 + $0x170] sm:$0xff]  ;;  %v3071_v39 = vld [vmem:[#allocation2 + $0x178] sm:$0xff] }
 0x2d0   :  { %v6069_v10 = vmul.f32 %v5992_v15, %v3048_v44  ;;  %v6072_v11 = vmul.f32 %v5992_v15, %v3049_v45  ;;  %v6075_v12 = vmul.f32 %v5992_v15, %v3050_v46  ;;  %v6078_v19 = vmul.f32 %v5992_v15, %v3051_v52  ;;  %v3072_v52 = vld [vmem:[#allocation2 + $0x180] sm:$0xff] }
 0x2d1   :  { %v6081_v20 = vmul.f32 %v5992_v15, %v3052_v53  ;;  %v6084_v21 = vmul.f32 %v5992_v15, %v3053_v54  ;;  %v6087_v50 = vmul.f32 %v5992_v15, %v3054_v55  ;;  %v6090_v28 = vmul.f32 %v5992_v15, %v3055_v60  ;;  %v3073_v53 = vld [vmem:[#allocation2 + $0x188] sm:$0xff]  ;;  %v3074_v54 = vld [vmem:[#allocation2 + $0x190] sm:$0xff] }
 0x2d2   :  { %v6093_v29 = vmul.f32 %v5992_v15, %v3056_v61  ;;  %v6096_v30 = vmul.f32 %v5992_v15, %v3057_v34  ;;  %v6099_v35 = vmul.f32 %v5992_v15, %v3058_v62  ;;  %v6102_v36 = vmul.f32 %v5992_v15, %v3059_v3  ;;  %v3075_v62 = vld [vmem:[#allocation2 + $0x198] sm:$0xff]  ;;  %v3076_v3 = vld [vmem:[#allocation2 + $0x1a0] sm:$0xff] }
 0x2d3   :  { %v6105_v44 = vmul.f32 %v5992_v15, %v3060_v4  ;;  %v6108_v45 = vmul.f32 %v5992_v15, %v3061_v5  ;;  %v6111_v46 = vmul.f32 %v5992_v15, %v3062_v6  ;;  %v6114_v55 = vmul.f32 %v5992_v15, %v3063_v13  ;;  %v3077_v4 = vld [vmem:[#allocation2 + $0x1a8] sm:$0xff] }
 0x2d4   :  { %v6117_v60 = vmul.f32 %v5992_v15, %v3064_v16  ;;  %v6120_v61 = vmul.f32 %v5992_v15, %v3065_v18  ;;  %v6123_v34 = vmul.f32 %v5992_v15, %v3066_v22  ;;  %v6126_v5 = vmul.f32 %v5992_v15, %v3067_v48  ;;  %v3078_v18 = vld [vmem:[#allocation2 + $0x1b0] sm:$0xff] }
 0x2d5   :  { %v6129_v6 = vmul.f32 %v5992_v15, %v3068_v27  ;;  %v6132_v13 = vmul.f32 %v5992_v15, %v3069_v37  ;;  %v6135_v16 = vmul.f32 %v5992_v15, %v3070_v38  ;;  %v6138_v22 = vmul.f32 %v5992_v15, %v3071_v39  ;;  %v3222_v37 = vld [vmem:[#allocation2 + $0x200] sm:$0xff]  ;;  %v3083_v38 = vld [vmem:[#allocation2 + $0x1d8] sm:$0xff] }
 0x2d6   :  { %8956 = vst [vmem:[#allocation4_spill] sm:$0xff] %v6120_v61  ;;  %v3080_v61 = vld [vmem:[#allocation2 + $0x1c0] sm:$0xff]  ;;  %v6144_v48 = vmul.f32 %v5992_v15, %v3073_v53  ;;  %v6147_v27 = vmul.f32 %v5992_v15, %v3074_v54  ;;  %v6156_v39 = vmul.f32 %v5992_v15, %v3077_v4  ;;  %v3086_v54 = vld [vmem:[#allocation2 + $0x1f0] sm:$0xff]  ;;  %v3223_v4 = vld [vmem:[#allocation2 + $0x208] sm:$0xff] }
 0x2d7   :  { %8957 = vst [vmem:[#allocation5_spill] sm:$0xff] %v6123_v34  ;;  %v6141_v34 = vmul.f32 %v5992_v15, %v3072_v52  ;;  %v6159_v52 = vmul.f32 %v5992_v15, %v3078_v18  ;;  %v3084_v53 = vld [vmem:[#allocation2 + $0x1e0] sm:$0xff]  ;;  %v6174_v18 = vmul.f32 %v5992_v15, %v3083_v38 }
 0x2d8   :  { %8958 = vst [vmem:[#allocation6_spill] sm:$0xff] %v6126_v5  ;;  %v6153_v5 = vmul.f32 %v5992_v15, %v3076_v3 }
 0x2d9   :  { %8959 = vst [vmem:[#allocation7_spill] sm:$0xff] %v6129_v6  ;;  %v3082_v6 = vld [vmem:[#allocation2 + $0x1d0] sm:$0xff] }
 0x2da   :  { %8960 = vst [vmem:[#allocation8_spill] sm:$0xff] %v6132_v13  ;;  %v3081_v13 = vld [vmem:[#allocation2 + $0x1c8] sm:$0xff]  ;;  %v6171_v3 = vmul.f32 %v5992_v15, %v3082_v6 }
 0x2db   :  { %8961 = vst [vmem:[#allocation9_spill] sm:$0xff] %v6135_v16  ;;  %v6150_v16 = vmul.f32 %v5992_v15, %v3075_v62  ;;  %v6168_v62 = vmul.f32 %v5992_v15, %v3081_v13  ;;  %v3225_v13 = vld [vmem:[#allocation2 + $0x218] sm:$0xff] }
 0x2dc   :  { %8962 = vst [vmem:[#allocation10_spill] sm:$0xff] %v6141_v34  ;;  %v6165_v34 = vmul.f32 %v5992_v15, %v3080_v61  ;;  %v6183_v61 = vmul.f32 %v5992_v15, %v3086_v54 }
 0x2dd   :  { %8963 = vst [vmem:[#allocation11_spill] sm:$0xff] %v6144_v48  ;;  %v3085_v48 = vld [vmem:[#allocation2 + $0x1e8] sm:$0xff] }
 0x2de   :  { %8964 = vst [vmem:[#allocation12_spill] sm:$0xff] %v6147_v27  ;;  %v6162_v27 = vmul.f32 %v5992_v15, %v3079_v23  ;;  %v6180_v23 = vmul.f32 %v5992_v15, %v3085_v48  ;;  %v6197_v48 = vmul.f32 %v3223_v4, %v5992_v15 }
 0x2df   :  { %8965 = vst [vmem:[#allocation13_spill] sm:$0xff] %v6153_v5  ;;  %v3087_v5 = vld [vmem:[#allocation2 + $0x1f8] sm:$0xff] }
 0x2e0   :  { %8966 = vst [vmem:[#allocation14_spill] sm:$0xff] %v6156_v39  ;;  %v3224_v39 = vld [vmem:[#allocation2 + $0x210] sm:$0xff]  ;;  %v6186_v6 = vmul.f32 %v5992_v15, %v3087_v5  ;;  %v9020_v4 = vld [vmem:[#allocation6_spill] sm:$0xff] }
 0x2e1   :  { %8967 = vst [vmem:[#allocation15_spill] sm:$0xff] %v6159_v52  ;;  %v6177_v52 = vmul.f32 %v5992_v15, %v3084_v53  ;;  %v6194_v53 = vmul.f32 %v3222_v37, %v5992_v15  ;;  %v6200_v54 = vmul.f32 %v3224_v39, %v5992_v15 }
 0x2e2   :  { %8968 = vst [vmem:[#allocation16_spill] sm:$0xff] %v6165_v34  ;;  %v3227_v34 = vld [vmem:[#allocation2 + $0x228] sm:$0xff] }
 0x2e3   :  { %8969 = vst [vmem:[#allocation17_spill] sm:$0xff] %v6168_v62  ;;  %v3226_v62 = vld [vmem:[#allocation2 + $0x220] sm:$0xff] }
 0x2e4   :  { %8970 = vst [vmem:[#allocation18_spill] sm:$0xff] %v6171_v3  ;;  %v8973_v3 = vsub.f32 %v5988_v9, %v5990_v14  ;;  %v6206_v5 = vmul.f32 %v3226_v62, %v5992_v15  ;;  %v9016_v62 = vld [vmem:[#allocation4_spill] sm:$0xff] }
 0x2e5   :  { %8971 = vst [vmem:[#allocation19_spill] sm:$0xff] %v6183_v61  ;;  %v6203_v61 = vmul.f32 %v3225_v13, %v5992_v15  ;;  %v9022_v13 = vld [vmem:[#allocation7_spill] sm:$0xff] }
 0x2e6   :  { %8972 = vst [vmem:[#allocation20_spill] sm:$0xff] %v6186_v6  ;;  %v6191_v38 = vperm.slane %v8973_v3, 0  ;;  %v6209_v6 = vmul.f32 %v3227_v34, %v5992_v15  ;;  %v9018_v3 = vld [vmem:[#allocation5_spill] sm:$0xff] }
 0x2e8   :  { %8974 = vst [vmem:[#allocation21_spill] sm:$0xff] %v6191_v38  ;;  %v6213_v9 = vadd.f32 %v6191_v38, %v5997_v24  ;;  %v6217_v14 = vadd.f32 %v6191_v38, %v6000_v25  ;;  %v6221_v37 = vadd.f32 %v6191_v38, %v6003_v26  ;;  %v6225_v39 = vadd.f32 %v6191_v38, %v6006_v31 }
 0x2e9   :  { %v6229_v34 = vadd.f32 %v6191_v38, %v6009_v32  ;;  %v6233_v24 = vadd.f32 %v6191_v38, %v6012_v33  ;;  %v6237_v25 = vadd.f32 %v6191_v38, %v6015_v63  ;;  %v6241_v26 = vadd.f32 %v6191_v38, %v6018_v40 }
 0x2ea   :  { %8975 = vst [vmem:[#allocation22_spill] sm:$0xff] %v6213_v9  ;;  %v6245_v31 = vadd.f32 %v6191_v38, %v6021_v41  ;;  %v6249_v32 = vadd.f32 %v6191_v38, %v6024_v42  ;;  %v6253_v33 = vadd.f32 %v6191_v38, %v6027_v43  ;;  %v6257_v63 = vadd.f32 %v6191_v38, %v6030_v17 }
 0x2eb   :  { %8976 = vst [vmem:[#allocation23_spill] sm:$0xff] %v6217_v14  ;;  %v6261_v40 = vadd.f32 %v6191_v38, %v6033_v47  ;;  %v6265_v41 = vadd.f32 %v6191_v38, %v6036_v49  ;;  %v6269_v42 = vadd.f32 %v6191_v38, %v6039_v51  ;;  %v6273_v43 = vadd.f32 %v6191_v38, %v6042_v56  ;;  %v3277_v14 = vld [vmem:[#allocation2 + $0x3b8] sm:$0xff] }
 0x2ec   :  { %8977 = vst [vmem:[#allocation24_spill] sm:$0xff] %v6221_v37  ;;  %v6277_v17 = vadd.f32 %v6191_v38, %v6045_v57  ;;  %v6281_v47 = vadd.f32 %v6191_v38, %v6048_v58  ;;  %v6285_v49 = vadd.f32 %v6191_v38, %v6051_v59  ;;  %v6289_v51 = vadd.f32 %v6191_v38, %v6054_v0  ;;  %v3276_v37 = vld [vmem:[#allocation2 + $0x3b0] sm:$0xff] }
 0x2ed   :  { %8978 = vst [vmem:[#allocation25_spill] sm:$0xff] %v6225_v39  ;;  %v6293_v56 = vadd.f32 %v6191_v38, %v6057_v1  ;;  %v6297_v57 = vadd.f32 %v6191_v38, %v6060_v8  ;;  %v6301_v58 = vadd.f32 %v6191_v38, %v6063_v2  ;;  %v6305_v59 = vadd.f32 %v6191_v38, %v6066_v7 }
 0x2ee   :  { %8979 = vst [vmem:[#allocation26_spill] sm:$0xff] %v6229_v34  ;;  %v6309_v0 = vadd.f32 %v6191_v38, %v6069_v10  ;;  %v6313_v1 = vadd.f32 %v6191_v38, %v6072_v11  ;;  %v6317_v8 = vadd.f32 %v6191_v38, %v6075_v12  ;;  %v6321_v2 = vadd.f32 %v6191_v38, %v6078_v19  ;;  %v3274_v34 = vld [vmem:[#allocation2 + $0x3a0] sm:$0xff] }
 0x2ef   :  { %8980 = vst [vmem:[#allocation27_spill] sm:$0xff] %v6233_v24  ;;  %v6325_v7 = vadd.f32 %v6191_v38, %v6081_v20  ;;  %v6329_v10 = vadd.f32 %v6191_v38, %v6084_v21  ;;  %v6333_v11 = vadd.f32 %v6191_v38, %v6087_v50  ;;  %v6337_v12 = vadd.f32 %v6191_v38, %v6090_v28  ;;  %v3273_v24 = vld [vmem:[#allocation2 + $0x398] sm:$0xff] }
 0x2f0   :  { %8981 = vst [vmem:[#allocation28_spill] sm:$0xff] %v6237_v25  ;;  %v6341_v19 = vadd.f32 %v6191_v38, %v6093_v29  ;;  %v6345_v20 = vadd.f32 %v6191_v38, %v6096_v30  ;;  %v6349_v21 = vadd.f32 %v6191_v38, %v6099_v35  ;;  %v6353_v50 = vadd.f32 %v6191_v38, %v6102_v36 }
 0x2f1   :  { %8982 = vst [vmem:[#allocation29_spill] sm:$0xff] %v6241_v26  ;;  %v6357_v28 = vadd.f32 %v6191_v38, %v6105_v44  ;;  %v6361_v29 = vadd.f32 %v6191_v38, %v6108_v45  ;;  %v6365_v30 = vadd.f32 %v6191_v38, %v6111_v46  ;;  %v6369_v35 = vadd.f32 %v6191_v38, %v6114_v55  ;;  %v3271_v26 = vld [vmem:[#allocation2 + $0x388] sm:$0xff] }
 0x2f2   :  { %8983 = vst [vmem:[#allocation30_spill] sm:$0xff] %v6245_v31  ;;  %v6373_v36 = vadd.f32 %v6191_v38, %v6117_v60  ;;  %v6377_v44 = vadd.f32 %v6191_v38, %v9016_v62  ;;  %v6381_v45 = vadd.f32 %v6191_v38, %v9018_v3  ;;  %v6385_v46 = vadd.f32 %v6191_v38, %v9020_v4  ;;  %v3270_v31 = vld [vmem:[#allocation2 + $0x380] sm:$0xff] }
 0x2f3   :  { %8984 = vst [vmem:[#allocation31_spill] sm:$0xff] %v6249_v32  ;;  %v6389_v55 = vadd.f32 %v6191_v38, %v9022_v13  ;;  %v6401_v3 = vadd.f32 %v6191_v38, %v6138_v22  ;;  %v3230_v22 = vld [vmem:[#allocation2 + $0x240] sm:$0xff] }
 0x2f4   :  { %8985 = vst [vmem:[#allocation32_spill] sm:$0xff] %v6253_v33  ;;  %v3268_v33 = vld [vmem:[#allocation2 + $0x370] sm:$0xff] }
 0x2f5   :  { %8986 = vst [vmem:[#allocation33_spill] sm:$0xff] %v6257_v63  ;;  %v3267_v63 = vld [vmem:[#allocation2 + $0x368] sm:$0xff] }
 0x2f6   :  { %8987 = vst [vmem:[#allocation34_spill] sm:$0xff] %v6261_v40 }
 0x2f7   :  { %8988 = vst [vmem:[#allocation35_spill] sm:$0xff] %v6265_v41  ;;  %v3265_v41 = vld [vmem:[#allocation2 + $0x358] sm:$0xff] }
 0x2f8   :  { %8989 = vst [vmem:[#allocation36_spill] sm:$0xff] %v6269_v42  ;;  %v3264_v42 = vld [vmem:[#allocation2 + $0x350] sm:$0xff]  ;;  %v6579_v39 = vmul.f32 %v3265_v41, %v5992_v15  ;;  %v6597_v41 = vmul.f32 %v3271_v26, %v5992_v15  ;;  %v6612_v26 = vmul.f32 %v3276_v37, %v5992_v15 }
 0x2f9   :  { %8990 = vst [vmem:[#allocation37_spill] sm:$0xff] %v6273_v43 }
 0x2fa   :  { %8991 = vst [vmem:[#allocation38_spill] sm:$0xff] %v6277_v17 }
 0x2fb   :  { %8992 = vst [vmem:[#allocation39_spill] sm:$0xff] %v6281_v47  ;;  %v3261_v47 = vld [vmem:[#allocation2 + $0x338] sm:$0xff] }
 0x2fc   :  { %8993 = vst [vmem:[#allocation40_spill] sm:$0xff] %v6285_v49  ;;  %v6567_v25 = vmul.f32 %v3261_v47, %v5992_v15  ;;  %v6585_v47 = vmul.f32 %v3267_v63, %v5992_v15 }
 0x2fd   :  { %8994 = vst [vmem:[#allocation41_spill] sm:$0xff] %v6289_v51 }
 0x2fe   :  { %8995 = vst [vmem:[#allocation42_spill] sm:$0xff] %v6293_v56  ;;  %v3259_v56 = vld [vmem:[#allocation2 + $0x328] sm:$0xff] }
 0x2ff   :  { %8996 = vst [vmem:[#allocation43_spill] sm:$0xff] %v6297_v57  ;;  %v3257_v57 = vld [vmem:[#allocation2 + $0x318] sm:$0xff] }
 0x300   :  { %8997 = vst [vmem:[#allocation44_spill] sm:$0xff] %v6301_v58  ;;  %v6555_v32 = vmul.f32 %v3257_v57, %v5992_v15 }
 0x301   :  { %8998 = vst [vmem:[#allocation45_spill] sm:$0xff] %v6305_v59 }
 0x302   :  { %8999 = vst [vmem:[#allocation46_spill] sm:$0xff] %v6309_v0  ;;  %v3255_v0 = vld [vmem:[#allocation2 + $0x308] sm:$0xff] }
 0x303   :  { %9000 = vst [vmem:[#allocation47_spill] sm:$0xff] %v6313_v1  ;;  %v3253_v1 = vld [vmem:[#allocation2 + $0x2f8] sm:$0xff] }
 0x304   :  { %9001 = vst [vmem:[#allocation48_spill] sm:$0xff] %v6317_v8  ;;  %v6543_v40 = vmul.f32 %v3253_v1, %v5992_v15  ;;  %v6561_v1 = vmul.f32 %v3259_v56, %v5992_v15  ;;  %v6576_v56 = vmul.f32 %v3264_v42, %v5992_v15  ;;  %v6594_v42 = vmul.f32 %v3270_v31, %v5992_v15  ;;  %v3281_v31 = vld [vmem:[#allocation2 + $0x3d8] sm:$0xff] }
 0x305   :  { %9002 = vst [vmem:[#allocation49_spill] sm:$0xff] %v6321_v2 }
 0x306   :  { %9003 = vst [vmem:[#allocation50_spill] sm:$0xff] %v6325_v7  ;;  %v3251_v7 = vld [vmem:[#allocation2 + $0x2e8] sm:$0xff] }
 0x307   :  { %9004 = vst [vmem:[#allocation51_spill] sm:$0xff] %v6329_v10  ;;  %v3249_v10 = vld [vmem:[#allocation2 + $0x2d8] sm:$0xff] }
 0x308   :  { %9005 = vst [vmem:[#allocation52_spill] sm:$0xff] %v6333_v11  ;;  %v6531_v43 = vmul.f32 %v3249_v10, %v5992_v15  ;;  %v6549_v10 = vmul.f32 %v3255_v0, %v5992_v15 }
 0x309   :  { %9006 = vst [vmem:[#allocation53_spill] sm:$0xff] %v6337_v12 }
 0x30a   :  { %9007 = vst [vmem:[#allocation54_spill] sm:$0xff] %v6341_v19  ;;  %v3243_v19 = vld [vmem:[#allocation2 + $0x2a8] sm:$0xff] }
 0x30b   :  { %9008 = vst [vmem:[#allocation55_spill] sm:$0xff] %v6345_v20  ;;  %v3242_v20 = vld [vmem:[#allocation2 + $0x2a0] sm:$0xff] }
 0x30c   :  { %9009 = vst [vmem:[#allocation56_spill] sm:$0xff] %v6349_v21  ;;  %v3239_v21 = vld [vmem:[#allocation2 + $0x288] sm:$0xff] }
 0x30d   :  { %9010 = vst [vmem:[#allocation57_spill] sm:$0xff] %v6353_v50  ;;  %v3238_v50 = vld [vmem:[#allocation2 + $0x280] sm:$0xff] }
 0x30e   :  { %9011 = vst [vmem:[#allocation58_spill] sm:$0xff] %v6357_v28  ;;  %v9043_v28 = vld [vmem:[#allocation16_spill] sm:$0xff] }
 0x30f   :  { %9012 = vst [vmem:[#allocation59_spill] sm:$0xff] %v6361_v29  ;;  %v3235_v29 = vld [vmem:[#allocation2 + $0x268] sm:$0xff] }
 0x310   :  { %9013 = vst [vmem:[#allocation60_spill] sm:$0xff] %v6365_v30  ;;  %v3234_v30 = vld [vmem:[#allocation2 + $0x260] sm:$0xff] }
 0x311   :  { %9014 = vst [vmem:[#allocation61_spill] sm:$0xff] %v6369_v35  ;;  %v9024_v35 = vld [vmem:[#allocation8_spill] sm:$0xff] }
 0x312   :  { %9015 = vst [vmem:[#allocation62_spill] sm:$0xff] %v6373_v36  ;;  %v6393_v60 = vadd.f32 %v6191_v38, %v9024_v35  ;;  %v9026_v36 = vld [vmem:[#allocation9_spill] sm:$0xff] }
 0x313   :  { %9017 = vst [vmem:[#allocation4_spill] sm:$0xff] %v6377_v44  ;;  %v6397_v62 = vadd.f32 %v6191_v38, %v9026_v36  ;;  %v6417_v36 = vadd.f32 %v6191_v38, %v6150_v16  ;;  %v9036_v44 = vld [vmem:[#allocation13_spill] sm:$0xff]  ;;  %v6433_v16 = vadd.f32 %v6191_v38, %v6162_v27  ;;  %v6449_v27 = vadd.f32 %v6191_v38, %v6174_v18 }
 0x314   :  { %9019 = vst [vmem:[#allocation5_spill] sm:$0xff] %v6381_v45  ;;  %v9029_v45 = vld [vmem:[#allocation10_spill] sm:$0xff] }
 0x315   :  { %9021 = vst [vmem:[#allocation6_spill] sm:$0xff] %v6385_v46  ;;  %v6405_v4 = vadd.f32 %v6191_v38, %v9029_v45  ;;  %v9031_v46 = vld [vmem:[#allocation11_spill] sm:$0xff]  ;;  %v6421_v45 = vadd.f32 %v6191_v38, %v9036_v44  ;;  %v6437_v44 = vadd.f32 %v6191_v38, %v9043_v28  ;;  %v6453_v28 = vadd.f32 %v6191_v38, %v6177_v52 }
 0x316   :  { %9023 = vst [vmem:[#allocation7_spill] sm:$0xff] %v6389_v55  ;;  %v6409_v13 = vadd.f32 %v6191_v38, %v9031_v46  ;;  %v9033_v55 = vld [vmem:[#allocation12_spill] sm:$0xff] }
 0x317   :  { %9025 = vst [vmem:[#allocation8_spill] sm:$0xff] %v6393_v60  ;;  %v6413_v35 = vadd.f32 %v6191_v38, %v9033_v55  ;;  %v3229_v60 = vld [vmem:[#allocation2 + $0x238] sm:$0xff] }
 0x318   :  { %9027 = vst [vmem:[#allocation9_spill] sm:$0xff] %v6397_v62  ;;  %v3228_v62 = vld [vmem:[#allocation2 + $0x230] sm:$0xff]  ;;  %v6471_v52 = vmul.f32 %v3229_v60, %v5992_v15  ;;  %v6489_v60 = vmul.f32 %v3235_v29, %v5992_v15  ;;  %v3254_v29 = vld [vmem:[#allocation2 + $0x300] sm:$0xff] }
 0x319   :  { %9028 = vst [vmem:[#allocation63_spill] sm:$0xff] %v6401_v3  ;;  %v3231_v3 = vld [vmem:[#allocation2 + $0x248] sm:$0xff]  ;;  %v6468_v12 = vmul.f32 %v3228_v62, %v5992_v15  ;;  %v6486_v62 = vmul.f32 %v3234_v30, %v5992_v15  ;;  %v3252_v30 = vld [vmem:[#allocation2 + $0x2f0] sm:$0xff] }
 0x31a   :  { %9030 = vst [vmem:[#allocation10_spill] sm:$0xff] %v6405_v4  ;;  %v9038_v4 = vld [vmem:[#allocation14_spill] sm:$0xff] }
 0x31b   :  { %9032 = vst [vmem:[#allocation11_spill] sm:$0xff] %v6409_v13  ;;  %v6425_v46 = vadd.f32 %v6191_v38, %v9038_v4  ;;  %v9040_v13 = vld [vmem:[#allocation15_spill] sm:$0xff] }
 0x31c   :  { %9034 = vst [vmem:[#allocation12_spill] sm:$0xff] %v6413_v35  ;;  %v6429_v55 = vadd.f32 %v6191_v38, %v9040_v13  ;;  %v3233_v35 = vld [vmem:[#allocation2 + $0x258] sm:$0xff] }
 0x31d   :  { %9035 = vst [vmem:[#allocation64_spill] sm:$0xff] %v6417_v36  ;;  %v3232_v36 = vld [vmem:[#allocation2 + $0x250] sm:$0xff]  ;;  %v6483_v11 = vmul.f32 %v3233_v35, %v5992_v15  ;;  %v6501_v35 = vmul.f32 %v3239_v21, %v5992_v15  ;;  %v3258_v21 = vld [vmem:[#allocation2 + $0x320] sm:$0xff] }
 0x31e   :  { %9037 = vst [vmem:[#allocation13_spill] sm:$0xff] %v6421_v45  ;;  %v9045_v45 = vld [vmem:[#allocation17_spill] sm:$0xff] }
 0x31f   :  { %9039 = vst [vmem:[#allocation14_spill] sm:$0xff] %v6425_v46  ;;  %v6441_v4 = vadd.f32 %v6191_v38, %v9045_v45  ;;  %v9047_v46 = vld [vmem:[#allocation18_spill] sm:$0xff]  ;;  %v6457_v45 = vadd.f32 %v6191_v38, %v6180_v23  ;;  %v6474_v23 = vmul.f32 %v3230_v22, %v5992_v15  ;;  %v3248_v22 = vld [vmem:[#allocation2 + $0x2d0] sm:$0xff] }
 0x320   :  { %9041 = vst [vmem:[#allocation15_spill] sm:$0xff] %v6429_v55  ;;  %v6445_v13 = vadd.f32 %v6191_v38, %v9047_v46  ;;  %v3237_v55 = vld [vmem:[#allocation2 + $0x278] sm:$0xff]  ;;  %v6528_v17 = vmul.f32 %v3248_v22, %v5992_v15  ;;  %v6546_v22 = vmul.f32 %v3254_v29, %v5992_v15 }
 0x321   :  { %9042 = vst [vmem:[#allocation65_spill] sm:$0xff] %v6433_v16  ;;  %v3236_v16 = vld [vmem:[#allocation2 + $0x270] sm:$0xff]  ;;  %v6495_v8 = vmul.f32 %v3237_v55, %v5992_v15  ;;  %v6513_v55 = vmul.f32 %v3243_v19, %v5992_v15  ;;  %v3262_v19 = vld [vmem:[#allocation2 + $0x340] sm:$0xff]  ;;  %v3269_v29 = vld [vmem:[#allocation2 + $0x378] sm:$0xff] }
 0x322   :  { %9044 = vst [vmem:[#allocation16_spill] sm:$0xff] %v6437_v44  ;;  %v3241_v44 = vld [vmem:[#allocation2 + $0x298] sm:$0xff]  ;;  %v6492_v2 = vmul.f32 %v3236_v16, %v5992_v15  ;;  %v6510_v16 = vmul.f32 %v3242_v20, %v5992_v15  ;;  %v3260_v20 = vld [vmem:[#allocation2 + $0x330] sm:$0xff]  ;;  %v6591_v9 = vmul.f32 %v3269_v29, %v5992_v15 }
 0x323   :  { %9046 = vst [vmem:[#allocation17_spill] sm:$0xff] %v6441_v4  ;;  %v9052_v4 = vld [vmem:[#allocation19_spill] sm:$0xff]  ;;  %v6507_v58 = vmul.f32 %v3241_v44, %v5992_v15  ;;  %v6564_v0 = vmul.f32 %v3260_v20, %v5992_v15 }
 0x324   :  { %9048 = vst [vmem:[#allocation18_spill] sm:$0xff] %v6445_v13  ;;  %v6461_v46 = vadd.f32 %v6191_v38, %v9052_v4  ;;  %v9054_v13 = vld [vmem:[#allocation20_spill] sm:$0xff]  ;;  %v6477_v4 = vmul.f32 %v3231_v3, %v5992_v15  ;;  %v3250_v3 = vld [vmem:[#allocation2 + $0x2e0] sm:$0xff] }
 0x325   :  { %9049 = vst [vmem:[#allocation66_spill] sm:$0xff] %v6449_v27  ;;  %v6465_v18 = vadd.f32 %v6191_v38, %v9054_v13  ;;  %v3240_v27 = vld [vmem:[#allocation2 + $0x290] sm:$0xff]  ;;  %v3246_v13 = vld [vmem:[#allocation2 + $0x2c0] sm:$0xff] }
 0x326   :  { %9050 = vst [vmem:[#allocation67_spill] sm:$0xff] %v6453_v28  ;;  %v6480_v28 = vmul.f32 %v3232_v36, %v5992_v15  ;;  %v6498_v36 = vmul.f32 %v3238_v50, %v5992_v15  ;;  %v6504_v59 = vmul.f32 %v3240_v27, %v5992_v15  ;;  %v3256_v50 = vld [vmem:[#allocation2 + $0x310] sm:$0xff]  ;;  %v6522_v27 = vmul.f32 %v3246_v13, %v5992_v15  ;;  %v3263_v13 = vld [vmem:[#allocation2 + $0x348] sm:$0xff] }
 0x327   :  { %9051 = vst [vmem:[#allocation68_spill] sm:$0xff] %v6457_v45  ;;  %v3245_v45 = vld [vmem:[#allocation2 + $0x2b8] sm:$0xff]  ;;  %v6573_v57 = vmul.f32 %v3263_v13, %v5992_v15  ;;  %v6588_v13 = vmul.f32 %v3268_v33, %v5992_v15  ;;  %v6606_v33 = vmul.f32 %v3274_v34, %v5992_v15  ;;  %v3284_v34 = vld [vmem:[#allocation2 + $0x3f0] sm:$0xff] }
 0x328   :  { %9053 = vst [vmem:[#allocation19_spill] sm:$0xff] %v6461_v46  ;;  %v3244_v46 = vld [vmem:[#allocation2 + $0x2b0] sm:$0xff]  ;;  %v6519_v49 = vmul.f32 %v3245_v45, %v5992_v15  ;;  %v6537_v45 = vmul.f32 %v3251_v7, %v5992_v15  ;;  %v6552_v7 = vmul.f32 %v3256_v50, %v5992_v15  ;;  %v6570_v50 = vmul.f32 %v3262_v19, %v5992_v15  ;;  %v3275_v19 = vld [vmem:[#allocation2 + $0x3a8] sm:$0xff] }
 0x329   :  { %9055 = vst [vmem:[#allocation20_spill] sm:$0xff] %v6465_v18  ;;  %v3247_v18 = vld [vmem:[#allocation2 + $0x2c8] sm:$0xff]  ;;  %v6516_v51 = vmul.f32 %v3244_v46, %v5992_v15  ;;  %v6534_v46 = vmul.f32 %v3250_v3, %v5992_v15  ;;  %v3266_v3 = vld [vmem:[#allocation2 + $0x360] sm:$0xff]  ;;  %v6609_v29 = vmul.f32 %v3275_v19, %v5992_v15 }
 0x32a   :  { %v6525_v44 = vmul.f32 %v3247_v18, %v5992_v15  ;;  %v6540_v18 = vmul.f32 %v3252_v30, %v5992_v15  ;;  %v6558_v30 = vmul.f32 %v3258_v21, %v5992_v15  ;;  %v3272_v21 = vld [vmem:[#allocation2 + $0x390] sm:$0xff]  ;;  %9056 = vst [vmem:[#allocation69_spill] sm:$0xff] %v6579_v39  ;;  %v6582_v20 = vmul.f32 %v3266_v3, %v5992_v15  ;;  %v3278_v3 = vld [vmem:[#allocation2 + $0x3c0] sm:$0xff] }
 0x32b   :  { %9058 = vst [vmem:[#allocation71_spill] sm:$0xff] %v6585_v47  ;;  %v3280_v39 = vld [vmem:[#allocation2 + $0x3d0] sm:$0xff]  ;;  %v6600_v63 = vmul.f32 %v3272_v21, %v5992_v15  ;;  %v6603_v47 = vmul.f32 %v3273_v24, %v5992_v15  ;;  %v6618_v21 = vmul.f32 %v3278_v3, %v5992_v15  ;;  %v6636_v3 = vmul.f32 %v3284_v34, %v5992_v15 }
 0x32c   :  { %9057 = vst [vmem:[#allocation70_spill] sm:$0xff] %v6582_v20  ;;  %v3279_v20 = vld [vmem:[#allocation2 + $0x3c8] sm:$0xff]  ;;  %v6624_v19 = vmul.f32 %v3280_v39, %v5992_v15  ;;  %v6647_v39 = vadd.f32 %v6197_v48, %v6191_v38  ;;  %v6667_v48 = vadd.f32 %v6468_v12, %v6191_v38  ;;  %v6687_v12 = vadd.f32 %v6483_v11, %v6191_v38 }
 0x32d   :  { %9059 = vst [vmem:[#allocation72_spill] sm:$0xff] %v6591_v9  ;;  %v3283_v9 = vld [vmem:[#allocation2 + $0x3e8] sm:$0xff]  ;;  %v6621_v24 = vmul.f32 %v3279_v20, %v5992_v15  ;;  %v6707_v11 = vadd.f32 %v6498_v36, %v6191_v38  ;;  %v6727_v36 = vadd.f32 %v6513_v55, %v6191_v38  ;;  %v6747_v55 = vadd.f32 %v6528_v17, %v6191_v38 }
 0x32e   :  { %9060 = vst [vmem:[#allocation73_spill] sm:$0xff] %v6594_v42  ;;  %v3282_v42 = vld [vmem:[#allocation2 + $0x3e0] sm:$0xff]  ;;  %v6767_v17 = vadd.f32 %v6543_v40, %v6191_v38  ;;  %v6787_v40 = vadd.f32 %v6558_v30, %v6191_v38  ;;  %v6807_v30 = vadd.f32 %v6573_v57, %v6191_v38  ;;  %v6827_v57 = vadd.f32 %v6588_v13, %v6191_v38 }
 0x32f   :  { %9061 = vst [vmem:[#allocation74_spill] sm:$0xff] %v6597_v41  ;;  %v6615_v41 = vmul.f32 %v3277_v14, %v5992_v15  ;;  %v6630_v37 = vmul.f32 %v3282_v42, %v5992_v15  ;;  %v6633_v14 = vmul.f32 %v3283_v9, %v5992_v15  ;;  %v6651_v42 = vadd.f32 %v6200_v54, %v6191_v38 }
 0x330   :  { %9062 = vst [vmem:[#allocation75_spill] sm:$0xff] %v6606_v33  ;;  %v3285_v33 = vld [vmem:[#allocation2 + $0x3f8] sm:$0xff]  ;;  %v6655_v9 = vadd.f32 %v6203_v61, %v6191_v38  ;;  %v6671_v54 = vadd.f32 %v6471_v52, %v6191_v38  ;;  %v6675_v61 = vadd.f32 %v6474_v23, %v6191_v38  ;;  %v6691_v52 = vadd.f32 %v6486_v62, %v6191_v38 }
 0x331   :  { %9063 = vst [vmem:[#allocation76_spill] sm:$0xff] %v6609_v29  ;;  %v6627_v29 = vmul.f32 %v3281_v31, %v5992_v15  ;;  %v6639_v20 = vmul.f32 %v3285_v33, %v5992_v15  ;;  %v6659_v33 = vadd.f32 %v6206_v5, %v6191_v38  ;;  %v6679_v5 = vadd.f32 %v6477_v4, %v6191_v38  ;;  %v9108_v31 = vld [vmem:[#allocation69_spill] sm:$0xff] }
 0x332   :  { %9064 = vst [vmem:[#allocation77_spill] sm:$0xff] %v6621_v24  ;;  %v6643_v24 = vadd.f32 %v6194_v53, %v6191_v38  ;;  %v6663_v53 = vadd.f32 %v6209_v6, %v6191_v38  ;;  %v6683_v6 = vadd.f32 %v6480_v28, %v6191_v38  ;;  %v6695_v23 = vadd.f32 %v6489_v60, %v6191_v38  ;;  %v9112_v15 = vld [vmem:[#allocation71_spill] sm:$0xff] }
 0x333   :  { %9066 = vst [vmem:[#allocation79_spill] sm:$0xff] %v6647_v39  ;;  %v6699_v4 = vadd.f32 %v6492_v2, %v6191_v38  ;;  %v6703_v28 = vadd.f32 %v6495_v8, %v6191_v38  ;;  %v6711_v62 = vadd.f32 %v6501_v35, %v6191_v38  ;;  %v6715_v60 = vadd.f32 %v6504_v59, %v6191_v38  ;;  %v9110_v34 = vld [vmem:[#allocation70_spill] sm:$0xff]  ;;  %v3520_v39 = vld [vmem:[#allocation2 + $0x550] sm:$0xff] }
 0x334   :  { %9065 = vst [vmem:[#allocation78_spill] sm:$0xff] %v6643_v24  ;;  %v6719_v2 = vadd.f32 %v6507_v58, %v6191_v38  ;;  %v6723_v8 = vadd.f32 %v6510_v16, %v6191_v38  ;;  %v6731_v35 = vadd.f32 %v6516_v51, %v6191_v38  ;;  %v6735_v59 = vadd.f32 %v6519_v49, %v6191_v38  ;;  %v3521_v24 = vld [vmem:[#allocation2 + $0x558] sm:$0xff] }
 0x335   :  { %9067 = vst [vmem:[#allocation80_spill] sm:$0xff] %v6651_v42  ;;  %v6739_v58 = vadd.f32 %v6522_v27, %v6191_v38  ;;  %v6743_v16 = vadd.f32 %v6525_v44, %v6191_v38  ;;  %v6751_v51 = vadd.f32 %v6531_v43, %v6191_v38  ;;  %v6755_v49 = vadd.f32 %v6534_v46, %v6191_v38 }
 0x336   :  { %9068 = vst [vmem:[#allocation81_spill] sm:$0xff] %v6655_v9  ;;  %v6759_v27 = vadd.f32 %v6537_v45, %v6191_v38  ;;  %v6763_v44 = vadd.f32 %v6540_v18, %v6191_v38  ;;  %v6771_v43 = vadd.f32 %v6546_v22, %v6191_v38  ;;  %v6775_v46 = vadd.f32 %v6549_v10, %v6191_v38 }
 0x337   :  { %9069 = vst [vmem:[#allocation82_spill] sm:$0xff] %v6659_v33  ;;  %v6779_v45 = vadd.f32 %v6552_v7, %v6191_v38  ;;  %v6783_v18 = vadd.f32 %v6555_v32, %v6191_v38  ;;  %v6791_v22 = vadd.f32 %v6561_v1, %v6191_v38  ;;  %v6795_v10 = vadd.f32 %v6564_v0, %v6191_v38  ;;  %v3517_v33 = vld [vmem:[#allocation2 + $0x538] sm:$0xff] }
 0x338   :  { %9070 = vst [vmem:[#allocation83_spill] sm:$0xff] %v6663_v53  ;;  %v6799_v7 = vadd.f32 %v6567_v25, %v6191_v38  ;;  %v6803_v32 = vadd.f32 %v6570_v50, %v6191_v38  ;;  %v6811_v1 = vadd.f32 %v6576_v56, %v6191_v38  ;;  %v6815_v0 = vadd.f32 %v9108_v31, %v6191_v38 }
 0x339   :  { %9071 = vst [vmem:[#allocation84_spill] sm:$0xff] %v6667_v48  ;;  %v6819_v25 = vadd.f32 %v9110_v34, %v6191_v38  ;;  %v6823_v50 = vadd.f32 %v9112_v15, %v6191_v38  ;;  %v6843_v15 = vadd.f32 %v6600_v63, %v6191_v38  ;;  %v6847_v13 = vadd.f32 %v6603_v47, %v6191_v38 }
 0x33a   :  { %9072 = vst [vmem:[#allocation85_spill] sm:$0xff] %v6671_v54  ;;  %v6863_v63 = vadd.f32 %v6615_v41, %v6191_v38  ;;  %v6867_v47 = vadd.f32 %v6618_v21, %v6191_v38  ;;  %v6883_v41 = vadd.f32 %v6630_v37, %v6191_v38  ;;  %v6887_v21 = vadd.f32 %v6633_v14, %v6191_v38  ;;  %v3515_v54 = vld [vmem:[#allocation2 + $0x528] sm:$0xff]  ;;  %v3532_v14 = vld [vmem:[#allocation2 + $0x5b0] sm:$0xff]  ;;  %v3533_v37 = vld [vmem:[#allocation2 + $0x5b8] sm:$0xff] }
 0x33b   :  { %9073 = vst [vmem:[#allocation86_spill] sm:$0xff] %v6675_v61  ;;  %v3513_v61 = vld [vmem:[#allocation2 + $0x518] sm:$0xff] }
 0x33c   :  { %9074 = vst [vmem:[#allocation87_spill] sm:$0xff] %v6679_v5 }
 0x33d   :  { %9075 = vst [vmem:[#allocation88_spill] sm:$0xff] %v6683_v6 }
 0x33e   :  { %9076 = vst [vmem:[#allocation89_spill] sm:$0xff] %v6687_v12  ;;  %v3511_v12 = vld [vmem:[#allocation2 + $0x508] sm:$0xff] }
 0x33f   :  { %9077 = vst [vmem:[#allocation90_spill] sm:$0xff] %v6691_v52  ;;  %v3509_v52 = vld [vmem:[#allocation2 + $0x4f8] sm:$0xff] }
 0x340   :  { %9078 = vst [vmem:[#allocation91_spill] sm:$0xff] %v6695_v23 }
 0x341   :  { %9079 = vst [vmem:[#allocation92_spill] sm:$0xff] %v6699_v4 }
 0x342   :  { %9080 = vst [vmem:[#allocation93_spill] sm:$0xff] %v6703_v28  ;;  %v3507_v28 = vld [vmem:[#allocation2 + $0x4e8] sm:$0xff] }
 0x343   :  { %9081 = vst [vmem:[#allocation94_spill] sm:$0xff] %v6707_v11  ;;  %v3505_v11 = vld [vmem:[#allocation2 + $0x4d8] sm:$0xff] }
 0x344   :  { %9082 = vst [vmem:[#allocation95_spill] sm:$0xff] %v6711_v62 }
 0x345   :  { %9083 = vst [vmem:[#allocation96_spill] sm:$0xff] %v6715_v60 }
 0x346   :  { %9084 = vst [vmem:[#allocation97_spill] sm:$0xff] %v6719_v2  ;;  %v3482_v2 = vld [vmem:[#allocation2 + $0x420] sm:$0xff] }
 0x347   :  { %9085 = vst [vmem:[#allocation98_spill] sm:$0xff] %v6723_v8  ;;  %v3492_v8 = vld [vmem:[#allocation2 + $0x470] sm:$0xff] }
 0x348   :  { %9086 = vst [vmem:[#allocation99_spill] sm:$0xff] %v6727_v36  ;;  %v3488_v36 = vld [vmem:[#allocation2 + $0x450] sm:$0xff] }
 0x349   :  { %9087 = vst [vmem:[#allocation100_spill] sm:$0xff] %v6731_v35  ;;  %v3499_v35 = vld [vmem:[#allocation2 + $0x4a8] sm:$0xff] }
 0x34a   :  { %9088 = vst [vmem:[#allocation101_spill] sm:$0xff] %v6735_v59 }
 0x34b   :  { %9089 = vst [vmem:[#allocation102_spill] sm:$0xff] %v6739_v58 }
 0x34c   :  { %9090 = vst [vmem:[#allocation103_spill] sm:$0xff] %v6743_v16  ;;  %v3480_v16 = vld [vmem:[#allocation2 + $0x410] sm:$0xff] }
 0x34d   :  { %9091 = vst [vmem:[#allocation104_spill] sm:$0xff] %v6747_v55 }
 0x34e   :  { %9092 = vst [vmem:[#allocation105_spill] sm:$0xff] %v6751_v51  ;;  %v3503_v51 = vld [vmem:[#allocation2 + $0x4c8] sm:$0xff] }
 0x34f   :  { %9093 = vst [vmem:[#allocation106_spill] sm:$0xff] %v6755_v49  ;;  %v3478_v49 = vld [vmem:[#allocation2 + $0x400] sm:$0xff] }
 0x350   :  { %9094 = vst [vmem:[#allocation107_spill] sm:$0xff] %v6759_v27  ;;  %v3501_v27 = vld [vmem:[#allocation2 + $0x4b8] sm:$0xff] }
 0x351   :  { %9095 = vst [vmem:[#allocation108_spill] sm:$0xff] %v6763_v44  ;;  %v3491_v44 = vld [vmem:[#allocation2 + $0x468] sm:$0xff] }
 0x352   :  { %9096 = vst [vmem:[#allocation109_spill] sm:$0xff] %v6767_v17  ;;  %v9216_v17 = vld [vmem:[#allocation3_spill] sm:$0xff] }
 0x353   :  { %9097 = vst [vmem:[#allocation110_spill] sm:$0xff] %v6771_v43  ;;  %v7032_v43 = vmul.f32 %v3480_v16, %v9216_v17  ;;  %v7038_v59 = vmul.f32 %v3482_v2, %v9216_v17  ;;  %v3500_v2 = vld [vmem:[#allocation2 + $0x4b0] sm:$0xff]  ;;  %v7056_v58 = vmul.f32 %v3488_v36, %v9216_v17  ;;  %v7068_v4 = vmul.f32 %v3492_v8, %v9216_v17 }
 0x354   :  { %9098 = vst [vmem:[#allocation111_spill] sm:$0xff] %v6775_v46  ;;  %v3481_v46 = vld [vmem:[#allocation2 + $0x418] sm:$0xff]  ;;  %v7092_v48 = vmul.f32 %v3500_v2, %v9216_v17  ;;  %v7095_v53 = vmul.f32 %v3501_v27, %v9216_v17  ;;  %v7107_v42 = vmul.f32 %v3505_v11, %v9216_v17  ;;  %v7113_v27 = vmul.f32 %v3507_v28, %v9216_v17 }
 0x355   :  { %9099 = vst [vmem:[#allocation112_spill] sm:$0xff] %v6779_v45  ;;  %v3495_v45 = vld [vmem:[#allocation2 + $0x488] sm:$0xff]  ;;  %v7125_v11 = vmul.f32 %v3511_v12, %v9216_v17 }
 0x356   :  { %9100 = vst [vmem:[#allocation113_spill] sm:$0xff] %v6783_v18  ;;  %v7035_v18 = vmul.f32 %v3481_v46, %v9216_v17 }
 0x357   :  { %9101 = vst [vmem:[#allocation114_spill] sm:$0xff] %v6787_v40  ;;  %v3479_v40 = vld [vmem:[#allocation2 + $0x408] sm:$0xff] }
 0x358   :  { %9102 = vst [vmem:[#allocation115_spill] sm:$0xff] %v6791_v22  ;;  %v3489_v22 = vld [vmem:[#allocation2 + $0x458] sm:$0xff]  ;;  %v7029_v55 = vmul.f32 %v3479_v40, %v9216_v17  ;;  %v3498_v40 = vld [vmem:[#allocation2 + $0x4a0] sm:$0xff] }
 0x359   :  { %9103 = vst [vmem:[#allocation116_spill] sm:$0xff] %v6795_v10  ;;  %v7059_v62 = vmul.f32 %v3489_v22, %v9216_v17  ;;  %v7077_v22 = vmul.f32 %v3495_v45, %v9216_v17  ;;  %v7086_v8 = vmul.f32 %v3498_v40, %v9216_v17  ;;  %v3514_v45 = vld [vmem:[#allocation2 + $0x520] sm:$0xff]  ;;  %v3516_v40 = vld [vmem:[#allocation2 + $0x530] sm:$0xff] }
 0x35a   :  { %9104 = vst [vmem:[#allocation117_spill] sm:$0xff] %v6799_v7  ;;  %v3484_v7 = vld [vmem:[#allocation2 + $0x430] sm:$0xff]  ;;  %v7140_v12 = vmul.f32 %v3516_v40, %v9216_v17 }
 0x35b   :  { %9105 = vst [vmem:[#allocation118_spill] sm:$0xff] %v6803_v32  ;;  %v3487_v32 = vld [vmem:[#allocation2 + $0x448] sm:$0xff]  ;;  %v7044_v10 = vmul.f32 %v3484_v7, %v9216_v17 }
 0x35c   :  { %9106 = vst [vmem:[#allocation119_spill] sm:$0xff] %v6807_v30  ;;  %v9115_v30 = vld [vmem:[#allocation72_spill] sm:$0xff]  ;;  %v7053_v46 = vmul.f32 %v3487_v32, %v9216_v17  ;;  %v3506_v32 = vld [vmem:[#allocation2 + $0x4e0] sm:$0xff] }
 0x35d   :  { %9107 = vst [vmem:[#allocation120_spill] sm:$0xff] %v6811_v1  ;;  %v6831_v56 = vadd.f32 %v9115_v30, %v6191_v38  ;;  %v9117_v1 = vld [vmem:[#allocation73_spill] sm:$0xff]  ;;  %v7110_v2 = vmul.f32 %v3506_v32, %v9216_v17  ;;  %v3522_v32 = vld [vmem:[#allocation2 + $0x560] sm:$0xff] }
 0x35e   :  { %9109 = vst [vmem:[#allocation69_spill] sm:$0xff] %v6815_v0  ;;  %v6835_v31 = vadd.f32 %v9117_v1, %v6191_v38  ;;  %v9119_v0 = vld [vmem:[#allocation74_spill] sm:$0xff]  ;;  %v7158_v40 = vmul.f32 %v3522_v32, %v9216_v17  ;;  %v3534_v32 = vld [vmem:[#allocation2 + $0x5c0] sm:$0xff] }
 0x35f   :  { %9111 = vst [vmem:[#allocation70_spill] sm:$0xff] %v6819_v25  ;;  %v6839_v34 = vadd.f32 %v9119_v0, %v6191_v38  ;;  %v6859_v0 = vadd.f32 %v6612_v26, %v6191_v38  ;;  %v6879_v26 = vadd.f32 %v6627_v29, %v6191_v38  ;;  %v7143_v29 = vmul.f32 %v3517_v33, %v9216_v17 }
 0x360   :  { %9113 = vst [vmem:[#allocation71_spill] sm:$0xff] %v6823_v50  ;;  %v3486_v50 = vld [vmem:[#allocation2 + $0x440] sm:$0xff] }
 0x361   :  { %9114 = vst [vmem:[#allocation121_spill] sm:$0xff] %v6827_v57  ;;  %v9123_v57 = vld [vmem:[#allocation75_spill] sm:$0xff]  ;;  %v7050_v16 = vmul.f32 %v3486_v50, %v9216_v17  ;;  %v3504_v50 = vld [vmem:[#allocation2 + $0x4d0] sm:$0xff] }
 0x362   :  { %9116 = vst [vmem:[#allocation72_spill] sm:$0xff] %v6831_v56  ;;  %v6851_v30 = vadd.f32 %v9123_v57, %v6191_v38  ;;  %v9125_v56 = vld [vmem:[#allocation76_spill] sm:$0xff]  ;;  %v7104_v9 = vmul.f32 %v3504_v50, %v9216_v17 }
 0x363   :  { %9118 = vst [vmem:[#allocation73_spill] sm:$0xff] %v6835_v31  ;;  %v6855_v1 = vadd.f32 %v9125_v56, %v6191_v38  ;;  %v6875_v56 = vadd.f32 %v6624_v19, %v6191_v38  ;;  %v6895_v19 = vadd.f32 %v6639_v20, %v6191_v38  ;;  %v3483_v31 = vld [vmem:[#allocation2 + $0x428] sm:$0xff]  ;;  %v3529_v20 = vld [vmem:[#allocation2 + $0x598] sm:$0xff] }
 0x364   :  { %9120 = vst [vmem:[#allocation74_spill] sm:$0xff] %v6839_v34  ;;  %v3493_v34 = vld [vmem:[#allocation2 + $0x478] sm:$0xff]  ;;  %v7041_v60 = vmul.f32 %v3483_v31, %v9216_v17  ;;  %v3502_v31 = vld [vmem:[#allocation2 + $0x4c0] sm:$0xff] }
 0x365   :  { %9121 = vst [vmem:[#allocation122_spill] sm:$0xff] %v6843_v15  ;;  %v3490_v15 = vld [vmem:[#allocation2 + $0x460] sm:$0xff]  ;;  %v7071_v23 = vmul.f32 %v3493_v34, %v9216_v17  ;;  %v7089_v34 = vmul.f32 %v3499_v35, %v9216_v17 }
 0x366   :  { %9122 = vst [vmem:[#allocation123_spill] sm:$0xff] %v6847_v13  ;;  %v9130_v13 = vld [vmem:[#allocation77_spill] sm:$0xff]  ;;  %v7062_v7 = vmul.f32 %v3490_v15, %v9216_v17  ;;  %v3518_v35 = vld [vmem:[#allocation2 + $0x540] sm:$0xff] }
 0x367   :  { %9124 = vst [vmem:[#allocation75_spill] sm:$0xff] %v6851_v30  ;;  %v6871_v57 = vadd.f32 %v9130_v13, %v6191_v38  ;;  %v6891_v13 = vadd.f32 %v6636_v3, %v6191_v38  ;;  %v3485_v30 = vld [vmem:[#allocation2 + $0x438] sm:$0xff]  ;;  %v3508_v15 = vld [vmem:[#allocation2 + $0x4f0] sm:$0xff]  ;;  %v7119_v38 = vmul.f32 %v3509_v52, %v9216_v17  ;;  %v7137_v52 = vmul.f32 %v3515_v54, %v9216_v17 }
 0x368   :  { %9126 = vst [vmem:[#allocation76_spill] sm:$0xff] %v6855_v1  ;;  %v7026_v1 = vmul.f32 %v3478_v49, %v9216_v17  ;;  %v3496_v49 = vld [vmem:[#allocation2 + $0x490] sm:$0xff]  ;;  %v7047_v25 = vmul.f32 %v3485_v30, %v9216_v17  ;;  %v7065_v30 = vmul.f32 %v3491_v44, %v9216_v17  ;;  %v3510_v44 = vld [vmem:[#allocation2 + $0x500] sm:$0xff]  ;;  %v7152_v54 = vmul.f32 %v3520_v39, %v9216_v17 }
 0x369   :  { %9127 = vst [vmem:[#allocation124_spill] sm:$0xff] %v6859_v0  ;;  %v3494_v0 = vld [vmem:[#allocation2 + $0x480] sm:$0xff]  ;;  %v7080_v6 = vmul.f32 %v3496_v49, %v9216_v17  ;;  %v7098_v49 = vmul.f32 %v3502_v31, %v9216_v17  ;;  %v3519_v31 = vld [vmem:[#allocation2 + $0x548] sm:$0xff]  ;;  %v7122_v50 = vmul.f32 %v3510_v44, %v9216_v17  ;;  %v3524_v3 = vld [vmem:[#allocation2 + $0x570] sm:$0xff] }
 0x36a   :  { %9128 = vst [vmem:[#allocation125_spill] sm:$0xff] %v6863_v63  ;;  %v7074_v36 = vmul.f32 %v3494_v0, %v9216_v17  ;;  %v3512_v0 = vld [vmem:[#allocation2 + $0x510] sm:$0xff]  ;;  %v3523_v63 = vld [vmem:[#allocation2 + $0x568] sm:$0xff]  ;;  %v3525_v44 = vld [vmem:[#allocation2 + $0x578] sm:$0xff] }
 0x36b   :  { %9129 = vst [vmem:[#allocation126_spill] sm:$0xff] %v6867_v47  ;;  %v7128_v28 = vmul.f32 %v3512_v0, %v9216_v17  ;;  %v7146_v0 = vmul.f32 %v3518_v35, %v9216_v17  ;;  %v7155_v47 = vmul.f32 %v3521_v24, %v9216_v17  ;;  %v7161_v33 = vmul.f32 %v3523_v63, %v9216_v17  ;;  %v3531_v35 = vld [vmem:[#allocation2 + $0x5a8] sm:$0xff] }
 0x36c   :  { %9131 = vst [vmem:[#allocation77_spill] sm:$0xff] %v6871_v57  ;;  %v3527_v57 = vld [vmem:[#allocation2 + $0x588] sm:$0xff] }
 0x36d   :  { %9132 = vst [vmem:[#allocation127_spill] sm:$0xff] %v6875_v56  ;;  %v7173_v24 = vmul.f32 %v3527_v57, %v9216_v17  ;;  %v3535_v56 = vld [vmem:[#allocation2 + $0x5c8] sm:$0xff]  ;;  %v7188_v57 = vmul.f32 %v3532_v14, %v9216_v17 }
 0x36e   :  { %9133 = vst [vmem:[#allocation128_spill] sm:$0xff] %v6879_v26  ;;  %v7167_v26 = vmul.f32 %v3525_v44, %v9216_v17  ;;  %v7185_v44 = vmul.f32 %v3531_v35, %v9216_v17 }
 0x36f   :  { %9134 = vst [vmem:[#allocation129_spill] sm:$0xff] %v6883_v41  ;;  %v3526_v41 = vld [vmem:[#allocation2 + $0x580] sm:$0xff] }
 0x370   :  { %9135 = vst [vmem:[#allocation130_spill] sm:$0xff] %v6887_v21  ;;  %v7131_v21 = vmul.f32 %v3513_v61, %v9216_v17  ;;  %v7149_v61 = vmul.f32 %v3519_v31, %v9216_v17  ;;  %v7164_v31 = vmul.f32 %v3524_v3, %v9216_v17  ;;  %v7170_v39 = vmul.f32 %v3526_v41, %v9216_v17  ;;  %v3537_v41 = vld [vmem:[#allocation2 + $0x5d8] sm:$0xff] }
 0x371   :  { %9136 = vst [vmem:[#allocation131_spill] sm:$0xff] %v6891_v13  ;;  %v3530_v13 = vld [vmem:[#allocation2 + $0x5a0] sm:$0xff] }
 0x372   :  { %9137 = vst [vmem:[#allocation132_spill] sm:$0xff] %v6895_v19  ;;  %v3497_v19 = vld [vmem:[#allocation2 + $0x498] sm:$0xff]  ;;  %v7182_v3 = vmul.f32 %v3530_v13, %v9216_v17  ;;  %v3540_v13 = vld [vmem:[#allocation2 + $0x5f0] sm:$0xff] }
 0x373   :  { %v7083_v5 = vmul.f32 %v3497_v19, %v9216_v17  ;;  %v7101_v19 = vmul.f32 %v3503_v51, %v9216_v17  ;;  %v7116_v51 = vmul.f32 %v3508_v15, %v9216_v17  ;;  %v7134_v15 = vmul.f32 %v3514_v45, %v9216_v17  ;;  %v3528_v45 = vld [vmem:[#allocation2 + $0x590] sm:$0xff]  ;;  %9217 = vst [vmem:[#allocation3_spill] sm:$0xff] %v7158_v40 }
 0x374   :  { %9218 = vst [vmem:[#allocation133_spill] sm:$0xff] %v7161_v33  ;;  %v3536_v40 = vld [vmem:[#allocation2 + $0x5d0] sm:$0xff]  ;;  %v7176_v63 = vmul.f32 %v3528_v45, %v9216_v17  ;;  %v7179_v33 = vmul.f32 %v3529_v20, %v9216_v17  ;;  %v7194_v45 = vmul.f32 %v3534_v32, %v9216_v17  ;;  %v7197_v20 = vmul.f32 %v3535_v56, %v9216_v17 }
 0x375   :  { %9219 = vst [vmem:[#allocation134_spill] sm:$0xff] %v7167_v26  ;;  %v3539_v26 = vld [vmem:[#allocation2 + $0x5e8] sm:$0xff]  ;;  %v7200_v35 = vmul.f32 %v3536_v40, %v9216_v17  ;;  %v7212_v32 = vmul.f32 %v3540_v13, %v9216_v17 }
 0x376   :  { %9220 = vst [vmem:[#allocation135_spill] sm:$0xff] %v7170_v39  ;;  %v3538_v39 = vld [vmem:[#allocation2 + $0x5e0] sm:$0xff] }
 0x377   :  { %9221 = vst [vmem:[#allocation136_spill] sm:$0xff] %v7173_v24  ;;  %v7191_v24 = vmul.f32 %v3533_v37, %v9216_v17  ;;  %v7206_v14 = vmul.f32 %v3538_v39, %v9216_v17  ;;  %v7209_v37 = vmul.f32 %v3539_v26, %v9216_v17 }
 0x378   :  { %9222 = vst [vmem:[#allocation137_spill] sm:$0xff] %v7182_v3  ;;  %v3541_v3 = vld [vmem:[#allocation2 + $0x5f8] sm:$0xff] }
 0x379   :  { %9223 = vst [vmem:[#allocation138_spill] sm:$0xff] %v7185_v44  ;;  %v7203_v44 = vmul.f32 %v3537_v41, %v9216_v17  ;;  %v7215_v56 = vmul.f32 %v3541_v3, %v9216_v17 }
 0x37a   :  { %9224 = vst [vmem:[#allocation139_spill] sm:$0xff] %v7194_v45  ;;  %v9271_v41 = vld [vmem:[#allocation3_spill] sm:$0xff] }
 0x37b   :  { %9225 = vst [vmem:[#allocation140_spill] sm:$0xff] %v7197_v20  ;;  %v9226_v20 = vld [vmem:[#allocation21_spill] sm:$0xff] }
 0x37c   :  { %v7219_v45 = vadd.f32 %v7026_v1, %v9226_v20  ;;  %v7223_v40 = vadd.f32 %v7029_v55, %v9226_v20  ;;  %v7227_v39 = vadd.f32 %v7032_v43, %v9226_v20  ;;  %v7231_v26 = vadd.f32 %v7035_v18, %v9226_v20  ;;  %v9273_v13 = vld [vmem:[#allocation133_spill] sm:$0xff] }
 0x37d   :  { %v7235_v3 = vadd.f32 %v7038_v59, %v9226_v20  ;;  %v7239_v1 = vadd.f32 %v7041_v60, %v9226_v20  ;;  %v7243_v55 = vadd.f32 %v7044_v10, %v9226_v20  ;;  %v7247_v43 = vadd.f32 %v7047_v25, %v9226_v20 }
 0x37e   :  { %9227 = vst [vmem:[#allocation21_spill] sm:$0xff] %v7219_v45  ;;  %v7251_v18 = vadd.f32 %v7050_v16, %v9226_v20  ;;  %v7255_v59 = vadd.f32 %v7053_v46, %v9226_v20  ;;  %v7259_v60 = vadd.f32 %v7056_v58, %v9226_v20  ;;  %v7263_v10 = vadd.f32 %v7059_v62, %v9226_v20 }
 0x37f   :  { %9228 = vst [vmem:[#allocation141_spill] sm:$0xff] %v7223_v40  ;;  %v7267_v25 = vadd.f32 %v7062_v7, %v9226_v20  ;;  %v7271_v16 = vadd.f32 %v7065_v30, %v9226_v20  ;;  %v7275_v46 = vadd.f32 %v7068_v4, %v9226_v20  ;;  %v7279_v58 = vadd.f32 %v7071_v23, %v9226_v20  ;;  %v3725_v40 = vld [vmem:[#allocation2 + $0x7b8] sm:$0xff] }
 0x380   :  { %9229 = vst [vmem:[#allocation142_spill] sm:$0xff] %v7227_v39  ;;  %v7283_v62 = vadd.f32 %v7074_v36, %v9226_v20  ;;  %v7287_v7 = vadd.f32 %v7077_v22, %v9226_v20  ;;  %v7291_v30 = vadd.f32 %v7080_v6, %v9226_v20  ;;  %v7295_v4 = vadd.f32 %v7083_v5, %v9226_v20  ;;  %v3724_v39 = vld [vmem:[#allocation2 + $0x7b0] sm:$0xff] }
 0x381   :  { %9230 = vst [vmem:[#allocation143_spill] sm:$0xff] %v7231_v26  ;;  %v7299_v23 = vadd.f32 %v7086_v8, %v9226_v20  ;;  %v7303_v36 = vadd.f32 %v7089_v34, %v9226_v20  ;;  %v7307_v22 = vadd.f32 %v7092_v48, %v9226_v20  ;;  %v7311_v6 = vadd.f32 %v7095_v53, %v9226_v20 }
 0x382   :  { %9231 = vst [vmem:[#allocation144_spill] sm:$0xff] %v7235_v3  ;;  %v7315_v5 = vadd.f32 %v7098_v49, %v9226_v20  ;;  %v7319_v8 = vadd.f32 %v7101_v19, %v9226_v20  ;;  %v7323_v34 = vadd.f32 %v7104_v9, %v9226_v20  ;;  %v7327_v48 = vadd.f32 %v7107_v42, %v9226_v20  ;;  %v3722_v3 = vld [vmem:[#allocation2 + $0x7a0] sm:$0xff] }
 0x383   :  { %9232 = vst [vmem:[#allocation145_spill] sm:$0xff] %v7239_v1  ;;  %v7331_v53 = vadd.f32 %v7110_v2, %v9226_v20  ;;  %v7335_v49 = vadd.f32 %v7113_v27, %v9226_v20  ;;  %v7339_v19 = vadd.f32 %v7116_v51, %v9226_v20  ;;  %v7343_v9 = vadd.f32 %v7119_v38, %v9226_v20  ;;  %v3721_v1 = vld [vmem:[#allocation2 + $0x798] sm:$0xff] }
 0x384   :  { %9233 = vst [vmem:[#allocation146_spill] sm:$0xff] %v7243_v55  ;;  %v7347_v42 = vadd.f32 %v7122_v50, %v9226_v20  ;;  %v7351_v2 = vadd.f32 %v7125_v11, %v9226_v20  ;;  %v7355_v27 = vadd.f32 %v7128_v28, %v9226_v20  ;;  %v7359_v51 = vadd.f32 %v7131_v21, %v9226_v20 }
 0x385   :  { %9234 = vst [vmem:[#allocation147_spill] sm:$0xff] %v7247_v43  ;;  %v7363_v38 = vadd.f32 %v7134_v15, %v9226_v20  ;;  %v7367_v50 = vadd.f32 %v7137_v52, %v9226_v20  ;;  %v7371_v11 = vadd.f32 %v7140_v12, %v9226_v20  ;;  %v7375_v28 = vadd.f32 %v7143_v29, %v9226_v20  ;;  %v3719_v43 = vld [vmem:[#allocation2 + $0x788] sm:$0xff] }
 0x386   :  { %9235 = vst [vmem:[#allocation148_spill] sm:$0xff] %v7251_v18  ;;  %v7379_v21 = vadd.f32 %v7146_v0, %v9226_v20  ;;  %v7383_v15 = vadd.f32 %v7149_v61, %v9226_v20  ;;  %v7387_v52 = vadd.f32 %v7152_v54, %v9226_v20  ;;  %v7391_v12 = vadd.f32 %v7155_v47, %v9226_v20  ;;  %v3718_v18 = vld [vmem:[#allocation2 + $0x780] sm:$0xff] }
 0x387   :  { %9236 = vst [vmem:[#allocation149_spill] sm:$0xff] %v7255_v59  ;;  %v7395_v29 = vadd.f32 %v9271_v41, %v9226_v20  ;;  %v7399_v0 = vadd.f32 %v9273_v13, %v9226_v20  ;;  %v7403_v61 = vadd.f32 %v7164_v31, %v9226_v20  ;;  %v7419_v13 = vadd.f32 %v7176_v63, %v9226_v20 }
 0x388   :  { %9237 = vst [vmem:[#allocation150_spill] sm:$0xff] %v7259_v60  ;;  %v7423_v31 = vadd.f32 %v7179_v33, %v9226_v20  ;;  %v7435_v63 = vadd.f32 %v7188_v57, %v9226_v20  ;;  %v7439_v33 = vadd.f32 %v7191_v24, %v9226_v20  ;;  %v7451_v57 = vadd.f32 %v7200_v35, %v9226_v20  ;;  %v3716_v60 = vld [vmem:[#allocation2 + $0x770] sm:$0xff] }
 0x389   :  { %9238 = vst [vmem:[#allocation151_spill] sm:$0xff] %v7263_v10  ;;  %v7455_v24 = vadd.f32 %v7203_v44, %v9226_v20  ;;  %v7467_v35 = vadd.f32 %v7212_v32, %v9226_v20  ;;  %v7471_v44 = vadd.f32 %v7215_v56, %v9226_v20  ;;  %v3715_v10 = vld [vmem:[#allocation2 + $0x768] sm:$0xff] }
 0x38a   :  { %9239 = vst [vmem:[#allocation152_spill] sm:$0xff] %v7267_v25 }
 0x38b   :  { %9240 = vst [vmem:[#allocation153_spill] sm:$0xff] %v7271_v16  ;;  %v3713_v16 = vld [vmem:[#allocation2 + $0x758] sm:$0xff] }
 0x38c   :  { %9241 = vst [vmem:[#allocation154_spill] sm:$0xff] %v7275_v46  ;;  %v3712_v46 = vld [vmem:[#allocation2 + $0x750] sm:$0xff]  ;;  %v7603_v26 = vmul.f32 %v3713_v16, %v9216_v17  ;;  %v7621_v16 = vmul.f32 %v3719_v43, %v9216_v17  ;;  %v7636_v43 = vmul.f32 %v3724_v39, %v9216_v17 }
 0x38d   :  { %9242 = vst [vmem:[#allocation155_spill] sm:$0xff] %v7279_v58 }
 0x38e   :  { %9243 = vst [vmem:[#allocation156_spill] sm:$0xff] %v7283_v62 }
 0x38f   :  { %9244 = vst [vmem:[#allocation157_spill] sm:$0xff] %v7287_v7  ;;  %v3709_v7 = vld [vmem:[#allocation2 + $0x738] sm:$0xff] }
 0x390   :  { %9245 = vst [vmem:[#allocation158_spill] sm:$0xff] %v7291_v30  ;;  %v7591_v55 = vmul.f32 %v3709_v7, %v9216_v17  ;;  %v7609_v7 = vmul.f32 %v3715_v10, %v9216_v17 }
 0x391   :  { %9246 = vst [vmem:[#allocation159_spill] sm:$0xff] %v7295_v4 }
 0x392   :  { %9247 = vst [vmem:[#allocation160_spill] sm:$0xff] %v7299_v23  ;;  %v3707_v23 = vld [vmem:[#allocation2 + $0x728] sm:$0xff] }
 0x393   :  { %9248 = vst [vmem:[#allocation161_spill] sm:$0xff] %v7303_v36  ;;  %v3705_v36 = vld [vmem:[#allocation2 + $0x718] sm:$0xff] }
 0x394   :  { %9249 = vst [vmem:[#allocation162_spill] sm:$0xff] %v7307_v22  ;;  %v7579_v59 = vmul.f32 %v3705_v36, %v9216_v17 }
 0x395   :  { %9250 = vst [vmem:[#allocation163_spill] sm:$0xff] %v7311_v6 }
 0x396   :  { %9251 = vst [vmem:[#allocation164_spill] sm:$0xff] %v7315_v5  ;;  %v3703_v5 = vld [vmem:[#allocation2 + $0x708] sm:$0xff] }
 0x397   :  { %9252 = vst [vmem:[#allocation165_spill] sm:$0xff] %v7319_v8  ;;  %v3701_v8 = vld [vmem:[#allocation2 + $0x6f8] sm:$0xff] }
 0x398   :  { %9253 = vst [vmem:[#allocation166_spill] sm:$0xff] %v7323_v34  ;;  %v7567_v25 = vmul.f32 %v3701_v8, %v9216_v17  ;;  %v7585_v8 = vmul.f32 %v3707_v23, %v9216_v17  ;;  %v7600_v23 = vmul.f32 %v3712_v46, %v9216_v17  ;;  %v7618_v46 = vmul.f32 %v3718_v18, %v9216_v17  ;;  %v3729_v18 = vld [vmem:[#allocation2 + $0x7d8] sm:$0xff] }
 0x399   :  { %9254 = vst [vmem:[#allocation167_spill] sm:$0xff] %v7327_v48 }
 0x39a   :  { %9255 = vst [vmem:[#allocation168_spill] sm:$0xff] %v7331_v53  ;;  %v3699_v53 = vld [vmem:[#allocation2 + $0x6e8] sm:$0xff] }
 0x39b   :  { %9256 = vst [vmem:[#allocation169_spill] sm:$0xff] %v7335_v49  ;;  %v3697_v49 = vld [vmem:[#allocation2 + $0x6d8] sm:$0xff] }
 0x39c   :  { %9257 = vst [vmem:[#allocation170_spill] sm:$0xff] %v7339_v19  ;;  %v7555_v58 = vmul.f32 %v3697_v49, %v9216_v17  ;;  %v7573_v49 = vmul.f32 %v3703_v5, %v9216_v17 }
 0x39d   :  { %9258 = vst [vmem:[#allocation171_spill] sm:$0xff] %v7343_v9 }
 0x39e   :  { %9259 = vst [vmem:[#allocation172_spill] sm:$0xff] %v7347_v42  ;;  %v3695_v42 = vld [vmem:[#allocation2 + $0x6c8] sm:$0xff] }
 0x39f   :  { %9260 = vst [vmem:[#allocation173_spill] sm:$0xff] %v7351_v2  ;;  %v3693_v2 = vld [vmem:[#allocation2 + $0x6b8] sm:$0xff] }
 0x3a0   :  { %9261 = vst [vmem:[#allocation174_spill] sm:$0xff] %v7355_v27  ;;  %v7543_v30 = vmul.f32 %v3693_v2, %v9216_v17  ;;  %v7561_v2 = vmul.f32 %v3699_v53, %v9216_v17 }
 0x3a1   :  { %9262 = vst [vmem:[#allocation175_spill] sm:$0xff] %v7359_v51 }
 0x3a2   :  { %9263 = vst [vmem:[#allocation176_spill] sm:$0xff] %v7363_v38  ;;  %v3691_v38 = vld [vmem:[#allocation2 + $0x6a8] sm:$0xff] }
 0x3a3   :  { %9264 = vst [vmem:[#allocation177_spill] sm:$0xff] %v7367_v50 }
 0x3a4   :  { %9265 = vst [vmem:[#allocation178_spill] sm:$0xff] %v7371_v11  ;;  %v3679_v11 = vld [vmem:[#allocation2 + $0x648] sm:$0xff] }
 0x3a5   :  { %9266 = vst [vmem:[#allocation179_spill] sm:$0xff] %v7375_v28  ;;  %v3678_v28 = vld [vmem:[#allocation2 + $0x640] sm:$0xff] }
 0x3a6   :  { %9267 = vst [vmem:[#allocation180_spill] sm:$0xff] %v7379_v21  ;;  %v3671_v21 = vld [vmem:[#allocation2 + $0x608] sm:$0xff] }
 0x3a7   :  { %9268 = vst [vmem:[#allocation181_spill] sm:$0xff] %v7383_v15  ;;  %v9276_v15 = vld [vmem:[#allocation134_spill] sm:$0xff] }
 0x3a8   :  { %9269 = vst [vmem:[#allocation182_spill] sm:$0xff] %v7387_v52  ;;  %v7407_v54 = vadd.f32 %v9276_v15, %v9226_v20  ;;  %v9278_v52 = vld [vmem:[#allocation135_spill] sm:$0xff]  ;;  %v9284_v15 = vld [vmem:[#allocation137_spill] sm:$0xff] }
 0x3a9   :  { %9270 = vst [vmem:[#allocation183_spill] sm:$0xff] %v7391_v12  ;;  %v7411_v47 = vadd.f32 %v9278_v52, %v9226_v20  ;;  %v9280_v12 = vld [vmem:[#allocation136_spill] sm:$0xff]  ;;  %v9286_v52 = vld [vmem:[#allocation138_spill] sm:$0xff] }
 0x3aa   :  { %9272 = vst [vmem:[#allocation3_spill] sm:$0xff] %v7395_v29  ;;  %v7415_v41 = vadd.f32 %v9280_v12, %v9226_v20  ;;  %v3670_v29 = vld [vmem:[#allocation2 + $0x600] sm:$0xff]  ;;  %v3672_v12 = vld [vmem:[#allocation2 + $0x610] sm:$0xff] }
 0x3ab   :  { %9274 = vst [vmem:[#allocation133_spill] sm:$0xff] %v7399_v0  ;;  %v3675_v0 = vld [vmem:[#allocation2 + $0x628] sm:$0xff]  ;;  %v7480_v50 = vmul.f32 %v3672_v12, %v9216_v17  ;;  %v7498_v12 = vmul.f32 %v3678_v28, %v9216_v17  ;;  %v3696_v28 = vld [vmem:[#allocation2 + $0x6d0] sm:$0xff] }
 0x3ac   :  { %9275 = vst [vmem:[#allocation184_spill] sm:$0xff] %v7403_v61  ;;  %v3674_v61 = vld [vmem:[#allocation2 + $0x620] sm:$0xff]  ;;  %v7489_v56 = vmul.f32 %v3675_v0, %v9216_v17  ;;  %v7552_v62 = vmul.f32 %v3696_v28, %v9216_v17 }
 0x3ad   :  { %9277 = vst [vmem:[#allocation134_spill] sm:$0xff] %v7407_v54  ;;  %v7427_v54 = vadd.f32 %v9284_v15, %v9226_v20  ;;  %v3694_v0 = vld [vmem:[#allocation2 + $0x6c0] sm:$0xff] }
 0x3ae   :  { %9279 = vst [vmem:[#allocation135_spill] sm:$0xff] %v7411_v47  ;;  %v7431_v47 = vadd.f32 %v9286_v52, %v9226_v20 }
 0x3af   :  { %9281 = vst [vmem:[#allocation136_spill] sm:$0xff] %v7415_v41  ;;  %v3673_v41 = vld [vmem:[#allocation2 + $0x618] sm:$0xff] }
 0x3b0   :  { %9282 = vst [vmem:[#allocation185_spill] sm:$0xff] %v7419_v13  ;;  %v3677_v13 = vld [vmem:[#allocation2 + $0x638] sm:$0xff]  ;;  %v7483_v32 = vmul.f32 %v3673_v41, %v9216_v17  ;;  %v7501_v41 = vmul.f32 %v3679_v11, %v9216_v17  ;;  %v3698_v11 = vld [vmem:[#allocation2 + $0x6e0] sm:$0xff] }
 0x3b1   :  { %9283 = vst [vmem:[#allocation186_spill] sm:$0xff] %v7423_v31  ;;  %v9290_v31 = vld [vmem:[#allocation139_spill] sm:$0xff]  ;;  %v7495_v27 = vmul.f32 %v3677_v13, %v9216_v17 }
 0x3b2   :  { %9285 = vst [vmem:[#allocation137_spill] sm:$0xff] %v7427_v54  ;;  %v7443_v15 = vadd.f32 %v9290_v31, %v9226_v20  ;;  %v9292_v54 = vld [vmem:[#allocation140_spill] sm:$0xff]  ;;  %v7459_v31 = vadd.f32 %v7206_v14, %v9226_v20  ;;  %v7477_v14 = vmul.f32 %v3671_v21, %v9216_v17  ;;  %v3690_v21 = vld [vmem:[#allocation2 + $0x6a0] sm:$0xff] }
 0x3b3   :  { %9287 = vst [vmem:[#allocation138_spill] sm:$0xff] %v7431_v47  ;;  %v7447_v52 = vadd.f32 %v9292_v54, %v9226_v20  ;;  %v3676_v47 = vld [vmem:[#allocation2 + $0x630] sm:$0xff]  ;;  %v7463_v54 = vadd.f32 %v7209_v37, %v9226_v20 }
 0x3b4   :  { %9288 = vst [vmem:[#allocation187_spill] sm:$0xff] %v7435_v63  ;;  %v3683_v63 = vld [vmem:[#allocation2 + $0x668] sm:$0xff]  ;;  %v3684_v37 = vld [vmem:[#allocation2 + $0x670] sm:$0xff]  ;;  %v7492_v51 = vmul.f32 %v3676_v47, %v9216_v17 }
 0x3b5   :  { %9289 = vst [vmem:[#allocation188_spill] sm:$0xff] %v7439_v33  ;;  %v3682_v33 = vld [vmem:[#allocation2 + $0x660] sm:$0xff]  ;;  %v7513_v13 = vmul.f32 %v3683_v63, %v9216_v17  ;;  %v7516_v48 = vmul.f32 %v3684_v37, %v9216_v17  ;;  %v7534_v37 = vmul.f32 %v3690_v21, %v9216_v17  ;;  %v3708_v21 = vld [vmem:[#allocation2 + $0x730] sm:$0xff] }
 0x3b6   :  { %9291 = vst [vmem:[#allocation139_spill] sm:$0xff] %v7443_v15  ;;  %v3681_v15 = vld [vmem:[#allocation2 + $0x658] sm:$0xff]  ;;  %v7510_v47 = vmul.f32 %v3682_v33, %v9216_v17  ;;  %v3700_v33 = vld [vmem:[#allocation2 + $0x6f0] sm:$0xff]  ;;  %v3702_v63 = vld [vmem:[#allocation2 + $0x700] sm:$0xff]  ;;  %v7588_v5 = vmul.f32 %v3708_v21, %v9216_v17 }
 0x3b7   :  { %9293 = vst [vmem:[#allocation140_spill] sm:$0xff] %v7447_v52  ;;  %v3680_v52 = vld [vmem:[#allocation2 + $0x650] sm:$0xff]  ;;  %v7507_v19 = vmul.f32 %v3681_v15, %v9216_v17  ;;  %v7570_v28 = vmul.f32 %v3702_v63, %v9216_v17  ;;  %v3717_v63 = vld [vmem:[#allocation2 + $0x778] sm:$0xff] }
 0x3b8   :  { %9294 = vst [vmem:[#allocation189_spill] sm:$0xff] %v7451_v57  ;;  %v3687_v57 = vld [vmem:[#allocation2 + $0x688] sm:$0xff]  ;;  %v7504_v9 = vmul.f32 %v3680_v52, %v9216_v17  ;;  %v7615_v45 = vmul.f32 %v3717_v63, %v9216_v17 }
 0x3b9   :  { %9295 = vst [vmem:[#allocation190_spill] sm:$0xff] %v7455_v24  ;;  %v7474_v24 = vmul.f32 %v3670_v29, %v9216_v17  ;;  %v3688_v29 = vld [vmem:[#allocation2 + $0x690] sm:$0xff]  ;;  %v7525_v15 = vmul.f32 %v3687_v57, %v9216_v17  ;;  %v3706_v57 = vld [vmem:[#allocation2 + $0x720] sm:$0xff] }
 0x3ba   :  { %9296 = vst [vmem:[#allocation191_spill] sm:$0xff] %v7459_v31  ;;  %v3686_v31 = vld [vmem:[#allocation2 + $0x680] sm:$0xff]  ;;  %v7528_v6 = vmul.f32 %v3688_v29, %v9216_v17  ;;  %v7546_v29 = vmul.f32 %v3694_v0, %v9216_v17  ;;  %v3711_v0 = vld [vmem:[#allocation2 + $0x748] sm:$0xff] }
 0x3bb   :  { %9297 = vst [vmem:[#allocation192_spill] sm:$0xff] %v7463_v54  ;;  %v3685_v54 = vld [vmem:[#allocation2 + $0x678] sm:$0xff]  ;;  %v7522_v52 = vmul.f32 %v3686_v31, %v9216_v17  ;;  %v3704_v31 = vld [vmem:[#allocation2 + $0x710] sm:$0xff]  ;;  %v7597_v36 = vmul.f32 %v3711_v0, %v9216_v17  ;;  %v7612_v0 = vmul.f32 %v3716_v60, %v9216_v17  ;;  %v7630_v60 = vmul.f32 %v3722_v3, %v9216_v17 }
 0x3bc   :  { %9298 = vst [vmem:[#allocation193_spill] sm:$0xff] %v7467_v35  ;;  %v7486_v35 = vmul.f32 %v3674_v61, %v9216_v17  ;;  %v3692_v61 = vld [vmem:[#allocation2 + $0x6b0] sm:$0xff]  ;;  %v7519_v34 = vmul.f32 %v3685_v54, %v9216_v17  ;;  %v7537_v54 = vmul.f32 %v3691_v38, %v9216_v17  ;;  %v3710_v38 = vld [vmem:[#allocation2 + $0x740] sm:$0xff]  ;;  %v7576_v53 = vmul.f32 %v3704_v31, %v9216_v17 }
 0x3bd   :  { %9299 = vst [vmem:[#allocation194_spill] sm:$0xff] %v7471_v44  ;;  %v3689_v44 = vld [vmem:[#allocation2 + $0x698] sm:$0xff]  ;;  %v7540_v4 = vmul.f32 %v3692_v61, %v9216_v17  ;;  %v7558_v61 = vmul.f32 %v3698_v11, %v9216_v17  ;;  %v3714_v11 = vld [vmem:[#allocation2 + $0x760] sm:$0xff]  ;;  %v7594_v31 = vmul.f32 %v3710_v38, %v9216_v17  ;;  %v3723_v38 = vld [vmem:[#allocation2 + $0x7a8] sm:$0xff] }
 0x3be   :  { %v7531_v22 = vmul.f32 %v3689_v44, %v9216_v17  ;;  %v7549_v44 = vmul.f32 %v3695_v42, %v9216_v17  ;;  %v7564_v42 = vmul.f32 %v3700_v33, %v9216_v17  ;;  %v7582_v33 = vmul.f32 %v3706_v57, %v9216_v17  ;;  %v3720_v57 = vld [vmem:[#allocation2 + $0x790] sm:$0xff]  ;;  %9300 = vst [vmem:[#allocation195_spill] sm:$0xff] %v7603_v26 }
 0x3bf   :  { %v7606_v21 = vmul.f32 %v3714_v11, %v9216_v17  ;;  %9302 = vst [vmem:[#allocation197_spill] sm:$0xff] %v7609_v7  ;;  %v3726_v11 = vld [vmem:[#allocation2 + $0x7c0] sm:$0xff]  ;;  %v3728_v26 = vld [vmem:[#allocation2 + $0x7d0] sm:$0xff]  ;;  %v7624_v10 = vmul.f32 %v3720_v57, %v9216_v17  ;;  %v7627_v7 = vmul.f32 %v3721_v1, %v9216_v17  ;;  %v7633_v63 = vmul.f32 %v3723_v38, %v9216_v17 }
 0x3c0   :  { %9303 = vst [vmem:[#allocation198_spill] sm:$0xff] %v7615_v45  ;;  %v3731_v45 = vld [vmem:[#allocation2 + $0x7e8] sm:$0xff]  ;;  %v7642_v57 = vmul.f32 %v3726_v11, %v9216_v17  ;;  %v3732_v3 = vld [vmem:[#allocation2 + $0x7f0] sm:$0xff]  ;;  %v7648_v38 = vmul.f32 %v3728_v26, %v9216_v17  ;;  %v7671_v26 = vadd.f32 %v7477_v14, %v9226_v20  ;;  %v7691_v14 = vadd.f32 %v7492_v51, %v9226_v20 }
 0x3c1   :  { %9301 = vst [vmem:[#allocation196_spill] sm:$0xff] %v7606_v21  ;;  %v3727_v21 = vld [vmem:[#allocation2 + $0x7c8] sm:$0xff]  ;;  %v7660_v11 = vmul.f32 %v3732_v3, %v9216_v17  ;;  %v7711_v51 = vadd.f32 %v7507_v19, %v9226_v20  ;;  %v7731_v19 = vadd.f32 %v7522_v52, %v9226_v20  ;;  %v7751_v52 = vadd.f32 %v7537_v54, %v9226_v20 }
 0x3c2   :  { %9304 = vst [vmem:[#allocation199_spill] sm:$0xff] %v7618_v46  ;;  %v3730_v46 = vld [vmem:[#allocation2 + $0x7e0] sm:$0xff]  ;;  %v7645_v1 = vmul.f32 %v3727_v21, %v9216_v17  ;;  %v7771_v54 = vadd.f32 %v7552_v62, %v9226_v20  ;;  %v7791_v62 = vadd.f32 %v7567_v25, %v9226_v20  ;;  %v7811_v25 = vadd.f32 %v7582_v33, %v9226_v20 }
 0x3c3   :  { %9305 = vst [vmem:[#allocation200_spill] sm:$0xff] %v7621_v16  ;;  %v7639_v16 = vmul.f32 %v3725_v40, %v9216_v17  ;;  %v7654_v39 = vmul.f32 %v3730_v46, %v9216_v17  ;;  %v7657_v40 = vmul.f32 %v3731_v45, %v9216_v17  ;;  %v7675_v46 = vadd.f32 %v7480_v50, %v9226_v20 }
 0x3c4   :  { %9306 = vst [vmem:[#allocation201_spill] sm:$0xff] %v7630_v60  ;;  %v3733_v60 = vld [vmem:[#allocation2 + $0x7f8] sm:$0xff]  ;;  %v7679_v45 = vadd.f32 %v7483_v32, %v9226_v20  ;;  %v7695_v50 = vadd.f32 %v7495_v27, %v9226_v20  ;;  %v7699_v32 = vadd.f32 %v7498_v12, %v9226_v20  ;;  %v7715_v27 = vadd.f32 %v7510_v47, %v9226_v20 }
 0x3c5   :  { %9307 = vst [vmem:[#allocation202_spill] sm:$0xff] %v7633_v63  ;;  %v7651_v63 = vmul.f32 %v3729_v18, %v9216_v17  ;;  %v7663_v21 = vmul.f32 %v3733_v60, %v9216_v17  ;;  %v7683_v17 = vadd.f32 %v7486_v35, %v9226_v20  ;;  %v7703_v35 = vadd.f32 %v7501_v41, %v9226_v20  ;;  %v9352_v60 = vld [vmem:[#allocation195_spill] sm:$0xff] }
 0x3c6   :  { %9308 = vst [vmem:[#allocation203_spill] sm:$0xff] %v7645_v1  ;;  %v7667_v1 = vadd.f32 %v7474_v24, %v9226_v20  ;;  %v7687_v24 = vadd.f32 %v7489_v56, %v9226_v20  ;;  %v7707_v56 = vadd.f32 %v7504_v9, %v9226_v20  ;;  %v7719_v12 = vadd.f32 %v7513_v13, %v9226_v20  ;;  %v9356_v3 = vld [vmem:[#allocation197_spill] sm:$0xff] }
 0x3c7   :  { %9310 = vst [vmem:[#allocation205_spill] sm:$0xff] %v7671_v26  ;;  %v7723_v41 = vadd.f32 %v7516_v48, %v9226_v20  ;;  %v7727_v9 = vadd.f32 %v7519_v34, %v9226_v20  ;;  %v7735_v47 = vadd.f32 %v7525_v15, %v9226_v20  ;;  %v7739_v13 = vadd.f32 %v7528_v6, %v9226_v20  ;;  %v9397_v26 = vld [vmem:[#allocation155_spill] sm:$0xff] }
 0x3c8   :  { %9309 = vst [vmem:[#allocation204_spill] sm:$0xff] %v7667_v1  ;;  %v7743_v48 = vadd.f32 %v7531_v22, %v9226_v20  ;;  %v7747_v34 = vadd.f32 %v7534_v37, %v9226_v20  ;;  %v7755_v15 = vadd.f32 %v7540_v4, %v9226_v20  ;;  %v7759_v6 = vadd.f32 %v7543_v30, %v9226_v20  ;;  %v9354_v18 = vld [vmem:[#allocation196_spill] sm:$0xff]  ;;  %v9396_v1 = vld [vmem:[#allocation154_spill] sm:$0xff] }
 0x3c9   :  { %9311 = vst [vmem:[#allocation206_spill] sm:$0xff] %v7675_v46  ;;  %v7763_v22 = vadd.f32 %v7546_v29, %v9226_v20  ;;  %v7767_v37 = vadd.f32 %v7549_v44, %v9226_v20  ;;  %v7775_v4 = vadd.f32 %v7555_v58, %v9226_v20  ;;  %v7779_v30 = vadd.f32 %v7558_v61, %v9226_v20  ;;  %v9398_v46 = vld [vmem:[#allocation156_spill] sm:$0xff] }
 0x3ca   :  { %9312 = vst [vmem:[#allocation207_spill] sm:$0xff] %v7679_v45  ;;  %v7783_v29 = vadd.f32 %v7561_v2, %v9226_v20  ;;  %v7787_v44 = vadd.f32 %v7564_v42, %v9226_v20  ;;  %v7795_v58 = vadd.f32 %v7570_v28, %v9226_v20  ;;  %v7799_v61 = vadd.f32 %v7573_v49, %v9226_v20  ;;  %v9399_v45 = vld [vmem:[#allocation157_spill] sm:$0xff] }
 0x3cb   :  { %9313 = vst [vmem:[#allocation208_spill] sm:$0xff] %v7683_v17  ;;  %v7803_v2 = vadd.f32 %v7576_v53, %v9226_v20  ;;  %v7807_v42 = vadd.f32 %v7579_v59, %v9226_v20  ;;  %v7815_v28 = vadd.f32 %v7585_v8, %v9226_v20  ;;  %v7819_v49 = vadd.f32 %v7588_v5, %v9226_v20  ;;  %v9400_v17 = vld [vmem:[#allocation158_spill] sm:$0xff] }
 0x3cc   :  { %9314 = vst [vmem:[#allocation209_spill] sm:$0xff] %v7687_v24  ;;  %v7823_v53 = vadd.f32 %v7591_v55, %v9226_v20  ;;  %v7827_v59 = vadd.f32 %v7594_v31, %v9226_v20  ;;  %v7831_v33 = vadd.f32 %v7597_v36, %v9226_v20  ;;  %v7835_v8 = vadd.f32 %v7600_v23, %v9226_v20  ;;  %v9401_v24 = vld [vmem:[#allocation159_spill] sm:$0xff] }
 0x3cd   :  { %9315 = vst [vmem:[#allocation210_spill] sm:$0xff] %v7691_v14  ;;  %v7839_v5 = vadd.f32 %v9352_v60, %v9226_v20  ;;  %v7843_v55 = vadd.f32 %v9354_v18, %v9226_v20  ;;  %v7847_v31 = vadd.f32 %v9356_v3, %v9226_v20  ;;  %v7851_v36 = vadd.f32 %v7612_v0, %v9226_v20  ;;  %v9402_v14 = vld [vmem:[#allocation160_spill] sm:$0xff] }
 0x3ce   :  { %9316 = vst [vmem:[#allocation211_spill] sm:$0xff] %v7695_v50  ;;  %v7867_v3 = vadd.f32 %v7624_v10, %v9226_v20  ;;  %v7871_v0 = vadd.f32 %v7627_v7, %v9226_v20  ;;  %v7887_v10 = vadd.f32 %v7639_v16, %v9226_v20  ;;  %v7891_v7 = vadd.f32 %v7642_v57, %v9226_v20  ;;  %v9403_v50 = vld [vmem:[#allocation161_spill] sm:$0xff] }
 0x3cf   :  { %9317 = vst [vmem:[#allocation212_spill] sm:$0xff] %v7699_v32  ;;  %v7907_v16 = vadd.f32 %v7654_v39, %v9226_v20  ;;  %v7911_v57 = vadd.f32 %v7657_v40, %v9226_v20  ;;  %v9384_v39 = vld [vmem:[#allocation142_spill] sm:$0xff]  ;;  %v9385_v40 = vld [vmem:[#allocation143_spill] sm:$0xff] }
 0x3d0   :  { %9318 = vst [vmem:[#allocation213_spill] sm:$0xff] %v7703_v35  ;;  %v9404_v32 = vld [vmem:[#allocation162_spill] sm:$0xff]  ;;  %v9405_v35 = vld [vmem:[#allocation163_spill] sm:$0xff] }
 0x3d1   :  { %9319 = vst [vmem:[#allocation214_spill] sm:$0xff] %v7707_v56  ;;  %v9406_v56 = vld [vmem:[#allocation164_spill] sm:$0xff] }
 0x3d2   :  { %9320 = vst [vmem:[#allocation215_spill] sm:$0xff] %v7711_v51  ;;  %v9407_v51 = vld [vmem:[#allocation165_spill] sm:$0xff] }
 0x3d3   :  { %9321 = vst [vmem:[#allocation216_spill] sm:$0xff] %v7715_v27  ;;  %v9408_v27 = vld [vmem:[#allocation166_spill] sm:$0xff] }
 0x3d4   :  { %9322 = vst [vmem:[#allocation217_spill] sm:$0xff] %v7719_v12  ;;  %v9409_v12 = vld [vmem:[#allocation167_spill] sm:$0xff] }
 0x3d5   :  { %9323 = vst [vmem:[#allocation218_spill] sm:$0xff] %v7723_v41  ;;  %v9410_v41 = vld [vmem:[#allocation168_spill] sm:$0xff] }
 0x3d6   :  { %9324 = vst [vmem:[#allocation219_spill] sm:$0xff] %v7727_v9  ;;  %v9411_v9 = vld [vmem:[#allocation169_spill] sm:$0xff] }
 0x3d7   :  { %9325 = vst [vmem:[#allocation220_spill] sm:$0xff] %v7731_v19  ;;  %v9412_v19 = vld [vmem:[#allocation170_spill] sm:$0xff] }
 0x3d8   :  { %9326 = vst [vmem:[#allocation221_spill] sm:$0xff] %v7735_v47  ;;  %v9413_v47 = vld [vmem:[#allocation171_spill] sm:$0xff] }
 0x3d9   :  { %9327 = vst [vmem:[#allocation222_spill] sm:$0xff] %v7739_v13  ;;  %v9414_v13 = vld [vmem:[#allocation172_spill] sm:$0xff] }
 0x3da   :  { %9328 = vst [vmem:[#allocation223_spill] sm:$0xff] %v7743_v48  ;;  %v9444_v48 = vld [vmem:[#allocation188_spill] sm:$0xff] }
 0x3db   :  { %9329 = vst [vmem:[#allocation224_spill] sm:$0xff] %v7747_v34  ;;  %v9446_v34 = vld [vmem:[#allocation139_spill] sm:$0xff] }
 0x3dc   :  { %9330 = vst [vmem:[#allocation225_spill] sm:$0xff] %v7751_v52  ;;  %v9462_v52 = vld [vmem:[#allocation22_spill] sm:$0xff] }
 0x3dd   :  { %9331 = vst [vmem:[#allocation226_spill] sm:$0xff] %v7755_v15  ;;  %v9418_v15 = vld [vmem:[#allocation176_spill] sm:$0xff] }
 0x3de   :  { %9332 = vst [vmem:[#allocation227_spill] sm:$0xff] %v7759_v6  ;;  %v9419_v6 = vld [vmem:[#allocation177_spill] sm:$0xff] }
 0x3df   :  { %9333 = vst [vmem:[#allocation228_spill] sm:$0xff] %v7763_v22 }
 0x3e0   :  { %9334 = vst [vmem:[#allocation229_spill] sm:$0xff] %v7767_v37  ;;  %v9737_v37 = vld [vmem:[#allocation138_spill] sm:$0xff] }
 0x3e1   :  { %9335 = vst [vmem:[#allocation230_spill] sm:$0xff] %v7771_v54  ;;  %v9422_v54 = vld [vmem:[#allocation180_spill] sm:$0xff] }
 0x3e2   :  { %9336 = vst [vmem:[#allocation231_spill] sm:$0xff] %v7775_v4  ;;  %v9424_v4 = vld [vmem:[#allocation181_spill] sm:$0xff] }
 0x3e3   :  { %9337 = vst [vmem:[#allocation232_spill] sm:$0xff] %v7779_v30  ;;  %v9426_v30 = vld [vmem:[#allocation182_spill] sm:$0xff] }
 0x3e4   :  { %9338 = vst [vmem:[#allocation233_spill] sm:$0xff] %v7783_v29  ;;  %v9463_v29 = vld [vmem:[#allocation78_spill] sm:$0xff] }
 0x3e5   :  { %9339 = vst [vmem:[#allocation234_spill] sm:$0xff] %v7787_v44  ;;  %v9429_v44 = vld [vmem:[#allocation3_spill] sm:$0xff] }
 0x3e6   :  { %9340 = vst [vmem:[#allocation235_spill] sm:$0xff] %v7791_v62  ;;  %v9430_v62 = vld [vmem:[#allocation133_spill] sm:$0xff] }
 0x3e7   :  { %9341 = vst [vmem:[#allocation236_spill] sm:$0xff] %v7795_v58  ;;  %v9432_v58 = vld [vmem:[#allocation184_spill] sm:$0xff] }
 0x3e8   :  { %9342 = vst [vmem:[#allocation237_spill] sm:$0xff] %v7799_v61 }
 0x3e9   :  { %9343 = vst [vmem:[#allocation238_spill] sm:$0xff] %v7803_v2 }
 0x3ea   :  { %9344 = vst [vmem:[#allocation239_spill] sm:$0xff] %v7807_v42 }
 0x3eb   :  { %9345 = vst [vmem:[#allocation240_spill] sm:$0xff] %v7811_v25  ;;  %v9464_v25 = vmax.f32 %v9462_v52, %v9463_v29  ;;  %v9478_v52 = vld [vmem:[#allocation81_spill] sm:$0xff] }
 0x3ec   :  { %9346 = vst [vmem:[#allocation241_spill] sm:$0xff] %v7815_v28 }
 0x3ed   :  { %9347 = vst [vmem:[#allocation242_spill] sm:$0xff] %v7819_v49  ;;  %v9468_v49 = vld [vmem:[#allocation79_spill] sm:$0xff] }
 0x3ee   :  { %9348 = vst [vmem:[#allocation243_spill] sm:$0xff] %v7823_v53  ;;  %v9470_v53 = vld [vmem:[#allocation206_spill] sm:$0xff] }
 0x3ef   :  { %9349 = vst [vmem:[#allocation244_spill] sm:$0xff] %v7827_v59  ;;  %v9471_v61 = vmax.f32 %v9384_v39, %v9470_v53  ;;  %v9472_v59 = vld [vmem:[#allocation24_spill] sm:$0xff]  ;;  %v9485_v53 = vld [vmem:[#allocation209_spill] sm:$0xff]  ;;  %v9487_v39 = vld [vmem:[#allocation27_spill] sm:$0xff] }
 0x3f0   :  { %9350 = vst [vmem:[#allocation245_spill] sm:$0xff] %v7831_v33  ;;  %v9359_v33 = vld [vmem:[#allocation198_spill] sm:$0xff] }
 0x3f1   :  { %9351 = vst [vmem:[#allocation246_spill] sm:$0xff] %v7835_v8  ;;  %v7855_v23 = vadd.f32 %v9359_v33, %v9226_v20  ;;  %v9361_v8 = vld [vmem:[#allocation199_spill] sm:$0xff] }
 0x3f2   :  { %9353 = vst [vmem:[#allocation195_spill] sm:$0xff] %v7839_v5  ;;  %v7859_v60 = vadd.f32 %v9361_v8, %v9226_v20  ;;  %v9363_v5 = vld [vmem:[#allocation200_spill] sm:$0xff] }
 0x3f3   :  { %9355 = vst [vmem:[#allocation196_spill] sm:$0xff] %v7843_v55  ;;  %v7863_v18 = vadd.f32 %v9363_v5, %v9226_v20  ;;  %v7883_v5 = vadd.f32 %v7636_v43, %v9226_v20  ;;  %v7903_v43 = vadd.f32 %v7651_v63, %v9226_v20  ;;  %v9389_v63 = vld [vmem:[#allocation147_spill] sm:$0xff] }
 0x3f4   :  { %9357 = vst [vmem:[#allocation197_spill] sm:$0xff] %v7847_v31  ;;  %v9740_v31 = vld [vmem:[#allocation14_spill] sm:$0xff] }
 0x3f5   :  { %9358 = vst [vmem:[#allocation247_spill] sm:$0xff] %v7851_v36  ;;  %v9367_v36 = vld [vmem:[#allocation201_spill] sm:$0xff] }
 0x3f6   :  { %9360 = vst [vmem:[#allocation198_spill] sm:$0xff] %v7855_v23  ;;  %v7875_v33 = vadd.f32 %v9367_v36, %v9226_v20  ;;  %v9369_v23 = vld [vmem:[#allocation202_spill] sm:$0xff] }
 0x3f7   :  { %9362 = vst [vmem:[#allocation199_spill] sm:$0xff] %v7859_v60  ;;  %v7879_v8 = vadd.f32 %v9369_v23, %v9226_v20  ;;  %v7899_v23 = vadd.f32 %v7648_v38, %v9226_v20  ;;  %v7919_v38 = vadd.f32 %v7663_v21, %v9226_v20  ;;  %v9395_v21 = vld [vmem:[#allocation153_spill] sm:$0xff]  ;;  %v9473_v60 = vld [vmem:[#allocation80_spill] sm:$0xff] }
 0x3f8   :  { %9364 = vst [vmem:[#allocation200_spill] sm:$0xff] %v7863_v18  ;;  %v9474_v2 = vmax.f32 %v9472_v59, %v9473_v60  ;;  %v9477_v18 = vld [vmem:[#allocation25_spill] sm:$0xff]  ;;  %v9488_v59 = vld [vmem:[#allocation83_spill] sm:$0xff]  ;;  %v9490_v60 = vld [vmem:[#allocation210_spill] sm:$0xff] }
 0x3f9   :  { %9365 = vst [vmem:[#allocation248_spill] sm:$0xff] %v7867_v3  ;;  %v9460_v3 = vld [vmem:[#allocation204_spill] sm:$0xff]  ;;  %v9479_v29 = vmax.f32 %v9477_v18, %v9478_v52 }
 0x3fa   :  { %9366 = vst [vmem:[#allocation249_spill] sm:$0xff] %v7871_v0  ;;  %v9374_v0 = vld [vmem:[#allocation203_spill] sm:$0xff]  ;;  %v9493_v18 = vld [vmem:[#allocation84_spill] sm:$0xff] }
 0x3fb   :  { %9368 = vst [vmem:[#allocation201_spill] sm:$0xff] %v7875_v33  ;;  %v7895_v36 = vadd.f32 %v9374_v0, %v9226_v20  ;;  %v7915_v0 = vadd.f32 %v7660_v11, %v9226_v20  ;;  %v9388_v20 = vld [vmem:[#allocation146_spill] sm:$0xff]  ;;  %v9393_v11 = vld [vmem:[#allocation151_spill] sm:$0xff]  ;;  %v9465_v33 = vld [vmem:[#allocation205_spill] sm:$0xff] }
 0x3fc   :  { %9370 = vst [vmem:[#allocation202_spill] sm:$0xff] %v7879_v8  ;;  %v9467_v8 = vld [vmem:[#allocation23_spill] sm:$0xff] }
 0x3fd   :  { %9371 = vst [vmem:[#allocation250_spill] sm:$0xff] %v7883_v5  ;;  %v9469_v22 = vmax.f32 %v9467_v8, %v9468_v49  ;;  %v9483_v49 = vld [vmem:[#allocation82_spill] sm:$0xff] }
 0x3fe   :  { %9372 = vst [vmem:[#allocation251_spill] sm:$0xff] %v7887_v10  ;;  %v9394_v10 = vld [vmem:[#allocation152_spill] sm:$0xff] }
 0x3ff   :  { %9373 = vst [vmem:[#allocation252_spill] sm:$0xff] %v7891_v7  ;;  %v9386_v7 = vld [vmem:[#allocation144_spill] sm:$0xff] }
 0x400   :  { %9375 = vst [vmem:[#allocation203_spill] sm:$0xff] %v7895_v36  ;;  %v9390_v36 = vld [vmem:[#allocation148_spill] sm:$0xff] }
 0x401   :  { %9376 = vst [vmem:[#allocation253_spill] sm:$0xff] %v7899_v23  ;;  %v9382_v23 = vld [vmem:[#allocation21_spill] sm:$0xff] }
 0x402   :  { %9377 = vst [vmem:[#allocation254_spill] sm:$0xff] %v7903_v43  ;;  %v9383_v43 = vld [vmem:[#allocation141_spill] sm:$0xff]  ;;  %v9461_v42 = vmax.f32 %v9382_v23, %v9460_v3  ;;  %v9475_v3 = vld [vmem:[#allocation207_spill] sm:$0xff] }
 0x403   :  { %9378 = vst [vmem:[#allocation255_spill] sm:$0xff] %v7907_v16  ;;  %v9391_v16 = vld [vmem:[#allocation149_spill] sm:$0xff]  ;;  %v9466_v28 = vmax.f32 %v9383_v43, %v9465_v33  ;;  %v9476_v23 = vmax.f32 %v9385_v40, %v9475_v3  ;;  %v9482_v43 = vld [vmem:[#allocation26_spill] sm:$0xff]  ;;  %v9491_v40 = vmax.f32 %v9388_v20, %v9490_v60  ;;  %v9492_v3 = vld [vmem:[#allocation28_spill] sm:$0xff] }
 0x404   :  { %9379 = vst [vmem:[#allocation256_spill] sm:$0xff] %v7911_v57  ;;  %v9392_v57 = vld [vmem:[#allocation150_spill] sm:$0xff]  ;;  %v3926_v55 = vmax.f32 %v9464_v25, %v9461_v42  ;;  %v9480_v25 = vld [vmem:[#allocation208_spill] sm:$0xff]  ;;  %v9505_v20 = vld [vmem:[#allocation213_spill] sm:$0xff] }
 0x405   :  { %9380 = vst [vmem:[#allocation257_spill] sm:$0xff] %v7915_v0  ;;  %v9387_v0 = vld [vmem:[#allocation145_spill] sm:$0xff]  ;;  %v3927_v5 = vmax.f32 %v9469_v22, %v9466_v28  ;;  %v3929_v42 = vmax.f32 %v9479_v29, %v9476_v23  ;;  %v9481_v33 = vmax.f32 %v9386_v7, %v9480_v25  ;;  %v9484_v22 = vmax.f32 %v9482_v43, %v9483_v49  ;;  %v9495_v7 = vld [vmem:[#allocation211_spill] sm:$0xff] }
 0x406   :  { %9381 = vst [vmem:[#allocation258_spill] sm:$0xff] %v7919_v38  ;;  %v3928_v38 = vmax.f32 %v9474_v2, %v9471_v61  ;;  %v9486_v8 = vmax.f32 %v9387_v0, %v9485_v53  ;;  %v9489_v61 = vmax.f32 %v9487_v39, %v9488_v59  ;;  %v9494_v23 = vmax.f32 %v9492_v3, %v9493_v18  ;;  %v9497_v25 = vld [vmem:[#allocation29_spill] sm:$0xff]  ;;  %v9500_v0 = vld [vmem:[#allocation212_spill] sm:$0xff]  ;;  %v9502_v53 = vld [vmem:[#allocation30_spill] sm:$0xff] }
 0x407   :  { %v3930_v28 = vmax.f32 %v9484_v22, %v9481_v33  ;;  %v9496_v29 = vmax.f32 %v9389_v63, %v9495_v7  ;;  %v9498_v43 = vld [vmem:[#allocation85_spill] sm:$0xff]  ;;  %v9501_v22 = vmax.f32 %v9390_v36, %v9500_v0  ;;  %v9503_v39 = vld [vmem:[#allocation86_spill] sm:$0xff]  ;;  %v9507_v60 = vld [vmem:[#allocation31_spill] sm:$0xff]  ;;  %3990 = vst.msk [vmem:[%s8694_s5] sm:$0xff] %vm562_vm1, %v3926_v55 }
 0x408   :  { %v3931_v2 = vmax.f32 %v9489_v61, %v9486_v8  ;;  %v3932_v52 = vmax.f32 %v9494_v23, %v9491_v40  ;;  %v9499_v33 = vmax.f32 %v9497_v25, %v9498_v43  ;;  %v9504_v8 = vmax.f32 %v9502_v53, %v9503_v39  ;;  %v9508_v3 = vld [vmem:[#allocation87_spill] sm:$0xff]  ;;  %v9510_v63 = vld [vmem:[#allocation214_spill] sm:$0xff]  ;;  %v9512_v36 = vld [vmem:[#allocation32_spill] sm:$0xff]  ;;  %3991 = vst.msk [vmem:[%s8694_s5 + $0x8] sm:$0xff] %vm562_vm1, %v3927_v5 }
 0x409   :  { %v9506_v61 = vmax.f32 %v9391_v16, %v9505_v20  ;;  %v9509_v40 = vmax.f32 %v9507_v60, %v9508_v3  ;;  %v9511_v23 = vmax.f32 %v9392_v57, %v9510_v63  ;;  %v9513_v7 = vld [vmem:[#allocation88_spill] sm:$0xff]  ;;  %v9515_v43 = vld [vmem:[#allocation215_spill] sm:$0xff]  ;;  %v9517_v16 = vld [vmem:[#allocation33_spill] sm:$0xff]  ;;  %3992 = vst.msk [vmem:[%s8694_s5 + $0x10] sm:$0xff] %vm562_vm1, %v3928_v38 }
 0x40a   :  { %v3933_v49 = vmax.f32 %v9499_v33, %v9496_v29  ;;  %v3934_v59 = vmax.f32 %v9504_v8, %v9501_v22  ;;  %v9514_v29 = vmax.f32 %v9512_v36, %v9513_v7  ;;  %v9516_v33 = vmax.f32 %v9393_v11, %v9515_v43  ;;  %v9518_v0 = vld [vmem:[#allocation89_spill] sm:$0xff]  ;;  %v9520_v39 = vld [vmem:[#allocation216_spill] sm:$0xff]  ;;  %v9522_v20 = vld [vmem:[#allocation34_spill] sm:$0xff]  ;;  %3993 = vst.msk [vmem:[%s8694_s5 + $0x18] sm:$0xff] %vm562_vm1, %v3929_v42 }
 0x40b   :  { %v3935_v18 = vmax.f32 %v9509_v40, %v9506_v61  ;;  %v9519_v22 = vmax.f32 %v9517_v16, %v9518_v0  ;;  %v9521_v8 = vmax.f32 %v9394_v10, %v9520_v39  ;;  %v9523_v61 = vld [vmem:[#allocation90_spill] sm:$0xff]  ;;  %v9525_v57 = vld [vmem:[#allocation217_spill] sm:$0xff]  ;;  %v9527_v40 = vld [vmem:[#allocation35_spill] sm:$0xff]  ;;  %3994 = vst.msk [vmem:[%s8694_s5 + $0x20] sm:$0xff] %vm562_vm1, %v3930_v28 }
 0x40c   :  { %v3936_v25 = vmax.f32 %v9514_v29, %v9511_v23  ;;  %v9524_v55 = vmax.f32 %v9522_v20, %v9523_v61  ;;  %v9526_v3 = vmax.f32 %v9395_v21, %v9525_v57  ;;  %v9528_v63 = vld [vmem:[#allocation91_spill] sm:$0xff]  ;;  %v9530_v11 = vld [vmem:[#allocation218_spill] sm:$0xff]  ;;  %v9532_v10 = vld [vmem:[#allocation36_spill] sm:$0xff]  ;;  %3995 = vst.msk [vmem:[%s8694_s5 + $0x28] sm:$0xff] %vm562_vm1, %v3931_v2 }
 0x40d   :  { %v3937_v53 = vmax.f32 %v9519_v22, %v9516_v33  ;;  %v9529_v23 = vmax.f32 %v9527_v40, %v9528_v63  ;;  %v9531_v7 = vmax.f32 %v9396_v1, %v9530_v11  ;;  %v9533_v29 = vld [vmem:[#allocation92_spill] sm:$0xff]  ;;  %v9535_v16 = vld [vmem:[#allocation219_spill] sm:$0xff]  ;;  %v9537_v21 = vld [vmem:[#allocation37_spill] sm:$0xff]  ;;  %3996 = vst.msk [vmem:[%s8694_s5 + $0x30] sm:$0xff] %vm562_vm1, %v3932_v52 }
 0x40e   :  { %v3938_v60 = vmax.f32 %v9524_v55, %v9521_v8  ;;  %v9534_v43 = vmax.f32 %v9532_v10, %v9533_v29  ;;  %v9536_v0 = vmax.f32 %v9397_v26, %v9535_v16  ;;  %v9538_v22 = vld [vmem:[#allocation93_spill] sm:$0xff]  ;;  %v9540_v20 = vld [vmem:[#allocation220_spill] sm:$0xff]  ;;  %v9542_v55 = vld [vmem:[#allocation38_spill] sm:$0xff]  ;;  %3997 = vst.msk [vmem:[%s8694_s5 + $0x38] sm:$0xff] %vm562_vm1, %v3933_v49 }
 0x40f   :  { %v3939_v36 = vmax.f32 %v9529_v23, %v9526_v3  ;;  %v9539_v39 = vmax.f32 %v9537_v21, %v9538_v22  ;;  %v9541_v61 = vmax.f32 %v9398_v46, %v9540_v20  ;;  %v9543_v57 = vld [vmem:[#allocation94_spill] sm:$0xff]  ;;  %v9545_v1 = vld [vmem:[#allocation221_spill] sm:$0xff]  ;;  %v9547_v63 = vld [vmem:[#allocation39_spill] sm:$0xff]  ;;  %3998 = vst.msk [vmem:[%s8694_s5 + $0x40] sm:$0xff] %vm562_vm1, %v3934_v59 }
 0x410   :  { %v3940_v33 = vmax.f32 %v9534_v43, %v9531_v7  ;;  %v9544_v5 = vmax.f32 %v9542_v55, %v9543_v57  ;;  %v9546_v40 = vmax.f32 %v9399_v45, %v9545_v1  ;;  %v9548_v23 = vld [vmem:[#allocation95_spill] sm:$0xff]  ;;  %v9550_v26 = vld [vmem:[#allocation222_spill] sm:$0xff]  ;;  %v9552_v46 = vld [vmem:[#allocation40_spill] sm:$0xff]  ;;  %3999 = vst.msk [vmem:[%s8694_s5 + $0x48] sm:$0xff] %vm562_vm1, %v3935_v18 }
 0x411   :  { %v3941_v8 = vmax.f32 %v9539_v39, %v9536_v0  ;;  %v9549_v11 = vmax.f32 %v9547_v63, %v9548_v23  ;;  %v9551_v10 = vmax.f32 %v9400_v17, %v9550_v26  ;;  %v9553_v29 = vld [vmem:[#allocation96_spill] sm:$0xff]  ;;  %v9555_v0 = vld [vmem:[#allocation223_spill] sm:$0xff]  ;;  %v9557_v45 = vld [vmem:[#allocation41_spill] sm:$0xff]  ;;  %4000 = vst.msk [vmem:[%s8694_s5 + $0x50] sm:$0xff] %vm562_vm1, %v3936_v25 }
 0x412   :  { %v3942_v3 = vmax.f32 %v9544_v5, %v9541_v61  ;;  %v9554_v43 = vmax.f32 %v9552_v46, %v9553_v29  ;;  %v9556_v21 = vmax.f32 %v9401_v24, %v9555_v0  ;;  %v9558_v22 = vld [vmem:[#allocation97_spill] sm:$0xff]  ;;  %v9560_v61 = vld [vmem:[#allocation224_spill] sm:$0xff]  ;;  %v9562_v57 = vld [vmem:[#allocation42_spill] sm:$0xff]  ;;  %4001 = vst.msk [vmem:[%s8694_s5 + $0x58] sm:$0xff] %vm562_vm1, %v3937_v53 }
 0x413   :  { %v3943_v7 = vmax.f32 %v9549_v11, %v9546_v40  ;;  %v9559_v39 = vmax.f32 %v9557_v45, %v9558_v22  ;;  %v9561_v55 = vmax.f32 %v9402_v14, %v9560_v61  ;;  %v9563_v5 = vld [vmem:[#allocation98_spill] sm:$0xff]  ;;  %v9565_v17 = vld [vmem:[#allocation225_spill] sm:$0xff]  ;;  %v9567_v63 = vld [vmem:[#allocation43_spill] sm:$0xff]  ;;  %4002 = vst.msk [vmem:[%s8694_s5 + $0x60] sm:$0xff] %vm562_vm1, %v3938_v60 }
 0x414   :  { %v3944_v16 = vmax.f32 %v9554_v43, %v9551_v10  ;;  %v9564_v38 = vmax.f32 %v9562_v57, %v9563_v5  ;;  %v9566_v40 = vmax.f32 %v9403_v50, %v9565_v17  ;;  %v9568_v23 = vld [vmem:[#allocation99_spill] sm:$0xff]  ;;  %v9570_v24 = vld [vmem:[#allocation226_spill] sm:$0xff]  ;;  %v9572_v14 = vld [vmem:[#allocation44_spill] sm:$0xff]  ;;  %4003 = vst.msk [vmem:[%s8694_s5 + $0x68] sm:$0xff] %vm562_vm1, %v3939_v36 }
 0x415   :  { %v3945_v20 = vmax.f32 %v9559_v39, %v9556_v21  ;;  %v9569_v11 = vmax.f32 %v9567_v63, %v9568_v23  ;;  %v9571_v10 = vmax.f32 %v9404_v32, %v9570_v24  ;;  %v9573_v46 = vld [vmem:[#allocation100_spill] sm:$0xff]  ;;  %v9575_v0 = vld [vmem:[#allocation227_spill] sm:$0xff]  ;;  %v9577_v50 = vld [vmem:[#allocation45_spill] sm:$0xff]  ;;  %4004 = vst.msk [vmem:[%s8694_s5 + $0x70] sm:$0xff] %vm562_vm1, %v3940_v33 }
 0x416   :  { %v3946_v1 = vmax.f32 %v9564_v38, %v9561_v55  ;;  %v9574_v29 = vmax.f32 %v9572_v14, %v9573_v46  ;;  %v9576_v21 = vmax.f32 %v9405_v35, %v9575_v0  ;;  %v9578_v45 = vld [vmem:[#allocation101_spill] sm:$0xff]  ;;  %v9580_v61 = vld [vmem:[#allocation228_spill] sm:$0xff]  ;;  %v9582_v57 = vld [vmem:[#allocation46_spill] sm:$0xff]  ;;  %4005 = vst.msk [vmem:[%s8694_s5 + $0x78] sm:$0xff] %vm562_vm1, %v3941_v8 }
 0x417   :  { %v3947_v26 = vmax.f32 %v9569_v11, %v9566_v40  ;;  %v9579_v22 = vmax.f32 %v9577_v50, %v9578_v45  ;;  %v9581_v55 = vmax.f32 %v9406_v56, %v9580_v61  ;;  %v9583_v5 = vld [vmem:[#allocation102_spill] sm:$0xff]  ;;  %v9585_v32 = vld [vmem:[#allocation229_spill] sm:$0xff]  ;;  %v9587_v40 = vld [vmem:[#allocation47_spill] sm:$0xff]  ;;  %4006 = vst.msk [vmem:[%s8694_s5 + $0x80] sm:$0xff] %vm562_vm1, %v3942_v3 }
 0x418   :  { %v3948_v43 = vmax.f32 %v9574_v29, %v9571_v10  ;;  %v9584_v42 = vmax.f32 %v9582_v57, %v9583_v5  ;;  %v9586_v17 = vmax.f32 %v9407_v51, %v9585_v32  ;;  %v9588_v63 = vld [vmem:[#allocation103_spill] sm:$0xff]  ;;  %v9590_v35 = vld [vmem:[#allocation230_spill] sm:$0xff]  ;;  %v9592_v56 = vld [vmem:[#allocation48_spill] sm:$0xff]  ;;  %4007 = vst.msk [vmem:[%s8694_s5 + $0x88] sm:$0xff] %vm562_vm1, %v3943_v7 }
 0x419   :  { %v3949_v39 = vmax.f32 %v9579_v22, %v9576_v21  ;;  %v9589_v23 = vmax.f32 %v9587_v40, %v9588_v63  ;;  %v9591_v24 = vmax.f32 %v9408_v27, %v9590_v35  ;;  %v9593_v10 = vld [vmem:[#allocation104_spill] sm:$0xff]  ;;  %v9595_v29 = vld [vmem:[#allocation231_spill] sm:$0xff]  ;;  %v9597_v51 = vld [vmem:[#allocation49_spill] sm:$0xff]  ;;  %4008 = vst.msk [vmem:[%s8694_s5 + $0x90] sm:$0xff] %vm562_vm1, %v3944_v16 }
 0x41a   :  { %v3950_v38 = vmax.f32 %v9584_v42, %v9581_v55  ;;  %v9594_v14 = vmax.f32 %v9592_v56, %v9593_v10  ;;  %v9596_v0 = vmax.f32 %v9409_v12, %v9595_v29  ;;  %v9598_v21 = vld [vmem:[#allocation105_spill] sm:$0xff]  ;;  %v9600_v22 = vld [vmem:[#allocation232_spill] sm:$0xff]  ;;  %v9602_v55 = vld [vmem:[#allocation50_spill] sm:$0xff]  ;;  %4009 = vst.msk [vmem:[%s8694_s5 + $0x98] sm:$0xff] %vm562_vm1, %v3945_v20 }
 0x41b   :  { %v3951_v11 = vmax.f32 %v9589_v23, %v9586_v17  ;;  %v9599_v50 = vmax.f32 %v9597_v51, %v9598_v21  ;;  %v9601_v61 = vmax.f32 %v9410_v41, %v9600_v22  ;;  %v9603_v57 = vld [vmem:[#allocation106_spill] sm:$0xff]  ;;  %v9605_v27 = vld [vmem:[#allocation233_spill] sm:$0xff]  ;;  %v9607_v32 = vld [vmem:[#allocation51_spill] sm:$0xff]  ;;  %4010 = vst.msk [vmem:[%s8694_s5 + $0xa0] sm:$0xff] %vm562_vm1, %v3946_v1 }
 0x41c   :  { %v3952_v46 = vmax.f32 %v9594_v14, %v9591_v24  ;;  %v9604_v28 = vmax.f32 %v9602_v55, %v9603_v57  ;;  %v9606_v42 = vmax.f32 %v9411_v9, %v9605_v27  ;;  %v9608_v17 = vld [vmem:[#allocation107_spill] sm:$0xff]  ;;  %v9610_v12 = vld [vmem:[#allocation234_spill] sm:$0xff]  ;;  %v9612_v41 = vld [vmem:[#allocation52_spill] sm:$0xff]  ;;  %4011 = vst.msk [vmem:[%s8694_s5 + $0xa8] sm:$0xff] %vm562_vm1, %v3947_v26 }
 0x41d   :  { %v3953_v45 = vmax.f32 %v9599_v50, %v9596_v0  ;;  %v9609_v40 = vmax.f32 %v9607_v32, %v9608_v17  ;;  %v9611_v23 = vmax.f32 %v9412_v19, %v9610_v12  ;;  %v9613_v35 = vld [vmem:[#allocation108_spill] sm:$0xff]  ;;  %v9615_v10 = vld [vmem:[#allocation235_spill] sm:$0xff]  ;;  %v9617_v9 = vld [vmem:[#allocation53_spill] sm:$0xff]  ;;  %4012 = vst.msk [vmem:[%s8694_s5 + $0xb0] sm:$0xff] %vm562_vm1, %v3948_v43 }
 0x41e   :  { %v3954_v5 = vmax.f32 %v9604_v28, %v9601_v61  ;;  %v9614_v24 = vmax.f32 %v9612_v41, %v9613_v35  ;;  %v9616_v14 = vmax.f32 %v9413_v47, %v9615_v10  ;;  %v9618_v29 = vld [vmem:[#allocation109_spill] sm:$0xff]  ;;  %v9620_v21 = vld [vmem:[#allocation236_spill] sm:$0xff]  ;;  %v9622_v22 = vld [vmem:[#allocation54_spill] sm:$0xff]  ;;  %4013 = vst.msk [vmem:[%s8694_s5 + $0xb8] sm:$0xff] %vm562_vm1, %v3949_v39 }
 0x41f   :  { %v3955_v63 = vmax.f32 %v9609_v40, %v9606_v42  ;;  %v9619_v0 = vmax.f32 %v9617_v9, %v9618_v29  ;;  %v9621_v50 = vmax.f32 %v9414_v13, %v9620_v21  ;;  %v9623_v61 = vld [vmem:[#allocation110_spill] sm:$0xff]  ;;  %v9625_v57 = vld [vmem:[#allocation173_spill] sm:$0xff]  ;;  %v9628_v27 = vld [vmem:[#allocation55_spill] sm:$0xff]  ;;  %4014 = vst.msk [vmem:[%s8694_s5 + $0xc0] sm:$0xff] %vm562_vm1, %v3950_v38 }
 0x420   :  { %v3956_v56 = vmax.f32 %v9614_v24, %v9611_v23  ;;  %v9624_v2 = vmax.f32 %v9622_v22, %v9623_v61  ;;  %v9626_v19 = vld [vmem:[#allocation237_spill] sm:$0xff]  ;;  %v9629_v42 = vld [vmem:[#allocation111_spill] sm:$0xff]  ;;  %v9631_v47 = vld [vmem:[#allocation174_spill] sm:$0xff]  ;;  %4015 = vst.msk [vmem:[%s8694_s5 + $0xc8] sm:$0xff] %vm562_vm1, %v3951_v11 }
 0x421   :  { %v3957_v51 = vmax.f32 %v9619_v0, %v9616_v14  ;;  %v9627_v28 = vmax.f32 %v9625_v57, %v9626_v19  ;;  %v9630_v32 = vmax.f32 %v9628_v27, %v9629_v42  ;;  %v9632_v40 = vld [vmem:[#allocation238_spill] sm:$0xff]  ;;  %v9634_v13 = vld [vmem:[#allocation56_spill] sm:$0xff]  ;;  %v9637_v24 = vld [vmem:[#allocation175_spill] sm:$0xff]  ;;  %4016 = vst.msk [vmem:[%s8694_s5 + $0xd0] sm:$0xff] %vm562_vm1, %v3952_v46 }
 0x422   :  { %v3958_v55 = vmax.f32 %v9624_v2, %v9621_v50  ;;  %v9633_v12 = vmax.f32 %v9631_v47, %v9632_v40  ;;  %v9635_v23 = vld [vmem:[#allocation112_spill] sm:$0xff]  ;;  %v9638_v10 = vld [vmem:[#allocation239_spill] sm:$0xff]  ;;  %v9640_v9 = vld [vmem:[#allocation57_spill] sm:$0xff]  ;;  %4017 = vst.msk [vmem:[%s8694_s5 + $0xd8] sm:$0xff] %vm562_vm1, %v3953_v45 }
 0x423   :  { %v3959_v17 = vmax.f32 %v9630_v32, %v9627_v28  ;;  %v9636_v41 = vmax.f32 %v9634_v13, %v9635_v23  ;;  %v9639_v14 = vmax.f32 %v9637_v24, %v9638_v10  ;;  %v9641_v29 = vld [vmem:[#allocation113_spill] sm:$0xff]  ;;  %v9643_v50 = vld [vmem:[#allocation240_spill] sm:$0xff]  ;;  %v9645_v61 = vld [vmem:[#allocation58_spill] sm:$0xff]  ;;  %4018 = vst.msk [vmem:[%s8694_s5 + $0xe0] sm:$0xff] %vm562_vm1, %v3954_v5 }
 0x424   :  { %v9642_v0 = vmax.f32 %v9640_v9, %v9641_v29  ;;  %v9644_v22 = vmax.f32 %v9418_v15, %v9643_v50  ;;  %v9646_v2 = vld [vmem:[#allocation114_spill] sm:$0xff]  ;;  %v9648_v19 = vld [vmem:[#allocation241_spill] sm:$0xff]  ;;  %v9650_v27 = vld [vmem:[#allocation59_spill] sm:$0xff]  ;;  %4019 = vst.msk [vmem:[%s8694_s5 + $0xe8] sm:$0xff] %vm562_vm1, %v3955_v63 }
 0x425   :  { %v3960_v35 = vmax.f32 %v9636_v41, %v9633_v12  ;;  %v9647_v52 = vmax.f32 %v9645_v61, %v9646_v2  ;;  %v9649_v28 = vmax.f32 %v9419_v6, %v9648_v19  ;;  %v9651_v42 = vld [vmem:[#allocation115_spill] sm:$0xff]  ;;  %v9653_v40 = vld [vmem:[#allocation178_spill] sm:$0xff]  ;;  %v9656_v15 = vld [vmem:[#allocation60_spill] sm:$0xff]  ;;  %4020 = vst.msk [vmem:[%s8694_s5 + $0xf0] sm:$0xff] %vm562_vm1, %v3956_v56 }
 0x426   :  { %v3961_v21 = vmax.f32 %v9642_v0, %v9639_v14  ;;  %v9652_v32 = vmax.f32 %v9650_v27, %v9651_v42  ;;  %v9654_v12 = vld [vmem:[#allocation242_spill] sm:$0xff]  ;;  %v9657_v23 = vld [vmem:[#allocation116_spill] sm:$0xff]  ;;  %v9659_v10 = vld [vmem:[#allocation179_spill] sm:$0xff]  ;;  %4021 = vst.msk [vmem:[%s8694_s5 + $0xf8] sm:$0xff] %vm562_vm1, %v3957_v51 }
 0x427   :  { %v3962_v57 = vmax.f32 %v9647_v52, %v9644_v22  ;;  %v9655_v13 = vmax.f32 %v9653_v40, %v9654_v12  ;;  %v9658_v41 = vmax.f32 %v9656_v15, %v9657_v23  ;;  %v9660_v14 = vld [vmem:[#allocation243_spill] sm:$0xff]  ;;  %v9662_v6 = vld [vmem:[#allocation61_spill] sm:$0xff]  ;;  %v9665_v22 = vld [vmem:[#allocation244_spill] sm:$0xff]  ;;  %4022 = vst.msk [vmem:[%s8694_s5 + $0x100] sm:$0xff] %vm562_vm1, %v3958_v55 }
 0x428   :  { %v3963_v47 = vmax.f32 %v9652_v32, %v9649_v28  ;;  %v9661_v9 = vmax.f32 %v9659_v10, %v9660_v14  ;;  %v9663_v29 = vld [vmem:[#allocation117_spill] sm:$0xff]  ;;  %v9666_v61 = vmax.f32 %v9422_v54, %v9665_v22  ;;  %v9667_v2 = vld [vmem:[#allocation62_spill] sm:$0xff]  ;;  %v9672_v42 = vld [vmem:[#allocation4_spill] sm:$0xff]  ;;  %4023 = vst.msk [vmem:[%s8694_s5 + $0x108] sm:$0xff] %vm562_vm1, %v3959_v17 }
 0x429   :  { %v3964_v24 = vmax.f32 %v9658_v41, %v9655_v13  ;;  %v9664_v0 = vmax.f32 %v9662_v6, %v9663_v29  ;;  %v9668_v52 = vld [vmem:[#allocation118_spill] sm:$0xff]  ;;  %v9670_v28 = vld [vmem:[#allocation245_spill] sm:$0xff]  ;;  %v9673_v32 = vld [vmem:[#allocation119_spill] sm:$0xff]  ;;  %4024 = vst.msk [vmem:[%s8694_s5 + $0x110] sm:$0xff] %vm562_vm1, %v3960_v35 }
 0x42a   :  { %v9669_v49 = vmax.f32 %v9667_v2, %v9668_v52  ;;  %v9671_v27 = vmax.f32 %v9424_v4, %v9670_v28  ;;  %v9674_v40 = vmax.f32 %v9672_v42, %v9673_v32  ;;  %v9675_v13 = vld [vmem:[#allocation246_spill] sm:$0xff]  ;;  %v9677_v54 = vld [vmem:[#allocation5_spill] sm:$0xff]  ;;  %v9678_v23 = vld [vmem:[#allocation120_spill] sm:$0xff]  ;;  %4025 = vst.msk [vmem:[%s8694_s5 + $0x118] sm:$0xff] %vm562_vm1, %v3961_v21 }
 0x42b   :  { %v3965_v50 = vmax.f32 %v9664_v0, %v9661_v9  ;;  %v9676_v15 = vmax.f32 %v9426_v30, %v9675_v13  ;;  %v9679_v41 = vmax.f32 %v9677_v54, %v9678_v23  ;;  %v9680_v14 = vld [vmem:[#allocation183_spill] sm:$0xff]  ;;  %v9683_v4 = vld [vmem:[#allocation6_spill] sm:$0xff]  ;;  %v9684_v29 = vld [vmem:[#allocation69_spill] sm:$0xff]  ;;  %4026 = vst.msk [vmem:[%s8694_s5 + $0x120] sm:$0xff] %vm562_vm1, %v3962_v57 }
 0x42c   :  { %v3966_v19 = vmax.f32 %v9669_v49, %v9666_v61  ;;  %v3967_v12 = vmax.f32 %v9674_v40, %v9671_v27  ;;  %v9681_v9 = vld [vmem:[#allocation195_spill] sm:$0xff]  ;;  %v9685_v0 = vmax.f32 %v9683_v4, %v9684_v29  ;;  %v9686_v61 = vld [vmem:[#allocation196_spill] sm:$0xff]  ;;  %v9689_v49 = vld [vmem:[#allocation70_spill] sm:$0xff]  ;;  %4027 = vst.msk [vmem:[%s8694_s5 + $0x128] sm:$0xff] %vm562_vm1, %v3963_v47 }
 0x42d   :  { %v3968_v10 = vmax.f32 %v9679_v41, %v9676_v15  ;;  %v9682_v6 = vmax.f32 %v9680_v14, %v9681_v9  ;;  %v9687_v2 = vmax.f32 %v9429_v44, %v9686_v61  ;;  %v9688_v52 = vld [vmem:[#allocation7_spill] sm:$0xff]  ;;  %v9691_v30 = vld [vmem:[#allocation197_spill] sm:$0xff]  ;;  %v9693_v42 = vld [vmem:[#allocation8_spill] sm:$0xff]  ;;  %4028 = vst.msk [vmem:[%s8694_s5 + $0x130] sm:$0xff] %vm562_vm1, %v3964_v24 }
 0x42e   :  { %v9690_v59 = vmax.f32 %v9688_v52, %v9689_v49  ;;  %v9692_v27 = vmax.f32 %v9430_v62, %v9691_v30  ;;  %v9694_v32 = vld [vmem:[#allocation71_spill] sm:$0xff]  ;;  %v9698_v44 = vld [vmem:[#allocation9_spill] sm:$0xff]  ;;  %v9701_v9 = vld [vmem:[#allocation134_spill] sm:$0xff]  ;;  %4029 = vst.msk [vmem:[%s8694_s5 + $0x138] sm:$0xff] %vm562_vm1, %v3965_v50 }
 0x42f   :  { %v3969_v22 = vmax.f32 %v9685_v0, %v9682_v6  ;;  %v9695_v40 = vmax.f32 %v9693_v42, %v9694_v32  ;;  %v9696_v15 = vld [vmem:[#allocation247_spill] sm:$0xff]  ;;  %v9699_v23 = vld [vmem:[#allocation121_spill] sm:$0xff]  ;;  %v9702_v6 = vld [vmem:[#allocation198_spill] sm:$0xff]  ;;  %4030 = vst.msk [vmem:[%s8694_s5 + $0x140] sm:$0xff] %vm562_vm1, %v3966_v19 }
 0x430   :  { %v3970_v28 = vmax.f32 %v9690_v59, %v9687_v2  ;;  %v9697_v54 = vmax.f32 %v9432_v58, %v9696_v15  ;;  %v9700_v41 = vmax.f32 %v9698_v44, %v9699_v23  ;;  %v9703_v4 = vmax.f32 %v9701_v9, %v9702_v6  ;;  %v9704_v62 = vld [vmem:[#allocation63_spill] sm:$0xff]  ;;  %v9705_v29 = vld [vmem:[#allocation72_spill] sm:$0xff]  ;;  %v9710_v59 = vld [vmem:[#allocation10_spill] sm:$0xff]  ;;  %4031 = vst.msk [vmem:[%s8694_s5 + $0x148] sm:$0xff] %vm562_vm1, %v3967_v12 }
 0x431   :  { %v3971_v13 = vmax.f32 %v9695_v40, %v9692_v27  ;;  %v9706_v0 = vmax.f32 %v9704_v62, %v9705_v29  ;;  %v9707_v2 = vld [vmem:[#allocation135_spill] sm:$0xff]  ;;  %v9711_v30 = vld [vmem:[#allocation73_spill] sm:$0xff]  ;;  %v9713_v42 = vld [vmem:[#allocation136_spill] sm:$0xff]  ;;  %4032 = vst.msk [vmem:[%s8694_s5 + $0x150] sm:$0xff] %vm562_vm1, %v3968_v10 }
 0x432   :  { %v3972_v14 = vmax.f32 %v9700_v41, %v9697_v54  ;;  %v9708_v52 = vld [vmem:[#allocation199_spill] sm:$0xff]  ;;  %v9712_v18 = vmax.f32 %v9710_v59, %v9711_v30  ;;  %v9714_v58 = vld [vmem:[#allocation200_spill] sm:$0xff]  ;;  %v9717_v15 = vld [vmem:[#allocation74_spill] sm:$0xff]  ;;  %4033 = vst.msk [vmem:[%s8694_s5 + $0x158] sm:$0xff] %vm562_vm1, %v3969_v22 }
 0x433   :  { %v3973_v61 = vmax.f32 %v9706_v0, %v9703_v4  ;;  %v9709_v49 = vmax.f32 %v9707_v2, %v9708_v52  ;;  %v9715_v32 = vmax.f32 %v9713_v42, %v9714_v58  ;;  %v9716_v40 = vld [vmem:[#allocation11_spill] sm:$0xff]  ;;  %v9719_v23 = vld [vmem:[#allocation185_spill] sm:$0xff]  ;;  %v9720_v41 = vld [vmem:[#allocation248_spill] sm:$0xff]  ;;  %4034 = vst.msk [vmem:[%s8694_s5 + $0x160] sm:$0xff] %vm562_vm1, %v3970_v28 }
 0x434   :  { %v9718_v54 = vmax.f32 %v9716_v40, %v9717_v15  ;;  %v9721_v9 = vmax.f32 %v9719_v23, %v9720_v41  ;;  %v9722_v6 = vld [vmem:[#allocation12_spill] sm:$0xff]  ;;  %v9723_v4 = vld [vmem:[#allocation122_spill] sm:$0xff]  ;;  %v9726_v2 = vld [vmem:[#allocation249_spill] sm:$0xff]  ;;  %4035 = vst.msk [vmem:[%s8694_s5 + $0x168] sm:$0xff] %vm562_vm1, %v3971_v13 }
 0x435   :  { %v3974_v27 = vmax.f32 %v9712_v18, %v9709_v49  ;;  %v9724_v62 = vmax.f32 %v9722_v6, %v9723_v4  ;;  %v9725_v0 = vld [vmem:[#allocation186_spill] sm:$0xff]  ;;  %v9728_v49 = vld [vmem:[#allocation64_spill] sm:$0xff]  ;;  %v9729_v59 = vld [vmem:[#allocation123_spill] sm:$0xff]  ;;  %4036 = vst.msk [vmem:[%s8694_s5 + $0x170] sm:$0xff] %vm562_vm1, %v3972_v14 }
 0x436   :  { %v3975_v44 = vmax.f32 %v9718_v54, %v9715_v32  ;;  %v9727_v52 = vmax.f32 %v9725_v0, %v9726_v2  ;;  %v9730_v30 = vmax.f32 %v9728_v49, %v9729_v59  ;;  %v9731_v42 = vld [vmem:[#allocation137_spill] sm:$0xff]  ;;  %v9735_v15 = vld [vmem:[#allocation75_spill] sm:$0xff]  ;;  %v9738_v23 = vld [vmem:[#allocation202_spill] sm:$0xff]  ;;  %4037 = vst.msk [vmem:[%s8694_s5 + $0x178] sm:$0xff] %vm562_vm1, %v3973_v61 }
 0x437   :  { %v3976_v29 = vmax.f32 %v9724_v62, %v9721_v9  ;;  %v9732_v58 = vld [vmem:[#allocation201_spill] sm:$0xff]  ;;  %v9739_v41 = vmax.f32 %v9737_v37, %v9738_v23  ;;  %v9741_v6 = vld [vmem:[#allocation76_spill] sm:$0xff]  ;;  %v9743_v62 = vld [vmem:[#allocation187_spill] sm:$0xff]  ;;  %4038 = vst.msk [vmem:[%s8694_s5 + $0x180] sm:$0xff] %vm562_vm1, %v3974_v27 }
 0x438   :  { %v3977_v18 = vmax.f32 %v9730_v30, %v9727_v52  ;;  %v9733_v32 = vmax.f32 %v9731_v42, %v9732_v58  ;;  %v9734_v40 = vld [vmem:[#allocation13_spill] sm:$0xff]  ;;  %v9742_v9 = vmax.f32 %v9740_v31, %v9741_v6  ;;  %v9744_v0 = vld [vmem:[#allocation250_spill] sm:$0xff]  ;;  %v9746_v52 = vld [vmem:[#allocation15_spill] sm:$0xff]  ;;  %4039 = vst.msk [vmem:[%s8694_s5 + $0x188] sm:$0xff] %vm562_vm1, %v3975_v44 }
 0x439   :  { %v9736_v25 = vmax.f32 %v9734_v40, %v9735_v15  ;;  %v9745_v2 = vmax.f32 %v9743_v62, %v9744_v0  ;;  %v9747_v49 = vld [vmem:[#allocation124_spill] sm:$0xff]  ;;  %v9749_v42 = vld [vmem:[#allocation251_spill] sm:$0xff]  ;;  %v9751_v37 = vld [vmem:[#allocation65_spill] sm:$0xff]  ;;  %4040 = vst.msk [vmem:[%s8694_s5 + $0x190] sm:$0xff] %vm562_vm1, %v3976_v29 }
 0x43a   :  { %v3979_v4 = vmax.f32 %v9742_v9, %v9739_v41  ;;  %v9748_v59 = vmax.f32 %v9746_v52, %v9747_v49  ;;  %v9750_v58 = vmax.f32 %v9444_v48, %v9749_v42  ;;  %v9754_v15 = vld [vmem:[#allocation252_spill] sm:$0xff]  ;;  %v9757_v41 = vld [vmem:[#allocation126_spill] sm:$0xff]  ;;  %v9760_v62 = vld [vmem:[#allocation203_spill] sm:$0xff]  ;;  %4041 = vst.msk [vmem:[%s8694_s5 + $0x198] sm:$0xff] %vm562_vm1, %v3977_v18 }
 0x43b   :  { %v3978_v54 = vmax.f32 %v9736_v25, %v9733_v32  ;;  %v9752_v32 = vld [vmem:[#allocation125_spill] sm:$0xff]  ;;  %v9755_v25 = vmax.f32 %v9446_v34, %v9754_v15  ;;  %v9756_v23 = vld [vmem:[#allocation16_spill] sm:$0xff]  ;;  %v9768_v34 = vld [vmem:[#allocation18_spill] sm:$0xff] }
 0x43c   :  { %v3980_v30 = vmax.f32 %v9748_v59, %v9745_v2  ;;  %v9753_v40 = vmax.f32 %v9751_v37, %v9752_v32  ;;  %v9758_v53 = vmax.f32 %v9756_v23, %v9757_v41  ;;  %v9759_v9 = vld [vmem:[#allocation140_spill] sm:$0xff]  ;;  %v9762_v49 = vld [vmem:[#allocation17_spill] sm:$0xff]  ;;  %v9769_v37 = vld [vmem:[#allocation127_spill] sm:$0xff]  ;;  %4043 = vst.msk [vmem:[%s8694_s5 + $0x1a8] sm:$0xff] %vm562_vm1, %v3979_v4 }
 0x43d   :  { %v9761_v0 = vmax.f32 %v9759_v9, %v9760_v62  ;;  %v9763_v52 = vld [vmem:[#allocation77_spill] sm:$0xff]  ;;  %v9770_v32 = vmax.f32 %v9768_v34, %v9769_v37  ;;  %v9771_v15 = vld [vmem:[#allocation190_spill] sm:$0xff]  ;;  %v9783_v34 = vld [vmem:[#allocation192_spill] sm:$0xff]  ;;  %4042 = vst.msk [vmem:[%s8694_s5 + $0x1a0] sm:$0xff] %vm562_vm1, %v3978_v54 }
 0x43e   :  { %v3981_v31 = vmax.f32 %v9753_v40, %v9750_v58  ;;  %v3982_v6 = vmax.f32 %v9758_v53, %v9755_v25  ;;  %v9764_v2 = vmax.f32 %v9762_v49, %v9763_v52  ;;  %v9765_v48 = vld [vmem:[#allocation189_spill] sm:$0xff]  ;;  %v9772_v25 = vld [vmem:[#allocation254_spill] sm:$0xff]  ;;  %v9775_v53 = vld [vmem:[#allocation128_spill] sm:$0xff]  ;;  %4044 = vst.msk [vmem:[%s8694_s5 + $0x1b0] sm:$0xff] %vm562_vm1, %v3980_v30 }
 0x43f   :  { %v9766_v42 = vld [vmem:[#allocation253_spill] sm:$0xff]  ;;  %v9773_v23 = vmax.f32 %v9771_v15, %v9772_v25  ;;  %v9774_v41 = vld [vmem:[#allocation66_spill] sm:$0xff]  ;;  %v9778_v49 = vld [vmem:[#allocation255_spill] sm:$0xff] }
 0x440   :  { %v3983_v59 = vmax.f32 %v9764_v2, %v9761_v0  ;;  %v9767_v58 = vmax.f32 %v9765_v48, %v9766_v42  ;;  %v9776_v9 = vmax.f32 %v9774_v41, %v9775_v53  ;;  %v9777_v0 = vld [vmem:[#allocation191_spill] sm:$0xff]  ;;  %v9781_v60 = vld [vmem:[#allocation129_spill] sm:$0xff]  ;;  %v9784_v37 = vld [vmem:[#allocation256_spill] sm:$0xff]  ;;  %4045 = vst.msk [vmem:[%s8694_s5 + $0x1b8] sm:$0xff] %vm562_vm1, %v3981_v31 }
 0x441   :  { %v9779_v52 = vmax.f32 %v9777_v0, %v9778_v49  ;;  %v9780_v2 = vld [vmem:[#allocation67_spill] sm:$0xff]  ;;  %v9787_v15 = vld [vmem:[#allocation130_spill] sm:$0xff]  ;;  %v9790_v53 = vld [vmem:[#allocation257_spill] sm:$0xff]  ;;  %4046 = vst.msk [vmem:[%s8694_s5 + $0x1c0] sm:$0xff] %vm562_vm1, %v3982_v6 }
 0x442   :  { %v3984_v40 = vmax.f32 %v9770_v32, %v9767_v58  ;;  %v3985_v62 = vmax.f32 %v9776_v9, %v9773_v23  ;;  %v9782_v42 = vmax.f32 %v9780_v2, %v9781_v60  ;;  %v9785_v32 = vmax.f32 %v9783_v34, %v9784_v37  ;;  %v9786_v58 = vld [vmem:[#allocation68_spill] sm:$0xff]  ;;  %v9789_v23 = vld [vmem:[#allocation193_spill] sm:$0xff]  ;;  %v9792_v0 = vld [vmem:[#allocation19_spill] sm:$0xff]  ;;  %4047 = vst.msk [vmem:[%s8694_s5 + $0x1c8] sm:$0xff] %vm562_vm1, %v3983_v59 }
 0x443   :  { %v9788_v25 = vmax.f32 %v9786_v58, %v9787_v15  ;;  %v9791_v9 = vmax.f32 %v9789_v23, %v9790_v53  ;;  %v9793_v49 = vld [vmem:[#allocation131_spill] sm:$0xff]  ;;  %v9798_v37 = vld [vmem:[#allocation20_spill] sm:$0xff] }
 0x444   :  { %v3986_v48 = vmax.f32 %v9782_v42, %v9779_v52  ;;  %v9794_v2 = vmax.f32 %v9792_v0, %v9793_v49  ;;  %v9795_v52 = vld [vmem:[#allocation194_spill] sm:$0xff]  ;;  %v9799_v15 = vld [vmem:[#allocation132_spill] sm:$0xff]  ;;  %4048 = vst.msk [vmem:[%s8694_s5 + $0x1d0] sm:$0xff] %vm562_vm1, %v3984_v40 }
 0x445   :  { %v3987_v41 = vmax.f32 %v9788_v25, %v9785_v32  ;;  %v9796_v42 = vld [vmem:[#allocation258_spill] sm:$0xff]  ;;  %v9800_v58 = vmax.f32 %v9798_v37, %v9799_v15  ;;  %4049 = vst.msk [vmem:[%s8694_s5 + $0x1d8] sm:$0xff] %vm562_vm1, %v3985_v62 }
 0x446   :  { %v3988_v60 = vmax.f32 %v9794_v2, %v9791_v9  ;;  %v9797_v34 = vmax.f32 %v9795_v52, %v9796_v42  ;;  %4050 = vst.msk [vmem:[%s8694_s5 + $0x1e0] sm:$0xff] %vm562_vm1, %v3986_v48 }
 0x447   :  { %4051 = vst.msk [vmem:[%s8694_s5 + $0x1e8] sm:$0xff] %vm562_vm1, %v3987_v41 }
 0x448   :  { %v3989_v25 = vmax.f32 %v9800_v58, %v9797_v34  ;;  %4052 = vst.msk [vmem:[%s8694_s5 + $0x1f0] sm:$0xff] %vm562_vm1, %v3988_v60 }
 0x44a   :  { %4053 = vst.msk [vmem:[%s8694_s5 + $0x1f8] sm:$0xff] %vm562_vm1, %v3989_v25 }

</bundles_post_ra>
